<compile_context>
chip_gen: v7x
topology: tpu7x:2x2x1
jax: 0.10.0
libtpu: 0.0.40
codegen_flags: <defaults>
</compile_context>

<pallas_src>
import jax
import jax.numpy as jnp
from jax import lax
from jax.experimental import pallas as pl
from jax.experimental.pallas import tpu as pltpu

NUM_CLASSES = 7            # self.num_classes
SWAP = 7 * 7               # self.swap_num[0]**2 -> Convmask out channels
CHANNEL_NUM = 512          # resnet18/34 trunk  -> self.channel_num = 512
OUT_PAD = 128              # lane-dense fused output width (>= 49 + 7 + 2)

# Column layout of the fused head output slab.
MASK_LO, MASK_HI = 0, SWAP                        # mask            -> lanes [0, 49)
CLS_LO, CLS_HI = SWAP, SWAP + NUM_CLASSES         # classifier      -> lanes [49, 56)
SWP_LO, SWP_HI = CLS_HI, CLS_HI + 2               # classifier_swap -> lanes [56, 58)

TB_CAP = 32                # batch tile cap: 2 x 8 MiB x-tile + weights < 32 MiB VMEM


def head_kernel(x_ref, coef_ref, w_all_ref, b_all_ref, sel_ref, out_ref,
                m_sc, s_sc):
    tb, c, hw = x_ref.shape                          # block: (tb, C, HW), C on sublanes
    inv_hw = 1.0 / hw

    # --- spatial pools: single streaming pass over channel chunks -----------
    # Each chunk is read from VMEM once and feeds both the max (AdaptiveMaxPool)
    # and the sum (-> AdaptiveAvgPool); partial results land in (tb, C) scratch
    # at 128-aligned lane offsets, so nothing big stays live across chunks.
    cc = 128 if c % 128 == 0 else c
    for k in range(c // cc):
        off = k * cc                                 # static, lane-tile aligned
        chunk = x_ref[:, pl.ds(off, cc), :]          # (tb, cc, HW)
        m_sc[:, pl.ds(off, cc)] = jnp.max(chunk, axis=-1)
        s_sc[:, pl.ds(off, cc)] = jnp.sum(chunk, axis=-1)
    m = m_sc[...]                                    # (tb, C)  C on lanes
    s = s_sc[...]                                    # (tb, C)

    # --- eca_layer: Conv1d(1,1,3,pad=1,bias=False) over channels + sigmoid --
    # coef rows already carry the conv taps with the zero-pad edge masks folded
    # in: coef[0] = w0*[0,1,...,1], coef[1] = w1, coef[2] = w2*[1,...,1,0].
    m_lft = pltpu.roll(m, shift=1, axis=1)           # lane c holds m[:, c-1] (wrap at 0)
    m_rgt = pltpu.roll(m, shift=c - 1, axis=1)       # lane c holds m[:, c+1] (wrap at C-1)
    att = jax.nn.sigmoid(m_lft * coef_ref[0:1, :]
                         + m * coef_ref[1:2, :]
                         + m_rgt * coef_ref[2:3, :])  # (tb, C)

    # --- attended global average pool, without materializing x*att ----------
    pooled = (s * inv_hw) * att                      # == mean_HW(x * att[:,None,:])

    # --- fused head: [Convmask | classifier | classifier_swap] in one GEMM --
    y = jnp.dot(pooled, w_all_ref[...],
                preferred_element_type=jnp.float32) + b_all_ref[...]   # (tb, 128)
    sel = sel_ref[...]                               # 1.0 on mask columns, else 0.0
    out_ref[...] = y + sel * (jnp.tanh(y) - y)       # tanh applied only to mask cols


def pack_params(params, channel_num=CHANNEL_NUM):
    """Repack PyTorch-layout parameters into the fused kernel layout.

    Call ONCE at init (outside the per-call jitted path)."""
    c = channel_num
    w_eca = params["eca_conv_w"].reshape(3).astype(jnp.float32)
    left = jnp.ones((c,), jnp.float32).at[0].set(0.0)       # zero-pad at the c-1 edge
    right = jnp.ones((c,), jnp.float32).at[c - 1].set(0.0)  # zero-pad at the c+1 edge
    coef = jnp.stack([w_eca[0] * left,
                      jnp.full((c,), w_eca[1], jnp.float32),
                      w_eca[2] * right])                    # (3, C)

    w_mask = params["convmask_w"].reshape(SWAP, c).T        # (C, 49)
    w_cls = params["classifier_w"].T                        # (C, 7)
    w_swap = params["classifier_swap_w"].T                  # (C, 2)
    w_all = jnp.zeros((c, OUT_PAD), jnp.float32)
    w_all = w_all.at[:, MASK_LO:MASK_HI].set(w_mask)
    w_all = w_all.at[:, CLS_LO:CLS_HI].set(w_cls)
    w_all = w_all.at[:, SWP_LO:SWP_HI].set(w_swap)

    b_all = jnp.zeros((1, OUT_PAD), jnp.float32)
    b_all = b_all.at[0, MASK_LO:MASK_HI].set(params["convmask_b"])
    sel = jnp.zeros((1, OUT_PAD), jnp.float32).at[0, MASK_LO:MASK_HI].set(1.0)
    return coef, w_all, b_all, sel


def _pick_tb(batch):
    """Batch tile: >=2 grid steps when possible (v7x 2-TC sharding), capped so the
    double-buffered x tile stays within a 32 MiB scoped-VMEM budget everywhere."""
    if batch <= 8:
        return batch                                  # single exact block
    half = pl.cdiv(batch, 2)
    return min(TB_CAP, 8 * pl.cdiv(half, 8))


@jax.jit
def main_model_head(feat_nchw, packed):
    """Post-backbone part of MainModel.forward; feat in PyTorch NCHW layout."""
    coef, w_all, b_all, sel = packed
    B, C, H, W = feat_nchw.shape
    HW = H * W
    # Free, contiguous reshape (no HBM round trip): NCHW is already (B, C, H*W).
    x = feat_nchw.reshape(B, C, HW)

    tb = _pick_tb(B)
    grid = (pl.cdiv(B, tb),)

    cost = pl.CostEstimate(
        flops=2 * B * HW * C + 2 * B * C * OUT_PAD + 8 * B * C,
        transcendentals=B * C + B * OUT_PAD,
        bytes_accessed=4 * (B * HW * C + C * OUT_PAD + B * OUT_PAD + 3 * C + 2 * OUT_PAD),
    )

    slab = pl.pallas_call(
        head_kernel,
        out_shape=jax.ShapeDtypeStruct((B, OUT_PAD), jnp.float32),
        grid=grid,
        in_specs=[
            pl.BlockSpec((tb, C, HW), lambda b: (b, 0, 0)),      # feature map
            pl.BlockSpec((3, C), lambda b: (0, 0)),              # eca coef (taps*masks)
            pl.BlockSpec((C, OUT_PAD), lambda b: (0, 0)),        # fused head weight
            pl.BlockSpec((1, OUT_PAD), lambda b: (0, 0)),        # fused bias
            pl.BlockSpec((1, OUT_PAD), lambda b: (0, 0)),        # tanh column selector
        ],
        out_specs=pl.BlockSpec((tb, OUT_PAD), lambda b: (b, 0)),
        scratch_shapes=[pltpu.VMEM((tb, C), jnp.float32),        # max-pool accumulator
                        pltpu.VMEM((tb, C), jnp.float32)],       # sum-pool accumulator
        compiler_params=pltpu.CompilerParams(
            dimension_semantics=("parallel",),
            vmem_limit_bytes=32 * 1024 * 1024,
        ),
        cost_estimate=cost,
    )(x, coef, w_all, b_all, sel)

    out_cls = slab[:, CLS_LO:CLS_HI]
    out_swap = slab[:, SWP_LO:SWP_HI]
    mask = slab[:, MASK_LO:MASK_HI]
    return [out_cls, out_swap, mask]                # forward() return order


def init_params(key, channel_num=CHANNEL_NUM):
    """Parameters in PyTorch layouts (Conv/Linear weight conventions)."""
    k1, k2, k3, k4, k5 = jax.random.split(key, 5)
    return {
        # eca_layer.conv: Conv1d(1, 1, k=3, bias=False) -> weight (1, 1, 3)
        "eca_conv_w": jax.random.normal(k1, (1, 1, 3), jnp.float32) * 0.5,
        # Convmask: Conv2d(C, 49, 1, bias=True) -> weight (49, C, 1, 1), bias (49,)
        "convmask_w": jax.random.normal(k2, (SWAP, channel_num, 1, 1), jnp.float32) * 0.05,
        "convmask_b": jax.random.normal(k3, (SWAP,), jnp.float32) * 0.05,
        # classifier: Linear(C, 7, bias=False) -> weight (7, C)
        "classifier_w": jax.random.normal(k4, (NUM_CLASSES, channel_num), jnp.float32) * 0.05,
        # classifier_swap: Linear(C, 2, bias=False) -> weight (2, C)
        "classifier_swap_w": jax.random.normal(k5, (2, channel_num), jnp.float32) * 0.05,
    }


def reference_head(feat_nchw, params):
    """Pure-JAX reference of the post-backbone part of MainModel.forward."""
    B, C, H, W = feat_nchw.shape
    x = feat_nchw.reshape(B, C, H * W)                        # (B, C, HW)
    # eca_layer(pool='max')
    m = jnp.max(x, axis=2)                                    # (B, C)
    w = params["eca_conv_w"].reshape(3)
    mp = jnp.pad(m, ((0, 0), (1, 1)))
    y = w[0] * mp[:, 0:C] + w[1] * mp[:, 1:C + 1] + w[2] * mp[:, 2:C + 2]
    att = jax.nn.sigmoid(y)
    x_att = x * att[:, :, None]
    # DCL mask branch: Convmask -> avgpool2 -> tanh -> view
    wm = params["convmask_w"].reshape(SWAP, C)
    mask_map = jnp.einsum("oc,bcp->bop", wm, x_att,
                          precision=lax.Precision.HIGHEST)
    mask_map = mask_map + params["convmask_b"][None, :, None]
    mask = jnp.tanh(jnp.mean(mask_map, axis=2))
    # avgpool -> classifiers
    pooled = jnp.mean(x_att, axis=2)
    cls = jnp.dot(pooled, params["classifier_w"].T, precision=lax.Precision.HIGHEST)
    swap = jnp.dot(pooled, params["classifier_swap_w"].T, precision=lax.Precision.HIGHEST)
    return [cls, swap, mask]


if __name__ == "__main__":
    key = jax.random.PRNGKey(0)
    kx, kp = jax.random.split(key)

    params = init_params(kp, CHANNEL_NUM)
    packed = pack_params(params, CHANNEL_NUM)       # packed ONCE, outside the jit

    # resnet18 trunk output for a 224x224 image is (B, 512, 7, 7).
    # B=12 exercises a 2-step grid with a partial (masked) last batch tile and
    # validates that the padded 49-lane reductions never leak pad values.
    H, W = 7, 7
    for B in (2, 12):
        feat = jax.random.normal(jax.random.fold_in(kx, B),
                                 (B, CHANNEL_NUM, H, W), jnp.float32)
        out = main_model_head(feat, packed)
        jax.block_until_ready(out)

        assert out[0].shape == (B, NUM_CLASSES)
        assert out[1].shape == (B, 2)
        assert out[2].shape == (B, SWAP)

        ref = reference_head(feat, params)
        for got, want in zip(out, ref):
            err = float(jnp.max(jnp.abs(got - want)))
            assert jnp.allclose(got, want, atol=2e-3, rtol=2e-3), err

    print("KERNEL_OK")
</pallas_src>

<mosaic_0001>
module attributes {stable_mosaic.version = 11 : i64} {
  func.func @head_kernel(%arg0: i32, %arg1: memref<2x512x49xf32, #tpu.memory_space<vmem>>, %arg2: memref<3x512xf32, #tpu.memory_space<vmem>>, %arg3: memref<512x128xf32, #tpu.memory_space<vmem>>, %arg4: memref<1x128xf32, #tpu.memory_space<vmem>>, %arg5: memref<1x128xf32, #tpu.memory_space<vmem>>, %arg6: memref<2x128xf32, #tpu.memory_space<vmem>>, %arg7: memref<2x512xf32, #tpu.memory_space<vmem>>, %arg8: memref<2x512xf32, #tpu.memory_space<vmem>>) attributes {dimension_semantics = [#tpu.dimension_semantics<parallel>], iteration_bounds = array<i64: 1>, scalar_prefetch = 0 : i64, scratch_operands = 2 : i64, tpu.core_type = #tpu.core_type<tc>, window_params = [{transform_indices = @transform_0, window_bounds = array<i64: 2, 512, 49>}, {pipeline_mode = #tpu.pipeline_mode<synchronous>, transform_indices = @transform_1, window_bounds = array<i64: 3, 512>}, {pipeline_mode = #tpu.pipeline_mode<synchronous>, transform_indices = @transform_2, window_bounds = array<i64: 512, 128>}, {pipeline_mode = #tpu.pipeline_mode<synchronous>, transform_indices = @transform_3, window_bounds = array<i64: 1, 128>}, {pipeline_mode = #tpu.pipeline_mode<synchronous>, transform_indices = @transform_4, window_bounds = array<i64: 1, 128>}, {transform_indices = @transform_5, window_bounds = array<i64: 2, 128>}]} {
    %c0 = arith.constant 0 : index
    %c0_0 = arith.constant 0 : index
    %c0_1 = arith.constant 0 : index
    %0 = vector.load %arg1[%c0, %c0_0, %c0_1] : memref<2x512x49xf32, #tpu.memory_space<vmem>>, vector<2x128x49xf32>
    %cst = arith.constant dense<0xFF800000> : vector<2x128xf32>
    %1 = vector.multi_reduction <maximumf>, %0, %cst [2] : vector<2x128x49xf32> to vector<2x128xf32>
    %c0_2 = arith.constant 0 : index
    %c0_3 = arith.constant 0 : index
    %2 = vector.load %arg7[%c0_2, %c0_3] : memref<2x512xf32, #tpu.memory_space<vmem>>, vector<2x128xf32>
    tpu.vector_store %arg7[%c0_2, %c0_3], %1 {strides = array<i32>} : memref<2x512xf32, #tpu.memory_space<vmem>>, vector<2x128xf32>,
    %cst_4 = arith.constant dense<0.000000e+00> : vector<2x128xf32>
    %3 = vector.multi_reduction <add>, %0, %cst_4 [2] : vector<2x128x49xf32> to vector<2x128xf32>
    %c0_5 = arith.constant 0 : index
    %c0_6 = arith.constant 0 : index
    %4 = vector.load %arg8[%c0_5, %c0_6] : memref<2x512xf32, #tpu.memory_space<vmem>>, vector<2x128xf32>
    tpu.vector_store %arg8[%c0_5, %c0_6], %3 {strides = array<i32>} : memref<2x512xf32, #tpu.memory_space<vmem>>, vector<2x128xf32>,
    %c0_7 = arith.constant 0 : index
    %c128 = arith.constant 128 : index
    %c0_8 = arith.constant 0 : index
    %5 = vector.load %arg1[%c0_7, %c128, %c0_8] : memref<2x512x49xf32, #tpu.memory_space<vmem>>, vector<2x128x49xf32>
    %cst_9 = arith.constant dense<0xFF800000> : vector<2x128xf32>
    %6 = vector.multi_reduction <maximumf>, %5, %cst_9 [2] : vector<2x128x49xf32> to vector<2x128xf32>
    %c0_10 = arith.constant 0 : index
    %c128_11 = arith.constant 128 : index
    %7 = vector.load %arg7[%c0_10, %c128_11] : memref<2x512xf32, #tpu.memory_space<vmem>>, vector<2x128xf32>
    tpu.vector_store %arg7[%c0_10, %c128_11], %6 {strides = array<i32>} : memref<2x512xf32, #tpu.memory_space<vmem>>, vector<2x128xf32>,
    %cst_12 = arith.constant dense<0.000000e+00> : vector<2x128xf32>
    %8 = vector.multi_reduction <add>, %5, %cst_12 [2] : vector<2x128x49xf32> to vector<2x128xf32>
    %c0_13 = arith.constant 0 : index
    %c128_14 = arith.constant 128 : index
    %9 = vector.load %arg8[%c0_13, %c128_14] : memref<2x512xf32, #tpu.memory_space<vmem>>, vector<2x128xf32>
    tpu.vector_store %arg8[%c0_13, %c128_14], %8 {strides = array<i32>} : memref<2x512xf32, #tpu.memory_space<vmem>>, vector<2x128xf32>,
    %c0_15 = arith.constant 0 : index
    %c256 = arith.constant 256 : index
    %c0_16 = arith.constant 0 : index
    %10 = vector.load %arg1[%c0_15, %c256, %c0_16] : memref<2x512x49xf32, #tpu.memory_space<vmem>>, vector<2x128x49xf32>
    %cst_17 = arith.constant dense<0xFF800000> : vector<2x128xf32>
    %11 = vector.multi_reduction <maximumf>, %10, %cst_17 [2] : vector<2x128x49xf32> to vector<2x128xf32>
    %c0_18 = arith.constant 0 : index
    %c256_19 = arith.constant 256 : index
    %12 = vector.load %arg7[%c0_18, %c256_19] : memref<2x512xf32, #tpu.memory_space<vmem>>, vector<2x128xf32>
    tpu.vector_store %arg7[%c0_18, %c256_19], %11 {strides = array<i32>} : memref<2x512xf32, #tpu.memory_space<vmem>>, vector<2x128xf32>,
    %cst_20 = arith.constant dense<0.000000e+00> : vector<2x128xf32>
    %13 = vector.multi_reduction <add>, %10, %cst_20 [2] : vector<2x128x49xf32> to vector<2x128xf32>
    %c0_21 = arith.constant 0 : index
    %c256_22 = arith.constant 256 : index
    %14 = vector.load %arg8[%c0_21, %c256_22] : memref<2x512xf32, #tpu.memory_space<vmem>>, vector<2x128xf32>
    tpu.vector_store %arg8[%c0_21, %c256_22], %13 {strides = array<i32>} : memref<2x512xf32, #tpu.memory_space<vmem>>, vector<2x128xf32>,
    %c0_23 = arith.constant 0 : index
    %c384 = arith.constant 384 : index
    %c0_24 = arith.constant 0 : index
    %15 = vector.load %arg1[%c0_23, %c384, %c0_24] : memref<2x512x49xf32, #tpu.memory_space<vmem>>, vector<2x128x49xf32>
    %cst_25 = arith.constant dense<0xFF800000> : vector<2x128xf32>
    %16 = vector.multi_reduction <maximumf>, %15, %cst_25 [2] : vector<2x128x49xf32> to vector<2x128xf32>
    %c0_26 = arith.constant 0 : index
    %c384_27 = arith.constant 384 : index
    %17 = vector.load %arg7[%c0_26, %c384_27] : memref<2x512xf32, #tpu.memory_space<vmem>>, vector<2x128xf32>
    tpu.vector_store %arg7[%c0_26, %c384_27], %16 {strides = array<i32>} : memref<2x512xf32, #tpu.memory_space<vmem>>, vector<2x128xf32>,
    %cst_28 = arith.constant dense<0.000000e+00> : vector<2x128xf32>
    %18 = vector.multi_reduction <add>, %15, %cst_28 [2] : vector<2x128x49xf32> to vector<2x128xf32>
    %c0_29 = arith.constant 0 : index
    %c384_30 = arith.constant 384 : index
    %19 = vector.load %arg8[%c0_29, %c384_30] : memref<2x512xf32, #tpu.memory_space<vmem>>, vector<2x128xf32>
    tpu.vector_store %arg8[%c0_29, %c384_30], %18 {strides = array<i32>} : memref<2x512xf32, #tpu.memory_space<vmem>>, vector<2x128xf32>,
    %c0_31 = arith.constant 0 : index
    %c0_32 = arith.constant 0 : index
    %20 = vector.load %arg7[%c0_31, %c0_32] : memref<2x512xf32, #tpu.memory_space<vmem>>, vector<2x512xf32>
    %c0_33 = arith.constant 0 : index
    %c0_34 = arith.constant 0 : index
    %21 = vector.load %arg8[%c0_33, %c0_34] : memref<2x512xf32, #tpu.memory_space<vmem>>, vector<2x512xf32>
    %c1_i32 = arith.constant 1 : i32
    %22 = tpu.dynamic_rotate %20 by %c1_i32 dim 1 : vector<2x512xf32>, i32 -> vector<2x512xf32>
    %c511_i32 = arith.constant 511 : i32
    %23 = tpu.dynamic_rotate %20 by %c511_i32 dim 1 : vector<2x512xf32>, i32 -> vector<2x512xf32>
    %c0_35 = arith.constant 0 : index
    %c0_36 = arith.constant 0 : index
    %24 = vector.load %arg2[%c0_35, %c0_36] : memref<3x512xf32, #tpu.memory_space<vmem>>, vector<1x512xf32>
    %25 = vector.broadcast %24 : vector<1x512xf32> to vector<2x512xf32>
    %26 = arith.mulf %22, %25 : vector<2x512xf32>
    %c1 = arith.constant 1 : index
    %c0_37 = arith.constant 0 : index
    %27 = vector.load %arg2[%c1, %c0_37] : memref<3x512xf32, #tpu.memory_space<vmem>>, vector<1x512xf32>
    %28 = vector.broadcast %27 : vector<1x512xf32> to vector<2x512xf32>
    %29 = arith.mulf %20, %28 : vector<2x512xf32>
    %30 = arith.addf %26, %29 : vector<2x512xf32>
    %c2 = arith.constant 2 : index
    %c0_38 = arith.constant 0 : index
    %31 = vector.load %arg2[%c2, %c0_38] : memref<3x512xf32, #tpu.memory_space<vmem>>, vector<1x512xf32>
    %32 = vector.broadcast %31 : vector<1x512xf32> to vector<2x512xf32>
    %33 = arith.mulf %23, %32 : vector<2x512xf32>
    %34 = arith.addf %30, %33 : vector<2x512xf32>
    %35 = arith.negf %34 : vector<2x512xf32>
    %36 = math.exp %35 : vector<2x512xf32>
    %cst_39 = arith.constant 1.000000e+00 : f32
    %37 = vector.broadcast %cst_39 : f32 to vector<2x512xf32>
    %38 = arith.addf %37, %36 : vector<2x512xf32>
    %39 = arith.divf %37, %38 : vector<2x512xf32>
    %cst_40 = arith.constant 0.0204081628 : f32
    %40 = vector.broadcast %cst_40 : f32 to vector<2x512xf32>
    %41 = arith.mulf %21, %40 : vector<2x512xf32>
    %42 = arith.mulf %41, %39 : vector<2x512xf32>
    %c0_41 = arith.constant 0 : index
    %c0_42 = arith.constant 0 : index
    %43 = vector.load %arg3[%c0_41, %c0_42] : memref<512x128xf32, #tpu.memory_space<vmem>>, vector<512x128xf32>
    %cst_43 = arith.constant dense<0.000000e+00> : vector<2x128xf32>
    %44 = tpu.matmul %42, %43, %cst_43 {dimension_numbers = #tpu.dot_dimension_numbers<[1], [0], [0], [1], [0, 0, 1, 1], [], []>} : vector<2x512xf32>, vector<512x128xf32>, vector<2x128xf32> -> vector<2x128xf32>
    %c0_44 = arith.constant 0 : index
    %c0_45 = arith.constant 0 : index
    %45 = vector.load %arg4[%c0_44, %c0_45] : memref<1x128xf32, #tpu.memory_space<vmem>>, vector<1x128xf32>
    %46 = vector.broadcast %45 : vector<1x128xf32> to vector<2x128xf32>
    %47 = arith.addf %44, %46 : vector<2x128xf32>
    %c0_46 = arith.constant 0 : index
    %c0_47 = arith.constant 0 : index
    %48 = vector.load %arg5[%c0_46, %c0_47] : memref<1x128xf32, #tpu.memory_space<vmem>>, vector<1x128xf32>
    %49 = math.tanh %47 : vector<2x128xf32>
    %50 = arith.subf %49, %47 : vector<2x128xf32>
    %51 = vector.broadcast %48 : vector<1x128xf32> to vector<2x128xf32>
    %52 = arith.mulf %51, %50 : vector<2x128xf32>
    %53 = arith.addf %47, %52 : vector<2x128xf32>
    %c0_48 = arith.constant 0 : index
    %c0_49 = arith.constant 0 : index
    %54 = vector.load %arg6[%c0_48, %c0_49] : memref<2x128xf32, #tpu.memory_space<vmem>>, vector<2x128xf32>
    tpu.vector_store %arg6[%c0_48, %c0_49], %53 {strides = array<i32>} : memref<2x128xf32, #tpu.memory_space<vmem>>, vector<2x128xf32>,
    return
  }
  func.func @transform_0(%arg0: i32) -> (i32, i32, i32) {
    %c0_i32 = arith.constant 0 : i32
    %c0_i32_0 = arith.constant 0 : i32
    %c0_i32_1 = arith.constant 0 : i32
    return %arg0, %c0_i32, %c0_i32_0 : i32, i32, i32
  }
  func.func @transform_1(%arg0: i32) -> (i32, i32) {
    %c0_i32 = arith.constant 0 : i32
    %c0_i32_0 = arith.constant 0 : i32
    %c0_i32_1 = arith.constant 0 : i32
    return %c0_i32, %c0_i32_0 : i32, i32
  }
  func.func @transform_2(%arg0: i32) -> (i32, i32) {
    %c0_i32 = arith.constant 0 : i32
    %c0_i32_0 = arith.constant 0 : i32
    %c0_i32_1 = arith.constant 0 : i32
    return %c0_i32, %c0_i32_0 : i32, i32
  }
  func.func @transform_3(%arg0: i32) -> (i32, i32) {
    %c0_i32 = arith.constant 0 : i32
    %c0_i32_0 = arith.constant 0 : i32
    %c0_i32_1 = arith.constant 0 : i32
    return %c0_i32, %c0_i32_0 : i32, i32
  }
  func.func @transform_4(%arg0: i32) -> (i32, i32) {
    %c0_i32 = arith.constant 0 : i32
    %c0_i32_0 = arith.constant 0 : i32
    %c0_i32_1 = arith.constant 0 : i32
    return %c0_i32, %c0_i32_0 : i32, i32
  }
  func.func @transform_5(%arg0: i32) -> (i32, i32) {
    %c0_i32 = arith.constant 0 : i32
    %c0_i32_0 = arith.constant 0 : i32
    return %arg0, %c0_i32 : i32, i32
  }
}

</mosaic_0001>

<bundles_post_ra>
// kernel: main_model_head.1
= control target key start
LH: loop header
LB: loop body
LE: loop exit
PB: predicated region body
PF: predicated region fallthrough
CT: control target
= control target key end

     0   :  { %vm52_vm0 = vcmask 400384   ;;  %vm1728_vm1 = vcmask 130112   ;;  %vm1735_vm2 = vcmask 195712   ;;  %vm1742_vm3 = vcmask 261312   ;;  %s15492_s24 = smov 127   ;;  %s22422_s0 = inlined_call_operand.vmem [shape: f32[2,512,49], index: 0, kind: input, shape index: {}]   ;;  %s22423_s1 = inlined_call_operand.vmem [shape: f32[3,512], index: 1, kind: input, shape index: {}]   ;;  %s22424_s2 = inlined_call_operand.vmem [shape: f32[512,128], index: 2, kind: input, shape index: {}]   ;;  %s22425_s3 = inlined_call_operand.vmem [shape: f32[1,128], index: 3, kind: input, shape index: {}]   ;;  %s22426_s4 = inlined_call_operand.vmem [shape: f32[1,128], index: 4, kind: input, shape index: {}]   ;;  %s22427_s5 = inlined_call_operand.vmem [shape: f32[2,128], index: 5, kind: output, shape index: {}]  }
   0x1   :  { %v15526_v0 = vld [vmem:[%s22422_s0 + $0x10] sm:$0xff]  ;;  %v15531_v1 = vld [vmem:[%s22422_s0] sm:$0xff]  ;;  %v15536_v2 = vld [vmem:[%s22422_s0 + $0x18] sm:$0xff]  ;;  %vm1749_vm4 = vcmask 326912   ;;  %vm1756_vm5 = vcmask 392512   ;;  %vm1763_vm6 = vcmask 458112  }
   0x2   :  { %v59_v3 = vsel %vm52_vm0, %v15526_v0, -inf  ;;  %v53_v4 = vsel %vm52_vm0, %v15531_v1, -inf  ;;  %v15545_v5 = vld [vmem:[%s22422_s0 + $0x8] sm:$0xff]  ;;  %v62_v6 = vsel %vm52_vm0, %v15536_v2, -inf  ;;  %v15559_v9 = vld [vmem:[%s22422_s0 + $0x20] sm:$0xff]  ;;  %v15568_v12 = vld [vmem:[%s22422_s0 + $0x38] sm:$0xff] }
   0x3   :  { %60 = vmax.xlane.f32.xlu1 %v59_v3  ;;  %54 = vmax.xlane.f32.xlu0 %v53_v4  ;;  %v56_v7 = vsel %vm52_vm0, %v15545_v5, -inf  ;;  %v15554_v8 = vld [vmem:[%s22422_s0 + $0x28] sm:$0xff]  ;;  %v65_v11 = vsel %vm52_vm0, %v15559_v9, -inf  ;;  %v15573_v13 = vld [vmem:[%s22422_s0 + $0x30] sm:$0xff]  ;;  %v74_v14 = vsel %vm52_vm0, %v15568_v12, -inf  ;;  %v15587_v17 = vld [vmem:[%s22422_s0 + $0x40] sm:$0xff] }
   0x4   :  { %v68_v10 = vsel %vm52_vm0, %v15554_v8, -inf  ;;  %v71_v15 = vsel %vm52_vm0, %v15573_v13, -inf  ;;  %v15582_v16 = vld [vmem:[%s22422_s0 + $0x48] sm:$0xff]  ;;  %v77_v19 = vsel %vm52_vm0, %v15587_v17, -inf  ;;  %v15596_v20 = vld [vmem:[%s22422_s0 + $0x58] sm:$0xff]  ;;  %v15601_v21 = vld [vmem:[%s22422_s0 + $0x50] sm:$0xff] }
   0x5   :  { %v80_v18 = vsel %vm52_vm0, %v15582_v16, -inf  ;;  %v86_v22 = vsel %vm52_vm0, %v15596_v20, -inf  ;;  %v83_v23 = vsel %vm52_vm0, %v15601_v21, -inf  ;;  %v15610_v24 = vld [vmem:[%s22422_s0 + $0x68] sm:$0xff]  ;;  %v15615_v25 = vld [vmem:[%s22422_s0 + $0x60] sm:$0xff]  ;;  %v15624_v28 = vld [vmem:[%s22422_s0 + $0x78] sm:$0xff] }
   0x6   :  { %v92_v26 = vsel %vm52_vm0, %v15610_v24, -inf  ;;  %v89_v27 = vsel %vm52_vm0, %v15615_v25, -inf  ;;  %v15629_v29 = vld [vmem:[%s22422_s0 + $0x70] sm:$0xff]  ;;  %v98_v30 = vsel %vm52_vm0, %v15624_v28, -inf  ;;  %v15638_v32 = vld [vmem:[%s22422_s0 + $0x208] sm:$0xff]  ;;  %v15643_v33 = vld [vmem:[%s22422_s0 + $0x200] sm:$0xff] }
   0x7   :  { %63 = vmax.xlane.f32.xlu1 %v62_v6  ;;  %57 = vmax.xlane.f32.xlu0 %v56_v7  ;;  %v95_v31 = vsel %vm52_vm0, %v15629_v29, -inf  ;;  %v104_v34 = vsel %vm52_vm0, %v15638_v32, -inf  ;;  %v101_v35 = vsel %vm52_vm0, %v15643_v33, -inf  ;;  %v15652_v36 = vld [vmem:[%s22422_s0 + $0x218] sm:$0xff]  ;;  %v15657_v37 = vld [vmem:[%s22422_s0 + $0x210] sm:$0xff]  ;;  %v15666_v40 = vld [vmem:[%s22422_s0 + $0x228] sm:$0xff] }
   0x8   :  { %v110_v38 = vsel %vm52_vm0, %v15652_v36, -inf  ;;  %v107_v39 = vsel %vm52_vm0, %v15657_v37, -inf  ;;  %v15671_v41 = vld [vmem:[%s22422_s0 + $0x220] sm:$0xff]  ;;  %v116_v42 = vsel %vm52_vm0, %v15666_v40, -inf  ;;  %v15680_v44 = vld [vmem:[%s22422_s0 + $0x238] sm:$0xff]  ;;  %v15685_v45 = vld [vmem:[%s22422_s0 + $0x230] sm:$0xff] }
   0x9   :  { %v113_v43 = vsel %vm52_vm0, %v15671_v41, -inf  ;;  %v122_v46 = vsel %vm52_vm0, %v15680_v44, -inf  ;;  %v119_v47 = vsel %vm52_vm0, %v15685_v45, -inf  ;;  %v15694_v48 = vld [vmem:[%s22422_s0 + $0x248] sm:$0xff]  ;;  %v15699_v49 = vld [vmem:[%s22422_s0 + $0x240] sm:$0xff]  ;;  %v15708_v52 = vld [vmem:[%s22422_s0 + $0x258] sm:$0xff] }
   0xa   :  { %v128_v50 = vsel %vm52_vm0, %v15694_v48, -inf  ;;  %v125_v51 = vsel %vm52_vm0, %v15699_v49, -inf  ;;  %v15713_v53 = vld [vmem:[%s22422_s0 + $0x250] sm:$0xff]  ;;  %v134_v54 = vsel %vm52_vm0, %v15708_v52, -inf  ;;  %v15722_v56 = vld [vmem:[%s22422_s0 + $0x268] sm:$0xff]  ;;  %v15727_v57 = vld [vmem:[%s22422_s0 + $0x260] sm:$0xff] }
   0xb   :  { %69 = vmax.xlane.f32.xlu1 %v68_v10  ;;  %66 = vmax.xlane.f32.xlu0 %v65_v11  ;;  %v131_v55 = vsel %vm52_vm0, %v15713_v53, -inf  ;;  %v140_v58 = vsel %vm52_vm0, %v15722_v56, -inf  ;;  %v137_v59 = vsel %vm52_vm0, %v15727_v57, -inf  ;;  %v15736_v60 = vld [vmem:[%s22422_s0 + $0x278] sm:$0xff]  ;;  %v15741_v61 = vld [vmem:[%s22422_s0 + $0x270] sm:$0xff]  ;;  %v1918_v3 = vsel %vm52_vm0, %v15531_v1, 0.0 }
   0xc   :  { %v146_v62 = vsel %vm52_vm0, %v15736_v60, -inf  ;;  %v143_v63 = vsel %vm52_vm0, %v15741_v61, -inf  ;;  %v1921_v4 = vsel %vm52_vm0, %v15545_v5, 0.0  ;;  %v1927_v6 = vsel %vm52_vm0, %v15536_v2, 0.0 }
   0xd   :  { %v1924_v7 = vsel %vm52_vm0, %v15526_v0, 0.0  ;;  %v1933_v10 = vsel %vm52_vm0, %v15554_v8, 0.0  ;;  %v1930_v11 = vsel %vm52_vm0, %v15559_v9, 0.0  ;;  %v1939_v1 = vsel %vm52_vm0, %v15568_v12, 0.0 }
   0xe   :  { %v1936_v5 = vsel %vm52_vm0, %v15573_v13, 0.0  ;;  %v1945_v0 = vsel %vm52_vm0, %v15582_v16, 0.0  ;;  %v1942_v2 = vsel %vm52_vm0, %v15587_v17, 0.0  ;;  %v1951_v8 = vsel %vm52_vm0, %v15596_v20, 0.0 }
   0xf   :  { %75 = vmax.xlane.f32.xlu1 %v74_v14  ;;  %72 = vmax.xlane.f32.xlu0 %v71_v15  ;;  %v1948_v9 = vsel %vm52_vm0, %v15601_v21, 0.0  ;;  %v1957_v12 = vsel %vm52_vm0, %v15610_v24, 0.0  ;;  %v1954_v13 = vsel %vm52_vm0, %v15615_v25, 0.0  ;;  %v1963_v14 = vsel %vm52_vm0, %v15624_v28, 0.0 }
  0x10   :  { %v1960_v15 = vsel %vm52_vm0, %v15629_v29, 0.0  ;;  %v1969_v16 = vsel %vm52_vm0, %v15638_v32, 0.0  ;;  %v1966_v17 = vsel %vm52_vm0, %v15643_v33, 0.0  ;;  %v1981_v20 = vsel %vm52_vm0, %v15666_v40, 0.0  ;;  %v15814_v32 = vld [vmem:[%s22422_s0 + $0x80] sm:$0xff]  ;;  %v15819_v33 = vld [vmem:[%s22422_s0 + $0x88] sm:$0xff] }
  0x11   :  { %v1978_v21 = vsel %vm52_vm0, %v15671_v41, 0.0  ;;  %v1993_v24 = vsel %vm52_vm0, %v15694_v48, 0.0  ;;  %v1990_v25 = vsel %vm52_vm0, %v15699_v49, 0.0  ;;  %v2005_v28 = vsel %vm52_vm0, %v15722_v56, 0.0  ;;  %v15842_v40 = vld [vmem:[%s22422_s0 + $0xa8] sm:$0xff]  ;;  %v15847_v41 = vld [vmem:[%s22422_s0 + $0xa0] sm:$0xff] }
  0x12   :  { %v2002_v29 = vsel %vm52_vm0, %v15727_v57, 0.0  ;;  %v15870_v48 = vld [vmem:[%s22422_s0 + $0xc8] sm:$0xff]  ;;  %v15875_v49 = vld [vmem:[%s22422_s0 + $0xc0] sm:$0xff]  ;;  %vm1770_vm7 = vcmask 523712   ;;  %vm1777_vm8 = vcmask 589312   ;;  %vm1784_vm9 = vcmask 654912  }
  0x13   :  { %81 = vmax.xlane.f32.xlu1 %v80_v18  ;;  %78 = vmax.xlane.f32.xlu0 %v77_v19  ;;  %v1975_v18 = vsel %vm52_vm0, %v15652_v36, 0.0  ;;  %v1972_v19 = vsel %vm52_vm0, %v15657_v37, 0.0  ;;  %v15828_v36 = vld [vmem:[%s22422_s0 + $0x98] sm:$0xff]  ;;  %v15833_v37 = vld [vmem:[%s22422_s0 + $0x90] sm:$0xff]  ;;  %vm1791_vm10 = vcmask 720512   ;;  %vm1798_vm11 = vcmask 786112  }
  0x14   :  { %vm1805_vm12 = vcmask 851712   ;;  %vm1812_vm13 = vcmask 917312   ;;  %vm1819_vm14 = vcmask 982912   ;;  %vm22718_vm15 = vcmask 1048512  }
  0x17   :  { %87 = vmax.xlane.f32.xlu1 %v86_v22  ;;  %84 = vmax.xlane.f32.xlu0 %v83_v23  ;;  %v1987_v22 = vsel %vm52_vm0, %v15680_v44, 0.0  ;;  %v1984_v23 = vsel %vm52_vm0, %v15685_v45, 0.0  ;;  %v15856_v44 = vld [vmem:[%s22422_s0 + $0xb8] sm:$0xff]  ;;  %v15861_v45 = vld [vmem:[%s22422_s0 + $0xb0] sm:$0xff] }
  0x1b   :  { %93 = vmax.xlane.f32.xlu1 %v92_v26  ;;  %90 = vmax.xlane.f32.xlu0 %v89_v27  ;;  %v1999_v26 = vsel %vm52_vm0, %v15708_v52, 0.0  ;;  %v1996_v27 = vsel %vm52_vm0, %v15713_v53, 0.0  ;;  %v3806_v52 = vsel %vm52_vm0, %v15875_v49, -inf }
  0x1f   :  { %99 = vmax.xlane.f32.xlu1 %v98_v30  ;;  %96 = vmax.xlane.f32.xlu0 %v95_v31  ;;  %v2011_v30 = vsel %vm52_vm0, %v15736_v60, 0.0  ;;  %v2008_v31 = vsel %vm52_vm0, %v15741_v61, 0.0  ;;  %v15906_v60 = vld [vmem:[%s22422_s0 + $0xe8] sm:$0xff]  ;;  %v15911_v61 = vld [vmem:[%s22422_s0 + $0xe0] sm:$0xff] }
  0x23   :  { %105 = vmax.xlane.f32.xlu1 %v104_v34  ;;  %102 = vmax.xlane.f32.xlu0 %v101_v35  ;;  %v3782_v34 = vsel %vm52_vm0, %v15814_v32, -inf  ;;  %v3785_v35 = vsel %vm52_vm0, %v15819_v33, -inf }
  0x27   :  { %111 = vmax.xlane.f32.xlu1 %v110_v38  ;;  %108 = vmax.xlane.f32.xlu0 %v107_v39  ;;  %v3791_v38 = vsel %vm52_vm0, %v15828_v36, -inf  ;;  %v3788_v39 = vsel %vm52_vm0, %v15833_v37, -inf }
  0x2b   :  { %117 = vmax.xlane.f32.xlu1 %v116_v42  ;;  %114 = vmax.xlane.f32.xlu0 %v113_v43  ;;  %v3797_v42 = vsel %vm52_vm0, %v15842_v40, -inf  ;;  %v3794_v43 = vsel %vm52_vm0, %v15847_v41, -inf }
  0x2f   :  { %123 = vmax.xlane.f32.xlu1 %v122_v46  ;;  %120 = vmax.xlane.f32.xlu0 %v119_v47  ;;  %v3803_v46 = vsel %vm52_vm0, %v15856_v44, -inf  ;;  %v3800_v47 = vsel %vm52_vm0, %v15861_v45, -inf }
  0x33   :  { %129 = vmax.xlane.f32.xlu1 %v128_v50  ;;  %126 = vmax.xlane.f32.xlu0 %v125_v51  ;;  %v3809_v51 = vsel %vm52_vm0, %v15870_v48, -inf }
  0x37   :  { %135 = vmax.xlane.f32.xlu1 %v134_v54  ;;  %132 = vmax.xlane.f32.xlu0 %v131_v55  ;;  %v15888_v54 = vld [vmem:[%s22422_s0 + $0xd8] sm:$0xff]  ;;  %v15893_v55 = vld [vmem:[%s22422_s0 + $0xd0] sm:$0xff] }
  0x38   :  { %v3815_v57 = vsel %vm52_vm0, %v15888_v54, -inf }
  0x3b   :  { %141 = vmax.xlane.f32.xlu1 %v140_v58  ;;  %138 = vmax.xlane.f32.xlu0 %v137_v59  ;;  %v3812_v58 = vsel %vm52_vm0, %v15893_v55, -inf }
  0x3f   :  { %147 = vmax.xlane.f32.xlu1 %v146_v62  ;;  %144 = vmax.xlane.f32.xlu0 %v143_v63  ;;  %v3821_v63 = vsel %vm52_vm0, %v15906_v60, -inf }
  0x43   :  { %1919 = vadd.xlane.f32.xlu1 %v1918_v3  ;;  %1922 = vadd.xlane.f32.xlu0 %v1921_v4  ;;  %v3818_v3 = vsel %vm52_vm0, %v15911_v61, -inf }
  0x47   :  { %1928 = vadd.xlane.f32.xlu1 %v1927_v6  ;;  %1925 = vadd.xlane.f32.xlu0 %v1924_v7  ;;  %v15924_v6 = vld [vmem:[%s22422_s0 + $0xf8] sm:$0xff]  ;;  %v15929_v7 = vld [vmem:[%s22422_s0 + $0xf0] sm:$0xff] }
  0x4b   :  { %1934 = vadd.xlane.f32.xlu1 %v1933_v10  ;;  %1931 = vadd.xlane.f32.xlu0 %v1930_v11  ;;  %v3827_v11 = vsel %vm52_vm0, %v15924_v6, -inf }
  0x4f   :  { %1940 = vadd.xlane.f32.xlu1 %v1939_v1  ;;  %1937 = vadd.xlane.f32.xlu0 %v1936_v5  ;;  %v3824_v1 = vsel %vm52_vm0, %v15929_v7, -inf }
  0x53   :  { %1946 = vadd.xlane.f32.xlu1 %v1945_v0  ;;  %1943 = vadd.xlane.f32.xlu0 %v1942_v2  ;;  %v15942_v0 = vld [vmem:[%s22422_s0 + $0x288] sm:$0xff]  ;;  %v15947_v2 = vld [vmem:[%s22422_s0 + $0x280] sm:$0xff] }
  0x57   :  { %1952 = vadd.xlane.f32.xlu1 %v1951_v8  ;;  %1949 = vadd.xlane.f32.xlu0 %v1948_v9  ;;  %v3833_v9 = vsel %vm52_vm0, %v15942_v0, -inf }
  0x5b   :  { %1958 = vadd.xlane.f32.xlu1 %v1957_v12  ;;  %1955 = vadd.xlane.f32.xlu0 %v1954_v13  ;;  %v3830_v12 = vsel %vm52_vm0, %v15947_v2, -inf }
  0x5f   :  { %1964 = vadd.xlane.f32.xlu1 %v1963_v14  ;;  %1961 = vadd.xlane.f32.xlu0 %v1960_v15  ;;  %v15960_v14 = vld [vmem:[%s22422_s0 + $0x298] sm:$0xff]  ;;  %v15965_v15 = vld [vmem:[%s22422_s0 + $0x290] sm:$0xff] }
  0x63   :  { %1970 = vadd.xlane.f32.xlu1 %v1969_v16  ;;  %1967 = vadd.xlane.f32.xlu0 %v1966_v17  ;;  %v3839_v17 = vsel %vm52_vm0, %v15960_v14, -inf }
  0x67   :  { %1976 = vadd.xlane.f32.xlu1 %v1975_v18  ;;  %1973 = vadd.xlane.f32.xlu0 %v1972_v19  ;;  %v3836_v18 = vsel %vm52_vm0, %v15965_v15, -inf }
  0x6b   :  { %1982 = vadd.xlane.f32.xlu1 %v1981_v20  ;;  %1979 = vadd.xlane.f32.xlu0 %v1978_v21  ;;  %v15978_v20 = vld [vmem:[%s22422_s0 + $0x2a8] sm:$0xff]  ;;  %v15983_v21 = vld [vmem:[%s22422_s0 + $0x2a0] sm:$0xff] }
  0x6f   :  { %1988 = vadd.xlane.f32.xlu1 %v1987_v22  ;;  %1985 = vadd.xlane.f32.xlu0 %v1984_v23  ;;  %v3845_v23 = vsel %vm52_vm0, %v15978_v20, -inf }
  0x73   :  { %1994 = vadd.xlane.f32.xlu1 %v1993_v24  ;;  %1991 = vadd.xlane.f32.xlu0 %v1990_v25  ;;  %v3842_v24 = vsel %vm52_vm0, %v15983_v21, -inf }
  0x77   :  { %2000 = vadd.xlane.f32.xlu1 %v1999_v26  ;;  %1997 = vadd.xlane.f32.xlu0 %v1996_v27  ;;  %v15996_v26 = vld [vmem:[%s22422_s0 + $0x2b8] sm:$0xff]  ;;  %v16001_v27 = vld [vmem:[%s22422_s0 + $0x2b0] sm:$0xff] }
  0x7b   :  { %2006 = vadd.xlane.f32.xlu1 %v2005_v28  ;;  %2003 = vadd.xlane.f32.xlu0 %v2002_v29  ;;  %v3851_v29 = vsel %vm52_vm0, %v15996_v26, -inf }
  0x7f   :  { %2012 = vadd.xlane.f32.xlu1 %v2011_v30  ;;  %2009 = vadd.xlane.f32.xlu0 %v2008_v31  ;;  %v3848_v30 = vsel %vm52_vm0, %v16001_v27, -inf }
  0x83   :  { %3783 = vmax.xlane.f32.xlu1 %v3782_v34  ;;  %3786 = vmax.xlane.f32.xlu0 %v3785_v35  ;;  %v16014_v34 = vld [vmem:[%s22422_s0 + $0x2c8] sm:$0xff]  ;;  %v16019_v35 = vld [vmem:[%s22422_s0 + $0x2c0] sm:$0xff] }
  0x87   :  { %3792 = vmax.xlane.f32.xlu1 %v3791_v38  ;;  %3789 = vmax.xlane.f32.xlu0 %v3788_v39  ;;  %v3857_v39 = vsel %vm52_vm0, %v16014_v34, -inf }
  0x8b   :  { %3798 = vmax.xlane.f32.xlu1 %v3797_v42  ;;  %3795 = vmax.xlane.f32.xlu0 %v3794_v43  ;;  %v3854_v42 = vsel %vm52_vm0, %v16019_v35, -inf }
  0x8f   :  { %3804 = vmax.xlane.f32.xlu1 %v3803_v46  ;;  %3801 = vmax.xlane.f32.xlu0 %v3800_v47  ;;  %v16032_v46 = vld [vmem:[%s22422_s0 + $0x2d8] sm:$0xff]  ;;  %v16037_v47 = vld [vmem:[%s22422_s0 + $0x2d0] sm:$0xff] }
  0x90   :  { %v15877_v50 = vpop.xlane.xlu1 %60  ;;  %v15883_v53 = vpop.xlane.xlu0 %54 }
  0x93   :  { %3810 = vmax.xlane.f32.xlu1 %v3809_v51  ;;  %3807 = vmax.xlane.f32.xlu0 %v3806_v52  ;;  %v3863_v52 = vsel %vm52_vm0, %v16032_v46, -inf }
  0x94   :  { %v15895_v56 = vpop.xlane.xlu1 %63  ;;  %v15901_v59 = vpop.xlane.xlu0 %57 }
  0x97   :  { %3816 = vmax.xlane.f32.xlu1 %v3815_v57  ;;  %3813 = vmax.xlane.f32.xlu0 %v3812_v58  ;;  %v3860_v57 = vsel %vm52_vm0, %v16037_v47, -inf }
  0x98   :  { %v15913_v62 = vpop.xlane.xlu1 %69  ;;  %v15919_v4 = vpop.xlane.xlu0 %66 }
  0x9b   :  { %3822 = vmax.xlane.f32.xlu1 %v3821_v63  ;;  %3819 = vmax.xlane.f32.xlu0 %v3818_v3  ;;  %v16050_v63 = vld [vmem:[%s22422_s0 + $0x2e8] sm:$0xff]  ;;  %v16055_v3 = vld [vmem:[%s22422_s0 + $0x2e0] sm:$0xff] }
  0x9c   :  { %v15931_v10 = vpop.xlane.xlu1 %75  ;;  %v15937_v5 = vpop.xlane.xlu0 %72 }
  0x9f   :  { %3828 = vmax.xlane.f32.xlu1 %v3827_v11  ;;  %3825 = vmax.xlane.f32.xlu0 %v3824_v1  ;;  %v3869_v1 = vsel %vm52_vm0, %v16050_v63, -inf }
  0xa0   :  { %v15949_v8 = vpop.xlane.xlu1 %81  ;;  %v15955_v13 = vpop.xlane.xlu0 %78 }
  0xa3   :  { %3834 = vmax.xlane.f32.xlu1 %v3833_v9  ;;  %3831 = vmax.xlane.f32.xlu0 %v3830_v12  ;;  %v3866_v9 = vsel %vm52_vm0, %v16055_v3, -inf }
  0xa4   :  { %v15967_v16 = vpop.xlane.xlu1 %87  ;;  %v15973_v19 = vpop.xlane.xlu0 %84 }
  0xa7   :  { %3840 = vmax.xlane.f32.xlu1 %v3839_v17  ;;  %3837 = vmax.xlane.f32.xlu0 %v3836_v18  ;;  %v16068_v17 = vld [vmem:[%s22422_s0 + $0x2f8] sm:$0xff]  ;;  %v16073_v18 = vld [vmem:[%s22422_s0 + $0x2f0] sm:$0xff] }
  0xa8   :  { %v15985_v22 = vpop.xlane.xlu1 %93  ;;  %v15991_v25 = vpop.xlane.xlu0 %90 }
  0xab   :  { %3846 = vmax.xlane.f32.xlu1 %v3845_v23  ;;  %3843 = vmax.xlane.f32.xlu0 %v3842_v24  ;;  %v3875_v24 = vsel %vm52_vm0, %v16068_v17, -inf }
  0xac   :  { %v16003_v28 = vpop.xlane.xlu1 %99  ;;  %v16009_v31 = vpop.xlane.xlu0 %96 }
  0xaf   :  { %3852 = vmax.xlane.f32.xlu1 %v3851_v29  ;;  %3849 = vmax.xlane.f32.xlu0 %v3848_v30  ;;  %v3872_v29 = vsel %vm52_vm0, %v16073_v18, -inf }
  0xb0   :  { %v16021_v38 = vpop.xlane.xlu1 %105  ;;  %v16027_v43 = vpop.xlane.xlu0 %102 }
  0xb3   :  { %3858 = vmax.xlane.f32.xlu1 %v3857_v39  ;;  %3855 = vmax.xlane.f32.xlu0 %v3854_v42  ;;  %v5614_v42 = vsel %vm52_vm0, %v15814_v32, 0.0 }
  0xb4   :  { %v16039_v51 = vpop.xlane.xlu1 %111  ;;  %v16045_v58 = vpop.xlane.xlu0 %108 }
  0xb7   :  { %3864 = vmax.xlane.f32.xlu1 %v3863_v52  ;;  %3861 = vmax.xlane.f32.xlu0 %v3860_v57  ;;  %v5617_v52 = vsel %vm52_vm0, %v15819_v33, 0.0  ;;  %v5629_v33 = vsel %vm52_vm0, %v15842_v40, 0.0 }
  0xb8   :  { %v16057_v11 = vpop.xlane.xlu1 %117  ;;  %v16063_v12 = vpop.xlane.xlu0 %114 }
  0xbb   :  { %3870 = vmax.xlane.f32.xlu1 %v3869_v1  ;;  %3867 = vmax.xlane.f32.xlu0 %v3866_v9  ;;  %v5623_v9 = vsel %vm52_vm0, %v15828_v36, 0.0 }
  0xbc   :  { %v16075_v23 = vpop.xlane.xlu1 %123  ;;  %v16081_v30 = vpop.xlane.xlu0 %120 }
  0xbd   :  { %22719 = vst [vmem:[#allocation4_spill] sm:$0xff] %v16081_v30 }
  0xbf   :  { %3876 = vmax.xlane.f32.xlu1 %v3875_v24  ;;  %3873 = vmax.xlane.f32.xlu0 %v3872_v29  ;;  %v5620_v24 = vsel %vm52_vm0, %v15833_v37, 0.0  ;;  %v5635_v37 = vsel %vm52_vm0, %v15856_v44, 0.0 }
  0xc0   :  { %v16083_v39 = vpop.xlane.xlu1 %129  ;;  %v16089_v57 = vpop.xlane.xlu0 %126 }
  0xc1   :  { %22720 = vst [vmem:[#allocation5_spill] sm:$0xff] %v16083_v39  ;;  %22721 = vst [vmem:[#allocation6_spill] sm:$0xff] %v16089_v57 }
  0xc3   :  { %5615 = vadd.xlane.f32.xlu1 %v5614_v42  ;;  %5618 = vadd.xlane.f32.xlu0 %v5617_v52  ;;  %v5626_v42 = vsel %vm52_vm0, %v15847_v41, 0.0  ;;  %v5641_v41 = vsel %vm52_vm0, %v15870_v48, 0.0 }
  0xc4   :  { %v16091_v1 = vpop.xlane.xlu1 %135  ;;  %v16097_v29 = vpop.xlane.xlu0 %132 }
  0xc5   :  { %22722 = vst [vmem:[#allocation7_spill] sm:$0xff] %v16091_v1  ;;  %22723 = vst [vmem:[#allocation8_spill] sm:$0xff] %v16097_v29  ;;  %v16484_v29 = vld [vmem:[%s22422_s0 + $0x378] sm:$0xff] }
  0xc7   :  { %5624 = vadd.xlane.f32.xlu1 %v5623_v9  ;;  %5621 = vadd.xlane.f32.xlu0 %v5620_v24  ;;  %v5632_v9 = vsel %vm52_vm0, %v15861_v45, 0.0  ;;  %v5647_v45 = vsel %vm52_vm0, %v15888_v54, 0.0 }
  0xc8   :  { %v16099_v32 = vpop.xlane.xlu1 %141  ;;  %v16105_v52 = vpop.xlane.xlu0 %138 }
  0xc9   :  { %22724 = vst [vmem:[#allocation9_spill] sm:$0xff] %v16099_v32  ;;  %22725 = vst [vmem:[#allocation10_spill] sm:$0xff] %v16105_v52  ;;  %v16466_v52 = vld [vmem:[%s22422_s0 + $0x368] sm:$0xff] }
  0xcb   :  { %5630 = vadd.xlane.f32.xlu1 %v5629_v33  ;;  %5627 = vadd.xlane.f32.xlu0 %v5626_v42  ;;  %v5638_v33 = vsel %vm52_vm0, %v15875_v49, 0.0  ;;  %v5653_v49 = vsel %vm52_vm0, %v15906_v60, 0.0 }
  0xcc   :  { %v16107_v36 = vpop.xlane.xlu1 %147  ;;  %v16113_v24 = vpop.xlane.xlu0 %144 }
  0xcd   :  { %22726 = vst [vmem:[#allocation11_spill] sm:$0xff] %v16107_v36  ;;  %22727 = vst [vmem:[#allocation12_spill] sm:$0xff] %v16113_v24  ;;  %v16448_v24 = vld [vmem:[%s22422_s0 + $0x358] sm:$0xff] }
  0xcf   :  { %5636 = vadd.xlane.f32.xlu1 %v5635_v37  ;;  %5633 = vadd.xlane.f32.xlu0 %v5632_v9  ;;  %v5644_v37 = vsel %vm52_vm0, %v15893_v55, 0.0  ;;  %v5659_v55 = vsel %vm52_vm0, %v15924_v6, 0.0 }
  0xd0   :  { %v16115_v40 = vpop.xlane.xlu1 %1919  ;;  %v16121_v42 = vpop.xlane.xlu0 %1922 }
  0xd1   :  { %22728 = vst [vmem:[#allocation13_spill] sm:$0xff] %v16115_v40  ;;  %22729 = vst [vmem:[#allocation14_spill] sm:$0xff] %v16121_v42  ;;  %v16430_v42 = vld [vmem:[%s22422_s0 + $0x348] sm:$0xff] }
  0xd3   :  { %5642 = vadd.xlane.f32.xlu1 %v5641_v41  ;;  %5639 = vadd.xlane.f32.xlu0 %v5638_v33  ;;  %v5650_v41 = vsel %vm52_vm0, %v15911_v61, 0.0  ;;  %v5665_v61 = vsel %vm52_vm0, %v15942_v0, 0.0 }
  0xd4   :  { %v16123_v44 = vpop.xlane.xlu1 %1928  ;;  %v16129_v9 = vpop.xlane.xlu0 %1925 }
  0xd5   :  { %22730 = vst [vmem:[#allocation15_spill] sm:$0xff] %v16123_v44  ;;  %22731 = vst [vmem:[#allocation16_spill] sm:$0xff] %v16129_v9  ;;  %v16412_v9 = vld [vmem:[%s22422_s0 + $0x338] sm:$0xff] }
  0xd7   :  { %5648 = vadd.xlane.f32.xlu1 %v5647_v45  ;;  %5645 = vadd.xlane.f32.xlu0 %v5644_v37  ;;  %v5656_v45 = vsel %vm52_vm0, %v15929_v7, 0.0  ;;  %v5671_v7 = vsel %vm52_vm0, %v15960_v14, 0.0 }
  0xd8   :  { %v16131_v48 = vpop.xlane.xlu1 %1934  ;;  %v16137_v33 = vpop.xlane.xlu0 %1931 }
  0xd9   :  { %22732 = vst [vmem:[#allocation17_spill] sm:$0xff] %v16131_v48  ;;  %22733 = vst [vmem:[#allocation18_spill] sm:$0xff] %v16137_v33  ;;  %v16394_v33 = vld [vmem:[%s22422_s0 + $0x328] sm:$0xff] }
  0xdb   :  { %5654 = vadd.xlane.f32.xlu1 %v5653_v49  ;;  %5651 = vadd.xlane.f32.xlu0 %v5650_v41  ;;  %v5662_v49 = vsel %vm52_vm0, %v15947_v2, 0.0  ;;  %v5677_v2 = vsel %vm52_vm0, %v15978_v20, 0.0 }
  0xdc   :  { %v16139_v54 = vpop.xlane.xlu1 %1940  ;;  %v16145_v37 = vpop.xlane.xlu0 %1937 }
  0xdd   :  { %22734 = vst [vmem:[#allocation19_spill] sm:$0xff] %v16139_v54  ;;  %22735 = vst [vmem:[#allocation20_spill] sm:$0xff] %v16145_v37  ;;  %v16376_v37 = vld [vmem:[%s22422_s0 + $0x318] sm:$0xff] }
  0xdf   :  { %5660 = vadd.xlane.f32.xlu1 %v5659_v55  ;;  %5657 = vadd.xlane.f32.xlu0 %v5656_v45  ;;  %v5668_v55 = vsel %vm52_vm0, %v15965_v15, 0.0  ;;  %v5683_v15 = vsel %vm52_vm0, %v15996_v26, 0.0 }
  0xe0   :  { %v16147_v60 = vpop.xlane.xlu1 %1946  ;;  %v16153_v41 = vpop.xlane.xlu0 %1943 }
  0xe1   :  { %22736 = vst [vmem:[#allocation21_spill] sm:$0xff] %v16147_v60  ;;  %22737 = vst [vmem:[#allocation22_spill] sm:$0xff] %v16153_v41  ;;  %v16358_v41 = vld [vmem:[%s22422_s0 + $0x308] sm:$0xff] }
  0xe3   :  { %5666 = vadd.xlane.f32.xlu1 %v5665_v61  ;;  %5663 = vadd.xlane.f32.xlu0 %v5662_v49  ;;  %v5674_v61 = vsel %vm52_vm0, %v15983_v21, 0.0  ;;  %v5689_v21 = vsel %vm52_vm0, %v16014_v34, 0.0 }
  0xe4   :  { %v16155_v6 = vpop.xlane.xlu1 %1952  ;;  %v16161_v45 = vpop.xlane.xlu0 %1949 }
  0xe5   :  { %22738 = vst [vmem:[#allocation23_spill] sm:$0xff] %v16155_v6  ;;  %22739 = vst [vmem:[#allocation24_spill] sm:$0xff] %v16161_v45  ;;  %v16340_v45 = vld [vmem:[%s22422_s0 + $0x178] sm:$0xff] }
  0xe7   :  { %5672 = vadd.xlane.f32.xlu1 %v5671_v7  ;;  %5669 = vadd.xlane.f32.xlu0 %v5668_v55  ;;  %v5680_v7 = vsel %vm52_vm0, %v16001_v27, 0.0  ;;  %v5695_v27 = vsel %vm52_vm0, %v16032_v46, 0.0 }
  0xe8   :  { %v16163_v0 = vpop.xlane.xlu1 %1958  ;;  %v16169_v49 = vpop.xlane.xlu0 %1955 }
  0xe9   :  { %22740 = vst [vmem:[#allocation25_spill] sm:$0xff] %v16163_v0  ;;  %22741 = vst [vmem:[#allocation26_spill] sm:$0xff] %v16169_v49  ;;  %v16322_v49 = vld [vmem:[%s22422_s0 + $0x168] sm:$0xff] }
  0xeb   :  { %5678 = vadd.xlane.f32.xlu1 %v5677_v2  ;;  %5675 = vadd.xlane.f32.xlu0 %v5674_v61  ;;  %v5686_v2 = vsel %vm52_vm0, %v16019_v35, 0.0  ;;  %v5701_v35 = vsel %vm52_vm0, %v16050_v63, 0.0  ;;  %v16214_v63 = vld [vmem:[%s22422_s0 + $0x100] sm:$0xff] }
  0xec   :  { %v16171_v14 = vpop.xlane.xlu1 %1964  ;;  %v16177_v55 = vpop.xlane.xlu0 %1961  ;;  %v9310_v39 = vsel %vm52_vm0, %v16214_v63, 0.0 }
  0xed   :  { %22742 = vst [vmem:[#allocation27_spill] sm:$0xff] %v16171_v14  ;;  %22743 = vst [vmem:[#allocation28_spill] sm:$0xff] %v16177_v55  ;;  %v16304_v55 = vld [vmem:[%s22422_s0 + $0x158] sm:$0xff] }
  0xef   :  { %5684 = vadd.xlane.f32.xlu1 %v5683_v15  ;;  %5681 = vadd.xlane.f32.xlu0 %v5680_v7  ;;  %v5692_v15 = vsel %vm52_vm0, %v16037_v47, 0.0  ;;  %v5707_v47 = vsel %vm52_vm0, %v16068_v17, 0.0  ;;  %v7478_v17 = vsel %vm52_vm0, %v16214_v63, -inf }
  0xf0   :  { %v16179_v20 = vpop.xlane.xlu1 %1970  ;;  %v16185_v61 = vpop.xlane.xlu0 %1967 }
  0xf1   :  { %22744 = vst [vmem:[#allocation29_spill] sm:$0xff] %v16179_v20  ;;  %22745 = vst [vmem:[#allocation30_spill] sm:$0xff] %v16185_v61  ;;  %v16286_v61 = vld [vmem:[%s22422_s0 + $0x148] sm:$0xff] }
  0xf3   :  { %5690 = vadd.xlane.f32.xlu1 %v5689_v21  ;;  %5687 = vadd.xlane.f32.xlu0 %v5686_v2  ;;  %v5698_v21 = vsel %vm52_vm0, %v16055_v3, 0.0  ;;  %v16219_v3 = vld [vmem:[%s22422_s0 + $0x108] sm:$0xff] }
  0xf4   :  { %v16187_v26 = vpop.xlane.xlu1 %1976  ;;  %v16193_v7 = vpop.xlane.xlu0 %1973 }
  0xf5   :  { %22746 = vst [vmem:[#allocation31_spill] sm:$0xff] %v16187_v26  ;;  %22747 = vst [vmem:[#allocation32_spill] sm:$0xff] %v16193_v7  ;;  %v16268_v7 = vld [vmem:[%s22422_s0 + $0x138] sm:$0xff] }
  0xf7   :  { %5696 = vadd.xlane.f32.xlu1 %v5695_v27  ;;  %5693 = vadd.xlane.f32.xlu0 %v5692_v15  ;;  %v5704_v27 = vsel %vm52_vm0, %v16073_v18, 0.0  ;;  %v7481_v18 = vsel %vm52_vm0, %v16219_v3, -inf }
  0xf8   :  { %v16195_v34 = vpop.xlane.xlu1 %1982  ;;  %v16201_v2 = vpop.xlane.xlu0 %1979 }
  0xf9   :  { %22748 = vst [vmem:[#allocation33_spill] sm:$0xff] %v16195_v34  ;;  %22749 = vst [vmem:[#allocation34_spill] sm:$0xff] %v16201_v2  ;;  %v16250_v2 = vld [vmem:[%s22422_s0 + $0x128] sm:$0xff] }
  0xfb   :  { %5702 = vadd.xlane.f32.xlu1 %v5701_v35  ;;  %5699 = vadd.xlane.f32.xlu0 %v5698_v21 }
  0xfc   :  { %v16203_v46 = vpop.xlane.xlu1 %1988  ;;  %v16209_v15 = vpop.xlane.xlu0 %1985 }
  0xfd   :  { %22750 = vst [vmem:[#allocation35_spill] sm:$0xff] %v16203_v46  ;;  %22751 = vst [vmem:[#allocation36_spill] sm:$0xff] %v16209_v15  ;;  %v16232_v15 = vld [vmem:[%s22422_s0 + $0x118] sm:$0xff] }
  0xfe   :  { %v9319_v30 = vsel %vm52_vm0, %v16232_v15, 0.0 }
  0xff   :  { %5708 = vadd.xlane.f32.xlu1 %v5707_v47  ;;  %5705 = vadd.xlane.f32.xlu0 %v5704_v27  ;;  %v16237_v47 = vld [vmem:[%s22422_s0 + $0x110] sm:$0xff] }
 0x100   :  { %v16221_v35 = vpop.xlane.xlu1 %1994  ;;  %v16227_v21 = vpop.xlane.xlu0 %1991 }
 0x101   :  { %22752 = vst [vmem:[#allocation37_spill] sm:$0xff] %v16221_v35  ;;  %22753 = vst [vmem:[#allocation38_spill] sm:$0xff] %v16227_v21  ;;  %v7487_v35 = vsel %vm52_vm0, %v16232_v15, -inf  ;;  %v7484_v21 = vsel %vm52_vm0, %v16237_v47, -inf }
 0x103   :  { %7479 = vmax.xlane.f32.xlu1 %v7478_v17  ;;  %7482 = vmax.xlane.f32.xlu0 %v7481_v18  ;;  %v16255_v17 = vld [vmem:[%s22422_s0 + $0x120] sm:$0xff] }
 0x104   :  { %v16239_v27 = vpop.xlane.xlu1 %2000  ;;  %v16245_v46 = vpop.xlane.xlu0 %1997 }
 0x105   :  { %22754 = vst [vmem:[#allocation39_spill] sm:$0xff] %v16239_v27  ;;  %22755 = vst [vmem:[#allocation40_spill] sm:$0xff] %v16245_v46  ;;  %v7493_v27 = vsel %vm52_vm0, %v16250_v2, -inf  ;;  %v7490_v46 = vsel %vm52_vm0, %v16255_v17, -inf }
 0x107   :  { %7488 = vmax.xlane.f32.xlu1 %v7487_v35  ;;  %7485 = vmax.xlane.f32.xlu0 %v7484_v21  ;;  %v16273_v35 = vld [vmem:[%s22422_s0 + $0x130] sm:$0xff] }
 0x108   :  { %v16257_v18 = vpop.xlane.xlu1 %2006  ;;  %v16263_v34 = vpop.xlane.xlu0 %2003 }
 0x109   :  { %22756 = vst [vmem:[#allocation41_spill] sm:$0xff] %v16257_v18  ;;  %22757 = vst [vmem:[#allocation42_spill] sm:$0xff] %v16263_v34  ;;  %v7499_v18 = vsel %vm52_vm0, %v16268_v7, -inf  ;;  %v7496_v34 = vsel %vm52_vm0, %v16273_v35, -inf }
 0x10b   :  { %7494 = vmax.xlane.f32.xlu1 %v7493_v27  ;;  %7491 = vmax.xlane.f32.xlu0 %v7490_v46  ;;  %v16291_v27 = vld [vmem:[%s22422_s0 + $0x140] sm:$0xff] }
 0x10c   :  { %v16275_v21 = vpop.xlane.xlu1 %2012  ;;  %v16281_v26 = vpop.xlane.xlu0 %2009 }
 0x10d   :  { %22758 = vst [vmem:[#allocation43_spill] sm:$0xff] %v16275_v21  ;;  %22759 = vst [vmem:[#allocation44_spill] sm:$0xff] %v16281_v26  ;;  %v7505_v21 = vsel %vm52_vm0, %v16286_v61, -inf  ;;  %v7502_v26 = vsel %vm52_vm0, %v16291_v27, -inf }
 0x10f   :  { %7500 = vmax.xlane.f32.xlu1 %v7499_v18  ;;  %7497 = vmax.xlane.f32.xlu0 %v7496_v34  ;;  %v16309_v18 = vld [vmem:[%s22422_s0 + $0x150] sm:$0xff] }
 0x110   :  { %v16293_v46 = vpop.xlane.xlu1 %3783  ;;  %v16299_v20 = vpop.xlane.xlu0 %3786 }
 0x111   :  { %22760 = vst [vmem:[#allocation45_spill] sm:$0xff] %v16293_v46  ;;  %22761 = vst [vmem:[#allocation46_spill] sm:$0xff] %v16299_v20  ;;  %v7511_v46 = vsel %vm52_vm0, %v16304_v55, -inf  ;;  %v7508_v20 = vsel %vm52_vm0, %v16309_v18, -inf }
 0x113   :  { %7506 = vmax.xlane.f32.xlu1 %v7505_v21  ;;  %7503 = vmax.xlane.f32.xlu0 %v7502_v26  ;;  %v16327_v21 = vld [vmem:[%s22422_s0 + $0x160] sm:$0xff] }
 0x114   :  { %v16311_v34 = vpop.xlane.xlu1 %3792  ;;  %v16317_v14 = vpop.xlane.xlu0 %3789 }
 0x115   :  { %22762 = vst [vmem:[#allocation47_spill] sm:$0xff] %v16311_v34  ;;  %22763 = vst [vmem:[#allocation48_spill] sm:$0xff] %v16317_v14  ;;  %v7517_v34 = vsel %vm52_vm0, %v16322_v49, -inf  ;;  %v7514_v14 = vsel %vm52_vm0, %v16327_v21, -inf }
 0x117   :  { %7512 = vmax.xlane.f32.xlu1 %v7511_v46  ;;  %7509 = vmax.xlane.f32.xlu0 %v7508_v20  ;;  %v16345_v46 = vld [vmem:[%s22422_s0 + $0x170] sm:$0xff] }
 0x118   :  { %v16329_v26 = vpop.xlane.xlu1 %3798  ;;  %v16335_v0 = vpop.xlane.xlu0 %3795 }
 0x119   :  { %22764 = vst [vmem:[#allocation49_spill] sm:$0xff] %v16329_v26  ;;  %22765 = vst [vmem:[#allocation50_spill] sm:$0xff] %v16335_v0  ;;  %v7523_v26 = vsel %vm52_vm0, %v16340_v45, -inf  ;;  %v7520_v0 = vsel %vm52_vm0, %v16345_v46, -inf }
 0x11b   :  { %7518 = vmax.xlane.f32.xlu1 %v7517_v34  ;;  %7515 = vmax.xlane.f32.xlu0 %v7514_v14  ;;  %v16363_v34 = vld [vmem:[%s22422_s0 + $0x300] sm:$0xff] }
 0x11c   :  { %v16347_v20 = vpop.xlane.xlu1 %3804  ;;  %v16353_v6 = vpop.xlane.xlu0 %3801 }
 0x11d   :  { %22766 = vst [vmem:[#allocation51_spill] sm:$0xff] %v16347_v20  ;;  %22767 = vst [vmem:[#allocation52_spill] sm:$0xff] %v16353_v6  ;;  %v7529_v20 = vsel %vm52_vm0, %v16358_v41, -inf  ;;  %v7526_v6 = vsel %vm52_vm0, %v16363_v34, -inf }
 0x11f   :  { %7524 = vmax.xlane.f32.xlu1 %v7523_v26  ;;  %7521 = vmax.xlane.f32.xlu0 %v7520_v0  ;;  %v16381_v26 = vld [vmem:[%s22422_s0 + $0x310] sm:$0xff] }
 0x120   :  { %v16365_v14 = vpop.xlane.xlu1 %3810  ;;  %v16371_v60 = vpop.xlane.xlu0 %3807 }
 0x121   :  { %22768 = vst [vmem:[#allocation53_spill] sm:$0xff] %v16365_v14  ;;  %22769 = vst [vmem:[#allocation54_spill] sm:$0xff] %v16371_v60  ;;  %v7535_v14 = vsel %vm52_vm0, %v16376_v37, -inf  ;;  %v7532_v60 = vsel %vm52_vm0, %v16381_v26, -inf }
 0x123   :  { %7530 = vmax.xlane.f32.xlu1 %v7529_v20  ;;  %7527 = vmax.xlane.f32.xlu0 %v7526_v6  ;;  %v16399_v20 = vld [vmem:[%s22422_s0 + $0x320] sm:$0xff] }
 0x124   :  { %v16383_v0 = vpop.xlane.xlu1 %3816  ;;  %v16389_v54 = vpop.xlane.xlu0 %3813 }
 0x125   :  { %22770 = vst [vmem:[#allocation55_spill] sm:$0xff] %v16383_v0  ;;  %22771 = vst [vmem:[#allocation56_spill] sm:$0xff] %v16389_v54  ;;  %v7541_v0 = vsel %vm52_vm0, %v16394_v33, -inf  ;;  %v7538_v54 = vsel %vm52_vm0, %v16399_v20, -inf }
 0x127   :  { %7536 = vmax.xlane.f32.xlu1 %v7535_v14  ;;  %7533 = vmax.xlane.f32.xlu0 %v7532_v60  ;;  %v16417_v14 = vld [vmem:[%s22422_s0 + $0x330] sm:$0xff] }
 0x128   :  { %v16401_v6 = vpop.xlane.xlu1 %3822  ;;  %v16407_v48 = vpop.xlane.xlu0 %3819 }
 0x129   :  { %22772 = vst [vmem:[#allocation57_spill] sm:$0xff] %v16401_v6  ;;  %22773 = vst [vmem:[#allocation58_spill] sm:$0xff] %v16407_v48  ;;  %v7547_v6 = vsel %vm52_vm0, %v16412_v9, -inf  ;;  %v7544_v48 = vsel %vm52_vm0, %v16417_v14, -inf }
 0x12b   :  { %7542 = vmax.xlane.f32.xlu1 %v7541_v0  ;;  %7539 = vmax.xlane.f32.xlu0 %v7538_v54  ;;  %v16435_v0 = vld [vmem:[%s22422_s0 + $0x340] sm:$0xff] }
 0x12c   :  { %v16419_v60 = vpop.xlane.xlu1 %3828  ;;  %v16425_v44 = vpop.xlane.xlu0 %3825 }
 0x12d   :  { %22774 = vst [vmem:[#allocation59_spill] sm:$0xff] %v16419_v60  ;;  %22775 = vst [vmem:[#allocation60_spill] sm:$0xff] %v16425_v44  ;;  %v7553_v60 = vsel %vm52_vm0, %v16430_v42, -inf  ;;  %v7550_v44 = vsel %vm52_vm0, %v16435_v0, -inf }
 0x12f   :  { %7548 = vmax.xlane.f32.xlu1 %v7547_v6  ;;  %7545 = vmax.xlane.f32.xlu0 %v7544_v48  ;;  %v16453_v6 = vld [vmem:[%s22422_s0 + $0x350] sm:$0xff] }
 0x130   :  { %v16437_v54 = vpop.xlane.xlu1 %3834  ;;  %v16443_v40 = vpop.xlane.xlu0 %3831 }
 0x131   :  { %22776 = vst [vmem:[#allocation61_spill] sm:$0xff] %v16437_v54  ;;  %22777 = vst [vmem:[#allocation62_spill] sm:$0xff] %v16443_v40  ;;  %v7559_v54 = vsel %vm52_vm0, %v16448_v24, -inf  ;;  %v7556_v40 = vsel %vm52_vm0, %v16453_v6, -inf }
 0x133   :  { %7554 = vmax.xlane.f32.xlu1 %v7553_v60  ;;  %7551 = vmax.xlane.f32.xlu0 %v7550_v44  ;;  %v16471_v60 = vld [vmem:[%s22422_s0 + $0x360] sm:$0xff] }
 0x134   :  { %v16455_v48 = vpop.xlane.xlu1 %3840  ;;  %v16461_v36 = vpop.xlane.xlu0 %3837 }
 0x135   :  { %22778 = vst [vmem:[#allocation63_spill] sm:$0xff] %v16455_v48  ;;  %22779 = vst [vmem:[#allocation64_spill] sm:$0xff] %v16461_v36  ;;  %v7565_v48 = vsel %vm52_vm0, %v16466_v52, -inf  ;;  %v7562_v36 = vsel %vm52_vm0, %v16471_v60, -inf }
 0x137   :  { %7560 = vmax.xlane.f32.xlu1 %v7559_v54  ;;  %7557 = vmax.xlane.f32.xlu0 %v7556_v40  ;;  %v16489_v54 = vld [vmem:[%s22422_s0 + $0x370] sm:$0xff] }
 0x138   :  { %v16473_v44 = vpop.xlane.xlu1 %3846  ;;  %v16479_v32 = vpop.xlane.xlu0 %3843 }
 0x139   :  { %22780 = vst [vmem:[#allocation65_spill] sm:$0xff] %v16473_v44  ;;  %22781 = vst [vmem:[#allocation66_spill] sm:$0xff] %v16479_v32  ;;  %v7571_v44 = vsel %vm52_vm0, %v16484_v29, -inf  ;;  %v7568_v32 = vsel %vm52_vm0, %v16489_v54, -inf }
 0x13b   :  { %7566 = vmax.xlane.f32.xlu1 %v7565_v48  ;;  %7563 = vmax.xlane.f32.xlu0 %v7562_v36  ;;  %v9313_v36 = vsel %vm52_vm0, %v16219_v3, 0.0  ;;  %v9325_v3 = vsel %vm52_vm0, %v16250_v2, 0.0 }
 0x13c   :  { %v16491_v40 = vpop.xlane.xlu1 %3852  ;;  %v16497_v1 = vpop.xlane.xlu0 %3849 }
 0x13d   :  { %22782 = vst [vmem:[#allocation67_spill] sm:$0xff] %v16491_v40  ;;  %22783 = vst [vmem:[#allocation68_spill] sm:$0xff] %v16497_v1 }
 0x13f   :  { %7572 = vmax.xlane.f32.xlu1 %v7571_v44  ;;  %7569 = vmax.xlane.f32.xlu0 %v7568_v32  ;;  %v9316_v32 = vsel %vm52_vm0, %v16237_v47, 0.0  ;;  %v9331_v47 = vsel %vm52_vm0, %v16268_v7, 0.0 }
 0x140   :  { %v16499_v57 = vpop.xlane.xlu1 %3858  ;;  %v16505_v48 = vpop.xlane.xlu0 %3855 }
 0x141   :  { %22784 = vst [vmem:[#allocation69_spill] sm:$0xff] %v16499_v57  ;;  %22785 = vst [vmem:[#allocation70_spill] sm:$0xff] %v16505_v48 }
 0x143   :  { %9311 = vadd.xlane.f32.xlu1 %v9310_v39  ;;  %9314 = vadd.xlane.f32.xlu0 %v9313_v36  ;;  %v9322_v39 = vsel %vm52_vm0, %v16255_v17, 0.0  ;;  %v9337_v17 = vsel %vm52_vm0, %v16286_v61, 0.0 }
 0x144   :  { %v16507_v40 = vpop.xlane.xlu1 %3864  ;;  %v16513_v44 = vpop.xlane.xlu0 %3861 }
 0x145   :  { %22786 = vst [vmem:[#allocation71_spill] sm:$0xff] %v16507_v40  ;;  %22787 = vst [vmem:[#allocation72_spill] sm:$0xff] %v16513_v44 }
 0x147   :  { %9320 = vadd.xlane.f32.xlu1 %v9319_v30  ;;  %9317 = vadd.xlane.f32.xlu0 %v9316_v32  ;;  %v9328_v30 = vsel %vm52_vm0, %v16273_v35, 0.0  ;;  %v9343_v35 = vsel %vm52_vm0, %v16304_v55, 0.0 }
 0x148   :  { %v16515_v63 = vpop.xlane.xlu1 %3870  ;;  %v16521_v36 = vpop.xlane.xlu0 %3867 }
 0x149   :  { %22788 = vst [vmem:[#allocation73_spill] sm:$0xff] %v16515_v63  ;;  %22789 = vst [vmem:[#allocation74_spill] sm:$0xff] %v16521_v36 }
 0x14b   :  { %9326 = vadd.xlane.f32.xlu1 %v9325_v3  ;;  %9323 = vadd.xlane.f32.xlu0 %v9322_v39  ;;  %v9334_v3 = vsel %vm52_vm0, %v16291_v27, 0.0  ;;  %v9349_v27 = vsel %vm52_vm0, %v16322_v49, 0.0 }
 0x14c   :  { %v16523_v15 = vpop.xlane.xlu1 %3876  ;;  %v16529_v32 = vpop.xlane.xlu0 %3873 }
 0x14d   :  { %22790 = vst [vmem:[#allocation75_spill] sm:$0xff] %v16523_v15  ;;  %22791 = vst [vmem:[#allocation76_spill] sm:$0xff] %v16529_v32 }
 0x14f   :  { %9332 = vadd.xlane.f32.xlu1 %v9331_v47  ;;  %9329 = vadd.xlane.f32.xlu0 %v9328_v30  ;;  %v9340_v47 = vsel %vm52_vm0, %v16309_v18, 0.0  ;;  %v9355_v18 = vsel %vm52_vm0, %v16340_v45, 0.0  ;;  %v22501_v45 = vlaneseq }
 0x150   :  { %v16531_v2 = vpop.xlane.xlu1 %5615  ;;  %v16537_v39 = vpop.xlane.xlu0 %5618 }
 0x151   :  { %22792 = vst [vmem:[#allocation77_spill] sm:$0xff] %v16531_v2  ;;  %22793 = vst [vmem:[#allocation78_spill] sm:$0xff] %v16537_v39 }
 0x153   :  { %9338 = vadd.xlane.f32.xlu1 %v9337_v17  ;;  %9335 = vadd.xlane.f32.xlu0 %v9334_v3  ;;  %v9346_v17 = vsel %vm52_vm0, %v16327_v21, 0.0  ;;  %v9361_v21 = vsel %vm52_vm0, %v16358_v41, 0.0  ;;  %v9367_v41 = vsel %vm52_vm0, %v16376_v37, 0.0  ;;  %v9370_v37 = vsel %vm52_vm0, %v16399_v20, 0.0 }
 0x154   :  { %v16539_v7 = vpop.xlane.xlu1 %5624  ;;  %v16545_v30 = vpop.xlane.xlu0 %5621  ;;  %v9379_v20 = vsel %vm52_vm0, %v16412_v9, 0.0 }
 0x155   :  { %22794 = vst [vmem:[#allocation79_spill] sm:$0xff] %v16539_v7  ;;  %22795 = vst [vmem:[#allocation80_spill] sm:$0xff] %v16545_v30 }
 0x157   :  { %9344 = vadd.xlane.f32.xlu1 %v9343_v35  ;;  %9341 = vadd.xlane.f32.xlu0 %v9340_v47  ;;  %v9352_v35 = vsel %vm52_vm0, %v16345_v46, 0.0  ;;  %v15487_v46 = vmov 1414812756  }
 0x158   :  { %v16547_v61 = vpop.xlane.xlu1 %5630  ;;  %v16553_v3 = vpop.xlane.xlu0 %5627  ;;  %v196_v7 = vunpack.c.l.s4 %v15487_v46 }
 0x159   :  { %22796 = vst [vmem:[#allocation81_spill] sm:$0xff] %v16547_v61  ;;  %22797 = vst [vmem:[#allocation82_spill] sm:$0xff] %v16553_v3  ;;  %v15486_v61 = vmov 842150450  }
 0x15a   :  { %v189_v30 = vunpack.c.l.s4 %v15486_v61  ;;  %v197_v46 = vunpack.c.0.s8 %v196_v7 }
 0x15b   :  { %9350 = vadd.xlane.f32.xlu1 %v9349_v27  ;;  %9347 = vadd.xlane.f32.xlu0 %v9346_v17  ;;  %v9358_v27 = vsel %vm52_vm0, %v16363_v34, 0.0  ;;  %v9364_v34 = vsel %vm52_vm0, %v16381_v26, 0.0 }
 0x15c   :  { %v16555_v55 = vpop.xlane.xlu1 %5636  ;;  %v16561_v47 = vpop.xlane.xlu0 %5633  ;;  %v190_v61 = vunpack.c.0.s8 %v189_v30 }
 0x15d   :  { %22798 = vst [vmem:[#allocation83_spill] sm:$0xff] %v16555_v55  ;;  %22799 = vst [vmem:[#allocation84_spill] sm:$0xff] %v16561_v47  ;;  %v15485_v55 = vmov 269488144   ;;  %v15488_v47 = vmov 1987475062  }
 0x15e   :  { %v182_v3 = vunpack.c.l.s4 %v15485_v55 }
 0x15f   :  { %9356 = vadd.xlane.f32.xlu1 %v9355_v18  ;;  %9353 = vadd.xlane.f32.xlu0 %v9352_v35  ;;  %v203_v18 = vunpack.c.l.s4 %v15488_v47 }
 0x160   :  { %v16563_v49 = vpop.xlane.xlu1 %5642  ;;  %v16569_v17 = vpop.xlane.xlu0 %5639  ;;  %v183_v55 = vunpack.c.0.s8 %v182_v3 }
 0x161   :  { %22800 = vst [vmem:[#allocation85_spill] sm:$0xff] %v16563_v49  ;;  %22801 = vst [vmem:[#allocation86_spill] sm:$0xff] %v16569_v17  ;;  %v16580_v49 = vshrl.u32 %v22501_v45, 7  ;;  %v204_v39 = vunpack.c.0.s8 %v203_v18 }
 0x163   :  { %9362 = vadd.xlane.f32.xlu1 %v9361_v21  ;;  %9359 = vadd.xlane.f32.xlu0 %v9358_v27  ;;  %22804 = vst [vmem:[#allocation89_spill] sm:$0xff] %v16580_v49  ;;  %v9373_v21 = vsel %vm52_vm0, %v16394_v33, 0.0  ;;  %v16591_v3 = vsub.s32 %v183_v55, %v16580_v49  ;;  %v15489_v27 = vmov 1983009808   ;;  %v16594_v7 = vsub.s32 %v190_v61, %v16580_v49 }
 0x164   :  { %v16571_v35 = vpop.xlane.xlu1 %5648  ;;  %v16577_v17 = vpop.xlane.xlu0 %5645  ;;  %v1080_v45 = vunpack.c.l.s4 %v15489_v27  ;;  %v16597_v30 = vsub.s32 %v197_v46, %v16580_v49  ;;  %v16600_v18 = vsub.s32 %v204_v39, %v16580_v49 }
 0x165   :  { %22802 = vst [vmem:[#allocation87_spill] sm:$0xff] %v16571_v35  ;;  %22803 = vst [vmem:[#allocation88_spill] sm:$0xff] %v16577_v17  ;;  %v243_v55 = vrot.slane %v15877_v50, %v16591_v3  ;;  %v250_v39 = vrot.slane %v15877_v50, %v16594_v7  ;;  %v187_v9 = vrot.slane %v15883_v53, %v16591_v3 }
 0x166   :  { %22807 = vst [vmem:[#allocation92_spill] sm:$0xff] %v16591_v3  ;;  %v1081_v61 = vunpack.c.0.s8 %v1080_v45  ;;  %v257_v46 = vrot.slane %v15877_v50, %v16597_v30  ;;  %v208_v45 = vrot.slane %v15883_v53, %v16600_v18  ;;  %v271_v27 = vrot.slane %v15895_v56, %v16591_v3 }
 0x167   :  { %9368 = vadd.xlane.f32.xlu1 %v9367_v41  ;;  %9365 = vadd.xlane.f32.xlu0 %v9364_v34  ;;  %v9376_v41 = vsel %vm52_vm0, %v16417_v14, 0.0  ;;  %v194_v14 = vrot.slane %v15883_v53, %v16594_v7  ;;  %v16646_v17 = vcombine.low %v243_v55, %v250_v39  ;;  %v236_v2 = vrot.slane %v15901_v59, %v16600_v18 }
 0x168   :  { %v16582_v47 = vpop.xlane.xlu1 %5654  ;;  %v16588_v26 = vpop.xlane.xlu0 %5651  ;;  %v9391_v55 = vsel %vm52_vm0, %v16448_v24, 0.0  ;;  %v341_v24 = vrot.slane %v15913_v62, %v16597_v30 }
 0x169   :  { %22805 = vst [vmem:[#allocation90_spill] sm:$0xff] %v16582_v47  ;;  %22806 = vst [vmem:[#allocation91_spill] sm:$0xff] %v16588_v26  ;;  %v9382_v26 = vsel %vm52_vm0, %v16435_v0, 0.0 }
 0x16b   :  { %9374 = vadd.xlane.f32.xlu1 %v9373_v21  ;;  %9371 = vadd.xlane.f32.xlu0 %v9370_v37  ;;  %v264_v21 = vrot.slane %v15877_v50, %v16600_v18  ;;  %v201_v37 = vrot.slane %v15883_v53, %v16597_v30  ;;  %v278_v50 = vrot.slane %v15895_v56, %v16594_v7 }
 0x16c   :  { %v16602_v33 = vpop.xlane.xlu1 %5660  ;;  %v16608_v34 = vpop.xlane.xlu0 %5657  ;;  %v285_v53 = vrot.slane %v15895_v56, %v16597_v30 }
 0x16d   :  { %22808 = vst [vmem:[#allocation93_spill] sm:$0xff] %v16602_v33  ;;  %22809 = vst [vmem:[#allocation94_spill] sm:$0xff] %v16608_v34  ;;  %v9385_v33 = vsel %vm52_vm0, %v16430_v42, 0.0  ;;  %v16649_v42 = vsub.s32 %v1081_v61, %v16580_v49  ;;  %v16651_v0 = vcombine.low %v257_v46, %v264_v21  ;;  %v16655_v35 = vcombine.low %v201_v37, %v208_v45 }
 0x16e   :  { %v9388_v61 = vsel %vm52_vm0, %v16453_v6, 0.0  ;;  %v16669_v46 = vcombine.low %v271_v27, %v278_v50  ;;  %v348_v6 = vrot.slane %v15913_v62, %v16600_v18  ;;  %v313_v37 = vrot.slane %v15919_v4, %v16597_v30 }
 0x16f   :  { %9380 = vadd.xlane.f32.xlu1 %v9379_v20  ;;  %9377 = vadd.xlane.f32.xlu0 %v9376_v41  ;;  %v292_v20 = vrot.slane %v15895_v56, %v16600_v18  ;;  %v215_v41 = vrot.slane %v15901_v59, %v16591_v3  ;;  %v229_v56 = vrot.slane %v15901_v59, %v16597_v30  ;;  %v9394_v50 = vsel %vm52_vm0, %v16471_v60, 0.0 }
 0x170   :  { %v16630_v34 = vpop.xlane.xlu1 %5666  ;;  %v16636_v47 = vpop.xlane.xlu0 %5663  ;;  %v355_v60 = vrot.slane %v15937_v5, %v16591_v3  ;;  %v1136_v36 = vrot.slane %v16669_v46, %v16649_v42 }
 0x171   :  { %22810 = vst [vmem:[#allocation95_spill] sm:$0xff] %v16630_v34  ;;  %22811 = vst [vmem:[#allocation96_spill] sm:$0xff] %v16636_v47  ;;  %v222_v34 = vrot.slane %v15901_v59, %v16594_v7  ;;  %v16653_v47 = vcombine.low %v187_v9, %v194_v14  ;;  %v334_v59 = vrot.slane %v15913_v62, %v16594_v7 }
 0x172   :  { %v299_v9 = vrot.slane %v15919_v4, %v16591_v3  ;;  %v306_v14 = vrot.slane %v15919_v4, %v16594_v7  ;;  %v16691_v45 = vcombine.low %v229_v56, %v236_v2  ;;  %v390_v2 = vrot.slane %v15931_v10, %v16594_v7 }
 0x173   :  { %9386 = vadd.xlane.f32.xlu1 %v9385_v33  ;;  %9383 = vadd.xlane.f32.xlu0 %v9382_v26  ;;  %v16671_v33 = vcombine.low %v285_v53, %v292_v20  ;;  %v327_v26 = vrot.slane %v15913_v62, %v16591_v3  ;;  %v16675_v21 = vcombine.low %v215_v41, %v222_v34  ;;  %v9397_v62 = vsel %vm52_vm0, %v16466_v52, 0.0 }
 0x174   :  { %v16661_v32 = vpop.xlane.xlu1 %5672  ;;  %v16667_v39 = vpop.xlane.xlu0 %5669  ;;  %v320_v34 = vrot.slane %v15919_v4, %v16600_v18  ;;  %v1119_v20 = vrot.slane %v16646_v17, %v16649_v42  ;;  %v383_v4 = vrot.slane %v15931_v10, %v16591_v3  ;;  %v397_v41 = vrot.slane %v15931_v10, %v16597_v30 }
 0x175   :  { %22812 = vst [vmem:[#allocation97_spill] sm:$0xff] %v16661_v32  ;;  %22813 = vst [vmem:[#allocation98_spill] sm:$0xff] %v16667_v39  ;;  %v404_v52 = vrot.slane %v15931_v10, %v16600_v18  ;;  %v16711_v56 = vcombine.low %v327_v26, %v334_v59  ;;  %v362_v17 = vrot.slane %v15937_v5, %v16594_v7  ;;  %v9403_v26 = vsel %vm52_vm0, %v16484_v29, 0.0 }
 0x176   :  { %v16721_v49 = vcombine.low %v299_v9, %v306_v14  ;;  %v9400_v59 = vsel %vm52_vm0, %v16489_v54, 0.0  ;;  %v369_v14 = vrot.slane %v15937_v5, %v16597_v30  ;;  %v376_v29 = vrot.slane %v15937_v5, %v16600_v18  ;;  %v16748_v54 = vld [vmem:[%s22422_s0 + $0x188] sm:$0xff] }
 0x177   :  { %9392 = vadd.xlane.f32.xlu1 %v9391_v55  ;;  %9389 = vadd.xlane.f32.xlu0 %v9388_v61  ;;  %v1126_v55 = vrot.slane %v16651_v0, %v16649_v42  ;;  %v16719_v61 = vcombine.low %v341_v24, %v348_v6  ;;  %v1102_v0 = vrot.slane %v16675_v21, %v16649_v42  ;;  %v16753_v21 = vld [vmem:[%s22422_s0 + $0x180] sm:$0xff] }
 0x178   :  { %v16693_v27 = vpop.xlane.xlu1 %5678  ;;  %v16699_v53 = vpop.xlane.xlu0 %5675  ;;  %v1109_v24 = vrot.slane %v16691_v45, %v16649_v42  ;;  %v16737_v6 = vcombine.low %v383_v4, %v390_v2  ;;  %v16739_v9 = vcombine.low %v397_v41, %v404_v52  ;;  %v453_v45 = vrot.slane %v15949_v8, %v16597_v30 }
 0x179   :  { %22814 = vst [vmem:[#allocation99_spill] sm:$0xff] %v16693_v27  ;;  %22815 = vst [vmem:[#allocation100_spill] sm:$0xff] %v16699_v53  ;;  %v16723_v53 = vcombine.low %v313_v37, %v320_v34  ;;  %v439_v37 = vrot.slane %v15949_v8, %v16591_v3  ;;  %v446_v34 = vrot.slane %v15949_v8, %v16594_v7 }
 0x17a   :  { %v16761_v5 = vcombine.low %v355_v60, %v362_v17  ;;  %v418_v4 = vrot.slane %v15955_v13, %v16594_v7  ;;  %v425_v2 = vrot.slane %v15955_v13, %v16597_v30  ;;  %v432_v41 = vrot.slane %v15955_v13, %v16600_v18 }
 0x17b   :  { %9398 = vadd.xlane.f32.xlu1 %v9397_v62  ;;  %9395 = vadd.xlane.f32.xlu0 %v9394_v50  ;;  %v460_v62 = vrot.slane %v15949_v8, %v16600_v18  ;;  %v411_v50 = vrot.slane %v15955_v13, %v16591_v3  ;;  %v11177_v60 = vsel %vm52_vm0, %v16748_v54, -inf  ;;  %v11174_v8 = vsel %vm52_vm0, %v16753_v21, -inf }
 0x17c   :  { %v16725_v10 = vpop.xlane.xlu1 %5684  ;;  %v16731_v27 = vpop.xlane.xlu0 %5681  ;;  %v516_v13 = vrot.slane %v15967_v16, %v16600_v18  ;;  %v474_v39 = vrot.slane %v15973_v19, %v16594_v7  ;;  %v481_v32 = vrot.slane %v15973_v19, %v16597_v30  ;;  %v16807_v15 = vcombine.low %v369_v14, %v376_v29 }
 0x17d   :  { %22816 = vst [vmem:[#allocation101_spill] sm:$0xff] %v16725_v10  ;;  %22817 = vst [vmem:[#allocation102_spill] sm:$0xff] %v16731_v27  ;;  %v509_v27 = vrot.slane %v15967_v16, %v16597_v30  ;;  %v467_v10 = vrot.slane %v15973_v19, %v16591_v3  ;;  %v1143_v63 = vrot.slane %v16671_v33, %v16649_v42 }
 0x17e   :  { %v16823_v14 = vcombine.low %v1119_v20, %v1126_v55  ;;  %v16825_v29 = vcombine.low %v439_v37, %v446_v34  ;;  %v16827_v46 = vcombine.low %v453_v45, %v460_v62  ;;  %v16831_v33 = vcombine.low %v425_v2, %v432_v41  ;;  %v16885_v2 = vld [vmem:[%s22422_s0 + $0x390] sm:$0xff] }
 0x17f   :  { %9404 = vadd.xlane.f32.xlu1 %v9403_v26  ;;  %9401 = vadd.xlane.f32.xlu0 %v9400_v59  ;;  %v495_v26 = vrot.slane %v15967_v16, %v16591_v3  ;;  %v502_v59 = vrot.slane %v15967_v16, %v16594_v7  ;;  %v488_v16 = vrot.slane %v15973_v19, %v16600_v18  ;;  %v11228_v1 = vsel %vm52_vm0, %v16885_v2, -inf }
 0x180   :  { %v16773_v52 = vpop.xlane.xlu1 %5690  ;;  %v16779_v17 = vpop.xlane.xlu0 %5687  ;;  %v16821_v19 = vcombine.low %v1102_v0, %v1109_v24  ;;  %22823 = vst [vmem:[#allocation108_spill] sm:$0xff] %v16823_v14  ;;  %v16841_v0 = vld [vmem:[%s22422_s0 + $0x388] sm:$0xff]  ;;  %v16845_v55 = vcombine.low %v509_v27, %v516_v13  ;;  %v16847_v24 = vcombine.low %v467_v10, %v474_v39  ;;  %v551_v34 = vrot.slane %v15985_v22, %v16591_v3 }
 0x181   :  { %22818 = vst [vmem:[#allocation103_spill] sm:$0xff] %v16773_v52  ;;  %22819 = vst [vmem:[#allocation104_spill] sm:$0xff] %v16779_v17  ;;  %v16792_v52 = vld [vmem:[%s22422_s0 + $0x190] sm:$0xff]  ;;  %v16797_v17 = vld [vmem:[%s22422_s0 + $0x380] sm:$0xff]  ;;  %v16843_v20 = vcombine.low %v495_v26, %v502_v59  ;;  %v16849_v37 = vcombine.low %v481_v32, %v488_v16  ;;  %v558_v45 = vrot.slane %v15985_v22, %v16594_v7  ;;  %v11225_v10 = vsel %vm52_vm0, %v16841_v0, -inf }
 0x182   :  { %v11180_v40 = vsel %vm52_vm0, %v16792_v52, -inf  ;;  %v11222_v48 = vsel %vm52_vm0, %v16797_v17, -inf  ;;  %22822 = vst [vmem:[#allocation107_spill] sm:$0xff] %v16821_v19  ;;  %22825 = vst [vmem:[#allocation110_spill] sm:$0xff] %v16847_v24  ;;  %v16855_v62 = vcombine.low %v1136_v36, %v1143_v63  ;;  %v572_v27 = vrot.slane %v15985_v22, %v16600_v18  ;;  %v16880_v36 = vld [vmem:[%s22422_s0 + $0x1a0] sm:$0xff] }
 0x183   :  { %11178 = vmax.xlane.f32.xlu1 %v11177_v60  ;;  %11175 = vmax.xlane.f32.xlu0 %v11174_v8  ;;  %v16829_v60 = vcombine.low %v411_v50, %v418_v4  ;;  %v16836_v8 = vld [vmem:[%s22422_s0 + $0x198] sm:$0xff]  ;;  %22826 = vst [vmem:[#allocation111_spill] sm:$0xff] %v16849_v37  ;;  %v565_v50 = vrot.slane %v15985_v22, %v16597_v30  ;;  %22830 = vst [vmem:[#allocation115_spill] sm:$0xff] %v16880_v36  ;;  %v15490_v14 = vmov 0  }
 0x184   :  { %v16813_v44 = vpop.xlane.xlu1 %5696  ;;  %v16819_v57 = vpop.xlane.xlu0 %5693  ;;  %22824 = vst [vmem:[#allocation109_spill] sm:$0xff] %v16836_v8  ;;  %22827 = vst [vmem:[#allocation112_spill] sm:$0xff] %v16855_v62  ;;  %v11183_v32 = vsel %vm52_vm0, %v16836_v8, -inf  ;;  %v537_v63 = vrot.slane %v15991_v25, %v16597_v30  ;;  %v544_v22 = vrot.slane %v15991_v25, %v16600_v18  ;;  %v607_v41 = vrot.slane %v16003_v28, %v16591_v3 }
 0x185   :  { %22820 = vst [vmem:[#allocation105_spill] sm:$0xff] %v16813_v44  ;;  %22821 = vst [vmem:[#allocation106_spill] sm:$0xff] %v16819_v57  ;;  %v614_v26 = vrot.slane %v16003_v28, %v16594_v7  ;;  %v621_v59 = vrot.slane %v16003_v28, %v16597_v30  ;;  %v579_v13 = vrot.slane %v16009_v31, %v16591_v3  ;;  %15465 = vset.pattern.permute.xlu1 %v15490_v14 }
 0x186   :  { %v586_v16 = vrot.slane %v16009_v31, %v16594_v7  ;;  %v16903_v57 = vcombine.low %v565_v50, %v572_v27  ;;  %15464 = vset.pattern.permute.xlu0 %v15490_v14  ;;  %v1160_v50 = vrot.slane %v16723_v53, %v16649_v42  ;;  %v1085_v14 = vrot.slane %v16653_v47, %v16649_v42 }
 0x187   :  { %11181 = vmax.xlane.f32.xlu1 %v11180_v40  ;;  %11223 = vmax.xlane.f32.xlu0 %v11222_v48  ;;  %v523_v40 = vrot.slane %v15991_v25, %v16591_v3  ;;  %v530_v48 = vrot.slane %v15991_v25, %v16594_v7  ;;  %v628_v25 = vrot.slane %v16003_v28, %v16600_v18  ;;  %v11186_v28 = vsel %vm52_vm0, %v16880_v36, -inf }
 0x188   :  { %v16861_v39 = vpop.xlane.xlu1 %5702  ;;  %v16867_v4 = vpop.xlane.xlu0 %5699  ;;  %v16931_v27 = vcombine.low %v607_v41, %v614_v26  ;;  %v16943_v53 = vcombine.low %v579_v13, %v586_v16  ;;  %v677_v47 = vrot.slane %v16021_v38, %v16597_v30  ;;  %v684_v41 = vrot.slane %v16021_v38, %v16600_v18 }
 0x189   :  { %22828 = vst [vmem:[#allocation113_spill] sm:$0xff] %v16861_v39  ;;  %22829 = vst [vmem:[#allocation114_spill] sm:$0xff] %v16867_v4  ;;  %v1153_v4 = vrot.slane %v16721_v49, %v16649_v42  ;;  %v16901_v39 = vcombine.low %v551_v34, %v558_v45  ;;  %v16915_v49 = vcombine.low %v537_v63, %v544_v22  ;;  %v16920_v34 = vld [vmem:[%s22422_s0 + $0x1a8] sm:$0xff]  ;;  %v16925_v45 = vld [vmem:[%s22422_s0 + $0x398] sm:$0xff] }
 0x18a   :  { %22835 = vst [vmem:[#allocation120_spill] sm:$0xff] %v16920_v34  ;;  %v663_v63 = vrot.slane %v16021_v38, %v16591_v3  ;;  %v670_v22 = vrot.slane %v16021_v38, %v16594_v7  ;;  %22836 = vst [vmem:[#allocation121_spill] sm:$0xff] %v16943_v53  ;;  %v635_v13 = vrot.slane %v16027_v43, %v16591_v3 }
 0x18b   :  { %11184 = vmax.xlane.f32.xlu1 %v11183_v32  ;;  %11226 = vmax.xlane.f32.xlu0 %v11225_v10  ;;  %v16913_v32 = vcombine.low %v523_v40, %v530_v48  ;;  %22834 = vst [vmem:[#allocation119_spill] sm:$0xff] %v16915_v49  ;;  %v16933_v10 = vcombine.low %v621_v59, %v628_v25  ;;  %v11231_v59 = vsel %vm52_vm0, %v16925_v45, -inf }
 0x18c   :  { %v16905_v44 = vpop.xlane.xlu1 %5708  ;;  %v16911_v62 = vpop.xlane.xlu0 %5705  ;;  %v593_v40 = vrot.slane %v16009_v31, %v16597_v30  ;;  %v600_v48 = vrot.slane %v16009_v31, %v16600_v18  ;;  %v11189_v31 = vsel %vm52_vm0, %v16920_v34, -inf  ;;  %v649_v16 = vrot.slane %v16027_v43, %v16597_v30 }
 0x18d   :  { %22831 = vst [vmem:[#allocation116_spill] sm:$0xff] %v16905_v44  ;;  %22832 = vst [vmem:[#allocation117_spill] sm:$0xff] %v16911_v62  ;;  %v656_v38 = vrot.slane %v16027_v43, %v16600_v18  ;;  %v726_v62 = vrot.slane %v16039_v51, %v16594_v7  ;;  %v733_v44 = vrot.slane %v16039_v51, %v16597_v30 }
 0x18e   :  { %22833 = vst [vmem:[#allocation118_spill] sm:$0xff] %v16913_v32  ;;  %v740_v19 = vrot.slane %v16039_v51, %v16600_v18  ;;  %v691_v53 = vrot.slane %v16045_v58, %v16591_v3  ;;  %v698_v49 = vrot.slane %v16045_v58, %v16594_v7  ;;  %v16989_v34 = vcombine.low %v593_v40, %v600_v48  ;;  %v17012_v48 = vld [vmem:[%s22422_s0 + $0x1b8] sm:$0xff] }
 0x18f   :  { %11187 = vmax.xlane.f32.xlu1 %v11186_v28  ;;  %11229 = vmax.xlane.f32.xlu0 %v11228_v1  ;;  %v642_v1 = vrot.slane %v16027_v43, %v16594_v7  ;;  %v16968_v28 = vld [vmem:[%s22422_s0 + $0x1b0] sm:$0xff]  ;;  %v1092_v43 = vrot.slane %v16655_v35, %v16649_v42  ;;  %v17001_v37 = vcombine.low %v663_v63, %v670_v22 }
 0x190   :  { %v16949_v26 = vpop.xlane.xlu1 %7479  ;;  %v16955_v25 = vpop.xlane.xlu0 %7482  ;;  %22839 = vst [vmem:[#allocation124_spill] sm:$0xff] %v16968_v28  ;;  %22840 = vst [vmem:[#allocation125_spill] sm:$0xff] %v16989_v34  ;;  %v11192_v36 = vsel %vm52_vm0, %v16968_v28, -inf  ;;  %v17003_v24 = vcombine.low %v677_v47, %v684_v41  ;;  %v17007_v40 = vcombine.low %v649_v16, %v656_v38  ;;  %v1170_v22 = vrot.slane %v16711_v56, %v16649_v42 }
 0x191   :  { %22837 = vst [vmem:[#allocation122_spill] sm:$0xff] %v16949_v26  ;;  %22838 = vst [vmem:[#allocation123_spill] sm:$0xff] %v16955_v25  ;;  %v16973_v25 = vld [vmem:[%s22422_s0 + $0x3a0] sm:$0xff]  ;;  %v719_v26 = vrot.slane %v16039_v51, %v16591_v3  ;;  %v16999_v51 = vcombine.low %v1153_v4, %v1160_v50  ;;  %v705_v4 = vrot.slane %v16045_v58, %v16597_v30 }
 0x192   :  { %v11234_v35 = vsel %vm52_vm0, %v16973_v25, -inf  ;;  %22845 = vst [vmem:[#allocation130_spill] sm:$0xff] %v17007_v40  ;;  %22846 = vst [vmem:[#allocation131_spill] sm:$0xff] %v17012_v48  ;;  %v712_v50 = vrot.slane %v16045_v58, %v16600_v18  ;;  %v17023_v63 = vcombine.low %v1085_v14, %v1092_v43  ;;  %v17029_v41 = vcombine.low %v733_v44, %v740_v19 }
 0x193   :  { %11190 = vmax.xlane.f32.xlu1 %v11189_v31  ;;  %11232 = vmax.xlane.f32.xlu0 %v11231_v59  ;;  %22843 = vst [vmem:[#allocation128_spill] sm:$0xff] %v16999_v51  ;;  %v17005_v31 = vcombine.low %v635_v13, %v642_v1  ;;  %v17017_v59 = vld [vmem:[%s22422_s0 + $0x3a8] sm:$0xff]  ;;  %v17027_v47 = vcombine.low %v719_v26, %v726_v62  ;;  %v11195_v58 = vsel %vm52_vm0, %v17012_v48, -inf }
 0x194   :  { %v16991_v32 = vpop.xlane.xlu1 %7488  ;;  %v16997_v8 = vpop.xlane.xlu0 %7485  ;;  %22847 = vst [vmem:[#allocation132_spill] sm:$0xff] %v17023_v63  ;;  %22849 = vst [vmem:[#allocation134_spill] sm:$0xff] %v17029_v41  ;;  %v17031_v13 = vcombine.low %v691_v53, %v698_v49  ;;  %v775_v1 = vrot.slane %v16057_v11, %v16591_v3  ;;  %v11237_v14 = vsel %vm52_vm0, %v17017_v59, -inf  ;;  %v1177_v44 = vrot.slane %v16719_v61, %v16649_v42  ;;  %v17056_v53 = vld [vmem:[%s22422_s0 + $0x1c0] sm:$0xff]  ;;  %v17061_v61 = vld [vmem:[%s22422_s0 + $0x3b0] sm:$0xff] }
 0x195   :  { %22841 = vst [vmem:[#allocation126_spill] sm:$0xff] %v16991_v32  ;;  %22842 = vst [vmem:[#allocation127_spill] sm:$0xff] %v16997_v8  ;;  %v782_v19 = vrot.slane %v16057_v11, %v16594_v7  ;;  %v789_v62 = vrot.slane %v16057_v11, %v16597_v30  ;;  %v747_v49 = vrot.slane %v16063_v12, %v16591_v3  ;;  %v22855_v8 = vld [vmem:[#allocation4_spill] sm:$0xff] }
 0x196   :  { %22844 = vst [vmem:[#allocation129_spill] sm:$0xff] %v17005_v31  ;;  %22848 = vst [vmem:[#allocation133_spill] sm:$0xff] %v17027_v47  ;;  %v831_v26 = vrot.slane %v16075_v23, %v16591_v3  ;;  %v754_v38 = vrot.slane %v16063_v12, %v16594_v7  ;;  %v768_v43 = vrot.slane %v16063_v12, %v16600_v18 }
 0x197   :  { %22850 = vst [vmem:[#allocation135_spill] sm:$0xff] %v17031_v13  ;;  %11193 = vmax.xlane.f32.xlu1 %v11192_v36  ;;  %11235 = vmax.xlane.f32.xlu0 %v11234_v35  ;;  %v796_v36 = vrot.slane %v16057_v11, %v16600_v18  ;;  %22853 = vst [vmem:[#allocation138_spill] sm:$0xff] %v17056_v53  ;;  %v761_v11 = vrot.slane %v16063_v12, %v16597_v30  ;;  %v11198_v12 = vsel %vm52_vm0, %v17056_v53, -inf }
 0x198   :  { %v17035_v16 = vpop.xlane.xlu1 %7494  ;;  %v17041_v56 = vpop.xlane.xlu0 %7491  ;;  %22854 = vst [vmem:[#allocation139_spill] sm:$0xff] %v17061_v61  ;;  %v838_v35 = vrot.slane %v16075_v23, %v16594_v7  ;;  %v803_v32 = vrot.slane %v22855_v8, %v16591_v3  ;;  %v810_v63 = vrot.slane %v22855_v8, %v16594_v7  ;;  %v11240_v13 = vsel %vm52_vm0, %v17061_v61, -inf }
 0x199   :  { %22851 = vst [vmem:[#allocation136_spill] sm:$0xff] %v17035_v16  ;;  %22852 = vst [vmem:[#allocation137_spill] sm:$0xff] %v17041_v56  ;;  %v845_v56 = vrot.slane %v16075_v23, %v16597_v30  ;;  %v852_v16 = vrot.slane %v16075_v23, %v16600_v18  ;;  %v817_v23 = vrot.slane %v22855_v8, %v16597_v30 }
 0x19a   :  { %v1238_v31 = vrot.slane %v16825_v29, %v16649_v42  ;;  %v17107_v34 = vcombine.low %v775_v1, %v782_v19  ;;  %v17109_v53 = vcombine.low %v789_v62, %v796_v36  ;;  %v17113_v41 = vcombine.low %v747_v49, %v754_v38  ;;  %v22867_v19 = vld [vmem:[#allocation5_spill] sm:$0xff]  ;;  %v22871_v36 = vld [vmem:[#allocation6_spill] sm:$0xff] }
 0x19b   :  { %11196 = vmax.xlane.f32.xlu1 %v11195_v58  ;;  %11238 = vmax.xlane.f32.xlu0 %v11237_v14  ;;  %v824_v58 = vrot.slane %v22855_v8, %v16600_v18  ;;  %v17096_v14 = vld [vmem:[%s22422_s0 + $0x1c8] sm:$0xff]  ;;  %v17111_v8 = vcombine.low %v705_v4, %v712_v50  ;;  %v17115_v48 = vcombine.low %v831_v26, %v838_v35 }
 0x19c   :  { %v17081_v51 = vpop.xlane.xlu1 %7500  ;;  %v17087_v40 = vpop.xlane.xlu0 %7497  ;;  %22859 = vst [vmem:[#allocation142_spill] sm:$0xff] %v17113_v41  ;;  %v17117_v47 = vcombine.low %v761_v11, %v768_v43  ;;  %v17119_v28 = vcombine.low %v1170_v22, %v1177_v44  ;;  %v17121_v29 = vcombine.low %v845_v56, %v852_v16  ;;  %v17123_v61 = vcombine.low %v803_v32, %v810_v63  ;;  %v17142_v32 = vld [vmem:[%s22422_s0 + $0x1d0] sm:$0xff]  ;;  %v17147_v63 = vld [vmem:[%s22422_s0 + $0x3c0] sm:$0xff] }
 0x19d   :  { %22856 = vst [vmem:[#allocation4_spill] sm:$0xff] %v17081_v51  ;;  %22857 = vst [vmem:[#allocation140_spill] sm:$0xff] %v17087_v40  ;;  %v17101_v51 = vld [vmem:[%s22422_s0 + $0x3b8] sm:$0xff]  ;;  %v1245_v40 = vrot.slane %v16827_v46, %v16649_v42  ;;  %v11201_v4 = vsel %vm52_vm0, %v17096_v14, -inf  ;;  %v887_v62 = vrot.slane %v22867_v19, %v16591_v3  ;;  %v894_v22 = vrot.slane %v22867_v19, %v16594_v7 }
 0x19e   :  { %22858 = vst [vmem:[#allocation141_spill] sm:$0xff] %v17111_v8  ;;  %22860 = vst [vmem:[#allocation143_spill] sm:$0xff] %v17115_v48  ;;  %v11243_v50 = vsel %vm52_vm0, %v17101_v51, -inf  ;;  %v901_v56 = vrot.slane %v22867_v19, %v16597_v30  ;;  %v908_v44 = vrot.slane %v22867_v19, %v16600_v18  ;;  %v859_v49 = vrot.slane %v22871_v36, %v16591_v3 }
 0x19f   :  { %22861 = vst [vmem:[#allocation144_spill] sm:$0xff] %v17117_v47  ;;  %11199 = vmax.xlane.f32.xlu1 %v11198_v12  ;;  %11241 = vmax.xlane.f32.xlu0 %v11240_v13  ;;  %22862 = vst [vmem:[#allocation145_spill] sm:$0xff] %v17119_v28  ;;  %v17137_v13 = vcombine.low %v817_v23, %v824_v58  ;;  %v17149_v16 = vcombine.low %v1238_v31, %v1245_v40  ;;  %v22872_v40 = vld [vmem:[#allocation7_spill] sm:$0xff]  ;;  %v11246_v23 = vsel %vm52_vm0, %v17147_v63, -inf }
 0x1a0   :  { %22863 = vst [vmem:[#allocation146_spill] sm:$0xff] %v17121_v29  ;;  %22864 = vst [vmem:[#allocation147_spill] sm:$0xff] %v17123_v61  ;;  %v17125_v46 = vpop.xlane.xlu1 %7506  ;;  %v17131_v1 = vpop.xlane.xlu0 %7503  ;;  %v1187_v26 = vrot.slane %v16761_v5, %v16649_v42  ;;  %v866_v38 = vrot.slane %v22871_v36, %v16594_v7  ;;  %v873_v11 = vrot.slane %v22871_v36, %v16597_v30  ;;  %v11204_v5 = vsel %vm52_vm0, %v17142_v32, -inf }
 0x1a1   :  { %22865 = vst [vmem:[#allocation148_spill] sm:$0xff] %v17125_v46  ;;  %22866 = vst [vmem:[#allocation149_spill] sm:$0xff] %v17131_v1  ;;  %v880_v31 = vrot.slane %v22871_v36, %v16600_v18  ;;  %v943_v43 = vrot.slane %v22872_v40, %v16591_v3  ;;  %v950_v35 = vrot.slane %v22872_v40, %v16594_v7  ;;  %v17186_v36 = vld [vmem:[%s22422_s0 + $0x1d8] sm:$0xff] }
 0x1a2   :  { %22868 = vst [vmem:[#allocation5_spill] sm:$0xff] %v17137_v13  ;;  %22869 = vst [vmem:[#allocation150_spill] sm:$0xff] %v17142_v32  ;;  %v17177_v19 = vcombine.low %v887_v62, %v894_v22  ;;  %v1194_v62 = vrot.slane %v16807_v15, %v16649_v42  ;;  %v22877_v22 = vld [vmem:[#allocation8_spill] sm:$0xff]  ;;  %v17205_v28 = vcombine.low %v859_v49, %v866_v38  ;;  %v11207_v47 = vsel %vm52_vm0, %v17186_v36, -inf }
 0x1a3   :  { %22870 = vst [vmem:[#allocation151_spill] sm:$0xff] %v17149_v16  ;;  %11202 = vmax.xlane.f32.xlu1 %v11201_v4  ;;  %11244 = vmax.xlane.f32.xlu0 %v11243_v50  ;;  %v957_v4 = vrot.slane %v22872_v40, %v16597_v30  ;;  %v964_v50 = vrot.slane %v22872_v40, %v16600_v18  ;;  %22876 = vst [vmem:[#allocation153_spill] sm:$0xff] %v17186_v36  ;;  %v13006_v32 = vsel %vm52_vm0, %v16753_v21, 0.0 }
 0x1a4   :  { %v17169_v12 = vpop.xlane.xlu1 %7512  ;;  %v17175_v58 = vpop.xlane.xlu0 %7509  ;;  %22875 = vst [vmem:[#allocation152_spill] sm:$0xff] %v17177_v19  ;;  %v922_v1 = vrot.slane %v22877_v22, %v16594_v7  ;;  %v929_v40 = vrot.slane %v22877_v22, %v16597_v30  ;;  %v936_v46 = vrot.slane %v22877_v22, %v16600_v18  ;;  %v17203_v16 = vcombine.low %v901_v56, %v908_v44  ;;  %v22884_v44 = vld [vmem:[#allocation9_spill] sm:$0xff] }
 0x1a5   :  { %22873 = vst [vmem:[#allocation6_spill] sm:$0xff] %v17169_v12  ;;  %22874 = vst [vmem:[#allocation7_spill] sm:$0xff] %v17175_v58  ;;  %v17191_v12 = vld [vmem:[%s22422_s0 + $0x3c8] sm:$0xff]  ;;  %v915_v58 = vrot.slane %v22877_v22, %v16591_v3  ;;  %v17207_v13 = vcombine.low %v873_v11, %v880_v31  ;;  %v17209_v15 = vcombine.low %v943_v43, %v950_v35  ;;  %v17232_v43 = vld [vmem:[%s22422_s0 + $0x1e0] sm:$0xff] }
 0x1a6   :  { %22878 = vst [vmem:[#allocation8_spill] sm:$0xff] %v17203_v16  ;;  %22879 = vst [vmem:[#allocation154_spill] sm:$0xff] %v17205_v28  ;;  %v11249_v41 = vsel %vm52_vm0, %v17191_v12, -inf  ;;  %v1272_v56 = vrot.slane %v16843_v20, %v16649_v42  ;;  %v999_v49 = vrot.slane %v22884_v44, %v16591_v3  ;;  %v1006_v38 = vrot.slane %v22884_v44, %v16594_v7  ;;  %v17237_v20 = vld [vmem:[%s22422_s0 + $0x3d0] sm:$0xff] }
 0x1a7   :  { %22880 = vst [vmem:[#allocation155_spill] sm:$0xff] %v17207_v13  ;;  %11205 = vmax.xlane.f32.xlu1 %v11204_v5  ;;  %11247 = vmax.xlane.f32.xlu0 %v11246_v23  ;;  %22881 = vst [vmem:[#allocation156_spill] sm:$0xff] %v17209_v15  ;;  %v1013_v11 = vrot.slane %v22884_v44, %v16597_v30  ;;  %v1020_v31 = vrot.slane %v22884_v44, %v16600_v18  ;;  %v22890_v44 = vld [vmem:[#allocation10_spill] sm:$0xff]  ;;  %v22920_v15 = vld [vmem:[#allocation17_spill] sm:$0xff] }
 0x1a8   :  { %v17211_v61 = vpop.xlane.xlu1 %7518  ;;  %v17217_v19 = vpop.xlane.xlu0 %7515  ;;  %22885 = vst [vmem:[#allocation9_spill] sm:$0xff] %v17232_v43  ;;  %v17239_v35 = vcombine.low %v957_v4, %v964_v50  ;;  %v17241_v5 = vcombine.low %v915_v58, %v922_v1  ;;  %v17243_v23 = vcombine.low %v929_v40, %v936_v46  ;;  %v17245_v22 = vcombine.low %v1187_v26, %v1194_v62 }
 0x1a9   :  { %22882 = vst [vmem:[#allocation157_spill] sm:$0xff] %v17211_v61  ;;  %22883 = vst [vmem:[#allocation158_spill] sm:$0xff] %v17217_v19  ;;  %v971_v19 = vrot.slane %v22890_v44, %v16591_v3  ;;  %v978_v61 = vrot.slane %v22890_v44, %v16594_v7  ;;  %v1279_v13 = vrot.slane %v16845_v55, %v16649_v42  ;;  %v11210_v26 = vsel %vm52_vm0, %v17232_v43, -inf  ;;  %v22895_v55 = vld [vmem:[#allocation11_spill] sm:$0xff] }
 0x1aa   :  { %22886 = vst [vmem:[#allocation159_spill] sm:$0xff] %v17239_v35  ;;  %22887 = vst [vmem:[#allocation160_spill] sm:$0xff] %v17241_v5  ;;  %v985_v4 = vrot.slane %v22890_v44, %v16597_v30  ;;  %v992_v46 = vrot.slane %v22890_v44, %v16600_v18  ;;  %v11252_v58 = vsel %vm52_vm0, %v17237_v20, -inf  ;;  %v1055_v62 = vrot.slane %v22895_v55, %v16591_v3  ;;  %v17276_v44 = vld [vmem:[%s22422_s0 + $0x1e8] sm:$0xff] }
 0x1ab   :  { %22888 = vst [vmem:[#allocation161_spill] sm:$0xff] %v17243_v23  ;;  %22889 = vst [vmem:[#allocation162_spill] sm:$0xff] %v17245_v22  ;;  %11208 = vmax.xlane.f32.xlu1 %v11207_v47  ;;  %11250 = vmax.xlane.f32.xlu0 %v11249_v41  ;;  %v17265_v47 = vcombine.low %v999_v49, %v1006_v38  ;;  %v17267_v41 = vcombine.low %v1013_v11, %v1020_v31  ;;  %v22897_v11 = vld [vmem:[#allocation12_spill] sm:$0xff] }
 0x1ac   :  { %v17257_v1 = vpop.xlane.xlu1 %7524  ;;  %v17263_v50 = vpop.xlane.xlu0 %7521  ;;  %v1062_v40 = vrot.slane %v22895_v55, %v16594_v7  ;;  %22896 = vst [vmem:[#allocation11_spill] sm:$0xff] %v17276_v44  ;;  %v1069_v49 = vrot.slane %v22895_v55, %v16597_v30  ;;  %v1076_v38 = vrot.slane %v22895_v55, %v16600_v18  ;;  %v1027_v31 = vrot.slane %v22897_v11, %v16591_v3 }
 0x1ad   :  { %22891 = vst [vmem:[#allocation10_spill] sm:$0xff] %v17257_v1  ;;  %22892 = vst [vmem:[#allocation163_spill] sm:$0xff] %v17263_v50  ;;  %v17281_v1 = vld [vmem:[%s22422_s0 + $0x3d8] sm:$0xff]  ;;  %v1034_v50 = vrot.slane %v22897_v11, %v16594_v7  ;;  %v17291_v23 = vcombine.low %v971_v19, %v978_v61  ;;  %v1041_v5 = vrot.slane %v22897_v11, %v16597_v30  ;;  %v11213_v55 = vsel %vm52_vm0, %v17276_v44, -inf }
 0x1ae   :  { %22893 = vst [vmem:[#allocation164_spill] sm:$0xff] %v17265_v47  ;;  %22894 = vst [vmem:[#allocation165_spill] sm:$0xff] %v17267_v41  ;;  %v1048_v22 = vrot.slane %v22897_v11, %v16600_v18  ;;  %v17297_v28 = vcombine.low %v985_v4, %v992_v46  ;;  %v11255_v47 = vsel %vm52_vm0, %v17281_v1, -inf  ;;  %v17307_v19 = vcombine.low %v1272_v56, %v1279_v13  ;;  %v17325_v13 = vld [vmem:[%s22422_s0 + $0x3e0] sm:$0xff] }
 0x1af   :  { %22898 = vst [vmem:[#allocation12_spill] sm:$0xff] %v17291_v23  ;;  %11211 = vmax.xlane.f32.xlu1 %v11210_v26  ;;  %11253 = vmax.xlane.f32.xlu0 %v11252_v58  ;;  %v22903_v23 = vld [vmem:[#allocation13_spill] sm:$0xff]  ;;  %v17320_v58 = vld [vmem:[%s22422_s0 + $0x1f0] sm:$0xff]  ;;  %v17327_v56 = vcombine.low %v1055_v62, %v1062_v40  ;;  %v17329_v11 = vcombine.low %v1069_v49, %v1076_v38  ;;  %v22909_v62 = vld [vmem:[#allocation14_spill] sm:$0xff] }
 0x1b0   :  { %22899 = vst [vmem:[#allocation166_spill] sm:$0xff] %v17297_v28  ;;  %v17299_v41 = vpop.xlane.xlu1 %7530  ;;  %v17305_v61 = vpop.xlane.xlu0 %7527  ;;  %22902 = vst [vmem:[#allocation169_spill] sm:$0xff] %v17307_v19  ;;  %v2052_v35 = vrot.slane %v22903_v23, %v16591_v3  ;;  %v2059_v26 = vrot.slane %v22903_v23, %v16594_v7  ;;  %v2066_v4 = vrot.slane %v22903_v23, %v16597_v30 }
 0x1b1   :  { %22900 = vst [vmem:[#allocation167_spill] sm:$0xff] %v17299_v41  ;;  %22901 = vst [vmem:[#allocation168_spill] sm:$0xff] %v17305_v61  ;;  %v2073_v46 = vrot.slane %v22903_v23, %v16600_v18  ;;  %v17331_v61 = vcombine.low %v1027_v31, %v1034_v50  ;;  %v1204_v41 = vrot.slane %v16737_v6, %v16649_v42  ;;  %v11216_v6 = vsel %vm52_vm0, %v17320_v58, -inf  ;;  %v17364_v31 = vld [vmem:[%s22422_s0 + $0x1f8] sm:$0xff] }
 0x1b2   :  { %22904 = vst [vmem:[#allocation13_spill] sm:$0xff] %v17320_v58  ;;  %22905 = vst [vmem:[#allocation170_spill] sm:$0xff] %v17327_v56  ;;  %v17335_v23 = vcombine.low %v1041_v5, %v1048_v22  ;;  %v1211_v28 = vrot.slane %v16739_v9, %v16649_v42  ;;  %v1306_v19 = vrot.slane %v16901_v39, %v16649_v42  ;;  %v11258_v5 = vsel %vm52_vm0, %v17325_v13, -inf }
 0x1b3   :  { %22906 = vst [vmem:[#allocation171_spill] sm:$0xff] %v17329_v11  ;;  %22907 = vst [vmem:[#allocation172_spill] sm:$0xff] %v17331_v61  ;;  %11214 = vmax.xlane.f32.xlu1 %v11213_v55  ;;  %11256 = vmax.xlane.f32.xlu0 %v11255_v47  ;;  %v2080_v40 = vrot.slane %v22909_v62, %v16591_v3  ;;  %v2087_v50 = vrot.slane %v22909_v62, %v16594_v7  ;;  %v17369_v55 = vld [vmem:[%s22422_s0 + $0x3e8] sm:$0xff] }
 0x1b4   :  { %22908 = vst [vmem:[#allocation173_spill] sm:$0xff] %v17335_v23  ;;  %v17345_v49 = vpop.xlane.xlu1 %7536  ;;  %v17351_v22 = vpop.xlane.xlu0 %7533  ;;  %v17353_v9 = vcombine.low %v2052_v35, %v2059_v26  ;;  %v17355_v47 = vcombine.low %v2066_v4, %v2073_v46  ;;  %v2094_v39 = vrot.slane %v22909_v62, %v16597_v30  ;;  %v2101_v38 = vrot.slane %v22909_v62, %v16600_v18  ;;  %v22916_v35 = vld [vmem:[#allocation15_spill] sm:$0xff] }
 0x1b5   :  { %22910 = vst [vmem:[#allocation14_spill] sm:$0xff] %v17345_v49  ;;  %22911 = vst [vmem:[#allocation174_spill] sm:$0xff] %v17351_v22  ;;  %v2136_v26 = vrot.slane %v22916_v35, %v16591_v3  ;;  %v2143_v4 = vrot.slane %v22916_v35, %v16594_v7  ;;  %v2150_v46 = vrot.slane %v22916_v35, %v16597_v30  ;;  %v22917_v49 = vld [vmem:[#allocation16_spill] sm:$0xff] }
 0x1b6   :  { %22912 = vst [vmem:[#allocation175_spill] sm:$0xff] %v17353_v9  ;;  %22913 = vst [vmem:[#allocation176_spill] sm:$0xff] %v17355_v47  ;;  %v1313_v62 = vrot.slane %v16903_v57, %v16649_v42  ;;  %v2157_v22 = vrot.slane %v22916_v35, %v16600_v18  ;;  %v2108_v23 = vrot.slane %v22917_v49, %v16591_v3  ;;  %v11219_v57 = vsel %vm52_vm0, %v17364_v31, -inf }
 0x1b7   :  { %22914 = vst [vmem:[#allocation177_spill] sm:$0xff] %v17364_v31  ;;  %22915 = vst [vmem:[#allocation178_spill] sm:$0xff] %v17369_v55  ;;  %v2115_v61 = vrot.slane %v22917_v49, %v16594_v7  ;;  %11217 = vmax.xlane.f32.xlu1 %v11216_v6  ;;  %11259 = vmax.xlane.f32.xlu0 %v11258_v5  ;;  %v2122_v47 = vrot.slane %v22917_v49, %v16597_v30  ;;  %v11261_v35 = vsel %vm52_vm0, %v17369_v55, -inf  ;;  %v22921_v31 = vld [vmem:[#allocation18_spill] sm:$0xff] }
 0x1b8   :  { %v2129_v9 = vrot.slane %v22917_v49, %v16600_v18  ;;  %v17389_v11 = vpop.xlane.xlu1 %7542  ;;  %v17395_v56 = vpop.xlane.xlu0 %7539  ;;  %v2192_v6 = vrot.slane %v22920_v15, %v16591_v3  ;;  %v2199_v5 = vrot.slane %v22920_v15, %v16594_v7  ;;  %v2206_v16 = vrot.slane %v22920_v15, %v16597_v30 }
 0x1b9   :  { %22918 = vst [vmem:[#allocation15_spill] sm:$0xff] %v17389_v11  ;;  %22919 = vst [vmem:[#allocation16_spill] sm:$0xff] %v17395_v56  ;;  %v2213_v49 = vrot.slane %v22920_v15, %v16600_v18  ;;  %v17408_v11 = vld [vmem:[%s22422_s0 + $0x3f0] sm:$0xff]  ;;  %v2164_v56 = vrot.slane %v22921_v31, %v16591_v3  ;;  %v2171_v8 = vrot.slane %v22921_v31, %v16594_v7 }
 0x1ba   :  { %v2178_v58 = vrot.slane %v22921_v31, %v16597_v30  ;;  %v2185_v29 = vrot.slane %v22921_v31, %v16600_v18  ;;  %v17418_v48 = vcombine.low %v2080_v40, %v2087_v50  ;;  %v17420_v15 = vcombine.low %v2094_v39, %v2101_v38 }
 0x1bb   :  { %11220 = vmax.xlane.f32.xlu1 %v11219_v57  ;;  %11262 = vmax.xlane.f32.xlu0 %v11261_v35  ;;  %v17422_v44 = vcombine.low %v1204_v41, %v1211_v28  ;;  %v17424_v43 = vcombine.low %v2136_v26, %v2143_v4  ;;  %v17426_v36 = vcombine.low %v2150_v46, %v2157_v22  ;;  %v11264_v31 = vsel %vm52_vm0, %v17408_v11, -inf  ;;  %v17443_v28 = vld [vmem:[%s22422_s0 + $0x3f8] sm:$0xff]  ;;  %s15491_s0 = smov 1  }
 0x1bc   :  { %22922 = vst [vmem:[#allocation17_spill] sm:$0xff] %v17418_v48  ;;  %22923 = vst [vmem:[#allocation18_spill] sm:$0xff] %v17420_v15  ;;  %v17428_v55 = vpop.xlane.xlu1 %7548  ;;  %v17434_v40 = vpop.xlane.xlu0 %7545  ;;  %v17436_v50 = vcombine.low %v2108_v23, %v2115_v61  ;;  %v17438_v39 = vcombine.low %v2122_v47, %v2129_v9  ;;  %v17445_v41 = vcombine.low %v1306_v19, %v1313_v62  ;;  %v22930_v23 = vld [vmem:[#allocation19_spill] sm:$0xff]  ;;  %v22934_v57 = vld [vmem:[#allocation21_spill] sm:$0xff] }
 0x1bd   :  { %22924 = vst [vmem:[#allocation179_spill] sm:$0xff] %v17428_v55  ;;  %22925 = vst [vmem:[#allocation180_spill] sm:$0xff] %v17434_v40  ;;  %v1221_v22 = vrot.slane %v16829_v60, %v16649_v42  ;;  %v17449_v21 = vcombine.low %v2192_v6, %v2199_v5  ;;  %v17451_v38 = vcombine.low %v2206_v16, %v2213_v49  ;;  %v22935_v49 = vld [vmem:[#allocation22_spill] sm:$0xff]  ;;  %v13009_v55 = vsel %vm52_vm0, %v16748_v54, 0.0 }
 0x1be   :  { %22926 = vst [vmem:[#allocation181_spill] sm:$0xff] %v17436_v50  ;;  %22927 = vst [vmem:[#allocation182_spill] sm:$0xff] %v17438_v39  ;;  %v17453_v26 = vcombine.low %v2164_v56, %v2171_v8  ;;  %v17455_v61 = vcombine.low %v2178_v58, %v2185_v29  ;;  %v2248_v9 = vrot.slane %v22930_v23, %v16591_v3  ;;  %v13057_v29 = vsel %vm52_vm0, %v16841_v0, 0.0 }
 0x1bf   :  { %v2255_v47 = vrot.slane %v22930_v23, %v16594_v7  ;;  %13007 = vadd.xlane.f32.xlu1 %v13006_v32  ;;  %11265 = vmax.xlane.f32.xlu0 %v11264_v31  ;;  %v1228_v19 = vrot.slane %v16831_v33, %v16649_v42  ;;  %v2262_v60 = vrot.slane %v22930_v23, %v16597_v30  ;;  %v11267_v58 = vsel %vm52_vm0, %v17443_v28, -inf  ;;  %v22933_v32 = vld [vmem:[#allocation20_spill] sm:$0xff] }
 0x1c0   :  { %22928 = vst [vmem:[#allocation183_spill] sm:$0xff] %v17453_v26  ;;  %22929 = vst [vmem:[#allocation184_spill] sm:$0xff] %v17455_v61  ;;  %v2269_v8 = vrot.slane %v22930_v23, %v16600_v18  ;;  %v17467_v16 = vpop.xlane.xlu1 %7554  ;;  %v17473_v56 = vpop.xlane.xlu0 %7551  ;;  %v2220_v4 = vrot.slane %v22933_v32, %v16591_v3  ;;  %v2227_v33 = vrot.slane %v22933_v32, %v16594_v7 }
 0x1c1   :  { %22931 = vst [vmem:[#allocation19_spill] sm:$0xff] %v17467_v16  ;;  %22932 = vst [vmem:[#allocation185_spill] sm:$0xff] %v17473_v56  ;;  %v2234_v46 = vrot.slane %v22933_v32, %v16597_v30  ;;  %v2241_v62 = vrot.slane %v22933_v32, %v16600_v18  ;;  %v2304_v0 = vrot.slane %v22934_v57, %v16591_v3 }
 0x1c2   :  { %v2311_v35 = vrot.slane %v22934_v57, %v16594_v7  ;;  %v2318_v6 = vrot.slane %v22934_v57, %v16597_v30  ;;  %v2325_v5 = vrot.slane %v22934_v57, %v16600_v18  ;;  %v2276_v31 = vrot.slane %v22935_v49, %v16591_v3 }
 0x1c3   :  { %v2283_v23 = vrot.slane %v22935_v49, %v16594_v7  ;;  %13058 = vadd.xlane.f32.xlu1 %v13057_v29  ;;  %11268 = vmax.xlane.f32.xlu0 %v11267_v58  ;;  %v1340_v32 = vrot.slane %v16931_v27, %v16649_v42  ;;  %v17497_v56 = vcombine.low %v2248_v9, %v2255_v47  ;;  %v13060_v57 = vsel %vm52_vm0, %v16885_v2, 0.0 }
 0x1c4   :  { %v17499_v16 = vcombine.low %v2262_v60, %v2269_v8  ;;  %v17501_v40 = vpop.xlane.xlu1 %7560  ;;  %v17507_v61 = vpop.xlane.xlu0 %7557  ;;  %v17509_v26 = vcombine.low %v2220_v4, %v2227_v33  ;;  %v17511_v29 = vcombine.low %v2234_v46, %v2241_v62  ;;  %v17513_v58 = vcombine.low %v1221_v22, %v1228_v19  ;;  %v22944_v60 = vld [vmem:[#allocation23_spill] sm:$0xff] }
 0x1c5   :  { %22936 = vst [vmem:[#allocation20_spill] sm:$0xff] %v17497_v56  ;;  %22938 = vst [vmem:[#allocation22_spill] sm:$0xff] %v17501_v40  ;;  %v1347_v27 = vrot.slane %v16933_v10, %v16649_v42  ;;  %v17517_v9 = vcombine.low %v2304_v0, %v2311_v35  ;;  %v17519_v47 = vcombine.low %v2318_v6, %v2325_v5  ;;  %v13063_v46 = vsel %vm52_vm0, %v16925_v45, 0.0  ;;  %v22948_v35 = vld [vmem:[#allocation24_spill] sm:$0xff]  ;;  %v22950_v45 = vld [vmem:[#allocation25_spill] sm:$0xff] }
 0x1c6   :  { %22937 = vst [vmem:[#allocation21_spill] sm:$0xff] %v17499_v16  ;;  %22939 = vst [vmem:[#allocation186_spill] sm:$0xff] %v17507_v61  ;;  %v2290_v2 = vrot.slane %v22935_v49, %v16597_v30  ;;  %v2297_v54 = vrot.slane %v22935_v49, %v16600_v18  ;;  %v2360_v8 = vrot.slane %v22944_v60, %v16591_v3  ;;  %v13054_v62 = vsel %vm52_vm0, %v16797_v17, 0.0 }
 0x1c7   :  { %22940 = vst [vmem:[#allocation187_spill] sm:$0xff] %v17509_v26  ;;  %22941 = vst [vmem:[#allocation188_spill] sm:$0xff] %v17511_v29  ;;  %v2367_v22 = vrot.slane %v22944_v60, %v16594_v7  ;;  %v17529_v19 = vcombine.low %v2276_v31, %v2283_v23  ;;  %13061 = vadd.xlane.f32.xlu1 %v13060_v57  ;;  %13010 = vadd.xlane.f32.xlu0 %v13009_v55  ;;  %v13012_v61 = vsel %vm52_vm0, %v16792_v52, 0.0 }
 0x1c8   :  { %22942 = vst [vmem:[#allocation189_spill] sm:$0xff] %v17517_v9  ;;  %22943 = vst [vmem:[#allocation190_spill] sm:$0xff] %v17519_v47  ;;  %v2374_v10 = vrot.slane %v22944_v60, %v16597_v30  ;;  %v2381_v4 = vrot.slane %v22944_v60, %v16600_v18  ;;  %v17535_v33 = vpop.xlane.xlu1 %7566  ;;  %v17541_v0 = vpop.xlane.xlu0 %7563  ;;  %v2332_v6 = vrot.slane %v22948_v35, %v16591_v3 }
 0x1c9   :  { %22945 = vst [vmem:[#allocation23_spill] sm:$0xff] %v17529_v19  ;;  %22946 = vst [vmem:[#allocation191_spill] sm:$0xff] %v17535_v33  ;;  %v2339_v55 = vrot.slane %v22948_v35, %v16594_v7  ;;  %v2346_v5 = vrot.slane %v22948_v35, %v16597_v30  ;;  %v2353_v49 = vrot.slane %v22948_v35, %v16600_v18 }
 0x1ca   :  { %22947 = vst [vmem:[#allocation192_spill] sm:$0xff] %v17541_v0  ;;  %v17551_v31 = vcombine.low %v2290_v2, %v2297_v54  ;;  %v2416_v23 = vrot.slane %v22950_v45, %v16591_v3  ;;  %v2423_v17 = vrot.slane %v22950_v45, %v16594_v7  ;;  %v2430_v57 = vrot.slane %v22950_v45, %v16597_v30  ;;  %v22951_v0 = vld [vmem:[#allocation26_spill] sm:$0xff] }
 0x1cb   :  { %v2437_v60 = vrot.slane %v22950_v45, %v16600_v18  ;;  %v2388_v33 = vrot.slane %v22951_v0, %v16591_v3  ;;  %v2395_v35 = vrot.slane %v22951_v0, %v16594_v7  ;;  %13064 = vadd.xlane.f32.xlu1 %v13063_v46  ;;  %13055 = vadd.xlane.f32.xlu0 %v13054_v62  ;;  %v13066_v54 = vsel %vm52_vm0, %v16973_v25, 0.0  ;;  %v22954_v45 = vld [vmem:[#allocation110_spill] sm:$0xff] }
 0x1cc   :  { %22949 = vst [vmem:[#allocation24_spill] sm:$0xff] %v17551_v31  ;;  %v17565_v2 = vpop.xlane.xlu1 %7572  ;;  %v17571_v40 = vpop.xlane.xlu0 %7569  ;;  %v17573_v31 = vcombine.low %v1340_v32, %v1347_v27  ;;  %v1255_v19 = vrot.slane %v22954_v45, %v16649_v42  ;;  %v17577_v29 = vcombine.low %v2360_v8, %v2367_v22  ;;  %v17579_v26 = vcombine.low %v2374_v10, %v2381_v4  ;;  %v22959_v32 = vld [vmem:[#allocation111_spill] sm:$0xff] }
 0x1cd   :  { %22952 = vst [vmem:[#allocation25_spill] sm:$0xff] %v17565_v2  ;;  %22953 = vst [vmem:[#allocation26_spill] sm:$0xff] %v17571_v40  ;;  %v17581_v46 = vcombine.low %v2332_v6, %v2339_v55  ;;  %v17583_v62 = vcombine.low %v2346_v5, %v2353_v49  ;;  %v2402_v25 = vrot.slane %v22951_v0, %v16597_v30  ;;  %v22963_v4 = vld [vmem:[#allocation27_spill] sm:$0xff]  ;;  %v22965_v5 = vld [vmem:[#allocation109_spill] sm:$0xff] }
 0x1ce   :  { %22955 = vst [vmem:[#allocation110_spill] sm:$0xff] %v17577_v29  ;;  %22956 = vst [vmem:[#allocation193_spill] sm:$0xff] %v17579_v26  ;;  %v2409_v52 = vrot.slane %v22951_v0, %v16600_v18  ;;  %v1262_v27 = vrot.slane %v22959_v32, %v16649_v42  ;;  %v1374_v45 = vrot.slane %v17001_v37, %v16649_v42  ;;  %v13069_v0 = vsel %vm52_vm0, %v17017_v59, 0.0 }
 0x1cf   :  { %22957 = vst [vmem:[#allocation194_spill] sm:$0xff] %v17581_v46  ;;  %22958 = vst [vmem:[#allocation195_spill] sm:$0xff] %v17583_v62  ;;  %v17593_v8 = vcombine.low %v2416_v23, %v2423_v17  ;;  %v17595_v22 = vcombine.low %v2430_v57, %v2437_v60  ;;  %v17597_v10 = vcombine.low %v2388_v33, %v2395_v35  ;;  %13067 = vadd.xlane.f32.xlu1 %v13066_v54  ;;  %v22967_v57 = vld [vmem:[#allocation28_spill] sm:$0xff]  ;;  %v22968_v60 = vld [vmem:[#allocation29_spill] sm:$0xff] }
 0x1d0   :  { %13013 = vadd.xlane.f32.xlu0 %v13012_v61  ;;  %v2472_v6 = vrot.slane %v22963_v4, %v16591_v3  ;;  %v17601_v55 = vpop.xlane.xlu1 %9311  ;;  %v13015_v49 = vsel %vm52_vm0, %v22965_v5, 0.0  ;;  %v17607_v37 = vpop.xlane.xlu0 %9314  ;;  %v1381_v23 = vrot.slane %v17003_v24, %v16649_v42  ;;  %v2479_v33 = vrot.slane %v22963_v4, %v16594_v7  ;;  %v22972_v46 = vld [vmem:[#allocation115_spill] sm:$0xff] }
 0x1d1   :  { %22960 = vst [vmem:[#allocation111_spill] sm:$0xff] %v17593_v8  ;;  %22961 = vst [vmem:[#allocation196_spill] sm:$0xff] %v17595_v22  ;;  %v2486_v61 = vrot.slane %v22963_v4, %v16597_v30  ;;  %v2493_v17 = vrot.slane %v22963_v4, %v16600_v18  ;;  %v2444_v59 = vrot.slane %v22967_v57, %v16591_v3  ;;  %v13018_v22 = vsel %vm52_vm0, %v22972_v46, 0.0 }
 0x1d2   :  { %22962 = vst [vmem:[#allocation197_spill] sm:$0xff] %v17597_v10  ;;  %22964 = vst [vmem:[#allocation27_spill] sm:$0xff] %v17601_v55  ;;  %v2528_v35 = vrot.slane %v22968_v60, %v16591_v3  ;;  %v2451_v54 = vrot.slane %v22967_v57, %v16594_v7  ;;  %v2458_v24 = vrot.slane %v22967_v57, %v16597_v30  ;;  %v22969_v55 = vld [vmem:[#allocation30_spill] sm:$0xff] }
 0x1d3   :  { %22966 = vst [vmem:[#allocation109_spill] sm:$0xff] %v17607_v37  ;;  %v2465_v32 = vrot.slane %v22967_v57, %v16600_v18  ;;  %v2535_v5 = vrot.slane %v22968_v60, %v16594_v7  ;;  %v2542_v4 = vrot.slane %v22968_v60, %v16597_v30  ;;  %v2549_v37 = vrot.slane %v22968_v60, %v16600_v18  ;;  %v22971_v57 = vld [vmem:[#allocation139_spill] sm:$0xff] }
 0x1d4   :  { %13070 = vadd.xlane.f32.xlu1 %v13069_v0  ;;  %13016 = vadd.xlane.f32.xlu0 %v13015_v49  ;;  %v2500_v40 = vrot.slane %v22969_v55, %v16591_v3  ;;  %v2507_v2 = vrot.slane %v22969_v55, %v16594_v7  ;;  %v17637_v10 = vpop.xlane.xlu1 %9320  ;;  %v13072_v62 = vsel %vm52_vm0, %v22971_v57, 0.0  ;;  %v17643_v8 = vpop.xlane.xlu0 %9317  ;;  %v17645_v26 = vcombine.low %v2472_v6, %v2479_v33  ;;  %v22979_v57 = vld [vmem:[#allocation118_spill] sm:$0xff] }
 0x1d5   :  { %22970 = vst [vmem:[#allocation28_spill] sm:$0xff] %v17637_v10  ;;  %22973 = vst [vmem:[#allocation29_spill] sm:$0xff] %v17643_v8  ;;  %v17647_v0 = vcombine.low %v2486_v61, %v2493_v17  ;;  %v17649_v49 = vcombine.low %v2402_v25, %v2409_v52  ;;  %v17651_v60 = vcombine.low %v1255_v19, %v1262_v27  ;;  %v22986_v17 = vld [vmem:[#allocation31_spill] sm:$0xff] }
 0x1d6   :  { %22974 = vst [vmem:[#allocation30_spill] sm:$0xff] %v17645_v26  ;;  %v17653_v29 = vcombine.low %v2444_v59, %v2451_v54  ;;  %v17655_v47 = vcombine.low %v2458_v24, %v2465_v32  ;;  %v17657_v10 = vcombine.low %v1374_v45, %v1381_v23  ;;  %v1289_v9 = vrot.slane %v22979_v57, %v16649_v42  ;;  %v22984_v23 = vld [vmem:[#allocation120_spill] sm:$0xff]  ;;  %v22989_v24 = vld [vmem:[#allocation33_spill] sm:$0xff] }
 0x1d7   :  { %22975 = vst [vmem:[#allocation139_spill] sm:$0xff] %v17647_v0  ;;  %22976 = vst [vmem:[#allocation115_spill] sm:$0xff] %v17649_v49  ;;  %v17661_v46 = vcombine.low %v2528_v35, %v2535_v5  ;;  %v2514_v6 = vrot.slane %v22969_v55, %v16597_v30  ;;  %v2521_v25 = vrot.slane %v22969_v55, %v16600_v18  ;;  %v13075_v45 = vsel %vm52_vm0, %v17101_v51, 0.0  ;;  %v22988_v55 = vld [vmem:[#allocation32_spill] sm:$0xff] }
 0x1d8   :  { %22977 = vst [vmem:[#allocation198_spill] sm:$0xff] %v17653_v29  ;;  %22978 = vst [vmem:[#allocation199_spill] sm:$0xff] %v17655_v47  ;;  %13073 = vadd.xlane.f32.xlu1 %v13072_v62  ;;  %13019 = vadd.xlane.f32.xlu0 %v13018_v22  ;;  %v17667_v19 = vcombine.low %v2542_v4, %v2549_v37  ;;  %v17669_v52 = vcombine.low %v2500_v40, %v2507_v2  ;;  %v17671_v27 = vpop.xlane.xlu1 %9326  ;;  %v13021_v33 = vsel %vm52_vm0, %v22984_v23, 0.0  ;;  %v17677_v61 = vpop.xlane.xlu0 %9323  ;;  %v22987_v2 = vld [vmem:[#allocation119_spill] sm:$0xff] }
 0x1d9   :  { %22980 = vst [vmem:[#allocation118_spill] sm:$0xff] %v17661_v46  ;;  %22983 = vst [vmem:[#allocation202_spill] sm:$0xff] %v17671_v27  ;;  %v2584_v59 = vrot.slane %v22986_v17, %v16591_v3  ;;  %v2591_v62 = vrot.slane %v22986_v17, %v16594_v7  ;;  %v2598_v40 = vrot.slane %v22986_v17, %v16597_v30 }
 0x1da   :  { %22981 = vst [vmem:[#allocation200_spill] sm:$0xff] %v17667_v19  ;;  %22982 = vst [vmem:[#allocation201_spill] sm:$0xff] %v17669_v52  ;;  %v1296_v22 = vrot.slane %v22987_v2, %v16649_v42  ;;  %v2605_v51 = vrot.slane %v22986_v17, %v16600_v18  ;;  %v2556_v37 = vrot.slane %v22988_v55, %v16591_v3  ;;  %v13078_v2 = vsel %vm52_vm0, %v17147_v63, 0.0 }
 0x1db   :  { %22985 = vst [vmem:[#allocation120_spill] sm:$0xff] %v17677_v61  ;;  %v2563_v35 = vrot.slane %v22988_v55, %v16594_v7  ;;  %v2570_v54 = vrot.slane %v22988_v55, %v16597_v30  ;;  %v2640_v32 = vrot.slane %v22989_v24, %v16591_v3  ;;  %v2647_v5 = vrot.slane %v22989_v24, %v16594_v7  ;;  %v22991_v61 = vld [vmem:[#allocation124_spill] sm:$0xff] }
 0x1dc   :  { %v2577_v4 = vrot.slane %v22988_v55, %v16600_v18  ;;  %13076 = vadd.xlane.f32.xlu1 %v13075_v45  ;;  %13022 = vadd.xlane.f32.xlu0 %v13021_v33  ;;  %v2654_v57 = vrot.slane %v22989_v24, %v16597_v30  ;;  %v2661_v23 = vrot.slane %v22989_v24, %v16600_v18  ;;  %v17705_v17 = vpop.xlane.xlu1 %9332  ;;  %v13024_v27 = vsel %vm52_vm0, %v22991_v61, 0.0  ;;  %v17711_v8 = vpop.xlane.xlu0 %9329  ;;  %v22993_v55 = vld [vmem:[#allocation34_spill] sm:$0xff]  ;;  %v22997_v61 = vld [vmem:[#allocation133_spill] sm:$0xff] }
 0x1dd   :  { %22990 = vst [vmem:[#allocation31_spill] sm:$0xff] %v17705_v17  ;;  %22992 = vst [vmem:[#allocation119_spill] sm:$0xff] %v17711_v8  ;;  %v2612_v45 = vrot.slane %v22993_v55, %v16591_v3  ;;  %v2619_v33 = vrot.slane %v22993_v55, %v16594_v7  ;;  %v2626_v52 = vrot.slane %v22993_v55, %v16597_v30 }
 0x1de   :  { %v2633_v24 = vrot.slane %v22993_v55, %v16600_v18  ;;  %v17721_v17 = vcombine.low %v2584_v59, %v2591_v62  ;;  %v17723_v63 = vcombine.low %v2598_v40, %v2605_v51  ;;  %v17725_v47 = vcombine.low %v2514_v6, %v2521_v25  ;;  %v23002_v6 = vld [vmem:[#allocation131_spill] sm:$0xff]  ;;  %v23004_v40 = vld [vmem:[#allocation134_spill] sm:$0xff] }
 0x1df   :  { %v1408_v8 = vrot.slane %v22997_v61, %v16649_v42  ;;  %v17729_v29 = vcombine.low %v2556_v37, %v2563_v35  ;;  %v17731_v49 = vcombine.low %v2570_v54, %v2577_v4  ;;  %v17733_v19 = vcombine.low %v1289_v9, %v1296_v22  ;;  %v23006_v9 = vld [vmem:[#allocation35_spill] sm:$0xff] }
 0x1e0   :  { %22994 = vst [vmem:[#allocation32_spill] sm:$0xff] %v17721_v17  ;;  %22995 = vst [vmem:[#allocation33_spill] sm:$0xff] %v17723_v63  ;;  %13079 = vadd.xlane.f32.xlu1 %v13078_v2  ;;  %13025 = vadd.xlane.f32.xlu0 %v13024_v27  ;;  %v17735_v46 = vcombine.low %v2640_v32, %v2647_v5  ;;  %v17737_v55 = vpop.xlane.xlu1 %9338  ;;  %v13081_v59 = vsel %vm52_vm0, %v17191_v12, 0.0  ;;  %v13027_v25 = vsel %vm52_vm0, %v23002_v6, 0.0  ;;  %v17743_v62 = vpop.xlane.xlu0 %9335  ;;  %v23009_v5 = vld [vmem:[#allocation36_spill] sm:$0xff]  ;;  %v23010_v2 = vld [vmem:[#allocation37_spill] sm:$0xff] }
 0x1e1   :  { %22996 = vst [vmem:[#allocation124_spill] sm:$0xff] %v17725_v47  ;;  %22998 = vst [vmem:[#allocation34_spill] sm:$0xff] %v17729_v29  ;;  %v1415_v51 = vrot.slane %v23004_v40, %v16649_v42  ;;  %v17747_v37 = vcombine.low %v2654_v57, %v2661_v23  ;;  %v2696_v27 = vrot.slane %v23006_v9, %v16591_v3  ;;  %v13084_v61 = vsel %vm52_vm0, %v17237_v20, 0.0  ;;  %v23012_v6 = vld [vmem:[#allocation138_spill] sm:$0xff] }
 0x1e2   :  { %22999 = vst [vmem:[#allocation133_spill] sm:$0xff] %v17731_v49  ;;  %23000 = vst [vmem:[#allocation203_spill] sm:$0xff] %v17735_v46  ;;  %v17751_v22 = vcombine.low %v2612_v45, %v2619_v33  ;;  %v17753_v35 = vcombine.low %v2626_v52, %v2633_v24  ;;  %v2703_v12 = vrot.slane %v23006_v9, %v16594_v7  ;;  %v13030_v40 = vsel %vm52_vm0, %v23012_v6, 0.0  ;;  %v23017_v6 = vld [vmem:[#allocation121_spill] sm:$0xff] }
 0x1e3   :  { %23001 = vst [vmem:[#allocation204_spill] sm:$0xff] %v17737_v55  ;;  %23003 = vst [vmem:[#allocation131_spill] sm:$0xff] %v17743_v62  ;;  %v2710_v54 = vrot.slane %v23006_v9, %v16597_v30  ;;  %v2717_v32 = vrot.slane %v23006_v9, %v16600_v18  ;;  %v2668_v4 = vrot.slane %v23009_v5, %v16591_v3 }
 0x1e4   :  { %23005 = vst [vmem:[#allocation134_spill] sm:$0xff] %v17747_v37  ;;  %23007 = vst [vmem:[#allocation35_spill] sm:$0xff] %v17751_v22  ;;  %v2675_v57 = vrot.slane %v23009_v5, %v16594_v7  ;;  %v2682_v23 = vrot.slane %v23009_v5, %v16597_v30  ;;  %v2689_v52 = vrot.slane %v23009_v5, %v16600_v18  ;;  %13082 = vadd.xlane.f32.xlu1 %v13081_v59  ;;  %v17773_v24 = vpop.xlane.xlu1 %9344  ;;  %v17779_v9 = vpop.xlane.xlu0 %9341  ;;  %v23014_v5 = vld [vmem:[#allocation38_spill] sm:$0xff]  ;;  %v23039_v37 = vld [vmem:[#allocation153_spill] sm:$0xff] }
 0x1e5   :  { %23008 = vst [vmem:[#allocation205_spill] sm:$0xff] %v17753_v35  ;;  %13028 = vadd.xlane.f32.xlu0 %v13027_v25  ;;  %v2752_v45 = vrot.slane %v23010_v2, %v16591_v3  ;;  %v2759_v33 = vrot.slane %v23010_v2, %v16594_v7  ;;  %23011 = vst [vmem:[#allocation36_spill] sm:$0xff] %v17773_v24  ;;  %v2766_v59 = vrot.slane %v23010_v2, %v16597_v30 }
 0x1e6   :  { %23013 = vst [vmem:[#allocation37_spill] sm:$0xff] %v17779_v9  ;;  %v2773_v25 = vrot.slane %v23010_v2, %v16600_v18  ;;  %v2724_v62 = vrot.slane %v23014_v5, %v16591_v3  ;;  %v2731_v24 = vrot.slane %v23014_v5, %v16594_v7  ;;  %v17789_v55 = vcombine.low %v2696_v27, %v2703_v12  ;;  %v23020_v2 = vld [vmem:[#allocation125_spill] sm:$0xff] }
 0x1e7   :  { %v17791_v20 = vcombine.low %v2710_v54, %v2717_v32  ;;  %v17793_v35 = vcombine.low %v1408_v8, %v1415_v51  ;;  %v1323_v9 = vrot.slane %v23017_v6, %v16649_v42  ;;  %v17797_v22 = vcombine.low %v2668_v4, %v2675_v57  ;;  %v23029_v6 = vld [vmem:[#allocation150_spill] sm:$0xff] }
 0x1e8   :  { %23015 = vst [vmem:[#allocation138_spill] sm:$0xff] %v17789_v55  ;;  %v17799_v49 = vcombine.low %v2682_v23, %v2689_v52  ;;  %13085 = vadd.xlane.f32.xlu1 %v13084_v61  ;;  %v1330_v29 = vrot.slane %v23020_v2, %v16649_v42  ;;  %v2738_v27 = vrot.slane %v23014_v5, %v16597_v30  ;;  %v17805_v12 = vpop.xlane.xlu1 %9350  ;;  %v13087_v8 = vsel %vm52_vm0, %v17281_v1, 0.0  ;;  %v17811_v54 = vpop.xlane.xlu0 %9347  ;;  %v23026_v61 = vld [vmem:[#allocation39_spill] sm:$0xff]  ;;  %v23038_v55 = vld [vmem:[#allocation178_spill] sm:$0xff] }
 0x1e9   :  { %23016 = vst [vmem:[#allocation38_spill] sm:$0xff] %v17791_v20  ;;  %23018 = vst [vmem:[#allocation121_spill] sm:$0xff] %v17797_v22  ;;  %13031 = vadd.xlane.f32.xlu0 %v13030_v40  ;;  %v13033_v51 = vsel %vm52_vm0, %v17096_v14, 0.0  ;;  %v1442_v32 = vrot.slane %v17107_v34, %v16649_v42  ;;  %v17815_v4 = vcombine.low %v2752_v45, %v2759_v33  ;;  %v23027_v33 = vld [vmem:[#allocation40_spill] sm:$0xff]  ;;  %v13036_v2 = vsel %vm52_vm0, %v23029_v6, 0.0 }
 0x1ea   :  { %23019 = vst [vmem:[#allocation206_spill] sm:$0xff] %v17799_v49  ;;  %23021 = vst [vmem:[#allocation125_spill] sm:$0xff] %v17805_v12  ;;  %v17817_v57 = vcombine.low %v2766_v59, %v2773_v25  ;;  %v2745_v23 = vrot.slane %v23014_v5, %v16600_v18  ;;  %v17821_v52 = vcombine.low %v2724_v62, %v2731_v24  ;;  %v13093_v47 = vsel %vm52_vm0, %v23038_v55, 0.0  ;;  %v23047_v55 = vld [vmem:[#allocation130_spill] sm:$0xff] }
 0x1eb   :  { %23022 = vst [vmem:[#allocation207_spill] sm:$0xff] %v17811_v54  ;;  %23023 = vst [vmem:[#allocation208_spill] sm:$0xff] %v17815_v4  ;;  %v2808_v1 = vrot.slane %v23026_v61, %v16591_v3  ;;  %v2815_v14 = vrot.slane %v23026_v61, %v16594_v7  ;;  %v2822_v40 = vrot.slane %v23026_v61, %v16597_v30  ;;  %v23031_v54 = vld [vmem:[#allocation41_spill] sm:$0xff] }
 0x1ec   :  { %23024 = vst [vmem:[#allocation209_spill] sm:$0xff] %v17817_v57  ;;  %23025 = vst [vmem:[#allocation210_spill] sm:$0xff] %v17821_v52  ;;  %v1449_v34 = vrot.slane %v17109_v53, %v16649_v42  ;;  %v2829_v45 = vrot.slane %v23026_v61, %v16600_v18  ;;  %v2780_v59 = vrot.slane %v23027_v33, %v16591_v3  ;;  %13088 = vadd.xlane.f32.xlu1 %v13087_v8  ;;  %v17841_v5 = vpop.xlane.xlu1 %9356  ;;  %v17847_v61 = vpop.xlane.xlu0 %9353 }
 0x1ed   :  { %v2787_v62 = vrot.slane %v23027_v33, %v16594_v7  ;;  %13034 = vadd.xlane.f32.xlu0 %v13033_v51  ;;  %v2794_v24 = vrot.slane %v23027_v33, %v16597_v30  ;;  %v2801_v25 = vrot.slane %v23027_v33, %v16600_v18  ;;  %23028 = vst [vmem:[#allocation39_spill] sm:$0xff] %v17841_v5  ;;  %v13090_v53 = vsel %vm52_vm0, %v17325_v13, 0.0  ;;  %v23032_v5 = vld [vmem:[#allocation42_spill] sm:$0xff] }
 0x1ee   :  { %23030 = vst [vmem:[#allocation40_spill] sm:$0xff] %v17847_v61  ;;  %v2864_v8 = vrot.slane %v23031_v54, %v16591_v3  ;;  %v2871_v51 = vrot.slane %v23031_v54, %v16594_v7  ;;  %v2878_v12 = vrot.slane %v23031_v54, %v16597_v30  ;;  %v2885_v33 = vrot.slane %v23031_v54, %v16600_v18 }
 0x1ef   :  { %v2836_v13 = vrot.slane %v23032_v5, %v16591_v3  ;;  %v2843_v6 = vrot.slane %v23032_v5, %v16594_v7  ;;  %v2850_v61 = vrot.slane %v23032_v5, %v16597_v30  ;;  %v2857_v52 = vrot.slane %v23032_v5, %v16600_v18 }
 0x1f0   :  { %v17865_v49 = vcombine.low %v2808_v1, %v2815_v14  ;;  %v17867_v22 = vcombine.low %v2738_v27, %v2745_v23  ;;  %13091 = vadd.xlane.f32.xlu1 %v13090_v53  ;;  %v17869_v57 = vcombine.low %v1323_v9, %v1330_v29  ;;  %v17871_v54 = vcombine.low %v2822_v40, %v2829_v45  ;;  %v17875_v20 = vpop.xlane.xlu1 %9362  ;;  %v17881_v1 = vpop.xlane.xlu0 %9359  ;;  %v23043_v9 = vld [vmem:[#allocation129_spill] sm:$0xff] }
 0x1f1   :  { %13037 = vadd.xlane.f32.xlu0 %v13036_v2  ;;  %v17873_v4 = vcombine.low %v2780_v59, %v2787_v62  ;;  %23037 = vst [vmem:[#allocation212_spill] sm:$0xff] %v17875_v20  ;;  %v13039_v5 = vsel %vm52_vm0, %v23039_v37, 0.0  ;;  %23040 = vst [vmem:[#allocation178_spill] sm:$0xff] %v17881_v1  ;;  %v17883_v27 = vcombine.low %v2864_v8, %v2871_v51  ;;  %v23048_v62 = vld [vmem:[#allocation43_spill] sm:$0xff]  ;;  %v13096_v2 = vsel %vm52_vm0, %v17408_v11, 0.0 }
 0x1f2   :  { %23033 = vst [vmem:[#allocation150_spill] sm:$0xff] %v17865_v49  ;;  %23034 = vst [vmem:[#allocation41_spill] sm:$0xff] %v17867_v22  ;;  %v17885_v23 = vcombine.low %v2794_v24, %v2801_v25  ;;  %v17887_v29 = vcombine.low %v1442_v32, %v1449_v34  ;;  %v1357_v14 = vrot.slane %v23043_v9, %v16649_v42  ;;  %v13099_v20 = vsel %vm52_vm0, %v17443_v28, 0.0  ;;  %v23059_v22 = vld [vmem:[#allocation146_spill] sm:$0xff] }
 0x1f3   :  { %23035 = vst [vmem:[#allocation42_spill] sm:$0xff] %v17871_v54  ;;  %23036 = vst [vmem:[#allocation211_spill] sm:$0xff] %v17873_v4  ;;  %v17891_v40 = vcombine.low %v2878_v12, %v2885_v33  ;;  %v17893_v45 = vcombine.low %v2836_v13, %v2843_v6  ;;  %v17895_v59 = vcombine.low %v2850_v61, %v2857_v52  ;;  %v23049_v52 = vld [vmem:[#allocation44_spill] sm:$0xff]  ;;  %v23051_v61 = vld [vmem:[#allocation9_spill] sm:$0xff] }
 0x1f4   :  { %23041 = vst [vmem:[#allocation153_spill] sm:$0xff] %v17883_v27  ;;  %23042 = vst [vmem:[#allocation213_spill] sm:$0xff] %v17885_v23  ;;  %v1364_v37 = vrot.slane %v23047_v55, %v16649_v42  ;;  %v2920_v53 = vrot.slane %v23048_v62, %v16591_v3  ;;  %v2927_v24 = vrot.slane %v23048_v62, %v16594_v7  ;;  %13094 = vadd.xlane.f32.xlu1 %v13093_v47  ;;  %v17909_v25 = vpop.xlane.xlu1 %9368  ;;  %v17915_v51 = vpop.xlane.xlu0 %9365  ;;  %v23053_v33 = vld [vmem:[#allocation45_spill] sm:$0xff]  ;;  %v23058_v23 = vld [vmem:[#allocation143_spill] sm:$0xff] }
 0x1f5   :  { %23044 = vst [vmem:[#allocation129_spill] sm:$0xff] %v17891_v40  ;;  %23045 = vst [vmem:[#allocation214_spill] sm:$0xff] %v17893_v45  ;;  %v2934_v32 = vrot.slane %v23048_v62, %v16597_v30  ;;  %13040 = vadd.xlane.f32.xlu0 %v13039_v5  ;;  %v2941_v12 = vrot.slane %v23048_v62, %v16600_v18  ;;  %v2892_v34 = vrot.slane %v23049_v52, %v16591_v3  ;;  %v23054_v62 = vld [vmem:[#allocation46_spill] sm:$0xff] }
 0x1f6   :  { %23046 = vst [vmem:[#allocation215_spill] sm:$0xff] %v17895_v59  ;;  %23050 = vst [vmem:[#allocation130_spill] sm:$0xff] %v17909_v25  ;;  %v13042_v8 = vsel %vm52_vm0, %v23051_v61, 0.0  ;;  %v3916_v47 = vrot.slane %v23053_v33, %v16591_v3  ;;  %v2899_v13 = vrot.slane %v23049_v52, %v16594_v7  ;;  %v2906_v6 = vrot.slane %v23049_v52, %v16597_v30 }
 0x1f7   :  { %23052 = vst [vmem:[#allocation43_spill] sm:$0xff] %v17915_v51  ;;  %v2913_v5 = vrot.slane %v23049_v52, %v16600_v18  ;;  %v3923_v11 = vrot.slane %v23053_v33, %v16594_v7  ;;  %v3930_v9 = vrot.slane %v23053_v33, %v16597_v30  ;;  %v3937_v55 = vrot.slane %v23053_v33, %v16600_v18  ;;  %v23056_v33 = vld [vmem:[#allocation11_spill] sm:$0xff] }
 0x1f8   :  { %v3944_v61 = vrot.slane %v23054_v62, %v16591_v3  ;;  %v3951_v51 = vrot.slane %v23054_v62, %v16594_v7  ;;  %v3958_v25 = vrot.slane %v23054_v62, %v16597_v30  ;;  %v3965_v52 = vrot.slane %v23054_v62, %v16600_v18  ;;  %13097 = vadd.xlane.f32.xlu1 %v13096_v2  ;;  %v17939_v1 = vpop.xlane.xlu1 %9374  ;;  %v17945_v45 = vpop.xlane.xlu0 %9371 }
 0x1f9   :  { %13043 = vadd.xlane.f32.xlu0 %v13042_v8  ;;  %23055 = vst [vmem:[#allocation44_spill] sm:$0xff] %v17939_v1  ;;  %v13045_v59 = vsel %vm52_vm0, %v23056_v33, 0.0  ;;  %23057 = vst [vmem:[#allocation9_spill] sm:$0xff] %v17945_v45  ;;  %v1476_v4 = vrot.slane %v23058_v23, %v16649_v42  ;;  %v1483_v40 = vrot.slane %v23059_v22, %v16649_v42  ;;  %v23065_v33 = vld [vmem:[#allocation47_spill] sm:$0xff] }
 0x1fa   :  { %v17951_v27 = vcombine.low %v2920_v53, %v2927_v24  ;;  %v17953_v2 = vcombine.low %v2934_v32, %v2941_v12  ;;  %v17955_v8 = vcombine.low %v2892_v34, %v2899_v13  ;;  %v17957_v62 = vcombine.low %v2906_v6, %v2913_v5  ;;  %v23070_v12 = vld [vmem:[#allocation13_spill] sm:$0xff] }
 0x1fb   :  { %v17959_v28 = vcombine.low %v3916_v47, %v3923_v11  ;;  %v4000_v1 = vrot.slane %v23065_v33, %v16591_v3  ;;  %v4007_v45 = vrot.slane %v23065_v33, %v16594_v7  ;;  %v17965_v23 = vcombine.low %v1357_v14, %v1364_v37  ;;  %v23072_v37 = vld [vmem:[#allocation135_spill] sm:$0xff] }
 0x1fc   :  { %23060 = vst [vmem:[#allocation45_spill] sm:$0xff] %v17951_v27  ;;  %23061 = vst [vmem:[#allocation46_spill] sm:$0xff] %v17953_v2  ;;  %v17967_v54 = vcombine.low %v3930_v9, %v3937_v55  ;;  %v17969_v22 = vcombine.low %v3944_v61, %v3951_v51  ;;  %v17971_v53 = vcombine.low %v3958_v25, %v3965_v52  ;;  %13100 = vadd.xlane.f32.xlu1 %v13099_v20  ;;  %v17975_v32 = vpop.xlane.xlu1 %9380  ;;  %v17979_v47 = vpop.xlane.xlu0 %9377  ;;  %v23073_v20 = vld [vmem:[#allocation48_spill] sm:$0xff]  ;;  %v23076_v9 = vld [vmem:[#allocation141_spill] sm:$0xff] }
 0x1fd   :  { %23062 = vst [vmem:[#allocation11_spill] sm:$0xff] %v17955_v8  ;;  %23063 = vst [vmem:[#allocation143_spill] sm:$0xff] %v17957_v62  ;;  %13046 = vadd.xlane.f32.xlu0 %v13045_v59  ;;  %v4014_v24 = vrot.slane %v23065_v33, %v16597_v30  ;;  %v13048_v34 = vsel %vm52_vm0, %v23070_v12, 0.0  ;;  %v17981_v14 = vcombine.low %v1476_v4, %v1483_v40  ;;  %v23075_v4 = vld [vmem:[#allocation49_spill] sm:$0xff]  ;;  %v23085_v2 = vld [vmem:[#allocation152_spill] sm:$0xff] }
 0x1fe   :  { %23064 = vst [vmem:[#allocation146_spill] sm:$0xff] %v17959_v28  ;;  %23066 = vst [vmem:[#allocation47_spill] sm:$0xff] %v17967_v54  ;;  %v1391_v51 = vrot.slane %v23072_v37, %v16649_v42  ;;  %v4021_v25 = vrot.slane %v23065_v33, %v16600_v18  ;;  %v3972_v59 = vrot.slane %v23073_v20, %v16591_v3  ;;  %v23086_v27 = vld [vmem:[#allocation8_spill] sm:$0xff] }
 0x1ff   :  { %23067 = vst [vmem:[#allocation216_spill] sm:$0xff] %v17969_v22  ;;  %23068 = vst [vmem:[#allocation217_spill] sm:$0xff] %v17971_v53  ;;  %v3979_v13 = vrot.slane %v23073_v20, %v16594_v7  ;;  %v3986_v6 = vrot.slane %v23073_v20, %v16597_v30  ;;  %v17993_v5 = vcombine.low %v4000_v1, %v4007_v45  ;;  %v23077_v1 = vld [vmem:[#allocation50_spill] sm:$0xff] }
 0x200   :  { %23069 = vst [vmem:[#allocation218_spill] sm:$0xff] %v17975_v32  ;;  %23071 = vst [vmem:[#allocation13_spill] sm:$0xff] %v17979_v47  ;;  %v4056_v40 = vrot.slane %v23075_v4, %v16591_v3  ;;  %v3993_v11 = vrot.slane %v23073_v20, %v16600_v18  ;;  %v1398_v55 = vrot.slane %v23076_v9, %v16649_v42  ;;  %v18015_v9 = vpop.xlane.xlu1 %9386  ;;  %v23079_v47 = vld [vmem:[#allocation177_spill] sm:$0xff]  ;;  %v18019_v53 = vpop.xlane.xlu0 %9383 }
 0x201   :  { %23074 = vst [vmem:[#allocation135_spill] sm:$0xff] %v17993_v5  ;;  %v4063_v61 = vrot.slane %v23075_v4, %v16594_v7  ;;  %v4070_v52 = vrot.slane %v23075_v4, %v16597_v30  ;;  %v4077_v33 = vrot.slane %v23075_v4, %v16600_v18  ;;  %v4028_v45 = vrot.slane %v23077_v1, %v16591_v3  ;;  %v23081_v4 = vld [vmem:[#allocation51_spill] sm:$0xff] }
 0x202   :  { %13049 = vadd.xlane.f32.xlu0 %v13048_v34  ;;  %v4035_v12 = vrot.slane %v23077_v1, %v16594_v7  ;;  %v4042_v37 = vrot.slane %v23077_v1, %v16597_v30  ;;  %v4049_v20 = vrot.slane %v23077_v1, %v16600_v18  ;;  %23078 = vst [vmem:[#allocation48_spill] sm:$0xff] %v18015_v9  ;;  %v13051_v32 = vsel %vm52_vm0, %v23079_v47, 0.0  ;;  %v23082_v1 = vld [vmem:[#allocation52_spill] sm:$0xff] }
 0x203   :  { %23080 = vst [vmem:[#allocation49_spill] sm:$0xff] %v18019_v53  ;;  %v4112_v22 = vrot.slane %v23081_v4, %v16591_v3  ;;  %v4119_v34 = vrot.slane %v23081_v4, %v16594_v7  ;;  %v4126_v62 = vrot.slane %v23081_v4, %v16597_v30  ;;  %v4133_v8 = vrot.slane %v23081_v4, %v16600_v18 }
 0x204   :  { %v4084_v9 = vrot.slane %v23082_v1, %v16591_v3  ;;  %v4091_v47 = vrot.slane %v23082_v1, %v16594_v7  ;;  %v4098_v53 = vrot.slane %v23082_v1, %v16597_v30  ;;  %v4105_v5 = vrot.slane %v23082_v1, %v16600_v18  ;;  %v18053_v1 = vpop.xlane.xlu1 %9392 }
 0x205   :  { %v18037_v54 = vcombine.low %v4014_v24, %v4021_v25  ;;  %v18039_v28 = vcombine.low %v3972_v59, %v3979_v13  ;;  %v1510_v4 = vrot.slane %v23085_v2, %v16649_v42  ;;  %v1517_v49 = vrot.slane %v23086_v27, %v16649_v42  ;;  %23091 = vst [vmem:[#allocation8_spill] sm:$0xff] %v18053_v1  ;;  %v18055_v24 = vpop.xlane.xlu0 %9389  ;;  %v23109_v1 = vld [vmem:[#allocation57_spill] sm:$0xff] }
 0x206   :  { %13052 = vadd.xlane.f32.xlu0 %v13051_v32  ;;  %v18045_v46 = vcombine.low %v4056_v40, %v4063_v61  ;;  %v18047_v63 = vcombine.low %v4070_v52, %v4077_v33  ;;  %v18049_v17 = vcombine.low %v3986_v6, %v3993_v11  ;;  %v18051_v0 = vcombine.low %v4028_v45, %v4035_v12  ;;  %v23094_v32 = vld [vmem:[#allocation53_spill] sm:$0xff]  ;;  %v23099_v45 = vld [vmem:[#allocation142_spill] sm:$0xff] }
 0x207   :  { %23083 = vst [vmem:[#allocation141_spill] sm:$0xff] %v18037_v54  ;;  %23084 = vst [vmem:[#allocation50_spill] sm:$0xff] %v18039_v28  ;;  %v18057_v25 = vcombine.low %v4042_v37, %v4049_v20  ;;  %v4168_v2 = vrot.slane %v23094_v32, %v16591_v3  ;;  %v4175_v27 = vrot.slane %v23094_v32, %v16594_v7  ;;  %v23104_v37 = vld [vmem:[#allocation55_spill] sm:$0xff]  ;;  %vm22717_vm0 = vcmask 1041409  }
 0x208   :  { %23087 = vst [vmem:[#allocation177_spill] sm:$0xff] %v18045_v46  ;;  %23088 = vst [vmem:[#allocation51_spill] sm:$0xff] %v18047_v63  ;;  %v18063_v59 = vcombine.low %v1391_v51, %v1398_v55  ;;  %v18065_v13 = vcombine.low %v4112_v22, %v4119_v34  ;;  %v18067_v6 = vcombine.low %v4126_v62, %v4133_v8  ;;  %v23100_v22 = vld [vmem:[#allocation54_spill] sm:$0xff]  ;;  %v23120_v54 = vld [vmem:[#allocation59_spill] sm:$0xff] }
 0x209   :  { %23089 = vst [vmem:[#allocation52_spill] sm:$0xff] %v18049_v17  ;;  %23090 = vst [vmem:[#allocation152_spill] sm:$0xff] %v18051_v0  ;;  %v18069_v40 = vcombine.low %v4084_v9, %v4091_v47  ;;  %v18071_v11 = vcombine.low %v4098_v53, %v4105_v5  ;;  %v4182_v61 = vrot.slane %v23094_v32, %v16597_v30  ;;  %v18089_v5 = vpop.xlane.xlu1 %9398  ;;  %v18091_v12 = vpop.xlane.xlu0 %9395  ;;  %v23105_v9 = vld [vmem:[#allocation144_spill] sm:$0xff] }
 0x20a   :  { %23092 = vst [vmem:[#allocation219_spill] sm:$0xff] %v18055_v24  ;;  %23093 = vst [vmem:[#allocation220_spill] sm:$0xff] %v18057_v25  ;;  %v4189_v52 = vrot.slane %v23094_v32, %v16600_v18  ;;  %v18077_v33 = vcombine.low %v1510_v4, %v1517_v49  ;;  %v1425_v51 = vrot.slane %v23099_v45, %v16649_v42  ;;  %v23106_v47 = vld [vmem:[#allocation156_spill] sm:$0xff] }
 0x20b   :  { %23095 = vst [vmem:[#allocation53_spill] sm:$0xff] %v18065_v13  ;;  %23096 = vst [vmem:[#allocation221_spill] sm:$0xff] %v18067_v6  ;;  %v4140_v55 = vrot.slane %v23100_v22, %v16591_v3  ;;  %v4147_v8 = vrot.slane %v23100_v22, %v16594_v7  ;;  %v4154_v62 = vrot.slane %v23100_v22, %v16597_v30 }
 0x20c   :  { %23097 = vst [vmem:[#allocation222_spill] sm:$0xff] %v18069_v40  ;;  %23098 = vst [vmem:[#allocation223_spill] sm:$0xff] %v18071_v11  ;;  %v4161_v53 = vrot.slane %v23100_v22, %v16600_v18  ;;  %v18093_v49 = vcombine.low %v4168_v2, %v4175_v27  ;;  %v4224_v20 = vrot.slane %v23104_v37, %v16591_v3  ;;  %v23107_v2 = vld [vmem:[#allocation56_spill] sm:$0xff] }
 0x20d   :  { %23101 = vst [vmem:[#allocation142_spill] sm:$0xff] %v18089_v5  ;;  %23102 = vst [vmem:[#allocation54_spill] sm:$0xff] %v18091_v12  ;;  %v1432_v34 = vrot.slane %v23105_v9, %v16649_v42  ;;  %v1544_v4 = vrot.slane %v23106_v47, %v16649_v42  ;;  %v4231_v32 = vrot.slane %v23104_v37, %v16594_v7  ;;  %v23108_v5 = vld [vmem:[#allocation159_spill] sm:$0xff]  ;;  %v18125_v0 = vpop.xlane.xlu1 %9404 }
 0x20e   :  { %23103 = vst [vmem:[#allocation224_spill] sm:$0xff] %v18093_v49  ;;  %v4238_v45 = vrot.slane %v23104_v37, %v16597_v30  ;;  %v4245_v22 = vrot.slane %v23104_v37, %v16600_v18  ;;  %v4196_v27 = vrot.slane %v23107_v2, %v16591_v3  ;;  %v4203_v12 = vrot.slane %v23107_v2, %v16594_v7  ;;  %v23111_v49 = vld [vmem:[#allocation107_spill] sm:$0xff] }
 0x20f   :  { %v4210_v9 = vrot.slane %v23107_v2, %v16597_v30  ;;  %v4217_v47 = vrot.slane %v23107_v2, %v16600_v18  ;;  %v1551_v24 = vrot.slane %v23108_v5, %v16649_v42  ;;  %v4280_v11 = vrot.slane %v23109_v1, %v16591_v3  ;;  %23110 = vst [vmem:[#allocation55_spill] sm:$0xff] %v18125_v0  ;;  %v18128_v2 = vpop.xlane.xlu0 %9401  ;;  %v23113_v5 = vld [vmem:[#allocation58_spill] sm:$0xff] }
 0x210   :  { %v4287_v37 = vrot.slane %v23109_v1, %v16594_v7  ;;  %v4294_v40 = vrot.slane %v23109_v1, %v16597_v30  ;;  %v4301_v25 = vrot.slane %v23109_v1, %v16600_v18  ;;  %1625 = vperm.xlu1 %15465, %v23111_v49   ;;  %23112 = vst [vmem:[#allocation144_spill] sm:$0xff] %v18128_v2 }
 0x211   :  { %v4252_v17 = vrot.slane %v23113_v5, %v16591_v3  ;;  %v4259_v28 = vrot.slane %v23113_v5, %v16594_v7  ;;  %v4266_v6 = vrot.slane %v23113_v5, %v16597_v30  ;;  %v4273_v13 = vrot.slane %v23113_v5, %v16600_v18  ;;  %v23137_v5 = vld [vmem:[#allocation62_spill] sm:$0xff] }
 0x212   :  { %v18138_v63 = vcombine.low %v4182_v61, %v4189_v52  ;;  %v18140_v1 = vcombine.low %v4224_v20, %v4231_v32  ;;  %v18142_v0 = vcombine.low %v4140_v55, %v4147_v8  ;;  %v18144_v49 = vcombine.low %v4154_v62, %v4161_v53  ;;  %v18160_v55 = vpop.xlane.xlu1 %11178  ;;  %v23125_v8 = vld [vmem:[#allocation108_spill] sm:$0xff] }
 0x213   :  { %v18146_v2 = vcombine.low %v4238_v45, %v4245_v22  ;;  %v18148_v46 = vcombine.low %v4196_v27, %v4203_v12  ;;  %v4336_v26 = vrot.slane %v23120_v54, %v16591_v3  ;;  %v4343_v39 = vrot.slane %v23120_v54, %v16594_v7  ;;  %23124 = vst [vmem:[#allocation227_spill] sm:$0xff] %v18160_v55  ;;  %v18163_v62 = vpop.xlane.xlu0 %11175  ;;  %v23130_v22 = vld [vmem:[#allocation60_spill] sm:$0xff] }
 0x214   :  { %23114 = vst [vmem:[#allocation156_spill] sm:$0xff] %v18138_v63  ;;  %23115 = vst [vmem:[#allocation56_spill] sm:$0xff] %v18140_v1  ;;  %v18154_v50 = vcombine.low %v4280_v11, %v4287_v37  ;;  %v18156_v61 = vcombine.low %v4294_v40, %v4301_v25  ;;  %v18158_v52 = vcombine.low %v4210_v9, %v4217_v47  ;;  %1628 = vperm.xlu1 %15465, %v23125_v8   ;;  %v23129_v11 = vld [vmem:[#allocation147_spill] sm:$0xff]  ;;  %v23135_v47 = vld [vmem:[#allocation112_spill] sm:$0xff] }
 0x215   :  { %23116 = vst [vmem:[#allocation159_spill] sm:$0xff] %v18142_v0  ;;  %23117 = vst [vmem:[#allocation57_spill] sm:$0xff] %v18144_v49  ;;  %v18165_v53 = vcombine.low %v1425_v51, %v1432_v34  ;;  %v18167_v12 = vcombine.low %v4252_v17, %v4259_v28  ;;  %v18169_v20 = vcombine.low %v4266_v6, %v4273_v13  ;;  %v23132_v6 = vld [vmem:[#allocation5_spill] sm:$0xff]  ;;  %v23139_v55 = vld [vmem:[#allocation64_spill] sm:$0xff] }
 0x216   :  { %23118 = vst [vmem:[#allocation107_spill] sm:$0xff] %v18146_v2  ;;  %23119 = vst [vmem:[#allocation58_spill] sm:$0xff] %v18148_v46  ;;  %v18171_v32 = vcombine.low %v1544_v4, %v1551_v24  ;;  %v1459_v25 = vrot.slane %v23129_v11, %v16649_v42  ;;  %v4350_v40 = vrot.slane %v23120_v54, %v16597_v30  ;;  %v23133_v34 = vld [vmem:[#allocation61_spill] sm:$0xff]  ;;  %v23143_v0 = vld [vmem:[#allocation128_spill] sm:$0xff] }
 0x217   :  { %23121 = vst [vmem:[#allocation59_spill] sm:$0xff] %v18154_v50  ;;  %23122 = vst [vmem:[#allocation225_spill] sm:$0xff] %v18156_v61  ;;  %v4357_v45 = vrot.slane %v23120_v54, %v16600_v18  ;;  %v4308_v27 = vrot.slane %v23130_v22, %v16591_v3  ;;  %v4315_v17 = vrot.slane %v23130_v22, %v16594_v7  ;;  %v18202_v37 = vpop.xlane.xlu0 %11223  ;;  %v23145_v61 = vld [vmem:[#allocation164_spill] sm:$0xff]  ;;  %v23146_v2 = vld [vmem:[#allocation165_spill] sm:$0xff] }
 0x218   :  { %23123 = vst [vmem:[#allocation226_spill] sm:$0xff] %v18158_v52  ;;  %23126 = vst [vmem:[#allocation108_spill] sm:$0xff] %v18163_v62  ;;  %v18183_v28 = vcombine.low %v4336_v26, %v4343_v39  ;;  %v4322_v24 = vrot.slane %v23130_v22, %v16597_v30  ;;  %v4329_v13 = vrot.slane %v23130_v22, %v16600_v18  ;;  %v18199_v26 = vpop.xlane.xlu1 %11181  ;;  %1631 = vperm.xlu1 %15465, %v23135_v47  }
 0x219   :  { %23127 = vst [vmem:[#allocation228_spill] sm:$0xff] %v18167_v12  ;;  %23128 = vst [vmem:[#allocation229_spill] sm:$0xff] %v18169_v20  ;;  %v1466_v51 = vrot.slane %v23132_v6, %v16649_v42  ;;  %v4392_v54 = vrot.slane %v23133_v34, %v16591_v3  ;;  %v4399_v4 = vrot.slane %v23133_v34, %v16594_v7 }
 0x21a   :  { %23131 = vst [vmem:[#allocation147_spill] sm:$0xff] %v18183_v28  ;;  %v4406_v9 = vrot.slane %v23133_v34, %v16597_v30  ;;  %v4413_v39 = vrot.slane %v23133_v34, %v16600_v18  ;;  %23134 = vst [vmem:[#allocation60_spill] sm:$0xff] %v18199_v26  ;;  %v4364_v8 = vrot.slane %v23137_v5, %v16591_v3  ;;  %v23138_v34 = vld [vmem:[#allocation63_spill] sm:$0xff] }
 0x21b   :  { %23136 = vst [vmem:[#allocation5_spill] sm:$0xff] %v18202_v37  ;;  %v4371_v11 = vrot.slane %v23137_v5, %v16594_v7  ;;  %v4378_v22 = vrot.slane %v23137_v5, %v16597_v30  ;;  %v4385_v6 = vrot.slane %v23137_v5, %v16600_v18  ;;  %v4448_v62 = vrot.slane %v23138_v34, %v16591_v3 }
 0x21c   :  { %v4455_v47 = vrot.slane %v23138_v34, %v16594_v7  ;;  %v4462_v37 = vrot.slane %v23138_v34, %v16597_v30  ;;  %v4469_v26 = vrot.slane %v23138_v34, %v16600_v18  ;;  %v4420_v20 = vrot.slane %v23139_v55, %v16591_v3  ;;  %v18232_v49 = vpop.xlane.xlu1 %11184  ;;  %1634 = vperm.xlu1 %15465, %v23143_v0   ;;  %v18235_v34 = vpop.xlane.xlu0 %11226  ;;  %v23153_v0 = vld [vmem:[#allocation65_spill] sm:$0xff] }
 0x21d   :  { %v4427_v12 = vrot.slane %v23139_v55, %v16594_v7  ;;  %v4434_v5 = vrot.slane %v23139_v55, %v16597_v30  ;;  %v4441_v52 = vrot.slane %v23139_v55, %v16600_v18  ;;  %v18228_v46 = vcombine.low %v4350_v40, %v4357_v45  ;;  %23142 = vst [vmem:[#allocation62_spill] sm:$0xff] %v18232_v49  ;;  %v23151_v45 = vld [vmem:[#allocation132_spill] sm:$0xff] }
 0x21e   :  { %v18230_v28 = vcombine.low %v4308_v27, %v4315_v17  ;;  %23144 = vst [vmem:[#allocation63_spill] sm:$0xff] %v18235_v34  ;;  %v1578_v50 = vrot.slane %v23145_v61, %v16649_v42  ;;  %v1585_v1 = vrot.slane %v23146_v2, %v16649_v42  ;;  %v18241_v63 = vcombine.low %v4392_v54, %v4399_v4 }
 0x21f   :  { %23140 = vst [vmem:[#allocation61_spill] sm:$0xff] %v18228_v46  ;;  %v18243_v16 = vcombine.low %v4406_v9, %v4413_v39  ;;  %v18245_v55 = vcombine.low %v4322_v24, %v4329_v13  ;;  %v18247_v40 = vcombine.low %v4364_v8, %v4371_v11  ;;  %1622 = vperm.xlu0 %15464, %v23151_v45   ;;  %v23159_v8 = vld [vmem:[#allocation145_spill] sm:$0xff]  ;;  %v23167_v45 = vld [vmem:[#allocation170_spill] sm:$0xff]  ;;  %v23179_v46 = vld [vmem:[#allocation71_spill] sm:$0xff] }
 0x220   :  { %23141 = vst [vmem:[#allocation112_spill] sm:$0xff] %v18230_v28  ;;  %23147 = vst [vmem:[#allocation64_spill] sm:$0xff] %v18241_v63  ;;  %v18250_v27 = vcombine.low %v4378_v22, %v4385_v6  ;;  %v4504_v17 = vrot.slane %v23153_v0, %v16591_v3  ;;  %v4511_v61 = vrot.slane %v23153_v0, %v16594_v7  ;;  %v18270_v39 = vpop.xlane.xlu1 %11187  ;;  %1637 = vperm.xlu1 %15465, %v23159_v8   ;;  %v23163_v22 = vld [vmem:[#allocation151_spill] sm:$0xff] }
 0x221   :  { %23148 = vst [vmem:[#allocation128_spill] sm:$0xff] %v18243_v16  ;;  %23149 = vst [vmem:[#allocation164_spill] sm:$0xff] %v18245_v55  ;;  %v18256_v34 = vcombine.low %v1459_v25, %v1466_v51  ;;  %v18258_v2 = vcombine.low %v4448_v62, %v4455_v47  ;;  %v18260_v54 = vcombine.low %v4462_v37, %v4469_v26  ;;  %v18273_v25 = vpop.xlane.xlu0 %11229  ;;  %v23161_v51 = vld [vmem:[#allocation154_spill] sm:$0xff]  ;;  %v23166_v47 = vld [vmem:[#allocation155_spill] sm:$0xff] }
 0x222   :  { %23150 = vst [vmem:[#allocation165_spill] sm:$0xff] %v18247_v40  ;;  %23152 = vst [vmem:[#allocation132_spill] sm:$0xff] %v18250_v27  ;;  %v18262_v24 = vcombine.low %v4420_v20, %v4427_v12  ;;  %v18264_v13 = vcombine.low %v4434_v5, %v4441_v52  ;;  %v4518_v4 = vrot.slane %v23153_v0, %v16597_v30  ;;  %v23162_v52 = vld [vmem:[#allocation66_spill] sm:$0xff] }
 0x223   :  { %23154 = vst [vmem:[#allocation65_spill] sm:$0xff] %v18258_v2  ;;  %23155 = vst [vmem:[#allocation230_spill] sm:$0xff] %v18260_v54  ;;  %v4525_v9 = vrot.slane %v23153_v0, %v16600_v18  ;;  %v18275_v62 = vcombine.low %v1578_v50, %v1585_v1  ;;  %v1493_v12 = vrot.slane %v23161_v51, %v16649_v42  ;;  %1649 = vperm.xlu0 %15464, %v23163_v22   ;;  %v23165_v50 = vld [vmem:[#allocation67_spill] sm:$0xff] }
 0x224   :  { %23156 = vst [vmem:[#allocation231_spill] sm:$0xff] %v18262_v24  ;;  %23157 = vst [vmem:[#allocation232_spill] sm:$0xff] %v18264_v13  ;;  %v4476_v20 = vrot.slane %v23162_v52, %v16591_v3  ;;  %v4483_v26 = vrot.slane %v23162_v52, %v16594_v7  ;;  %v4490_v37 = vrot.slane %v23162_v52, %v16597_v30  ;;  %v23173_v24 = vld [vmem:[#allocation69_spill] sm:$0xff] }
 0x225   :  { %23158 = vst [vmem:[#allocation233_spill] sm:$0xff] %v18270_v39  ;;  %23160 = vst [vmem:[#allocation145_spill] sm:$0xff] %v18273_v25  ;;  %v4497_v11 = vrot.slane %v23162_v52, %v16600_v18  ;;  %v18288_v6 = vcombine.low %v4504_v17, %v4511_v61  ;;  %v4560_v1 = vrot.slane %v23165_v50, %v16591_v3  ;;  %v23168_v17 = vld [vmem:[#allocation68_spill] sm:$0xff]  ;;  %v18310_v25 = vpop.xlane.xlu1 %11190  ;;  %v23170_v39 = vld [vmem:[#allocation162_spill] sm:$0xff]  ;;  %v18313_v49 = vpop.xlane.xlu0 %11232 }
 0x226   :  { %v1500_v5 = vrot.slane %v23166_v47, %v16649_v42  ;;  %v1612_v0 = vrot.slane %v23167_v45, %v16649_v42  ;;  %v4567_v8 = vrot.slane %v23165_v50, %v16594_v7  ;;  %v4574_v51 = vrot.slane %v23165_v50, %v16597_v30  ;;  %23169 = vst [vmem:[#allocation66_spill] sm:$0xff] %v18310_v25  ;;  %v23174_v25 = vld [vmem:[#allocation169_spill] sm:$0xff] }
 0x227   :  { %23164 = vst [vmem:[#allocation154_spill] sm:$0xff] %v18288_v6  ;;  %v4581_v52 = vrot.slane %v23165_v50, %v16600_v18  ;;  %v4532_v61 = vrot.slane %v23168_v17, %v16591_v3  ;;  %v4539_v22 = vrot.slane %v23168_v17, %v16594_v7  ;;  %v4546_v47 = vrot.slane %v23168_v17, %v16597_v30  ;;  %v23172_v50 = vld [vmem:[#allocation171_spill] sm:$0xff] }
 0x228   :  { %v4553_v45 = vrot.slane %v23168_v17, %v16600_v18  ;;  %1640 = vperm.xlu1 %15465, %v23170_v39   ;;  %23171 = vst [vmem:[#allocation151_spill] sm:$0xff] %v18313_v49  ;;  %v1619_v13 = vrot.slane %v23172_v50, %v16649_v42  ;;  %v4616_v27 = vrot.slane %v23173_v24, %v16591_v3  ;;  %v23175_v39 = vld [vmem:[#allocation70_spill] sm:$0xff] }
 0x229   :  { %v4623_v40 = vrot.slane %v23173_v24, %v16594_v7  ;;  %v4630_v6 = vrot.slane %v23173_v24, %v16597_v30  ;;  %v4637_v17 = vrot.slane %v23173_v24, %v16600_v18  ;;  %1655 = vperm.xlu0 %15464, %v23174_v25   ;;  %v4588_v49 = vrot.slane %v23175_v39, %v16591_v3  ;;  %v18350_v48 = vpop.xlane.xlu1 %11193 }
 0x22a   :  { %v4595_v50 = vrot.slane %v23175_v39, %v16594_v7  ;;  %v4602_v55 = vrot.slane %v23175_v39, %v16597_v30  ;;  %v4609_v28 = vrot.slane %v23175_v39, %v16600_v18  ;;  %v18334_v54 = vcombine.low %v4518_v4, %v4525_v9  ;;  %23180 = vst [vmem:[#allocation68_spill] sm:$0xff] %v18350_v48  ;;  %v18353_v4 = vpop.xlane.xlu0 %11235 }
 0x22b   :  { %v18336_v2 = vcombine.low %v4560_v1, %v4567_v8  ;;  %v18338_v16 = vcombine.low %v4476_v20, %v4483_v26  ;;  %v18340_v24 = vcombine.low %v4490_v37, %v4497_v11  ;;  %v18342_v25 = vcombine.low %v4574_v51, %v4581_v52  ;;  %23181 = vst [vmem:[#allocation162_spill] sm:$0xff] %v18353_v4  ;;  %v23191_v52 = vld [vmem:[#allocation73_spill] sm:$0xff] }
 0x22c   :  { %v18344_v63 = vcombine.low %v4532_v61, %v4539_v22  ;;  %v4672_v56 = vrot.slane %v23179_v46, %v16591_v3  ;;  %v4679_v15 = vrot.slane %v23179_v46, %v16594_v7  ;;  %1643 = vperm.xlu1 %15465, %v17422_v44   ;;  %v18355_v9 = vcombine.low %v4616_v27, %v4623_v40  ;;  %v23185_v44 = vld [vmem:[#allocation160_spill] sm:$0xff] }
 0x22d   :  { %23176 = vst [vmem:[#allocation67_spill] sm:$0xff] %v18338_v16  ;;  %23177 = vst [vmem:[#allocation155_spill] sm:$0xff] %v18340_v24  ;;  %v18357_v20 = vcombine.low %v4630_v6, %v4637_v17  ;;  %v18359_v26 = vcombine.low %v4546_v47, %v4553_v45  ;;  %1661 = vperm.xlu0 %15464, %v17445_v41   ;;  %v18362_v37 = vcombine.low %v1493_v12, %v1500_v5  ;;  %v23186_v6 = vld [vmem:[#allocation72_spill] sm:$0xff] }
 0x22e   :  { %23178 = vst [vmem:[#allocation170_spill] sm:$0xff] %v18344_v63  ;;  %v18364_v11 = vcombine.low %v4588_v49, %v4595_v50  ;;  %v18366_v1 = vcombine.low %v4602_v55, %v4609_v28  ;;  %v18368_v8 = vcombine.low %v1612_v0, %v1619_v13  ;;  %v1527_v51 = vrot.slane %v23185_v44, %v16649_v42  ;;  %v18386_v13 = vpop.xlane.xlu1 %11196  ;;  %v18389_v5 = vpop.xlane.xlu0 %11238  ;;  %v23193_v50 = vld [vmem:[#allocation75_spill] sm:$0xff] }
 0x22f   :  { %23182 = vst [vmem:[#allocation171_spill] sm:$0xff] %v18359_v26  ;;  %v4686_v40 = vrot.slane %v23179_v46, %v16597_v30  ;;  %v4693_v27 = vrot.slane %v23179_v46, %v16600_v18  ;;  %v4644_v41 = vrot.slane %v23186_v6, %v16591_v3  ;;  %v4651_v49 = vrot.slane %v23186_v6, %v16594_v7  ;;  %v23190_v46 = vld [vmem:[#allocation161_spill] sm:$0xff]  ;;  %v23198_v26 = vld [vmem:[#allocation175_spill] sm:$0xff] }
 0x230   :  { %23183 = vst [vmem:[#allocation69_spill] sm:$0xff] %v18364_v11  ;;  %23184 = vst [vmem:[#allocation169_spill] sm:$0xff] %v18366_v1  ;;  %v18380_v12 = vcombine.low %v4672_v56, %v4679_v15  ;;  %v4658_v28 = vrot.slane %v23186_v6, %v16597_v30  ;;  %v4665_v55 = vrot.slane %v23186_v6, %v16600_v18  ;;  %1646 = vperm.xlu1 %15465, %v17513_v58   ;;  %v23192_v58 = vld [vmem:[#allocation74_spill] sm:$0xff] }
 0x231   :  { %23188 = vst [vmem:[#allocation71_spill] sm:$0xff] %v18386_v13  ;;  %23189 = vst [vmem:[#allocation160_spill] sm:$0xff] %v18389_v5  ;;  %v1534_v0 = vrot.slane %v23190_v46, %v16649_v42  ;;  %v4728_v61 = vrot.slane %v23191_v52, %v16591_v3  ;;  %v4735_v15 = vrot.slane %v23191_v52, %v16594_v7  ;;  %1667 = vperm.xlu0 %15464, %v17573_v31  }
 0x232   :  { %23187 = vst [vmem:[#allocation70_spill] sm:$0xff] %v18380_v12  ;;  %v4742_v56 = vrot.slane %v23191_v52, %v16597_v30  ;;  %v4749_v22 = vrot.slane %v23191_v52, %v16600_v18  ;;  %v4700_v47 = vrot.slane %v23192_v58, %v16591_v3  ;;  %v4707_v45 = vrot.slane %v23192_v58, %v16594_v7  ;;  %v23194_v52 = vld [vmem:[#allocation76_spill] sm:$0xff]  ;;  %v18426_v48 = vpop.xlane.xlu1 %11199  ;;  %v18429_v1 = vpop.xlane.xlu0 %11241 }
 0x233   :  { %v4714_v17 = vrot.slane %v23192_v58, %v16597_v30  ;;  %v4721_v39 = vrot.slane %v23192_v58, %v16600_v18  ;;  %v4784_v44 = vrot.slane %v23193_v50, %v16591_v3  ;;  %v4791_v6 = vrot.slane %v23193_v50, %v16594_v7  ;;  %23195 = vst [vmem:[#allocation72_spill] sm:$0xff] %v18426_v48  ;;  %v23199_v12 = vld [vmem:[#allocation176_spill] sm:$0xff] }
 0x234   :  { %v4798_v31 = vrot.slane %v23193_v50, %v16597_v30  ;;  %v4805_v46 = vrot.slane %v23193_v50, %v16600_v18  ;;  %v4756_v5 = vrot.slane %v23194_v52, %v16591_v3  ;;  %v4763_v13 = vrot.slane %v23194_v52, %v16594_v7  ;;  %1652 = vperm.xlu1 %15465, %v17651_v60  }
 0x235   :  { %v4770_v58 = vrot.slane %v23194_v52, %v16597_v30  ;;  %v4777_v4 = vrot.slane %v23194_v52, %v16600_v18  ;;  %23196 = vst [vmem:[#allocation161_spill] sm:$0xff] %v18429_v1  ;;  %v18431_v11 = vcombine.low %v4686_v40, %v4693_v27  ;;  %v18433_v50 = vcombine.low %v4644_v41, %v4651_v49  ;;  %v23203_v27 = vld [vmem:[#allocation77_spill] sm:$0xff] }
 0x236   :  { %1673 = vperm.xlu0 %15464, %v17657_v10   ;;  %v2950_v63 = vrot.slane %v23198_v26, %v16649_v42  ;;  %v2957_v24 = vrot.slane %v23199_v12, %v16649_v42  ;;  %v18440_v16 = vcombine.low %v4728_v61, %v4735_v15  ;;  %v18442_v52 = vcombine.low %v4742_v56, %v4749_v22  ;;  %v18467_v15 = vpop.xlane.xlu0 %11244 }
 0x237   :  { %23197 = vst [vmem:[#allocation73_spill] sm:$0xff] %v18433_v50  ;;  %v18444_v48 = vcombine.low %v4658_v28, %v4665_v55  ;;  %v18446_v60 = vcombine.low %v4700_v47, %v4707_v45  ;;  %v18448_v40 = vcombine.low %v4714_v17, %v4721_v39  ;;  %v5748_v41 = vrot.slane %v23203_v27, %v16591_v3  ;;  %v18464_v55 = vpop.xlane.xlu1 %11202 }
 0x238   :  { %v5755_v10 = vrot.slane %v23203_v27, %v16594_v7  ;;  %v18454_v26 = vcombine.low %v1527_v51, %v1534_v0  ;;  %v18456_v49 = vcombine.low %v4784_v44, %v4791_v6  ;;  %v18458_v12 = vcombine.low %v4798_v31, %v4805_v46  ;;  %23206 = vst [vmem:[#allocation77_spill] sm:$0xff] %v18464_v55  ;;  %v23217_v55 = vld [vmem:[#allocation82_spill] sm:$0xff] }
 0x239   :  { %23200 = vst [vmem:[#allocation74_spill] sm:$0xff] %v18444_v48  ;;  %23201 = vst [vmem:[#allocation75_spill] sm:$0xff] %v18446_v60  ;;  %v18460_v61 = vcombine.low %v4756_v5, %v4763_v13  ;;  %v18462_v28 = vcombine.low %v4770_v58, %v4777_v4  ;;  %1658 = vperm.xlu1 %15465, %v17733_v19   ;;  %v5762_v56 = vrot.slane %v23203_v27, %v16597_v30  ;;  %v23208_v13 = vld [vmem:[#allocation12_spill] sm:$0xff]  ;;  %v23209_v5 = vld [vmem:[#allocation78_spill] sm:$0xff] }
 0x23a   :  { %23202 = vst [vmem:[#allocation76_spill] sm:$0xff] %v18448_v40  ;;  %23207 = vst [vmem:[#allocation234_spill] sm:$0xff] %v18467_v15  ;;  %v5769_v51 = vrot.slane %v23203_v27, %v16600_v18  ;;  %1679 = vperm.xlu0 %15464, %v17793_v35   ;;  %v18474_v0 = vcombine.low %v2950_v63, %v2957_v24  ;;  %v1561_v4 = vrot.slane %v23208_v13, %v16649_v42  ;;  %v23211_v63 = vld [vmem:[#allocation79_spill] sm:$0xff]  ;;  %v23212_v24 = vld [vmem:[#allocation166_spill] sm:$0xff] }
 0x23b   :  { %23204 = vst [vmem:[#allocation175_spill] sm:$0xff] %v18460_v61  ;;  %23205 = vst [vmem:[#allocation176_spill] sm:$0xff] %v18462_v28  ;;  %v5776_v22 = vrot.slane %v23209_v5, %v16591_v3  ;;  %v5783_v19 = vrot.slane %v23209_v5, %v16594_v7  ;;  %v5790_v47 = vrot.slane %v23209_v5, %v16597_v30  ;;  %v23213_v58 = vld [vmem:[#allocation80_spill] sm:$0xff] }
 0x23c   :  { %v5797_v45 = vrot.slane %v23209_v5, %v16600_v18  ;;  %v18486_v17 = vcombine.low %v5748_v41, %v5755_v10  ;;  %v5832_v35 = vrot.slane %v23211_v63, %v16591_v3  ;;  %v1568_v39 = vrot.slane %v23212_v24, %v16649_v42  ;;  %v18502_v41 = vpop.xlane.xlu1 %11205  ;;  %v18505_v10 = vpop.xlane.xlu0 %11247  ;;  %v23216_v24 = vld [vmem:[#allocation81_spill] sm:$0xff] }
 0x23d   :  { %v3001_v44 = vrot.slane %v17424_v43, %v16649_v42  ;;  %v5839_v6 = vrot.slane %v23211_v63, %v16594_v7  ;;  %v5846_v31 = vrot.slane %v23211_v63, %v16597_v30  ;;  %v5853_v46 = vrot.slane %v23211_v63, %v16600_v18  ;;  %23214 = vst [vmem:[#allocation78_spill] sm:$0xff] %v18502_v41 }
 0x23e   :  { %23210 = vst [vmem:[#allocation12_spill] sm:$0xff] %v18486_v17  ;;  %v5804_v27 = vrot.slane %v23213_v58, %v16591_v3  ;;  %1664 = vperm.xlu1 %15465, %v17869_v57   ;;  %23215 = vst [vmem:[#allocation79_spill] sm:$0xff] %v18505_v10  ;;  %v5811_v43 = vrot.slane %v23213_v58, %v16594_v7  ;;  %v5818_v13 = vrot.slane %v23213_v58, %v16597_v30 }
 0x23f   :  { %v5825_v5 = vrot.slane %v23213_v58, %v16600_v18  ;;  %1685 = vperm.xlu0 %15464, %v17887_v29   ;;  %v3008_v63 = vrot.slane %v17426_v36, %v16649_v42  ;;  %v5888_v41 = vrot.slane %v23216_v24, %v16591_v3  ;;  %v5895_v57 = vrot.slane %v23216_v24, %v16594_v7 }
 0x240   :  { %v5902_v10 = vrot.slane %v23216_v24, %v16597_v30  ;;  %v5909_v15 = vrot.slane %v23216_v24, %v16600_v18  ;;  %v5860_v58 = vrot.slane %v23217_v55, %v16591_v3  ;;  %v5867_v29 = vrot.slane %v23217_v55, %v16594_v7  ;;  %v18540_v24 = vpop.xlane.xlu1 %11208  ;;  %v18543_v17 = vpop.xlane.xlu0 %11250 }
 0x241   :  { %v5874_v36 = vrot.slane %v23217_v55, %v16597_v30  ;;  %v5881_v1 = vrot.slane %v23217_v55, %v16600_v18  ;;  %v18532_v28 = vcombine.low %v5762_v56, %v5769_v51  ;;  %v18534_v61 = vcombine.low %v5832_v35, %v5839_v6  ;;  %23220 = vst [vmem:[#allocation81_spill] sm:$0xff] %v18540_v24  ;;  %v23223_v55 = vld [vmem:[#allocation83_spill] sm:$0xff] }
 0x242   :  { %v18536_v40 = vcombine.low %v5776_v22, %v5783_v19  ;;  %v18538_v60 = vcombine.low %v5790_v47, %v5797_v45  ;;  %1670 = vperm.xlu1 %15465, %v17965_v23   ;;  %23221 = vst [vmem:[#allocation82_spill] sm:$0xff] %v18543_v17  ;;  %v18545_v48 = vcombine.low %v5846_v31, %v5853_v46  ;;  %v23229_v31 = vld [vmem:[#allocation172_spill] sm:$0xff] }
 0x243   :  { %v18547_v50 = vcombine.low %v5804_v27, %v5811_v43  ;;  %v5944_v56 = vrot.slane %v23223_v55, %v16591_v3  ;;  %v5951_v51 = vrot.slane %v23223_v55, %v16594_v7  ;;  %1691 = vperm.xlu0 %15464, %v17981_v14   ;;  %v18554_v22 = vcombine.low %v5888_v41, %v5895_v57  ;;  %v23230_v27 = vld [vmem:[#allocation84_spill] sm:$0xff] }
 0x244   :  { %23218 = vst [vmem:[#allocation166_spill] sm:$0xff] %v18536_v40  ;;  %23219 = vst [vmem:[#allocation80_spill] sm:$0xff] %v18538_v60  ;;  %v18556_v19 = vcombine.low %v5902_v10, %v5909_v15  ;;  %v18558_v47 = vcombine.low %v5818_v13, %v5825_v5  ;;  %v18560_v23 = vcombine.low %v1561_v4, %v1568_v39  ;;  %v18578_v39 = vpop.xlane.xlu1 %11211  ;;  %v23234_v13 = vld [vmem:[#allocation173_spill] sm:$0xff] }
 0x245   :  { %23222 = vst [vmem:[#allocation235_spill] sm:$0xff] %v18547_v50  ;;  %23224 = vst [vmem:[#allocation83_spill] sm:$0xff] %v18554_v22  ;;  %v18562_v45 = vcombine.low %v5860_v58, %v5867_v29  ;;  %v18564_v35 = vcombine.low %v5874_v36, %v5881_v1  ;;  %v18566_v6 = vcombine.low %v3001_v44, %v3008_v63  ;;  %v18581_v1 = vpop.xlane.xlu0 %11253  ;;  %v23235_v63 = vld [vmem:[#allocation85_spill] sm:$0xff]  ;;  %v23236_v36 = vld [vmem:[#allocation86_spill] sm:$0xff] }
 0x246   :  { %23225 = vst [vmem:[#allocation236_spill] sm:$0xff] %v18556_v19  ;;  %23226 = vst [vmem:[#allocation237_spill] sm:$0xff] %v18558_v47  ;;  %v1595_v46 = vrot.slane %v23229_v31, %v16649_v42  ;;  %v5958_v14 = vrot.slane %v23223_v55, %v16597_v30  ;;  %v5965_v15 = vrot.slane %v23223_v55, %v16600_v18  ;;  %1676 = vperm.xlu1 %15465, %v18063_v59   ;;  %v23237_v31 = vld [vmem:[#allocation87_spill] sm:$0xff] }
 0x247   :  { %23227 = vst [vmem:[#allocation238_spill] sm:$0xff] %v18562_v45  ;;  %23228 = vst [vmem:[#allocation239_spill] sm:$0xff] %v18564_v35  ;;  %v5916_v41 = vrot.slane %v23230_v27, %v16591_v3  ;;  %v5923_v4 = vrot.slane %v23230_v27, %v16594_v7  ;;  %v18583_v44 = vcombine.low %v5944_v56, %v5951_v51  ;;  %1697 = vperm.xlu0 %15464, %v18077_v33  }
 0x248   :  { %23231 = vst [vmem:[#allocation172_spill] sm:$0xff] %v18578_v39  ;;  %23232 = vst [vmem:[#allocation84_spill] sm:$0xff] %v18581_v1  ;;  %v5930_v10 = vrot.slane %v23230_v27, %v16597_v30  ;;  %v5937_v43 = vrot.slane %v23230_v27, %v16600_v18  ;;  %v1602_v5 = vrot.slane %v23234_v13, %v16649_v42  ;;  %v18616_v24 = vpop.xlane.xlu1 %11214 }
 0x249   :  { %23233 = vst [vmem:[#allocation240_spill] sm:$0xff] %v18583_v44  ;;  %v6000_v57 = vrot.slane %v23235_v63, %v16591_v3  ;;  %v6007_v59 = vrot.slane %v23235_v63, %v16594_v7  ;;  %v6014_v58 = vrot.slane %v23235_v63, %v16597_v30  ;;  %v6021_v29 = vrot.slane %v23235_v63, %v16600_v18  ;;  %v18619_v1 = vpop.xlane.xlu0 %11256 }
 0x24a   :  { %v5972_v55 = vrot.slane %v23236_v36, %v16591_v3  ;;  %v5979_v33 = vrot.slane %v23236_v36, %v16594_v7  ;;  %v5986_v56 = vrot.slane %v23236_v36, %v16597_v30  ;;  %v5993_v51 = vrot.slane %v23236_v36, %v16600_v18  ;;  %23238 = vst [vmem:[#allocation173_spill] sm:$0xff] %v18616_v24  ;;  %v23240_v36 = vld [vmem:[#allocation88_spill] sm:$0xff] }
 0x24b   :  { %v6056_v27 = vrot.slane %v23237_v31, %v16591_v3  ;;  %v6063_v13 = vrot.slane %v23237_v31, %v16594_v7  ;;  %v6070_v63 = vrot.slane %v23237_v31, %v16597_v30  ;;  %v6077_v39 = vrot.slane %v23237_v31, %v16600_v18  ;;  %1682 = vperm.xlu1 %15465, %v18165_v53  }
 0x24c   :  { %23239 = vst [vmem:[#allocation85_spill] sm:$0xff] %v18619_v1  ;;  %v6028_v17 = vrot.slane %v23240_v36, %v16591_v3  ;;  %v6035_v35 = vrot.slane %v23240_v36, %v16594_v7  ;;  %v6042_v45 = vrot.slane %v23240_v36, %v16597_v30  ;;  %v6049_v47 = vrot.slane %v23240_v36, %v16600_v18 }
 0x24d   :  { %1703 = vperm.xlu0 %15464, %v18171_v32   ;;  %v18630_v31 = vcombine.low %v5958_v14, %v5965_v15  ;;  %v18632_v24 = vcombine.low %v5916_v41, %v5923_v4  ;;  %v18634_v53 = vcombine.low %v5930_v10, %v5937_v43  ;;  %v3035_v1 = vrot.slane %v17449_v21, %v16649_v42  ;;  %v18650_v14 = vpop.xlane.xlu1 %11217  ;;  %v18653_v15 = vpop.xlane.xlu0 %11259  ;;  %v23252_v4 = vld [vmem:[#allocation90_spill] sm:$0xff] }
 0x24e   :  { %v18638_v50 = vcombine.low %v6000_v57, %v6007_v59  ;;  %v18640_v44 = vcombine.low %v6014_v58, %v6021_v29  ;;  %v18642_v60 = vcombine.low %v5972_v55, %v5979_v33  ;;  %v18644_v40 = vcombine.low %v5986_v56, %v5993_v51  ;;  %23250 = vst [vmem:[#allocation247_spill] sm:$0xff] %v18650_v14  ;;  %v23258_v29 = vld [vmem:[#allocation93_spill] sm:$0xff] }
 0x24f   :  { %23241 = vst [vmem:[#allocation86_spill] sm:$0xff] %v18630_v31  ;;  %23242 = vst [vmem:[#allocation87_spill] sm:$0xff] %v18632_v24  ;;  %v18646_v36 = vcombine.low %v6056_v27, %v6063_v13  ;;  %v18648_v32 = vcombine.low %v6070_v63, %v6077_v39  ;;  %1688 = vperm.xlu1 %15465, %v18256_v34   ;;  %v18655_v41 = vcombine.low %v1595_v46, %v1602_v5  ;;  %v23261_v63 = vld [vmem:[#allocation94_spill] sm:$0xff] }
 0x250   :  { %23243 = vst [vmem:[#allocation88_spill] sm:$0xff] %v18634_v53  ;;  %23244 = vst [vmem:[#allocation241_spill] sm:$0xff] %v18638_v50  ;;  %v3042_v21 = vrot.slane %v17451_v38, %v16649_v42  ;;  %v6112_v10 = vrot.slane %v23252_v4, %v16591_v3  ;;  %v6119_v43 = vrot.slane %v23252_v4, %v16594_v7  ;;  %v23255_v38 = vld [vmem:[#allocation91_spill] sm:$0xff] }
 0x251   :  { %23245 = vst [vmem:[#allocation242_spill] sm:$0xff] %v18640_v44  ;;  %23246 = vst [vmem:[#allocation243_spill] sm:$0xff] %v18642_v60  ;;  %v18663_v57 = vcombine.low %v6028_v17, %v6035_v35  ;;  %v18665_v39 = vcombine.low %v6042_v45, %v6049_v47  ;;  %1709 = vperm.xlu0 %15464, %v18275_v62   ;;  %v6126_v34 = vrot.slane %v23252_v4, %v16597_v30  ;;  %v23256_v62 = vld [vmem:[#allocation17_spill] sm:$0xff]  ;;  %v23257_v35 = vld [vmem:[#allocation18_spill] sm:$0xff]  ;;  %v18692_v27 = vpop.xlane.xlu1 %11220  ;;  %v18695_v13 = vpop.xlane.xlu0 %11262 }
 0x252   :  { %23247 = vst [vmem:[#allocation244_spill] sm:$0xff] %v18644_v40  ;;  %23248 = vst [vmem:[#allocation245_spill] sm:$0xff] %v18646_v36  ;;  %v6133_v46 = vrot.slane %v23252_v4, %v16600_v18  ;;  %v6084_v5 = vrot.slane %v23255_v38, %v16591_v3  ;;  %v6091_v59 = vrot.slane %v23255_v38, %v16594_v7 }
 0x253   :  { %23249 = vst [vmem:[#allocation246_spill] sm:$0xff] %v18648_v32  ;;  %23251 = vst [vmem:[#allocation248_spill] sm:$0xff] %v18653_v15  ;;  %v6098_v17 = vrot.slane %v23255_v38, %v16597_v30  ;;  %v6105_v47 = vrot.slane %v23255_v38, %v16600_v18  ;;  %v2967_v45 = vrot.slane %v23256_v62, %v16649_v42  ;;  %1694 = vperm.xlu1 %15465, %v18362_v37   ;;  %v23488_v32 = vld [vmem:[#allocation225_spill] sm:$0xff] }
 0x254   :  { %23253 = vst [vmem:[#allocation90_spill] sm:$0xff] %v18663_v57  ;;  %23254 = vst [vmem:[#allocation249_spill] sm:$0xff] %v18665_v39  ;;  %v2974_v58 = vrot.slane %v23257_v35, %v16649_v42  ;;  %v6168_v55 = vrot.slane %v23258_v29, %v16591_v3  ;;  %v6175_v33 = vrot.slane %v23258_v29, %v16594_v7 }
 0x255   :  { %v6182_v56 = vrot.slane %v23258_v29, %v16597_v30  ;;  %v6189_v51 = vrot.slane %v23258_v29, %v16600_v18  ;;  %23259 = vst [vmem:[#allocation91_spill] sm:$0xff] %v18692_v27  ;;  %23260 = vst [vmem:[#allocation17_spill] sm:$0xff] %v18695_v13  ;;  %v6140_v4 = vrot.slane %v23261_v63, %v16591_v3  ;;  %1715 = vperm.xlu0 %15464, %v18368_v8   ;;  %v23265_v13 = vld [vmem:[#allocation95_spill] sm:$0xff] }
 0x256   :  { %v6147_v38 = vrot.slane %v23261_v63, %v16594_v7  ;;  %v6154_v62 = vrot.slane %v23261_v63, %v16597_v30  ;;  %v6161_v35 = vrot.slane %v23261_v63, %v16600_v18  ;;  %v18706_v29 = vcombine.low %v6112_v10, %v6119_v43 }
 0x257   :  { %v18708_v27 = vcombine.low %v6126_v34, %v6133_v46  ;;  %v18710_v37 = vcombine.low %v6084_v5, %v6091_v59  ;;  %v3043_v14 = vcombine.low %v3035_v1, %v3042_v21  ;;  %v6224_v15 = vrot.slane %v23265_v13, %v16591_v3  ;;  %v18726_v34 = vpop.xlane.xlu1 %13007  ;;  %1700 = vperm.xlu1 %15465, %v18454_v26   ;;  %v18729_v1 = vpop.xlane.xlu0 %11265  ;;  %v23271_v21 = vld [vmem:[#allocation20_spill] sm:$0xff] }
 0x258   :  { %23262 = vst [vmem:[#allocation18_spill] sm:$0xff] %v18706_v29  ;;  %v6231_v39 = vrot.slane %v23265_v13, %v16594_v7  ;;  %v6238_v57 = vrot.slane %v23265_v13, %v16597_v30  ;;  %v6245_v63 = vrot.slane %v23265_v13, %v16600_v18  ;;  %v18720_v8 = vcombine.low %v6168_v55, %v6175_v33  ;;  %v23274_v33 = vld [vmem:[#allocation21_spill] sm:$0xff] }
 0x259   :  { %23263 = vst [vmem:[#allocation93_spill] sm:$0xff] %v18708_v27  ;;  %23264 = vst [vmem:[#allocation94_spill] sm:$0xff] %v18710_v37  ;;  %v18722_v10 = vcombine.low %v6182_v56, %v6189_v51  ;;  %v18724_v43 = vcombine.low %v6098_v17, %v6105_v47  ;;  %v3069_v46 = vrot.slane %v23271_v21, %v16649_v42  ;;  %3487 = vperm.xlu0 %15464, %v18474_v0   ;;  %v23275_v47 = vld [vmem:[#allocation96_spill] sm:$0xff]  ;;  %v23278_v0 = vld [vmem:[#allocation97_spill] sm:$0xff] }
 0x25a   :  { %23266 = vst [vmem:[#allocation95_spill] sm:$0xff] %v18720_v8  ;;  %23269 = vst [vmem:[#allocation252_spill] sm:$0xff] %v18726_v34  ;;  %v18733_v5 = vcombine.low %v6140_v4, %v6147_v38  ;;  %v18735_v59 = vcombine.low %v6154_v62, %v6161_v35  ;;  %v2975_v55 = vcombine.low %v2967_v45, %v2974_v58  ;;  %v23279_v58 = vld [vmem:[#allocation181_spill] sm:$0xff] }
 0x25b   :  { %23267 = vst [vmem:[#allocation250_spill] sm:$0xff] %v18722_v10  ;;  %23268 = vst [vmem:[#allocation251_spill] sm:$0xff] %v18724_v43  ;;  %v3076_v17 = vrot.slane %v23274_v33, %v16649_v42  ;;  %v6196_v56 = vrot.slane %v23275_v47, %v16591_v3  ;;  %v6203_v26 = vrot.slane %v23275_v47, %v16594_v7  ;;  %1706 = vperm.xlu1 %15465, %v18560_v23   ;;  %v23285_v43 = vld [vmem:[#allocation100_spill] sm:$0xff] }
 0x25c   :  { %23270 = vst [vmem:[#allocation253_spill] sm:$0xff] %v18729_v1  ;;  %23272 = vst [vmem:[#allocation20_spill] sm:$0xff] %v18733_v5  ;;  %v6210_v51 = vrot.slane %v23275_v47, %v16597_v30  ;;  %v6217_v13 = vrot.slane %v23275_v47, %v16600_v18  ;;  %v18748_v4 = vcombine.low %v6224_v15, %v6231_v39  ;;  %v23280_v15 = vld [vmem:[#allocation98_spill] sm:$0xff] }
 0x25d   :  { %23273 = vst [vmem:[#allocation254_spill] sm:$0xff] %v18735_v59  ;;  %v18750_v38 = vcombine.low %v6238_v57, %v6245_v63  ;;  %v6280_v45 = vrot.slane %v23278_v0, %v16591_v3  ;;  %v2984_v62 = vrot.slane %v23279_v58, %v16649_v42  ;;  %v6287_v35 = vrot.slane %v23278_v0, %v16594_v7  ;;  %v18764_v57 = vpop.xlane.xlu1 %13058  ;;  %v18767_v63 = vpop.xlane.xlu0 %11268 }
 0x25e   :  { %23276 = vst [vmem:[#allocation21_spill] sm:$0xff] %v18748_v4  ;;  %v6294_v21 = vrot.slane %v23278_v0, %v16597_v30  ;;  %v6301_v33 = vrot.slane %v23278_v0, %v16600_v18  ;;  %v6252_v39 = vrot.slane %v23280_v15, %v16591_v3  ;;  %23281 = vst [vmem:[#allocation97_spill] sm:$0xff] %v18764_v57  ;;  %3496 = vperm.xlu0 %15464, %v18566_v6   ;;  %v23283_v0 = vld [vmem:[#allocation182_spill] sm:$0xff]  ;;  %v23284_v57 = vld [vmem:[#allocation99_spill] sm:$0xff] }
 0x25f   :  { %23277 = vst [vmem:[#allocation96_spill] sm:$0xff] %v18750_v38  ;;  %23282 = vst [vmem:[#allocation181_spill] sm:$0xff] %v18767_v63  ;;  %v6259_v47 = vrot.slane %v23280_v15, %v16594_v7  ;;  %v6266_v58 = vrot.slane %v23280_v15, %v16597_v30  ;;  %v6273_v34 = vrot.slane %v23280_v15, %v16600_v18  ;;  %1712 = vperm.xlu1 %15465, %v18655_v41  }
 0x260   :  { %v2991_v1 = vrot.slane %v23283_v0, %v16649_v42  ;;  %v6336_v59 = vrot.slane %v23284_v57, %v16591_v3  ;;  %v6343_v23 = vrot.slane %v23284_v57, %v16594_v7  ;;  %v6350_v63 = vrot.slane %v23284_v57, %v16597_v30 }
 0x261   :  { %v6357_v5 = vrot.slane %v23284_v57, %v16600_v18  ;;  %v6308_v15 = vrot.slane %v23285_v43, %v16591_v3  ;;  %v6315_v6 = vrot.slane %v23285_v43, %v16594_v7  ;;  %v6322_v0 = vrot.slane %v23285_v43, %v16597_v30  ;;  %v18800_v8 = vpop.xlane.xlu1 %13061  ;;  %v18803_v57 = vpop.xlane.xlu0 %13010 }
 0x262   :  { %v6329_v37 = vrot.slane %v23285_v43, %v16600_v18  ;;  %v18794_v38 = vcombine.low %v6280_v45, %v6287_v35  ;;  %v18796_v4 = vcombine.low %v6196_v56, %v6203_v26  ;;  %v18798_v10 = vcombine.low %v6210_v51, %v6217_v13  ;;  %23289 = vst [vmem:[#allocation100_spill] sm:$0xff] %v18800_v8  ;;  %v23294_v43 = vld [vmem:[#allocation189_spill] sm:$0xff] }
 0x263   :  { %23290 = vst [vmem:[#allocation255_spill] sm:$0xff] %v18803_v57  ;;  %v3077_v40 = vcombine.low %v3069_v46, %v3076_v17  ;;  %v18805_v60 = vcombine.low %v6294_v21, %v6301_v33  ;;  %v18807_v27 = vcombine.low %v6252_v39, %v6259_v47  ;;  %v18809_v29 = vcombine.low %v6266_v58, %v6273_v34  ;;  %v23296_v51 = vld [vmem:[#allocation101_spill] sm:$0xff]  ;;  %v23297_v46 = vld [vmem:[#allocation190_spill] sm:$0xff] }
 0x264   :  { %23286 = vst [vmem:[#allocation98_spill] sm:$0xff] %v18794_v38  ;;  %23287 = vst [vmem:[#allocation182_spill] sm:$0xff] %v18796_v4  ;;  %3502 = vperm.xlu0 %15464, %v3043_v14   ;;  %v3103_v56 = vrot.slane %v23294_v43, %v16649_v42  ;;  %v18813_v26 = vcombine.low %v6336_v59, %v6343_v23  ;;  %v6392_v13 = vrot.slane %v23296_v51, %v16591_v3  ;;  %v23301_v33 = vld [vmem:[#allocation102_spill] sm:$0xff]  ;;  %v23307_v43 = vld [vmem:[#allocation184_spill] sm:$0xff] }
 0x265   :  { %23288 = vst [vmem:[#allocation99_spill] sm:$0xff] %v18798_v10  ;;  %23291 = vst [vmem:[#allocation256_spill] sm:$0xff] %v18805_v60  ;;  %v6399_v41 = vrot.slane %v23296_v51, %v16594_v7  ;;  %v3110_v17 = vrot.slane %v23297_v46, %v16649_v42  ;;  %v18821_v45 = vcombine.low %v6350_v63, %v6357_v5  ;;  %v18835_v58 = vpop.xlane.xlu1 %13064  ;;  %3490 = vperm.xlu1 %15465, %v2975_v55   ;;  %v18837_v5 = vpop.xlane.xlu0 %13055  ;;  %v23306_v55 = vld [vmem:[#allocation183_spill] sm:$0xff] }
 0x266   :  { %23292 = vst [vmem:[#allocation257_spill] sm:$0xff] %v18807_v27  ;;  %23293 = vst [vmem:[#allocation258_spill] sm:$0xff] %v18809_v29  ;;  %v18823_v35 = vcombine.low %v6308_v15, %v6315_v6  ;;  %v18825_v34 = vcombine.low %v6322_v0, %v6329_v37  ;;  %v2992_v14 = vcombine.low %v2984_v62, %v2991_v1  ;;  %v23304_v37 = vld [vmem:[#allocation103_spill] sm:$0xff] }
 0x267   :  { %23295 = vst [vmem:[#allocation189_spill] sm:$0xff] %v18813_v26  ;;  %23298 = vst [vmem:[#allocation101_spill] sm:$0xff] %v18821_v45  ;;  %v6406_v59 = vrot.slane %v23296_v51, %v16597_v30  ;;  %v6413_v21 = vrot.slane %v23296_v51, %v16600_v18  ;;  %v6364_v39 = vrot.slane %v23301_v33, %v16591_v3  ;;  %v23469_v26 = vld [vmem:[#allocation52_spill] sm:$0xff] }
 0x268   :  { %23299 = vst [vmem:[#allocation190_spill] sm:$0xff] %v18823_v35  ;;  %23300 = vst [vmem:[#allocation259_spill] sm:$0xff] %v18825_v34  ;;  %v6371_v47 = vrot.slane %v23301_v33, %v16594_v7  ;;  %v6448_v1 = vrot.slane %v23304_v37, %v16591_v3  ;;  %v6455_v62 = vrot.slane %v23304_v37, %v16594_v7  ;;  %3508 = vperm.xlu0 %15464, %v3077_v40   ;;  %v23309_v40 = vld [vmem:[#allocation193_spill] sm:$0xff] }
 0x269   :  { %23302 = vst [vmem:[#allocation102_spill] sm:$0xff] %v18835_v58  ;;  %23303 = vst [vmem:[#allocation260_spill] sm:$0xff] %v18837_v5  ;;  %v6378_v63 = vrot.slane %v23301_v33, %v16597_v30  ;;  %v6385_v23 = vrot.slane %v23301_v33, %v16600_v18  ;;  %v18847_v15 = vcombine.low %v6392_v13, %v6399_v41  ;;  %v23308_v5 = vld [vmem:[#allocation110_spill] sm:$0xff]  ;;  %3493 = vperm.xlu1 %15465, %v2992_v14   ;;  %v23317_v35 = vld [vmem:[#allocation105_spill] sm:$0xff] }
 0x26a   :  { %v3111_v6 = vcombine.low %v3103_v56, %v3110_v17  ;;  %v3018_v0 = vrot.slane %v23306_v55, %v16649_v42  ;;  %v3025_v51 = vrot.slane %v23307_v43, %v16649_v42  ;;  %v6462_v46 = vrot.slane %v23304_v37, %v16597_v30  ;;  %v23310_v56 = vld [vmem:[#allocation104_spill] sm:$0xff]  ;;  %v18869_v43 = vpop.xlane.xlu1 %13067 }
 0x26b   :  { %23305 = vst [vmem:[#allocation103_spill] sm:$0xff] %v18847_v15  ;;  %v6469_v58 = vrot.slane %v23304_v37, %v16600_v18  ;;  %v3137_v8 = vrot.slane %v23308_v5, %v16649_v42  ;;  %v3144_v13 = vrot.slane %v23309_v40, %v16649_v42  ;;  %v6420_v41 = vrot.slane %v23310_v56, %v16591_v3  ;;  %v18871_v37 = vpop.xlane.xlu0 %13013  ;;  %v23319_v14 = vld [vmem:[#allocation188_spill] sm:$0xff] }
 0x26c   :  { %v6427_v17 = vrot.slane %v23310_v56, %v16594_v7  ;;  %v6434_v33 = vrot.slane %v23310_v56, %v16597_v30  ;;  %v6441_v55 = vrot.slane %v23310_v56, %v16600_v18  ;;  %23311 = vst [vmem:[#allocation183_spill] sm:$0xff] %v18869_v43  ;;  %23312 = vst [vmem:[#allocation184_spill] sm:$0xff] %v18871_v37  ;;  %3514 = vperm.xlu0 %15464, %v3111_v6   ;;  %v23318_v56 = vld [vmem:[#allocation187_spill] sm:$0xff] }
 0x26d   :  { %v18873_v5 = vcombine.low %v6406_v59, %v6413_v21  ;;  %v18875_v40 = vcombine.low %v6448_v1, %v6455_v62  ;;  %v18877_v57 = vcombine.low %v6364_v39, %v6371_v47  ;;  %v18879_v34 = vcombine.low %v6378_v63, %v6385_v23  ;;  %v23320_v39 = vld [vmem:[#allocation111_spill] sm:$0xff]  ;;  %v23321_v1 = vld [vmem:[#allocation196_spill] sm:$0xff] }
 0x26e   :  { %v6504_v29 = vrot.slane %v23317_v35, %v16591_v3  ;;  %v3026_v27 = vcombine.low %v3018_v0, %v3025_v51  ;;  %v3052_v15 = vrot.slane %v23318_v56, %v16649_v42  ;;  %v3059_v43 = vrot.slane %v23319_v14, %v16649_v42  ;;  %v18901_v51 = vpop.xlane.xlu1 %13070  ;;  %v23332_v37 = vld [vmem:[#allocation139_spill] sm:$0xff] }
 0x26f   :  { %23313 = vst [vmem:[#allocation110_spill] sm:$0xff] %v18873_v5  ;;  %23314 = vst [vmem:[#allocation193_spill] sm:$0xff] %v18875_v40  ;;  %v6511_v59 = vrot.slane %v23317_v35, %v16594_v7  ;;  %v3145_v21 = vcombine.low %v3137_v8, %v3144_v13  ;;  %v3171_v47 = vrot.slane %v23320_v39, %v16649_v42  ;;  %v18903_v56 = vpop.xlane.xlu0 %13016  ;;  %v23327_v13 = vld [vmem:[#allocation106_spill] sm:$0xff]  ;;  %v23342_v5 = vld [vmem:[#allocation200_spill] sm:$0xff] }
 0x270   :  { %23315 = vst [vmem:[#allocation104_spill] sm:$0xff] %v18877_v57  ;;  %23316 = vst [vmem:[#allocation261_spill] sm:$0xff] %v18879_v34  ;;  %v3178_v62 = vrot.slane %v23321_v1, %v16649_v42  ;;  %v18893_v63 = vcombine.low %v6462_v46, %v6469_v58  ;;  %v6518_v23 = vrot.slane %v23317_v35, %v16597_v30  ;;  %3499 = vperm.xlu1 %15465, %v3026_v27   ;;  %v23328_v27 = vld [vmem:[#allocation23_spill] sm:$0xff] }
 0x271   :  { %v18897_v6 = vcombine.low %v6420_v41, %v6427_v17  ;;  %v18899_v0 = vcombine.low %v6434_v33, %v6441_v55  ;;  %23325 = vst [vmem:[#allocation111_spill] sm:$0xff] %v18901_v51  ;;  %23326 = vst [vmem:[#allocation196_spill] sm:$0xff] %v18903_v56  ;;  %v6525_v8 = vrot.slane %v23317_v35, %v16600_v18  ;;  %3520 = vperm.xlu0 %15464, %v3145_v21   ;;  %v23329_v55 = vld [vmem:[#allocation24_spill] sm:$0xff]  ;;  %v23331_v51 = vld [vmem:[#allocation30_spill] sm:$0xff] }
 0x272   :  { %23322 = vst [vmem:[#allocation105_spill] sm:$0xff] %v18893_v63  ;;  %v6476_v14 = vrot.slane %v23327_v13, %v16591_v3  ;;  %v6483_v58 = vrot.slane %v23327_v13, %v16594_v7  ;;  %v6490_v46 = vrot.slane %v23327_v13, %v16597_v30  ;;  %v6497_v41 = vrot.slane %v23327_v13, %v16600_v18  ;;  %v23333_v21 = vld [vmem:[#allocation113_spill] sm:$0xff]  ;;  %v23341_v63 = vld [vmem:[#allocation118_spill] sm:$0xff] }
 0x273   :  { %23323 = vst [vmem:[#allocation187_spill] sm:$0xff] %v18897_v6  ;;  %23324 = vst [vmem:[#allocation188_spill] sm:$0xff] %v18899_v0  ;;  %v3060_v17 = vcombine.low %v3052_v15, %v3059_v43  ;;  %v3086_v33 = vrot.slane %v23328_v27, %v16649_v42  ;;  %v3093_v35 = vrot.slane %v23329_v55, %v16649_v42 }
 0x274   :  { %v18919_v39 = vcombine.low %v6504_v29, %v6511_v59  ;;  %v3179_v1 = vcombine.low %v3171_v47, %v3178_v62  ;;  %v3205_v56 = vrot.slane %v23331_v51, %v16649_v42  ;;  %v3212_v0 = vrot.slane %v23332_v37, %v16649_v42  ;;  %v18933_v59 = vpop.xlane.xlu1 %13073  ;;  %v18935_v47 = vpop.xlane.xlu0 %13019  ;;  %v23336_v62 = vld [vmem:[#allocation114_spill] sm:$0xff] }
 0x275   :  { %v6560_v6 = vrot.slane %v23333_v21, %v16591_v3  ;;  %v6567_v15 = vrot.slane %v23333_v21, %v16594_v7  ;;  %v6574_v43 = vrot.slane %v23333_v21, %v16597_v30  ;;  %v6581_v29 = vrot.slane %v23333_v21, %v16600_v18  ;;  %23334 = vst [vmem:[#allocation23_spill] sm:$0xff] %v18933_v59 }
 0x276   :  { %23330 = vst [vmem:[#allocation106_spill] sm:$0xff] %v18919_v39  ;;  %3505 = vperm.xlu1 %15465, %v3060_v17   ;;  %23335 = vst [vmem:[#allocation24_spill] sm:$0xff] %v18935_v47  ;;  %v6532_v37 = vrot.slane %v23336_v62, %v16591_v3  ;;  %v6539_v51 = vrot.slane %v23336_v62, %v16594_v7  ;;  %v6546_v13 = vrot.slane %v23336_v62, %v16597_v30  ;;  %v23338_v17 = vld [vmem:[#allocation194_spill] sm:$0xff]  ;;  %v23339_v47 = vld [vmem:[#allocation195_spill] sm:$0xff] }
 0x277   :  { %v6553_v27 = vrot.slane %v23336_v62, %v16600_v18  ;;  %3526 = vperm.xlu0 %15464, %v3179_v1   ;;  %v18945_v55 = vcombine.low %v6518_v23, %v6525_v8  ;;  %v3094_v21 = vcombine.low %v3086_v33, %v3093_v35  ;;  %v3120_v59 = vrot.slane %v23338_v17, %v16649_v42  ;;  %v23345_v8 = vld [vmem:[#allocation116_spill] sm:$0xff] }
 0x278   :  { %v3127_v34 = vrot.slane %v23339_v47, %v16649_v42  ;;  %v18951_v57 = vcombine.low %v6476_v14, %v6483_v58  ;;  %v3213_v39 = vcombine.low %v3205_v56, %v3212_v0  ;;  %v3239_v40 = vrot.slane %v23341_v63, %v16649_v42  ;;  %v18965_v1 = vpop.xlane.xlu1 %13076  ;;  %v18967_v0 = vpop.xlane.xlu0 %13022 }
 0x279   :  { %23337 = vst [vmem:[#allocation30_spill] sm:$0xff] %v18945_v55  ;;  %v3246_v10 = vrot.slane %v23342_v5, %v16649_v42  ;;  %v18957_v62 = vcombine.low %v6560_v6, %v6567_v15  ;;  %v18959_v23 = vcombine.low %v6490_v46, %v6497_v41  ;;  %v6616_v33 = vrot.slane %v23345_v8, %v16591_v3  ;;  %v23351_v46 = vld [vmem:[#allocation197_spill] sm:$0xff]  ;;  %v23352_v15 = vld [vmem:[#allocation115_spill] sm:$0xff] }
 0x27a   :  { %23340 = vst [vmem:[#allocation139_spill] sm:$0xff] %v18951_v57  ;;  %v6623_v35 = vrot.slane %v23345_v8, %v16594_v7  ;;  %23346 = vst [vmem:[#allocation194_spill] sm:$0xff] %v18965_v1  ;;  %3511 = vperm.xlu1 %15465, %v3094_v21   ;;  %v18969_v56 = vcombine.low %v6574_v43, %v6581_v29  ;;  %v6630_v5 = vrot.slane %v23345_v8, %v16597_v30  ;;  %v23353_v43 = vld [vmem:[#allocation117_spill] sm:$0xff]  ;;  %v23362_v1 = vld [vmem:[#allocation199_spill] sm:$0xff] }
 0x27b   :  { %23343 = vst [vmem:[#allocation113_spill] sm:$0xff] %v18957_v62  ;;  %23344 = vst [vmem:[#allocation114_spill] sm:$0xff] %v18959_v23  ;;  %v18973_v63 = vcombine.low %v6532_v37, %v6539_v51  ;;  %v18975_v6 = vcombine.low %v6546_v13, %v6553_v27  ;;  %3532 = vperm.xlu0 %15464, %v3213_v39   ;;  %v6637_v14 = vrot.slane %v23345_v8, %v16600_v18  ;;  %v23354_v37 = vld [vmem:[#allocation32_spill] sm:$0xff]  ;;  %v23355_v13 = vld [vmem:[#allocation33_spill] sm:$0xff] }
 0x27c   :  { %23347 = vst [vmem:[#allocation195_spill] sm:$0xff] %v18967_v0  ;;  %23348 = vst [vmem:[#allocation118_spill] sm:$0xff] %v18969_v56  ;;  %v3128_v58 = vcombine.low %v3120_v59, %v3127_v34  ;;  %v3154_v41 = vrot.slane %v23351_v46, %v16649_v42  ;;  %v3161_v47 = vrot.slane %v23352_v15, %v16649_v42  ;;  %v18997_v8 = vpop.xlane.xlu1 %13079 }
 0x27d   :  { %23349 = vst [vmem:[#allocation200_spill] sm:$0xff] %v18973_v63  ;;  %23350 = vst [vmem:[#allocation116_spill] sm:$0xff] %v18975_v6  ;;  %v6588_v29 = vrot.slane %v23353_v43, %v16591_v3  ;;  %v3247_v21 = vcombine.low %v3239_v40, %v3246_v10  ;;  %v3273_v51 = vrot.slane %v23354_v37, %v16649_v42  ;;  %v18999_v10 = vpop.xlane.xlu0 %13025  ;;  %v23359_v40 = vld [vmem:[#allocation122_spill] sm:$0xff]  ;;  %v23363_v63 = vld [vmem:[#allocation203_spill] sm:$0xff] }
 0x27e   :  { %v3280_v39 = vrot.slane %v23355_v13, %v16649_v42  ;;  %v18989_v27 = vcombine.low %v6616_v33, %v6623_v35  ;;  %v6595_v34 = vrot.slane %v23353_v43, %v16594_v7  ;;  %v6602_v59 = vrot.slane %v23353_v43, %v16597_v30  ;;  %23357 = vst [vmem:[#allocation115_spill] sm:$0xff] %v18997_v8 }
 0x27f   :  { %v6609_v17 = vrot.slane %v23353_v43, %v16600_v18  ;;  %3517 = vperm.xlu1 %15465, %v3128_v58   ;;  %23358 = vst [vmem:[#allocation117_spill] sm:$0xff] %v18999_v10  ;;  %v7612_v46 = vrot.slane %v23359_v40, %v16591_v3  ;;  %v7619_v33 = vrot.slane %v23359_v40, %v16594_v7  ;;  %v23360_v43 = vld [vmem:[#allocation123_spill] sm:$0xff]  ;;  %v23361_v58 = vld [vmem:[#allocation198_spill] sm:$0xff] }
 0x280   :  { %23356 = vst [vmem:[#allocation197_spill] sm:$0xff] %v18989_v27  ;;  %v7626_v35 = vrot.slane %v23359_v40, %v16597_v30  ;;  %v7633_v15 = vrot.slane %v23359_v40, %v16600_v18  ;;  %3538 = vperm.xlu0 %15464, %v3247_v21   ;;  %v7640_v37 = vrot.slane %v23360_v43, %v16591_v3  ;;  %v23364_v40 = vld [vmem:[#allocation134_spill] sm:$0xff] }
 0x281   :  { %v3162_v13 = vcombine.low %v3154_v41, %v3161_v47  ;;  %v3188_v8 = vrot.slane %v23361_v58, %v16649_v42  ;;  %v3195_v10 = vrot.slane %v23362_v1, %v16649_v42  ;;  %v7647_v0 = vrot.slane %v23360_v43, %v16594_v7  ;;  %v19029_v47 = vpop.xlane.xlu1 %13082 }
 0x282   :  { %v3281_v6 = vcombine.low %v3273_v51, %v3280_v39  ;;  %v3307_v23 = vrot.slane %v23363_v63, %v16649_v42  ;;  %v3314_v21 = vrot.slane %v23364_v40, %v16649_v42  ;;  %v19021_v57 = vcombine.low %v6630_v5, %v6637_v14  ;;  %23367 = vst [vmem:[#allocation122_spill] sm:$0xff] %v19029_v47  ;;  %v19031_v51 = vpop.xlane.xlu0 %13028  ;;  %v23371_v5 = vld [vmem:[#allocation126_spill] sm:$0xff] }
 0x283   :  { %v19023_v27 = vcombine.low %v6588_v29, %v6595_v34  ;;  %v7654_v41 = vrot.slane %v23360_v43, %v16597_v30  ;;  %v7661_v1 = vrot.slane %v23360_v43, %v16600_v18  ;;  %3523 = vperm.xlu1 %15465, %v3162_v13   ;;  %23368 = vst [vmem:[#allocation123_spill] sm:$0xff] %v19031_v51  ;;  %v23373_v43 = vld [vmem:[#allocation201_spill] sm:$0xff]  ;;  %v23374_v13 = vld [vmem:[#allocation124_spill] sm:$0xff]  ;;  %v23377_v51 = vld [vmem:[#allocation38_spill] sm:$0xff] }
 0x284   :  { %23365 = vst [vmem:[#allocation32_spill] sm:$0xff] %v19021_v57  ;;  %v19033_v39 = vcombine.low %v7612_v46, %v7619_v33  ;;  %v19035_v63 = vcombine.low %v6602_v59, %v6609_v17  ;;  %v7696_v14 = vrot.slane %v23371_v5, %v16591_v3  ;;  %v7703_v29 = vrot.slane %v23371_v5, %v16594_v7  ;;  %v23376_v17 = vld [vmem:[#allocation138_spill] sm:$0xff] }
 0x285   :  { %23366 = vst [vmem:[#allocation33_spill] sm:$0xff] %v19023_v27  ;;  %3544 = vperm.xlu0 %15464, %v3281_v6   ;;  %v19041_v34 = vcombine.low %v7626_v35, %v7633_v15  ;;  %v3196_v58 = vcombine.low %v3188_v8, %v3195_v10  ;;  %v3222_v40 = vrot.slane %v23373_v43, %v16649_v42  ;;  %v23379_v35 = vld [vmem:[#allocation127_spill] sm:$0xff]  ;;  %v23420_v57 = vld [vmem:[#allocation46_spill] sm:$0xff] }
 0x286   :  { %23369 = vst [vmem:[#allocation198_spill] sm:$0xff] %v19033_v39  ;;  %23370 = vst [vmem:[#allocation199_spill] sm:$0xff] %v19035_v63  ;;  %v3229_v47 = vrot.slane %v23374_v13, %v16649_v42  ;;  %v19047_v46 = vcombine.low %v7640_v37, %v7647_v0  ;;  %v3315_v59 = vcombine.low %v3307_v23, %v3314_v21  ;;  %v19061_v0 = vpop.xlane.xlu1 %13085  ;;  %v19063_v23 = vpop.xlane.xlu0 %13031  ;;  %v23394_v39 = vld [vmem:[#allocation35_spill] sm:$0xff] }
 0x287   :  { %23372 = vst [vmem:[#allocation203_spill] sm:$0xff] %v19041_v34  ;;  %v3341_v33 = vrot.slane %v23376_v17, %v16649_v42  ;;  %v3348_v63 = vrot.slane %v23377_v51, %v16649_v42  ;;  %v7710_v6 = vrot.slane %v23371_v5, %v16597_v30  ;;  %v7717_v8 = vrot.slane %v23371_v5, %v16600_v18 }
 0x288   :  { %23375 = vst [vmem:[#allocation134_spill] sm:$0xff] %v19047_v46  ;;  %v19057_v10 = vcombine.low %v7654_v41, %v7661_v1  ;;  %v7668_v15 = vrot.slane %v23379_v35, %v16591_v3  ;;  %23380 = vst [vmem:[#allocation201_spill] sm:$0xff] %v19061_v0  ;;  %3529 = vperm.xlu1 %15465, %v3196_v58   ;;  %v19065_v37 = vcombine.low %v7696_v14, %v7703_v29  ;;  %v23383_v1 = vld [vmem:[#allocation136_spill] sm:$0xff]  ;;  %v23384_v58 = vld [vmem:[#allocation34_spill] sm:$0xff] }
 0x289   :  { %23381 = vst [vmem:[#allocation124_spill] sm:$0xff] %v19063_v23  ;;  %v7675_v21 = vrot.slane %v23379_v35, %v16594_v7  ;;  %v7682_v51 = vrot.slane %v23379_v35, %v16597_v30  ;;  %v7689_v41 = vrot.slane %v23379_v35, %v16600_v18  ;;  %3550 = vperm.xlu0 %15464, %v3315_v59   ;;  %v23385_v14 = vld [vmem:[#allocation133_spill] sm:$0xff]  ;;  %v23386_v23 = vld [vmem:[#allocation208_spill] sm:$0xff] }
 0x28a   :  { %23378 = vst [vmem:[#allocation126_spill] sm:$0xff] %v19057_v10  ;;  %23382 = vst [vmem:[#allocation138_spill] sm:$0xff] %v19065_v37  ;;  %v7752_v5 = vrot.slane %v23383_v1, %v16591_v3  ;;  %v3230_v43 = vcombine.low %v3222_v40, %v3229_v47  ;;  %v3256_v13 = vrot.slane %v23384_v58, %v16649_v42  ;;  %v23387_v35 = vld [vmem:[#allocation209_spill] sm:$0xff]  ;;  %v19093_v27 = vpop.xlane.xlu1 %13088 }
 0x28b   :  { %v3263_v29 = vrot.slane %v23385_v14, %v16649_v42  ;;  %v7759_v17 = vrot.slane %v23383_v1, %v16594_v7  ;;  %v3349_v0 = vcombine.low %v3341_v33, %v3348_v63  ;;  %v3375_v10 = vrot.slane %v23386_v23, %v16649_v42  ;;  %v23388_v40 = vld [vmem:[#allocation137_spill] sm:$0xff]  ;;  %23389 = vst [vmem:[#allocation38_spill] sm:$0xff] %v19093_v27  ;;  %v19095_v63 = vpop.xlane.xlu0 %13034 }
 0x28c   :  { %v3382_v59 = vrot.slane %v23387_v35, %v16649_v42  ;;  %v7766_v46 = vrot.slane %v23383_v1, %v16597_v30  ;;  %v7773_v47 = vrot.slane %v23383_v1, %v16600_v18  ;;  %v7724_v58 = vrot.slane %v23388_v40, %v16591_v3  ;;  %3535 = vperm.xlu1 %15465, %v3230_v43   ;;  %v23395_v43 = vld [vmem:[#allocation205_spill] sm:$0xff] }
 0x28d   :  { %v7731_v14 = vrot.slane %v23388_v40, %v16594_v7  ;;  %23390 = vst [vmem:[#allocation127_spill] sm:$0xff] %v19095_v63  ;;  %v19097_v33 = vcombine.low %v7710_v6, %v7717_v8  ;;  %v19099_v23 = vcombine.low %v7668_v15, %v7675_v21  ;;  %v7738_v35 = vrot.slane %v23388_v40, %v16597_v30  ;;  %v23397_v15 = vld [vmem:[#allocation150_spill] sm:$0xff] }
 0x28e   :  { %v7745_v1 = vrot.slane %v23388_v40, %v16600_v18  ;;  %3556 = vperm.xlu0 %15464, %v3349_v0   ;;  %v19105_v37 = vcombine.low %v7682_v51, %v7689_v41  ;;  %v3264_v34 = vcombine.low %v3256_v13, %v3263_v29  ;;  %v3290_v27 = vrot.slane %v23394_v39, %v16649_v42  ;;  %v23400_v0 = vld [vmem:[#allocation4_spill] sm:$0xff]  ;;  %v19125_v13 = vpop.xlane.xlu1 %13091 }
 0x28f   :  { %23391 = vst [vmem:[#allocation136_spill] sm:$0xff] %v19097_v33  ;;  %23392 = vst [vmem:[#allocation34_spill] sm:$0xff] %v19099_v23  ;;  %v3297_v63 = vrot.slane %v23395_v43, %v16649_v42  ;;  %v19111_v6 = vcombine.low %v7752_v5, %v7759_v17  ;;  %v3383_v8 = vcombine.low %v3375_v10, %v3382_v59  ;;  %v23398_v23 = vld [vmem:[#allocation42_spill] sm:$0xff]  ;;  %v19127_v10 = vpop.xlane.xlu0 %13037  ;;  %v23405_v17 = vld [vmem:[#allocation140_spill] sm:$0xff] }
 0x290   :  { %23393 = vst [vmem:[#allocation133_spill] sm:$0xff] %v19105_v37  ;;  %v3409_v21 = vrot.slane %v23397_v15, %v16649_v42  ;;  %v3416_v33 = vrot.slane %v23398_v23, %v16649_v42  ;;  %v19117_v40 = vcombine.low %v7766_v46, %v7773_v47  ;;  %v7808_v51 = vrot.slane %v23400_v0, %v16591_v3  ;;  %v23407_v23 = vld [vmem:[#allocation206_spill] sm:$0xff] }
 0x291   :  { %23396 = vst [vmem:[#allocation208_spill] sm:$0xff] %v19111_v6  ;;  %v7815_v39 = vrot.slane %v23400_v0, %v16594_v7  ;;  %v19123_v41 = vcombine.low %v7724_v58, %v7731_v14  ;;  %23402 = vst [vmem:[#allocation35_spill] sm:$0xff] %v19125_v13  ;;  %3541 = vperm.xlu1 %15465, %v3264_v34   ;;  %v7822_v5 = vrot.slane %v23400_v0, %v16597_v30  ;;  %v23406_v34 = vld [vmem:[#allocation121_spill] sm:$0xff] }
 0x292   :  { %23399 = vst [vmem:[#allocation209_spill] sm:$0xff] %v19117_v40  ;;  %23403 = vst [vmem:[#allocation205_spill] sm:$0xff] %v19127_v10  ;;  %v7829_v46 = vrot.slane %v23400_v0, %v16600_v18  ;;  %v19133_v29 = vcombine.low %v7738_v35, %v7745_v1  ;;  %v7780_v59 = vrot.slane %v23405_v17, %v16591_v3  ;;  %3562 = vperm.xlu0 %15464, %v3383_v8   ;;  %v23408_v35 = vld [vmem:[#allocation153_spill] sm:$0xff] }
 0x293   :  { %23401 = vst [vmem:[#allocation137_spill] sm:$0xff] %v19123_v41  ;;  %v7787_v47 = vrot.slane %v23405_v17, %v16594_v7  ;;  %v3298_v58 = vcombine.low %v3290_v27, %v3297_v63  ;;  %v3324_v14 = vrot.slane %v23406_v34, %v16649_v42  ;;  %v3331_v43 = vrot.slane %v23407_v23, %v16649_v42  ;;  %v23409_v13 = vld [vmem:[#allocation129_spill] sm:$0xff]  ;;  %v23411_v27 = vld [vmem:[#allocation148_spill] sm:$0xff] }
 0x294   :  { %23404 = vst [vmem:[#allocation150_spill] sm:$0xff] %v19133_v29  ;;  %v7794_v15 = vrot.slane %v23405_v17, %v16597_v30  ;;  %v3417_v0 = vcombine.low %v3409_v21, %v3416_v33  ;;  %v3443_v1 = vrot.slane %v23408_v35, %v16649_v42  ;;  %v3450_v8 = vrot.slane %v23409_v13, %v16649_v42  ;;  %v19157_v29 = vpop.xlane.xlu1 %13094  ;;  %v19159_v33 = vpop.xlane.xlu0 %13040 }
 0x295   :  { %v19149_v10 = vcombine.low %v7808_v51, %v7815_v39  ;;  %v7864_v63 = vrot.slane %v23411_v27, %v16591_v3  ;;  %v7871_v34 = vrot.slane %v23411_v27, %v16594_v7  ;;  %v7801_v23 = vrot.slane %v23405_v17, %v16600_v18  ;;  %23412 = vst [vmem:[#allocation4_spill] sm:$0xff] %v19157_v29  ;;  %v23414_v39 = vld [vmem:[#allocation149_spill] sm:$0xff] }
 0x296   :  { %3547 = vperm.xlu1 %15465, %v3298_v58   ;;  %23413 = vst [vmem:[#allocation140_spill] sm:$0xff] %v19159_v33  ;;  %v7878_v21 = vrot.slane %v23411_v27, %v16597_v30  ;;  %v7885_v51 = vrot.slane %v23411_v27, %v16600_v18  ;;  %v7836_v13 = vrot.slane %v23414_v39, %v16591_v3  ;;  %v23416_v58 = vld [vmem:[#allocation210_spill] sm:$0xff]  ;;  %v23417_v33 = vld [vmem:[#allocation41_spill] sm:$0xff] }
 0x297   :  { %23410 = vst [vmem:[#allocation42_spill] sm:$0xff] %v19149_v10  ;;  %v7843_v35 = vrot.slane %v23414_v39, %v16594_v7  ;;  %3568 = vperm.xlu0 %15464, %v3417_v0   ;;  %v19169_v41 = vcombine.low %v7822_v5, %v7829_v46  ;;  %v3332_v17 = vcombine.low %v3324_v14, %v3331_v43  ;;  %v23419_v27 = vld [vmem:[#allocation45_spill] sm:$0xff]  ;;  %v23426_v0 = vld [vmem:[#allocation6_spill] sm:$0xff] }
 0x298   :  { %v3358_v29 = vrot.slane %v23416_v58, %v16649_v42  ;;  %v3365_v37 = vrot.slane %v23417_v33, %v16649_v42  ;;  %v19175_v10 = vcombine.low %v7780_v59, %v7787_v47  ;;  %v3451_v40 = vcombine.low %v3443_v1, %v3450_v8  ;;  %v19189_v43 = vpop.xlane.xlu1 %13097  ;;  %v19191_v59 = vpop.xlane.xlu0 %13043  ;;  %v23429_v33 = vld [vmem:[#allocation213_spill] sm:$0xff] }
 0x299   :  { %23415 = vst [vmem:[#allocation121_spill] sm:$0xff] %v19169_v41  ;;  %v3477_v6 = vrot.slane %v23419_v27, %v16649_v42  ;;  %v3484_v56 = vrot.slane %v23420_v57, %v16649_v42  ;;  %v19181_v62 = vcombine.low %v7864_v63, %v7871_v34  ;;  %v19183_v5 = vcombine.low %v7794_v15, %v7801_v23  ;;  %v23428_v34 = vld [vmem:[#allocation211_spill] sm:$0xff] }
 0x29a   :  { %23418 = vst [vmem:[#allocation206_spill] sm:$0xff] %v19175_v10  ;;  %v7850_v46 = vrot.slane %v23414_v39, %v16597_v30  ;;  %v7857_v14 = vrot.slane %v23414_v39, %v16600_v18  ;;  %23423 = vst [vmem:[#allocation148_spill] sm:$0xff] %v19189_v43  ;;  %3553 = vperm.xlu1 %15465, %v3332_v17   ;;  %v19193_v47 = vcombine.low %v7878_v21, %v7885_v51  ;;  %v23430_v17 = vld [vmem:[#allocation146_spill] sm:$0xff] }
 0x29b   :  { %23421 = vst [vmem:[#allocation153_spill] sm:$0xff] %v19181_v62  ;;  %23422 = vst [vmem:[#allocation129_spill] sm:$0xff] %v19183_v5  ;;  %v7920_v57 = vrot.slane %v23426_v0, %v16591_v3  ;;  %v7927_v15 = vrot.slane %v23426_v0, %v16594_v7  ;;  %v19199_v1 = vcombine.low %v7836_v13, %v7843_v35  ;;  %3574 = vperm.xlu0 %15464, %v3451_v40   ;;  %v23431_v13 = vld [vmem:[#allocation47_spill] sm:$0xff] }
 0x29c   :  { %23424 = vst [vmem:[#allocation149_spill] sm:$0xff] %v19191_v59  ;;  %23425 = vst [vmem:[#allocation210_spill] sm:$0xff] %v19193_v47  ;;  %v7934_v8 = vrot.slane %v23426_v0, %v16597_v30  ;;  %v3366_v63 = vcombine.low %v3358_v29, %v3365_v37  ;;  %v3392_v23 = vrot.slane %v23428_v34, %v16649_v42  ;;  %v23432_v35 = vld [vmem:[#allocation7_spill] sm:$0xff] }
 0x29d   :  { %23427 = vst [vmem:[#allocation41_spill] sm:$0xff] %v19199_v1  ;;  %v3399_v21 = vrot.slane %v23429_v33, %v16649_v42  ;;  %v7941_v51 = vrot.slane %v23426_v0, %v16600_v18  ;;  %v3485_v39 = vcombine.low %v3477_v6, %v3484_v56  ;;  %v4814_v58 = vrot.slane %v23430_v17, %v16649_v42  ;;  %v19221_v0 = vpop.xlane.xlu1 %13100  ;;  %v19223_v56 = vpop.xlane.xlu0 %13046  ;;  %v23435_v6 = vld [vmem:[#allocation157_spill] sm:$0xff]  ;;  %v23438_v1 = vld [vmem:[#allocation215_spill] sm:$0xff] }
 0x29e   :  { %v4821_v40 = vrot.slane %v23431_v13, %v16649_v42  ;;  %v7892_v27 = vrot.slane %v23432_v35, %v16591_v3  ;;  %v7899_v37 = vrot.slane %v23432_v35, %v16594_v7  ;;  %v7906_v29 = vrot.slane %v23432_v35, %v16597_v30  ;;  %23433 = vst [vmem:[#allocation45_spill] sm:$0xff] %v19221_v0  ;;  %v23439_v62 = vld [vmem:[#allocation135_spill] sm:$0xff] }
 0x29f   :  { %v7913_v34 = vrot.slane %v23432_v35, %v16600_v18  ;;  %3559 = vperm.xlu1 %15465, %v3366_v63   ;;  %23434 = vst [vmem:[#allocation46_spill] sm:$0xff] %v19223_v56  ;;  %v7976_v33 = vrot.slane %v23435_v6, %v16591_v3  ;;  %v7983_v17 = vrot.slane %v23435_v6, %v16594_v7  ;;  %v23436_v35 = vld [vmem:[#allocation158_spill] sm:$0xff] }
 0x2a0   :  { %v7990_v13 = vrot.slane %v23435_v6, %v16597_v30  ;;  %v7997_v43 = vrot.slane %v23435_v6, %v16600_v18  ;;  %3580 = vperm.xlu0 %15464, %v3485_v39   ;;  %v7948_v59 = vrot.slane %v23436_v35, %v16591_v3  ;;  %v3400_v0 = vcombine.low %v3392_v23, %v3399_v21  ;;  %v23437_v63 = vld [vmem:[#allocation214_spill] sm:$0xff]  ;;  %v23440_v6 = vld [vmem:[#allocation141_spill] sm:$0xff] }
 0x2a1   :  { %v3426_v56 = vrot.slane %v23437_v63, %v16649_v42  ;;  %v3433_v5 = vrot.slane %v23438_v1, %v16649_v42  ;;  %v7955_v10 = vrot.slane %v23436_v35, %v16594_v7  ;;  %v4822_v47 = vcombine.low %v4814_v58, %v4821_v40  ;;  %v19253_v63 = vpop.permute.xlu1 %1625  ;;  %v19255_v1 = vpop.xlane.xlu0 %13049 }
 0x2a2   :  { %v4865_v41 = vrot.slane %v23439_v62, %v16649_v42  ;;  %v4872_v39 = vrot.slane %v23440_v6, %v16649_v42  ;;  %v19245_v55 = vcombine.low %v7920_v57, %v7927_v15  ;;  %v19247_v4 = vcombine.low %v7934_v8, %v7941_v51  ;;  %23445 = vst [vmem:[#allocation47_spill] sm:$0xff] %v19255_v1  ;;  %v23449_v15 = vld [vmem:[#allocation11_spill] sm:$0xff]  ;;  %v23459_v1 = vld [vmem:[#allocation217_spill] sm:$0xff] }
 0x2a3   :  { %v19249_v23 = vcombine.low %v7850_v46, %v7857_v14  ;;  %v19251_v21 = vcombine.low %v7892_v27, %v7899_v37  ;;  %3565 = vperm.xlu1 %15465, %v3400_v0   ;;  %v19257_v58 = vcombine.low %v7976_v33, %v7983_v17  ;;  %v19259_v40 = vcombine.low %v7906_v29, %v7913_v34  ;;  %v23450_v51 = vld [vmem:[#allocation143_spill] sm:$0xff]  ;;  %v23452_v34 = vld [vmem:[#allocation177_spill] sm:$0xff] }
 0x2a4   :  { %23441 = vst [vmem:[#allocation6_spill] sm:$0xff] %v19245_v55  ;;  %23442 = vst [vmem:[#allocation211_spill] sm:$0xff] %v19247_v4  ;;  %v7962_v62 = vrot.slane %v23436_v35, %v16597_v30  ;;  %v7969_v57 = vrot.slane %v23436_v35, %v16600_v18  ;;  %5351 = vperm.xlu0 %15464, %v4822_v47   ;;  %v19265_v46 = vcombine.low %v7990_v13, %v7997_v43  ;;  %v23453_v33 = vld [vmem:[#allocation51_spill] sm:$0xff]  ;;  %v23454_v47 = vld [vmem:[#allocation10_spill] sm:$0xff] }
 0x2a5   :  { %23443 = vst [vmem:[#allocation213_spill] sm:$0xff] %v19249_v23  ;;  %23444 = vst [vmem:[#allocation146_spill] sm:$0xff] %v19251_v21  ;;  %v3434_v14 = vcombine.low %v3426_v56, %v3433_v5  ;;  %v3460_v8 = vrot.slane %v23449_v15, %v16649_v42  ;;  %v3467_v27 = vrot.slane %v23450_v51, %v16649_v42  ;;  %v23456_v15 = vld [vmem:[#allocation167_spill] sm:$0xff]  ;;  %v23460_v23 = vld [vmem:[#allocation53_spill] sm:$0xff] }
 0x2a6   :  { %23446 = vst [vmem:[#allocation7_spill] sm:$0xff] %v19257_v58  ;;  %23447 = vst [vmem:[#allocation157_spill] sm:$0xff] %v19259_v40  ;;  %v19271_v37 = vcombine.low %v7948_v59, %v7955_v10  ;;  %v4873_v29 = vcombine.low %v4865_v41, %v4872_v39  ;;  %v4899_v0 = vrot.slane %v23452_v34, %v16649_v42  ;;  %v19285_v59 = vpop.permute.xlu1 %1628  ;;  %v23455_v41 = vld [vmem:[#allocation163_spill] sm:$0xff]  ;;  %v23468_v55 = vld [vmem:[#allocation50_spill] sm:$0xff] }
 0x2a7   :  { %23448 = vst [vmem:[#allocation158_spill] sm:$0xff] %v19265_v46  ;;  %v4906_v17 = vrot.slane %v23453_v33, %v16649_v42  ;;  %v8032_v43 = vrot.slane %v23454_v47, %v16591_v3  ;;  %v8039_v5 = vrot.slane %v23454_v47, %v16594_v7  ;;  %v8046_v56 = vrot.slane %v23454_v47, %v16597_v30  ;;  %v19297_v33 = vpop.xlane.xlu0 %13052 }
 0x2a8   :  { %23451 = vst [vmem:[#allocation214_spill] sm:$0xff] %v19271_v37  ;;  %v8053_v10 = vrot.slane %v23454_v47, %v16600_v18  ;;  %3571 = vperm.xlu1 %15465, %v3434_v14   ;;  %v8004_v13 = vrot.slane %v23455_v41, %v16591_v3  ;;  %v8011_v35 = vrot.slane %v23455_v41, %v16594_v7  ;;  %23457 = vst [vmem:[#allocation215_spill] sm:$0xff] %v19297_v33  ;;  %v23458_v14 = vld [vmem:[#allocation216_spill] sm:$0xff] }
 0x2a9   :  { %v8018_v6 = vrot.slane %v23455_v41, %v16597_v30  ;;  %v8025_v39 = vrot.slane %v23455_v41, %v16600_v18  ;;  %5360 = vperm.xlu0 %15464, %v4873_v29   ;;  %v8088_v51 = vrot.slane %v23456_v15, %v16591_v3  ;;  %v3468_v34 = vcombine.low %v3460_v8, %v3467_v27  ;;  %v23461_v29 = vld [vmem:[#allocation221_spill] sm:$0xff] }
 0x2aa   :  { %v4831_v47 = vrot.slane %v23458_v14, %v16649_v42  ;;  %v4838_v37 = vrot.slane %v23459_v1, %v16649_v42  ;;  %v8095_v40 = vrot.slane %v23456_v15, %v16594_v7  ;;  %v4907_v21 = vcombine.low %v4899_v0, %v4906_v17  ;;  %v23462_v14 = vld [vmem:[#allocation168_spill] sm:$0xff]  ;;  %v19317_v58 = vpop.permute.xlu1 %1631 }
 0x2ab   :  { %v4933_v41 = vrot.slane %v23460_v23, %v16649_v42  ;;  %v4940_v46 = vrot.slane %v23461_v29, %v16649_v42  ;;  %v8102_v8 = vrot.slane %v23456_v15, %v16597_v30  ;;  %v8109_v27 = vrot.slane %v23456_v15, %v16600_v18 }
 0x2ac   :  { %v8060_v33 = vrot.slane %v23462_v14, %v16591_v3  ;;  %v8067_v1 = vrot.slane %v23462_v14, %v16594_v7  ;;  %3577 = vperm.xlu1 %15465, %v3468_v34   ;;  %v19319_v0 = vcombine.low %v8032_v43, %v8039_v5  ;;  %v19321_v23 = vcombine.low %v8046_v56, %v8053_v10  ;;  %v23470_v56 = vld [vmem:[#allocation224_spill] sm:$0xff]  ;;  %v23476_v34 = vld [vmem:[#allocation174_spill] sm:$0xff] }
 0x2ad   :  { %v19323_v17 = vcombine.low %v7962_v62, %v7969_v57  ;;  %v19325_v29 = vcombine.low %v8004_v13, %v8011_v35  ;;  %5366 = vperm.xlu0 %15464, %v4907_v21   ;;  %v19327_v4 = vcombine.low %v8018_v6, %v8025_v39  ;;  %v4839_v15 = vcombine.low %v4831_v47, %v4838_v37  ;;  %v23471_v57 = vld [vmem:[#allocation156_spill] sm:$0xff]  ;;  %v19349_v35 = vpop.permute.xlu0 %1622 }
 0x2ae   :  { %23463 = vst [vmem:[#allocation135_spill] sm:$0xff] %v19319_v0  ;;  %23464 = vst [vmem:[#allocation141_spill] sm:$0xff] %v19321_v23  ;;  %v4848_v45 = vrot.slane %v23468_v55, %v16649_v42  ;;  %v4855_v60 = vrot.slane %v23469_v26, %v16649_v42  ;;  %v8074_v43 = vrot.slane %v23462_v14, %v16597_v30  ;;  %v19347_v26 = vpop.permute.xlu1 %1634  ;;  %v23485_v23 = vld [vmem:[#allocation223_spill] sm:$0xff] }
 0x2af   :  { %23465 = vst [vmem:[#allocation11_spill] sm:$0xff] %v19323_v17  ;;  %23466 = vst [vmem:[#allocation143_spill] sm:$0xff] %v19325_v29  ;;  %v4941_v5 = vcombine.low %v4933_v41, %v4940_v46  ;;  %v4967_v62 = vrot.slane %v23470_v56, %v16649_v42  ;;  %v4974_v10 = vrot.slane %v23471_v57, %v16649_v42  ;;  %v23475_v46 = vld [vmem:[#allocation14_spill] sm:$0xff]  ;;  %v23477_v41 = vld [vmem:[#allocation152_spill] sm:$0xff] }
 0x2b0   :  { %23467 = vst [vmem:[#allocation177_spill] sm:$0xff] %v19327_v4  ;;  %v19339_v21 = vcombine.low %v8088_v51, %v8095_v40  ;;  %v19341_v13 = vcombine.low %v8102_v8, %v8109_v27  ;;  %v8081_v55 = vrot.slane %v23462_v14, %v16600_v18  ;;  %v19345_v37 = vcombine.low %v8060_v33, %v8067_v1  ;;  %v23478_v27 = vld [vmem:[#allocation220_spill] sm:$0xff] }
 0x2b1   :  { %5354 = vperm.xlu1 %15465, %v4839_v15   ;;  %v8144_v6 = vrot.slane %v23475_v46, %v16591_v3  ;;  %v8151_v39 = vrot.slane %v23475_v46, %v16594_v7  ;;  %v8158_v40 = vrot.slane %v23475_v46, %v16597_v30  ;;  %v8165_v51 = vrot.slane %v23475_v46, %v16600_v18  ;;  %v23479_v56 = vld [vmem:[#allocation56_spill] sm:$0xff]  ;;  %v23480_v46 = vld [vmem:[#allocation107_spill] sm:$0xff] }
 0x2b2   :  { %23472 = vst [vmem:[#allocation51_spill] sm:$0xff] %v19339_v21  ;;  %23473 = vst [vmem:[#allocation10_spill] sm:$0xff] %v19341_v13  ;;  %5372 = vperm.xlu0 %15464, %v4941_v5   ;;  %v8116_v33 = vrot.slane %v23476_v34, %v16591_v3  ;;  %v4856_v47 = vcombine.low %v4848_v45, %v4855_v60  ;;  %v4882_v8 = vrot.slane %v23477_v41, %v16649_v42 }
 0x2b3   :  { %23474 = vst [vmem:[#allocation163_spill] sm:$0xff] %v19345_v37  ;;  %v4889_v14 = vrot.slane %v23478_v27, %v16649_v42  ;;  %v8123_v1 = vrot.slane %v23476_v34, %v16594_v7  ;;  %v4975_v15 = vcombine.low %v4967_v62, %v4974_v10  ;;  %v5001_v57 = vrot.slane %v23479_v56, %v16649_v42  ;;  %v23481_v37 = vld [vmem:[#allocation15_spill] sm:$0xff]  ;;  %v19379_v27 = vpop.permute.xlu1 %1637  ;;  %v19381_v62 = vpop.permute.xlu0 %1649 }
 0x2b4   :  { %v5008_v5 = vrot.slane %v23480_v46, %v16649_v42  ;;  %v8200_v4 = vrot.slane %v23481_v37, %v16591_v3  ;;  %v8207_v60 = vrot.slane %v23481_v37, %v16594_v7  ;;  %v8130_v45 = vrot.slane %v23476_v34, %v16597_v30  ;;  %v23482_v46 = vld [vmem:[#allocation16_spill] sm:$0xff] }
 0x2b5   :  { %v8137_v41 = vrot.slane %v23476_v34, %v16600_v18  ;;  %5357 = vperm.xlu1 %15465, %v4856_v47   ;;  %v8214_v10 = vrot.slane %v23481_v37, %v16597_v30  ;;  %v8221_v56 = vrot.slane %v23481_v37, %v16600_v18  ;;  %v8172_v29 = vrot.slane %v23482_v46, %v16591_v3  ;;  %v23484_v47 = vld [vmem:[#allocation222_spill] sm:$0xff]  ;;  %v23487_v37 = vld [vmem:[#allocation59_spill] sm:$0xff] }
 0x2b6   :  { %v8179_v17 = vrot.slane %v23482_v46, %v16594_v7  ;;  %5378 = vperm.xlu0 %15464, %v4975_v15   ;;  %v19391_v13 = vcombine.low %v8074_v43, %v8081_v55  ;;  %v4890_v34 = vcombine.low %v4882_v8, %v4889_v14  ;;  %v4916_v21 = vrot.slane %v23484_v47, %v16649_v42  ;;  %v23496_v15 = vld [vmem:[#allocation159_spill] sm:$0xff] }
 0x2b7   :  { %v4923_v0 = vrot.slane %v23485_v23, %v16649_v42  ;;  %v19397_v38 = vcombine.low %v8144_v6, %v8151_v39  ;;  %v5009_v53 = vcombine.low %v5001_v57, %v5008_v5  ;;  %v5035_v24 = vrot.slane %v23487_v37, %v16649_v42  ;;  %v19411_v14 = vpop.permute.xlu1 %1640  ;;  %v19413_v23 = vpop.permute.xlu0 %1655  ;;  %v23497_v5 = vld [vmem:[#allocation57_spill] sm:$0xff] }
 0x2b8   :  { %23483 = vst [vmem:[#allocation167_spill] sm:$0xff] %v19391_v13  ;;  %v5042_v36 = vrot.slane %v23488_v32, %v16649_v42  ;;  %v19403_v44 = vcombine.low %v8158_v40, %v8165_v51  ;;  %v19405_v43 = vcombine.low %v8116_v33, %v8123_v1  ;;  %v19407_v55 = vcombine.low %v8130_v45, %v8137_v41  ;;  %v23495_v51 = vld [vmem:[#allocation179_spill] sm:$0xff] }
 0x2b9   :  { %23486 = vst [vmem:[#allocation216_spill] sm:$0xff] %v19397_v38  ;;  %v8186_v8 = vrot.slane %v23482_v46, %v16597_v30  ;;  %5363 = vperm.xlu1 %15465, %v4890_v34   ;;  %v19415_v6 = vcombine.low %v8200_v4, %v8207_v60  ;;  %v19417_v39 = vcombine.low %v8214_v10, %v8221_v56  ;;  %v23498_v41 = vld [vmem:[#allocation147_spill] sm:$0xff] }
 0x2ba   :  { %23489 = vst [vmem:[#allocation217_spill] sm:$0xff] %v19403_v44  ;;  %23490 = vst [vmem:[#allocation53_spill] sm:$0xff] %v19405_v43  ;;  %v8193_v32 = vrot.slane %v23482_v46, %v16600_v18  ;;  %v19421_v40 = vcombine.low %v8172_v29, %v8179_v17  ;;  %5384 = vperm.xlu0 %15464, %v5009_v53   ;;  %v8256_v33 = vrot.slane %v23495_v51, %v16591_v3  ;;  %v23499_v17 = vld [vmem:[#allocation61_spill] sm:$0xff] }
 0x2bb   :  { %23491 = vst [vmem:[#allocation221_spill] sm:$0xff] %v19407_v55  ;;  %23492 = vst [vmem:[#allocation168_spill] sm:$0xff] %v19415_v6  ;;  %v4924_v1 = vcombine.low %v4916_v21, %v4923_v0  ;;  %v4950_v57 = vrot.slane %v23496_v15, %v16649_v42  ;;  %v4957_v45 = vrot.slane %v23497_v5, %v16649_v42  ;;  %v23500_v21 = vld [vmem:[#allocation180_spill] sm:$0xff]  ;;  %v19443_v34 = vpop.permute.xlu1 %1643  ;;  %v23507_v44 = vld [vmem:[#allocation185_spill] sm:$0xff] }
 0x2bc   :  { %23493 = vst [vmem:[#allocation50_spill] sm:$0xff] %v19417_v39  ;;  %23494 = vst [vmem:[#allocation52_spill] sm:$0xff] %v19421_v40  ;;  %v8263_v4 = vrot.slane %v23495_v51, %v16594_v7  ;;  %v5043_v60 = vcombine.low %v5035_v24, %v5042_v36  ;;  %v5069_v10 = vrot.slane %v23498_v41, %v16649_v42  ;;  %v19445_v24 = vpop.permute.xlu0 %1661  ;;  %v23502_v36 = vld [vmem:[#allocation19_spill] sm:$0xff]  ;;  %v23504_v40 = vld [vmem:[#allocation226_spill] sm:$0xff] }
 0x2bd   :  { %v5076_v53 = vrot.slane %v23499_v17, %v16649_v42  ;;  %v8270_v29 = vrot.slane %v23495_v51, %v16597_v30  ;;  %v8277_v0 = vrot.slane %v23495_v51, %v16600_v18  ;;  %v8228_v56 = vrot.slane %v23500_v21, %v16591_v3  ;;  %5369 = vperm.xlu1 %15465, %v4924_v1   ;;  %v23503_v1 = vld [vmem:[#allocation58_spill] sm:$0xff]  ;;  %v23505_v39 = vld [vmem:[#allocation64_spill] sm:$0xff] }
 0x2be   :  { %v8235_v46 = vrot.slane %v23500_v21, %v16594_v7  ;;  %23501 = vst [vmem:[#allocation224_spill] sm:$0xff] %v19445_v24  ;;  %v8312_v47 = vrot.slane %v23502_v36, %v16591_v3  ;;  %v8319_v37 = vrot.slane %v23502_v36, %v16594_v7  ;;  %v8242_v51 = vrot.slane %v23500_v21, %v16597_v30 }
 0x2bf   :  { %v8249_v15 = vrot.slane %v23500_v21, %v16600_v18  ;;  %5390 = vperm.xlu0 %15464, %v5043_v60   ;;  %v8326_v5 = vrot.slane %v23502_v36, %v16597_v30  ;;  %v4958_v41 = vcombine.low %v4950_v57, %v4957_v45  ;;  %v4984_v17 = vrot.slane %v23503_v1, %v16649_v42  ;;  %v23506_v21 = vld [vmem:[#allocation128_spill] sm:$0xff] }
 0x2c0   :  { %v4991_v55 = vrot.slane %v23504_v40, %v16649_v42  ;;  %v8333_v43 = vrot.slane %v23502_v36, %v16600_v18  ;;  %v5077_v13 = vcombine.low %v5069_v10, %v5076_v53  ;;  %v5103_v6 = vrot.slane %v23505_v39, %v16649_v42  ;;  %v19475_v36 = vpop.permute.xlu1 %1646  ;;  %v19477_v10 = vpop.permute.xlu0 %1667 }
 0x2c1   :  { %v5110_v60 = vrot.slane %v23506_v21, %v16649_v42  ;;  %v8284_v38 = vrot.slane %v23507_v44, %v16591_v3  ;;  %v8291_v57 = vrot.slane %v23507_v44, %v16594_v7  ;;  %v8298_v45 = vrot.slane %v23507_v44, %v16597_v30  ;;  %5375 = vperm.xlu1 %15465, %v4958_v41   ;;  %v23516_v41 = vld [vmem:[#allocation229_spill] sm:$0xff] }
 0x2c2   :  { %v8305_v40 = vrot.slane %v23507_v44, %v16600_v18  ;;  %23508 = vst [vmem:[#allocation156_spill] sm:$0xff] %v19477_v10  ;;  %v19479_v39 = vcombine.low %v8256_v33, %v8263_v4  ;;  %v19481_v53 = vcombine.low %v8270_v29, %v8277_v0  ;;  %v19483_v1 = vcombine.low %v8186_v8, %v8193_v32  ;;  %v23515_v44 = vld [vmem:[#allocation228_spill] sm:$0xff]  ;;  %v23518_v4 = vld [vmem:[#allocation65_spill] sm:$0xff]  ;;  %v23519_v32 = vld [vmem:[#allocation230_spill] sm:$0xff] }
 0x2c3   :  { %v23512_v21 = vlaneseq  ;;  %5396 = vperm.xlu0 %15464, %v5077_v13   ;;  %v19488_v31 = vcombine.low %v8228_v56, %v8235_v46  ;;  %v4992_v24 = vcombine.low %v4984_v17, %v4991_v55  ;;  %v5018_v19 = vrot.slane %v23515_v44, %v16649_v42 }
 0x2c4   :  { %23509 = vst [vmem:[#allocation14_spill] sm:$0xff] %v19479_v39  ;;  %23510 = vst [vmem:[#allocation174_spill] sm:$0xff] %v19481_v53  ;;  %v5025_v22 = vrot.slane %v23516_v41, %v16649_v42  ;;  %v19494_v10 = vcombine.low %v8242_v51, %v8249_v15  ;;  %v5111_v33 = vcombine.low %v5103_v6, %v5110_v60  ;;  %v19508_v46 = vpop.permute.xlu1 %1652  ;;  %v19510_v51 = vpop.permute.xlu0 %1673  ;;  %v23524_v6 = vld [vmem:[#allocation22_spill] sm:$0xff] }
 0x2c5   :  { %23511 = vst [vmem:[#allocation152_spill] sm:$0xff] %v19483_v1  ;;  %v19486_v50 = vand.u32 127, %v23512_v21  ;;  %23514 = vst [vmem:[#allocation56_spill] sm:$0xff] %v19488_v31  ;;  %v5137_v8 = vrot.slane %v23518_v4, %v16649_v42  ;;  %v5144_v29 = vrot.slane %v23519_v32, %v16649_v42  ;;  %v19500_v0 = vcombine.low %v8312_v47, %v8319_v37  ;;  %v23525_v37 = vld [vmem:[#allocation112_spill] sm:$0xff]  ;;  %v23527_v21 = vld [vmem:[#allocation154_spill] sm:$0xff] }
 0x2c6   :  { %23517 = vst [vmem:[#allocation107_spill] sm:$0xff] %v19494_v10  ;;  %v19502_v13 = vcombine.low %v8326_v5, %v8333_v43  ;;  %v19504_v55 = vcombine.low %v8284_v38, %v8291_v57  ;;  %v19506_v56 = vcombine.low %v8298_v45, %v8305_v40  ;;  %5381 = vperm.xlu1 %15465, %v4992_v24   ;;  %v23526_v24 = vld [vmem:[#allocation164_spill] sm:$0xff]  ;;  %v23539_v39 = vld [vmem:[#allocation70_spill] sm:$0xff] }
 0x2c7   :  { %23513 = vst [vmem:[#allocation220_spill] sm:$0xff] %v19486_v50  ;;  %23520 = vst [vmem:[#allocation15_spill] sm:$0xff] %v19500_v0  ;;  %v1723_v17 = vadd.s32 4294967288, %v19486_v50  ;;  %v1730_v60 = vadd.s32 4294967280, %v19486_v50  ;;  %v1737_v47 = vadd.s32 4294967272, %v19486_v50  ;;  %5402 = vperm.xlu0 %15464, %v5111_v33   ;;  %v5026_v43 = vcombine.low %v5018_v19, %v5025_v22  ;;  %v23528_v22 = vld [vmem:[#allocation186_spill] sm:$0xff] }
 0x2c8   :  { %23521 = vst [vmem:[#allocation16_spill] sm:$0xff] %v19502_v13  ;;  %23522 = vst [vmem:[#allocation222_spill] sm:$0xff] %v19504_v55  ;;  %v5052_v5 = vrot.slane %v23525_v37, %v16649_v42  ;;  %v5059_v57 = vrot.slane %v23526_v24, %v16649_v42  ;;  %v5145_v40 = vcombine.low %v5137_v8, %v5144_v29  ;;  %v1744_v32 = vadd.s32 4294967264, %v19486_v50  ;;  %v19536_v37 = vpop.permute.xlu1 %1658  ;;  %v19538_v8 = vpop.permute.xlu0 %1679  ;;  %v23529_v29 = vld [vmem:[#allocation89_spill] sm:$0xff] }
 0x2c9   :  { %23523 = vst [vmem:[#allocation223_spill] sm:$0xff] %v19506_v56  ;;  %v5171_v44 = vrot.slane %v23527_v21, %v16649_v42  ;;  %v5178_v41 = vrot.slane %v18334_v54, %v16649_v42  ;;  %v19541_v24 = vsub.s32 %v1723_v17, %v23529_v29  ;;  %v19544_v54 = vsub.s32 %v1730_v60, %v23529_v29  ;;  %v23531_v17 = vld [vmem:[#allocation132_spill] sm:$0xff] }
 0x2ca   :  { %5387 = vperm.xlu1 %15465, %v5026_v43   ;;  %v19547_v21 = vsub.s32 %v1737_v47, %v23529_v29  ;;  %v19551_v19 = vsub.s32 %v19486_v50, %v23529_v29  ;;  %v1751_v4 = vadd.s32 4294967256, %v19486_v50  ;;  %v5060_v45 = vcombine.low %v5052_v5, %v5059_v57  ;;  %v23530_v43 = vld [vmem:[#allocation165_spill] sm:$0xff] }
 0x2cb   :  { %5408 = vperm.xlu0 %15464, %v5145_v40   ;;  %v5086_v33 = vrot.slane %v23530_v43, %v16649_v42  ;;  %v5093_v15 = vrot.slane %v23531_v17, %v16649_v42  ;;  %v1779_v60 = vadd.s32 4294967224, %v19486_v50  ;;  %v5179_v38 = vcombine.low %v5171_v44, %v5178_v41  ;;  %v23533_v41 = vld [vmem:[#allocation232_spill] sm:$0xff] }
 0x2cc   :  { %v5205_v47 = vrot.slane %v18336_v2, %v16649_v42  ;;  %v5212_v56 = vrot.slane %v18342_v25, %v16649_v42  ;;  %v19564_v40 = vsub.s32 %v1744_v32, %v23529_v29  ;;  %v1758_v5 = vadd.s32 4294967248, %v19486_v50  ;;  %v19568_v43 = vpop.permute.xlu1 %1664  ;;  %v19570_v17 = vpop.permute.xlu0 %1685  ;;  %v23532_v2 = vld [vmem:[#allocation231_spill] sm:$0xff] }
 0x2cd   :  { %v1793_v57 = vadd.s32 4294967208, %v19486_v50  ;;  %v1765_v44 = vadd.s32 4294967240, %v19486_v50  ;;  %v5120_v25 = vrot.slane %v23532_v2, %v16649_v42  ;;  %v5127_v32 = vrot.slane %v23533_v41, %v16649_v42 }
 0x2ce   :  { %5393 = vperm.xlu1 %15465, %v5060_v45   ;;  %v1722_v55 = vrot.slane %v19349_v35, %v19551_v19  ;;  %v19580_v10 = vsub.s32 %v1751_v4, %v23529_v29  ;;  %v5094_v45 = vcombine.low %v5086_v33, %v5093_v15  ;;  %v19583_v31 = vsub.s32 %v1779_v60, %v23529_v29 }
 0x2cf   :  { %5414 = vperm.xlu0 %15464, %v5179_v38   ;;  %v5213_v1 = vcombine.low %v5205_v47, %v5212_v56  ;;  %v5239_v38 = vrot.slane %v18355_v9, %v16649_v42  ;;  %v5246_v2 = vrot.slane %v18357_v20, %v16649_v42  ;;  %v1727_v41 = vrot.slane %v19253_v63, %v19541_v24 }
 0x2d0   :  { %23534 = vst [vmem:[#allocation59_spill] sm:$0xff] %v19583_v31  ;;  %v19592_v35 = vsub.s32 %v1758_v5, %v23529_v29  ;;  %v19595_v4 = vsub.s32 %v1793_v57, %v23529_v29  ;;  %v1807_v15 = vadd.s32 4294967192, %v19486_v50  ;;  %v1671_v33 = vpop.permute.xlu1 %1670  ;;  %v19598_v56 = vpop.permute.xlu0 %1691  ;;  %v19601_v9 = vsub.s32 %v1765_v44, %v23529_v29  ;;  %v23537_v57 = vld [vmem:[#allocation67_spill] sm:$0xff] }
 0x2d1   :  { %v1772_v20 = vadd.s32 4294967232, %v19486_v50  ;;  %v1821_v63 = vadd.s32 4294967176, %v19486_v50  ;;  %v5128_v60 = vcombine.low %v5120_v25, %v5127_v32  ;;  %v1729_v47 = vsel %vm1728_vm1, %v1727_v41, %v1722_v55 }
 0x2d2   :  { %23535 = vst [vmem:[#allocation225_spill] sm:$0xff] %v19595_v4  ;;  %5399 = vperm.xlu1 %15465, %v5094_v45   ;;  %23536 = vst [vmem:[#allocation179_spill] sm:$0xff] %v19601_v9  ;;  %v1831_v5 = vrot.slane %v1671_v33, %v19551_v19  ;;  %v5154_v13 = vrot.slane %v23537_v57, %v16649_v42  ;;  %v23538_v45 = vld [vmem:[#allocation155_spill] sm:$0xff]  ;;  %v1734_v44 = vrot.slane %v19285_v59, %v19544_v54  ;;  %v23541_v59 = vld [vmem:[#allocation170_spill] sm:$0xff] }
 0x2d3   :  { %5420 = vperm.xlu0 %15464, %v5213_v1   ;;  %v5161_v0 = vrot.slane %v23538_v45, %v16649_v42  ;;  %v5247_v53 = vcombine.low %v5239_v38, %v5246_v2  ;;  %v5273_v3 = vrot.slane %v23539_v39, %v16649_v42  ;;  %v5280_v1 = vrot.slane %v18431_v11, %v16649_v42  ;;  %v23542_v2 = vld [vmem:[#allocation171_spill] sm:$0xff] }
 0x2d4   :  { %v19618_v55 = vsub.s32 %v1807_v15, %v23529_v29  ;;  %v1835_v25 = vrot.slane %v19510_v51, %v19541_v24  ;;  %v1677_v32 = vpop.permute.xlu1 %1676  ;;  %v19622_v41 = vpop.permute.xlu0 %1697  ;;  %v5188_v38 = vrot.slane %v23541_v59, %v16649_v42  ;;  %v5195_v39 = vrot.slane %v23542_v2, %v16649_v42 }
 0x2d5   :  { %v1736_v33 = vsel %vm1735_vm2, %v1734_v44, %v1729_v47  ;;  %v19630_v11 = vsub.s32 %v1772_v20, %v23529_v29  ;;  %v19633_v15 = vsub.s32 %v1821_v63, %v23529_v29  ;;  %v1840_v51 = vrot.slane %v1677_v32, %v19544_v54 }
 0x2d6   :  { %23540 = vst [vmem:[#allocation159_spill] sm:$0xff] %v19618_v55  ;;  %5405 = vperm.xlu1 %15465, %v5128_v60   ;;  %v1741_v60 = vrot.slane %v19317_v58, %v19547_v21  ;;  %v1786_v57 = vadd.s32 4294967216, %v19486_v50  ;;  %v1836_v45 = vsel %vm1728_vm1, %v1835_v25, %v1831_v5  ;;  %v5162_v59 = vcombine.low %v5154_v13, %v5161_v0 }
 0x2d7   :  { %23543 = vst [vmem:[#allocation57_spill] sm:$0xff] %v19630_v11  ;;  %23544 = vst [vmem:[#allocation147_spill] sm:$0xff] %v19633_v15  ;;  %5426 = vperm.xlu0 %15464, %v5247_v53   ;;  %v1841_v47 = vsel %vm1735_vm2, %v1840_v51, %v1836_v45  ;;  %v5281_v44 = vcombine.low %v5273_v3, %v5280_v1  ;;  %v5307_v20 = vrot.slane %v18440_v16, %v16649_v42  ;;  %v23546_v1 = vld [vmem:[#allocation169_spill] sm:$0xff] }
 0x2d8   :  { %v5314_v63 = vrot.slane %v18442_v52, %v16649_v42  ;;  %v1743_v53 = vsel %vm1742_vm3, %v1741_v60, %v1736_v33  ;;  %v1800_v32 = vadd.s32 4294967200, %v19486_v50  ;;  %v1845_v58 = vrot.slane %v19538_v8, %v19547_v21  ;;  %v1683_v2 = vpop.permute.xlu1 %1682  ;;  %v19649_v5 = vpop.permute.xlu0 %1703  ;;  %v23545_v52 = vld [vmem:[#allocation69_spill] sm:$0xff] }
 0x2d9   :  { %v5196_v0 = vcombine.low %v5188_v38, %v5195_v39  ;;  %v1748_v3 = vrot.slane %v19347_v26, %v19564_v40  ;;  %v1850_v16 = vrot.slane %v1683_v2, %v19564_v40  ;;  %v5222_v13 = vrot.slane %v23545_v52, %v16649_v42 }
 0x2da   :  { %5411 = vperm.xlu1 %15465, %v5162_v59   ;;  %v5229_v25 = vrot.slane %v23546_v1, %v16649_v42  ;;  %v1755_v8 = vrot.slane %v19379_v27, %v19580_v10  ;;  %v1846_v33 = vsel %vm1742_vm3, %v1845_v58, %v1841_v47  ;;  %v5341_v38 = vrot.slane %v18456_v49, %v16649_v42 }
 0x2db   :  { %5432 = vperm.xlu0 %15464, %v5281_v44   ;;  %v5348_v26 = vrot.slane %v18458_v12, %v16649_v42  ;;  %v1750_v39 = vsel %vm1749_vm4, %v1748_v3, %v1743_v53  ;;  %v1762_v51 = vrot.slane %v19411_v14, %v19592_v35  ;;  %v1851_v60 = vsel %vm1749_vm4, %v1850_v16, %v1846_v33 }
 0x2dc   :  { %v5315_v45 = vcombine.low %v5307_v20, %v5314_v63  ;;  %v1769_v27 = vrot.slane %v19443_v34, %v19601_v9  ;;  %v19672_v59 = vsub.s32 %v1786_v57, %v23529_v29  ;;  %v19675_v47 = vsub.s32 %v1800_v32, %v23529_v29  ;;  %v1689_v12 = vpop.permute.xlu1 %1688  ;;  %v19679_v44 = vpop.permute.xlu0 %1709  ;;  %v23549_v57 = vld [vmem:[#allocation73_spill] sm:$0xff] }
 0x2dd   :  { %v1855_v49 = vrot.slane %v19570_v17, %v19580_v10  ;;  %v1776_v14 = vrot.slane %v19475_v36, %v19630_v11  ;;  %v1860_v20 = vrot.slane %v1689_v12, %v19592_v35  ;;  %v5230_v34 = vcombine.low %v5222_v13, %v5229_v25  ;;  %v23550_v17 = vld [vmem:[#allocation74_spill] sm:$0xff]  ;;  %v23551_v36 = vld [vmem:[#allocation12_spill] sm:$0xff] }
 0x2de   :  { %23547 = vst [vmem:[#allocation61_spill] sm:$0xff] %v19672_v59  ;;  %23548 = vst [vmem:[#allocation180_spill] sm:$0xff] %v19675_v47  ;;  %5417 = vperm.xlu1 %15465, %v5196_v0   ;;  %v5256_v63 = vrot.slane %v23549_v57, %v16649_v42  ;;  %v1757_v53 = vsel %vm1756_vm5, %v1755_v8, %v1750_v39  ;;  %v5349_v58 = vcombine.low %v5341_v38, %v5348_v26  ;;  %v23552_v38 = vld [vmem:[#allocation75_spill] sm:$0xff] }
 0x2df   :  { %5438 = vperm.xlu0 %15464, %v5315_v45   ;;  %v1856_v32 = vsel %vm1756_vm5, %v1855_v49, %v1851_v60  ;;  %v5263_v2 = vrot.slane %v23550_v17, %v16649_v42  ;;  %v1764_v0 = vsel %vm1763_vm6, %v1762_v51, %v1757_v53  ;;  %v6646_v16 = vrot.slane %v23551_v36, %v16649_v42  ;;  %v23553_v60 = vld [vmem:[#allocation76_spill] sm:$0xff] }
 0x2e0   :  { %v1861_v3 = vsel %vm1763_vm6, %v1860_v20, %v1856_v32  ;;  %v6653_v52 = vrot.slane %v18532_v28, %v16649_v42  ;;  %v1771_v13 = vsel %vm1770_vm7, %v1769_v27, %v1764_v0  ;;  %v1814_v1 = vadd.s32 4294967184, %v19486_v50  ;;  %v1695_v8 = vpop.permute.xlu1 %1694  ;;  %v19700_v33 = vpop.permute.xlu0 %1715 }
 0x2e1   :  { %v1865_v25 = vrot.slane %v19598_v56, %v19601_v9  ;;  %v5290_v26 = vrot.slane %v23552_v38, %v16649_v42  ;;  %v1778_v39 = vsel %vm1777_vm8, %v1776_v14, %v1771_v13  ;;  %v1790_v51 = vrot.slane %v19508_v46, %v19672_v59 }
 0x2e2   :  { %5423 = vperm.xlu1 %15465, %v5230_v34   ;;  %v1870_v28 = vrot.slane %v1695_v8, %v19630_v11  ;;  %v5297_v45 = vrot.slane %v23553_v60, %v16649_v42  ;;  %v1783_v56 = vrot.slane %v19381_v62, %v19583_v31  ;;  %v5264_v49 = vcombine.low %v5256_v63, %v5263_v2 }
 0x2e3   :  { %5444 = vperm.xlu0 %15464, %v5349_v58   ;;  %v1866_v27 = vsel %vm1770_vm7, %v1865_v25, %v1861_v3  ;;  %v6654_v20 = vcombine.low %v6646_v16, %v6653_v52  ;;  %v6697_v14 = vrot.slane %v18534_v61, %v16649_v42  ;;  %v6704_v46 = vrot.slane %v18545_v48, %v16649_v42  ;;  %v23556_v3 = vld [vmem:[#allocation176_spill] sm:$0xff] }
 0x2e4   :  { %v1871_v12 = vsel %vm1777_vm8, %v1870_v28, %v1866_v27  ;;  %v1785_v34 = vsel %vm1784_vm9, %v1783_v56, %v1778_v39  ;;  %v19720_v57 = vsub.s32 %v1814_v1, %v23529_v29  ;;  %v1875_v62 = vrot.slane %v19622_v41, %v19583_v31  ;;  %v1701_v53 = vpop.permute.xlu1 %1700  ;;  %v19724_v63 = vpop.permute.xlu0 %3487  ;;  %v23555_v41 = vld [vmem:[#allocation175_spill] sm:$0xff]  ;;  %v23558_v1 = vld [vmem:[#allocation236_spill] sm:$0xff]  ;;  %v23559_v39 = vld [vmem:[#allocation166_spill] sm:$0xff] }
 0x2e5   :  { %v1792_v32 = vsel %vm1791_vm10, %v1790_v51, %v1785_v34  ;;  %v1804_v61 = vrot.slane %v19536_v37, %v19675_v47  ;;  %v1880_v48 = vrot.slane %v1701_v53, %v19672_v59  ;;  %v5298_v58 = vcombine.low %v5290_v26, %v5297_v45  ;;  %v23557_v37 = vld [vmem:[#allocation83_spill] sm:$0xff]  ;;  %v23560_v56 = vld [vmem:[#allocation80_spill] sm:$0xff]  ;;  %v23601_v29 = vld [vmem:[#allocation250_spill] sm:$0xff] }
 0x2e6   :  { %23554 = vst [vmem:[#allocation19_spill] sm:$0xff] %v19720_v57  ;;  %5429 = vperm.xlu1 %15465, %v5264_v49   ;;  %v1797_v17 = vrot.slane %v19413_v23, %v19595_v4  ;;  %v1876_v2 = vsel %vm1784_vm9, %v1875_v62, %v1871_v12  ;;  %v5324_v0 = vrot.slane %v23555_v41, %v16649_v42  ;;  %v23562_v34 = vld [vmem:[#allocation240_spill] sm:$0xff] }
 0x2e7   :  { %7183 = vperm.xlu0 %15464, %v6654_v20   ;;  %v5331_v36 = vrot.slane %v23556_v3, %v16649_v42  ;;  %v1881_v16 = vsel %vm1791_vm10, %v1880_v48, %v1876_v2  ;;  %v6705_v52 = vcombine.low %v6697_v14, %v6704_v46  ;;  %v6731_v13 = vrot.slane %v23557_v37, %v16649_v42  ;;  %v23566_v37 = vld [vmem:[#allocation237_spill] sm:$0xff] }
 0x2e8   :  { %v6738_v25 = vrot.slane %v23558_v1, %v16649_v42  ;;  %v1799_v8 = vsel %vm1798_vm11, %v1797_v17, %v1792_v32  ;;  %v1885_v23 = vrot.slane %v19649_v5, %v19595_v4  ;;  %v1707_v38 = vpop.permute.xlu1 %1706  ;;  %v19745_v26 = vpop.permute.xlu0 %3496  ;;  %v6663_v51 = vrot.slane %v23559_v39, %v16649_v42  ;;  %v23561_v5 = vld [vmem:[#allocation224_spill] sm:$0xff] }
 0x2e9   :  { %v1806_v28 = vsel %vm1805_vm12, %v1804_v61, %v1799_v8  ;;  %v1818_v60 = vrot.slane %v19568_v43, %v19720_v57  ;;  %v1890_v45 = vrot.slane %v1707_v38, %v19675_v47  ;;  %v6670_v27 = vrot.slane %v23560_v56, %v16649_v42  ;;  %v23563_v43 = vld [vmem:[#allocation86_spill] sm:$0xff]  ;;  %v23567_v8 = vld [vmem:[#allocation241_spill] sm:$0xff] }
 0x2ea   :  { %5435 = vperm.xlu1 %15465, %v5298_v58   ;;  %v1811_v49 = vrot.slane %v23561_v5, %v19618_v55  ;;  %v1886_v12 = vsel %vm1798_vm11, %v1885_v23, %v1881_v16  ;;  %v5332_v20 = vcombine.low %v5324_v0, %v5331_v36  ;;  %v6739_v46 = vcombine.low %v6731_v13, %v6738_v25  ;;  %v23564_v0 = vld [vmem:[#allocation235_spill] sm:$0xff]  ;;  %v23565_v36 = vld [vmem:[#allocation156_spill] sm:$0xff]  ;;  %v23568_v38 = vld [vmem:[#allocation242_spill] sm:$0xff] }
 0x2eb   :  { %7192 = vperm.xlu0 %15464, %v6705_v52   ;;  %v1891_v14 = vsel %vm1805_vm12, %v1890_v45, %v1886_v12  ;;  %v6765_v62 = vrot.slane %v23562_v34, %v16649_v42  ;;  %v6772_v53 = vrot.slane %v23563_v43, %v16649_v42  ;;  %v1895_v61 = vrot.slane %v19679_v44, %v19618_v55  ;;  %v23570_v5 = vld [vmem:[#allocation92_spill] sm:$0xff]  ;;  %v23636_v55 = vld [vmem:[#allocation103_spill] sm:$0xff] }
 0x2ec   :  { %v1813_v32 = vsel %vm1812_vm13, %v1811_v49, %v1806_v28  ;;  %v1713_v48 = vpop.permute.xlu1 %1712  ;;  %v19766_v58 = vpop.permute.xlu0 %3502  ;;  %v6671_v41 = vcombine.low %v6663_v51, %v6670_v27  ;;  %v6680_v3 = vrot.slane %v23564_v0, %v16649_v42  ;;  %v1825_v16 = vrot.slane %v23565_v36, %v19633_v15 }
 0x2ed   :  { %v1820_v17 = vsel %vm1819_vm14, %v1818_v60, %v1813_v32  ;;  %v1900_v2 = vrot.slane %v1713_v48, %v19720_v57  ;;  %v1905_v44 = vrot.slane %v19700_v33, %v19633_v15  ;;  %v1896_v52 = vsel %vm1812_vm13, %v1895_v61, %v1891_v14  ;;  %v23577_v61 = vld [vmem:[#allocation238_spill] sm:$0xff] }
 0x2ee   :  { %5441 = vperm.xlu1 %15465, %v5332_v20   ;;  %v6687_v13 = vrot.slane %v23566_v37, %v16649_v42  ;;  %v6773_v25 = vcombine.low %v6765_v62, %v6772_v53  ;;  %v6799_v23 = vrot.slane %v23567_v8, %v16649_v42  ;;  %v6806_v39 = vrot.slane %v23568_v38, %v16649_v42  ;;  %v23573_v20 = vld [vmem:[#allocation191_spill] sm:$0xff] }
 0x2ef   :  { %7198 = vperm.xlu0 %15464, %v6739_v46   ;;  %v1901_v1 = vsel %vm1819_vm14, %v1900_v2, %v1896_v52  ;;  %v8354_v51 = vrot.slane %v23528_v22, %v16597_v30  ;;  %v8361_v33 = vrot.slane %v23528_v22, %v16600_v18  ;;  %v1827_v28 = vsel %vm22718_vm15, %v1825_v16, %v1820_v17  ;;  %v23578_v17 = vld [vmem:[#allocation239_spill] sm:$0xff] }
 0x2f0   :  { %v1906_v60 = vsel %vm22718_vm15, %v1905_v44, %v1901_v1  ;;  %v19790_v45 = vpop.permute.xlu1 %3490  ;;  %v19792_v56 = vpop.permute.xlu0 %3508  ;;  %v23569_v27 = vrot.slane %v23524_v6, %v16594_v7  ;;  %v23571_v49 = vrot.slane %v23524_v6, %v23570_v5  ;;  %v8424_v14 = vrot.slane %v23573_v20, %v23570_v5 }
 0x2f1   :  { %v8431_v46 = vrot.slane %v23573_v20, %v16594_v7  ;;  %v1908_v34 = vsel %vm22717_vm0, %v1906_v60, %v1827_v28  ;;  %v23574_v62 = vrot.slane %v23524_v6, %v16600_v18  ;;  %v23575_v43 = vrot.slane %v23524_v6, %v16597_v30  ;;  %v23582_v6 = vld [vmem:[#allocation245_spill] sm:$0xff] }
 0x2f2   :  { %7186 = vperm.xlu1 %15465, %v6671_v41   ;;  %v19800_v12 = vcombine.low %v23571_v49, %v23569_v27  ;;  %15306 = vst.sshfl [vmem:[#allocation2] sm:$0x3 pattern:$0x76325410] %v1908_v34  ;;  %v6688_v32 = vcombine.low %v6680_v3, %v6687_v13  ;;  %v6714_v48 = vrot.slane %v23577_v61, %v16649_v42  ;;  %v23583_v3 = vld [vmem:[#allocation246_spill] sm:$0xff]  ;;  %v23588_v49 = vld [vmem:[#allocation87_spill] sm:$0xff] }
 0x2f3   :  { %7204 = vperm.xlu0 %15464, %v6773_v25   ;;  %v19813_v53 = vcombine.low %v23575_v43, %v23574_v62  ;;  %v6721_v2 = vrot.slane %v23578_v17, %v16649_v42  ;;  %v23579_v41 = vrot.slane %v23528_v22, %v16594_v7  ;;  %v23580_v0 = vrot.slane %v23528_v22, %v23570_v5  ;;  %v23585_v25 = vld [vmem:[#allocation192_spill] sm:$0xff]  ;;  %v23590_v43 = vld [vmem:[#allocation18_spill] sm:$0xff]  ;;  %v23591_v61 = vld [vmem:[#allocation93_spill] sm:$0xff] }
 0x2f4   :  { %23572 = vst [vmem:[#allocation58_spill] sm:$0xff] %v19800_v12  ;;  %v6807_v16 = vcombine.low %v6799_v23, %v6806_v39  ;;  %v6833_v44 = vrot.slane %v23582_v6, %v16649_v42  ;;  %v6840_v52 = vrot.slane %v23583_v3, %v16649_v42  ;;  %v8438_v37 = vrot.slane %v23573_v20, %v16597_v30  ;;  %v19839_v8 = vpop.permute.xlu1 %3493  ;;  %v19841_v23 = vpop.permute.xlu0 %3514 }
 0x2f5   :  { %23576 = vst [vmem:[#allocation226_spill] sm:$0xff] %v19813_v53  ;;  %v19825_v36 = vcombine.low %v23580_v0, %v23579_v41  ;;  %v8445_v13 = vrot.slane %v23573_v20, %v16600_v18  ;;  %v19835_v1 = vcombine.low %v8354_v51, %v8361_v33  ;;  %v8396_v22 = vrot.slane %v23585_v25, %v23570_v5  ;;  %v23587_v33 = vld [vmem:[#allocation25_spill] sm:$0xff]  ;;  %v23621_v53 = vld [vmem:[#allocation256_spill] sm:$0xff] }
 0x2f6   :  { %7189 = vperm.xlu1 %15465, %v6688_v32   ;;  %v19843_v38 = vcombine.low %v8424_v14, %v8431_v46  ;;  %v8403_v39 = vrot.slane %v23585_v25, %v16594_v7  ;;  %v8410_v28 = vrot.slane %v23585_v25, %v16597_v30  ;;  %v8417_v51 = vrot.slane %v23585_v25, %v16600_v18  ;;  %v23589_v14 = vld [vmem:[#allocation88_spill] sm:$0xff] }
 0x2f7   :  { %23581 = vst [vmem:[#allocation64_spill] sm:$0xff] %v19825_v36  ;;  %23584 = vst [vmem:[#allocation128_spill] sm:$0xff] %v19835_v1  ;;  %7210 = vperm.xlu0 %15464, %v6807_v16   ;;  %v8480_v60 = vrot.slane %v23587_v33, %v23570_v5  ;;  %v6722_v27 = vcombine.low %v6714_v48, %v6721_v2  ;;  %v6748_v20 = vrot.slane %v23588_v49, %v16649_v42  ;;  %v23592_v2 = vld [vmem:[#allocation26_spill] sm:$0xff]  ;;  %v23618_v36 = vld [vmem:[#allocation251_spill] sm:$0xff] }
 0x2f8   :  { %23586 = vst [vmem:[#allocation185_spill] sm:$0xff] %v19843_v38  ;;  %v6755_v46 = vrot.slane %v23589_v14, %v16649_v42  ;;  %v8487_v34 = vrot.slane %v23587_v33, %v16594_v7  ;;  %v6841_v62 = vcombine.low %v6833_v44, %v6840_v52  ;;  %v6867_v32 = vrot.slane %v23590_v43, %v16649_v42  ;;  %v19871_v6 = vpop.permute.xlu1 %3499  ;;  %v19873_v44 = vpop.permute.xlu0 %3520  ;;  %v23597_v43 = vld [vmem:[#allocation243_spill] sm:$0xff] }
 0x2f9   :  { %v6874_v17 = vrot.slane %v23591_v61, %v16649_v42  ;;  %v8494_v41 = vrot.slane %v23587_v33, %v16597_v30  ;;  %v8501_v48 = vrot.slane %v23587_v33, %v16600_v18  ;;  %v8452_v0 = vrot.slane %v23592_v2, %v23570_v5  ;;  %23593 = vst [vmem:[#allocation228_spill] sm:$0xff] %v19873_v44 }
 0x2fa   :  { %v8459_v16 = vrot.slane %v23592_v2, %v16594_v7  ;;  %7195 = vperm.xlu1 %15465, %v6722_v27   ;;  %v19875_v3 = vcombine.low %v8438_v37, %v8445_v13  ;;  %v19877_v52 = vcombine.low %v8396_v22, %v8403_v39  ;;  %v8466_v25 = vrot.slane %v23592_v2, %v16597_v30  ;;  %v23598_v27 = vld [vmem:[#allocation244_spill] sm:$0xff]  ;;  %v23600_v22 = vld [vmem:[#allocation95_spill] sm:$0xff] }
 0x2fb   :  { %v8473_v33 = vrot.slane %v23592_v2, %v16600_v18  ;;  %7216 = vperm.xlu0 %15464, %v6841_v62   ;;  %v19883_v49 = vcombine.low %v8410_v28, %v8417_v51  ;;  %v6756_v14 = vcombine.low %v6748_v20, %v6755_v46  ;;  %v6782_v61 = vrot.slane %v23597_v43, %v16649_v42  ;;  %v23603_v28 = vld [vmem:[#allocation27_spill] sm:$0xff]  ;;  %v23609_v43 = vld [vmem:[#allocation249_spill] sm:$0xff] }
 0x2fc   :  { %23594 = vst [vmem:[#allocation229_spill] sm:$0xff] %v19875_v3  ;;  %23595 = vst [vmem:[#allocation65_spill] sm:$0xff] %v19877_v52  ;;  %v6789_v50 = vrot.slane %v23598_v27, %v16649_v42  ;;  %v19889_v37 = vcombine.low %v8480_v60, %v8487_v34  ;;  %v6875_v13 = vcombine.low %v6867_v32, %v6874_v17  ;;  %v19903_v62 = vpop.permute.xlu1 %3505  ;;  %v19905_v60 = vpop.permute.xlu0 %3526  ;;  %v23607_v17 = vld [vmem:[#allocation109_spill] sm:$0xff] }
 0x2fd   :  { %23596 = vst [vmem:[#allocation230_spill] sm:$0xff] %v19883_v49  ;;  %v6901_v39 = vrot.slane %v23600_v22, %v16649_v42  ;;  %v6908_v52 = vrot.slane %v23601_v29, %v16649_v42  ;;  %v19895_v2 = vcombine.low %v8494_v41, %v8501_v48  ;;  %v9444_v51 = vrot.slane %v23603_v28, %v23570_v5 }
 0x2fe   :  { %23599 = vst [vmem:[#allocation22_spill] sm:$0xff] %v19889_v37  ;;  %v9451_v20 = vrot.slane %v23603_v28, %v16594_v7  ;;  %v19901_v46 = vcombine.low %v8452_v0, %v8459_v16  ;;  %7201 = vperm.xlu1 %15465, %v6756_v14   ;;  %23605 = vst [vmem:[#allocation154_spill] sm:$0xff] %v19905_v60  ;;  %v9458_v34 = vrot.slane %v23603_v28, %v16597_v30  ;;  %v23608_v16 = vld [vmem:[#allocation90_spill] sm:$0xff] }
 0x2ff   :  { %23602 = vst [vmem:[#allocation112_spill] sm:$0xff] %v19895_v2  ;;  %v9465_v29 = vrot.slane %v23603_v28, %v16600_v18  ;;  %v19911_v32 = vcombine.low %v8466_v25, %v8473_v33  ;;  %v9472_v41 = vrot.slane %v23607_v17, %v23570_v5  ;;  %7222 = vperm.xlu0 %15464, %v6875_v13   ;;  %v23610_v25 = vld [vmem:[#allocation21_spill] sm:$0xff] }
 0x300   :  { %23604 = vst [vmem:[#allocation164_spill] sm:$0xff] %v19901_v46  ;;  %v9479_v48 = vrot.slane %v23607_v17, %v16594_v7  ;;  %v6790_v0 = vcombine.low %v6782_v61, %v6789_v50  ;;  %v6816_v14 = vrot.slane %v23608_v16, %v16649_v42  ;;  %v6823_v27 = vrot.slane %v23609_v43, %v16649_v42  ;;  %v23613_v50 = vld [vmem:[#allocation28_spill] sm:$0xff]  ;;  %v19935_v49 = vpop.permute.xlu1 %3511 }
 0x301   :  { %23606 = vst [vmem:[#allocation186_spill] sm:$0xff] %v19911_v32  ;;  %v9486_v22 = vrot.slane %v23607_v17, %v16597_v30  ;;  %v6909_v28 = vcombine.low %v6901_v39, %v6908_v52  ;;  %v6935_v33 = vrot.slane %v23610_v25, %v16649_v42  ;;  %v23611_v32 = vld [vmem:[#allocation96_spill] sm:$0xff]  ;;  %v19927_v46 = vcombine.low %v9444_v51, %v9451_v20  ;;  %v19937_v52 = vpop.permute.xlu0 %3532  ;;  %v23615_v20 = vld [vmem:[#allocation29_spill] sm:$0xff] }
 0x302   :  { %v6942_v13 = vrot.slane %v23611_v32, %v16649_v42  ;;  %v9528_v61 = vrot.slane %v23613_v50, %v23570_v5  ;;  %v9535_v16 = vrot.slane %v23613_v50, %v16594_v7  ;;  %v9493_v43 = vrot.slane %v23607_v17, %v16600_v18  ;;  %7207 = vperm.xlu1 %15465, %v6790_v0   ;;  %v23617_v0 = vld [vmem:[#allocation94_spill] sm:$0xff] }
 0x303   :  { %23612 = vst [vmem:[#allocation165_spill] sm:$0xff] %v19927_v46  ;;  %23614 = vst [vmem:[#allocation132_spill] sm:$0xff] %v19937_v52  ;;  %v9542_v39 = vrot.slane %v23613_v50, %v16597_v30  ;;  %v9549_v51 = vrot.slane %v23613_v50, %v16600_v18  ;;  %v9500_v32 = vrot.slane %v23615_v20, %v23570_v5  ;;  %7228 = vperm.xlu0 %15464, %v6909_v28   ;;  %v23620_v50 = vld [vmem:[#allocation98_spill] sm:$0xff] }
 0x304   :  { %v9507_v25 = vrot.slane %v23615_v20, %v16594_v7  ;;  %v19947_v46 = vcombine.low %v9458_v34, %v9465_v29  ;;  %v6824_v17 = vcombine.low %v6816_v14, %v6823_v27  ;;  %v6850_v1 = vrot.slane %v23617_v0, %v16649_v42  ;;  %v23625_v27 = vld [vmem:[#allocation202_spill] sm:$0xff] }
 0x305   :  { %v6857_v2 = vrot.slane %v23618_v36, %v16649_v42  ;;  %v19953_v37 = vcombine.low %v9472_v41, %v9479_v48  ;;  %v6943_v3 = vcombine.low %v6935_v33, %v6942_v13  ;;  %v6969_v38 = vrot.slane %v23620_v50, %v16649_v42  ;;  %v19967_v36 = vpop.permute.xlu1 %3517  ;;  %v19969_v41 = vpop.permute.xlu0 %3538 }
 0x306   :  { %23616 = vst [vmem:[#allocation231_spill] sm:$0xff] %v19947_v46  ;;  %v6976_v12 = vrot.slane %v23621_v53, %v16649_v42  ;;  %v19959_v52 = vcombine.low %v9528_v61, %v9535_v16  ;;  %v19961_v34 = vcombine.low %v9486_v22, %v9493_v43  ;;  %v9514_v29 = vrot.slane %v23615_v20, %v16597_v30  ;;  %v23627_v61 = vld [vmem:[#allocation20_spill] sm:$0xff]  ;;  %v23628_v43 = vld [vmem:[#allocation254_spill] sm:$0xff] }
 0x307   :  { %23619 = vst [vmem:[#allocation232_spill] sm:$0xff] %v19953_v37  ;;  %v9521_v14 = vrot.slane %v23615_v20, %v16600_v18  ;;  %7213 = vperm.xlu1 %15465, %v6824_v17   ;;  %v19971_v48 = vcombine.low %v9542_v39, %v9549_v51  ;;  %v9584_v53 = vrot.slane %v23625_v27, %v23570_v5  ;;  %v23629_v17 = vld [vmem:[#allocation189_spill] sm:$0xff] }
 0x308   :  { %23622 = vst [vmem:[#allocation67_spill] sm:$0xff] %v19959_v52  ;;  %23623 = vst [vmem:[#allocation155_spill] sm:$0xff] %v19961_v34  ;;  %v9591_v22 = vrot.slane %v23625_v27, %v16594_v7  ;;  %v19977_v28 = vcombine.low %v9500_v32, %v9507_v25  ;;  %7234 = vperm.xlu0 %15464, %v6943_v3   ;;  %v9598_v33 = vrot.slane %v23625_v27, %v16597_v30  ;;  %v23630_v32 = vld [vmem:[#allocation101_spill] sm:$0xff]  ;;  %v23631_v25 = vld [vmem:[#allocation120_spill] sm:$0xff] }
 0x309   :  { %23624 = vst [vmem:[#allocation70_spill] sm:$0xff] %v19971_v48  ;;  %v6858_v13 = vcombine.low %v6850_v1, %v6857_v2  ;;  %v6884_v16 = vrot.slane %v23627_v61, %v16649_v42  ;;  %v6891_v39 = vrot.slane %v23628_v43, %v16649_v42  ;;  %v9605_v51 = vrot.slane %v23625_v27, %v16600_v18  ;;  %v19999_v27 = vpop.permute.xlu1 %3523  ;;  %v23635_v52 = vld [vmem:[#allocation99_spill] sm:$0xff] }
 0x30a   :  { %23626 = vst [vmem:[#allocation170_spill] sm:$0xff] %v19977_v28  ;;  %v6977_v20 = vcombine.low %v6969_v38, %v6976_v12  ;;  %v7003_v0 = vrot.slane %v23629_v17, %v16649_v42  ;;  %v7010_v3 = vrot.slane %v23630_v32, %v16649_v42  ;;  %v9556_v50 = vrot.slane %v23631_v25, %v23570_v5  ;;  %v20001_v12 = vpop.permute.xlu0 %3544  ;;  %v23632_v38 = vld [vmem:[#allocation31_spill] sm:$0xff] }
 0x30b   :  { %v9563_v1 = vrot.slane %v23631_v25, %v16594_v7  ;;  %v9570_v2 = vrot.slane %v23631_v25, %v16597_v30  ;;  %v9577_v61 = vrot.slane %v23631_v25, %v16600_v18  ;;  %7219 = vperm.xlu1 %15465, %v6858_v13   ;;  %v9640_v43 = vrot.slane %v23632_v38, %v23570_v5  ;;  %v23633_v25 = vld [vmem:[#allocation119_spill] sm:$0xff]  ;;  %v23634_v13 = vld [vmem:[#allocation182_spill] sm:$0xff] }
 0x30c   :  { %v9647_v17 = vrot.slane %v23632_v38, %v16594_v7  ;;  %v9654_v32 = vrot.slane %v23632_v38, %v16597_v30  ;;  %v9661_v28 = vrot.slane %v23632_v38, %v16600_v18  ;;  %7240 = vperm.xlu0 %15464, %v6977_v20   ;;  %v9612_v34 = vrot.slane %v23633_v25, %v23570_v5  ;;  %v23637_v38 = vld [vmem:[#allocation110_spill] sm:$0xff] }
 0x30d   :  { %v6892_v37 = vcombine.low %v6884_v16, %v6891_v39  ;;  %v6918_v48 = vrot.slane %v23634_v13, %v16649_v42  ;;  %v6925_v46 = vrot.slane %v23635_v52, %v16649_v42  ;;  %v9619_v15 = vrot.slane %v23633_v25, %v16594_v7  ;;  %v20031_v39 = vpop.permute.xlu1 %3529 }
 0x30e   :  { %v7011_v60 = vcombine.low %v7003_v0, %v7010_v3  ;;  %v7037_v57 = vrot.slane %v23636_v55, %v16649_v42  ;;  %v7044_v20 = vrot.slane %v23637_v38, %v16649_v42  ;;  %v20023_v44 = vcombine.low %v9584_v53, %v9591_v22  ;;  %v20033_v0 = vpop.permute.xlu0 %3550  ;;  %v23642_v53 = vld [vmem:[#allocation257_spill] sm:$0xff] }
 0x30f   :  { %v20025_v4 = vcombine.low %v9514_v29, %v9521_v14  ;;  %v9626_v16 = vrot.slane %v23633_v25, %v16597_v30  ;;  %v9633_v52 = vrot.slane %v23633_v25, %v16600_v18  ;;  %7225 = vperm.xlu1 %15465, %v6892_v37   ;;  %v20035_v3 = vcombine.low %v9598_v33, %v9605_v51  ;;  %v23643_v14 = vld [vmem:[#allocation258_spill] sm:$0xff]  ;;  %v23648_v51 = vld [vmem:[#allocation193_spill] sm:$0xff] }
 0x310   :  { %23638 = vst [vmem:[#allocation171_spill] sm:$0xff] %v20023_v44  ;;  %v20037_v55 = vcombine.low %v9556_v50, %v9563_v1  ;;  %7246 = vperm.xlu0 %15464, %v7011_v60   ;;  %v6952_v29 = vrot.slane %v23642_v53, %v16649_v42  ;;  %v6959_v22 = vrot.slane %v23643_v14, %v16649_v42  ;;  %v23649_v60 = vld [vmem:[#allocation105_spill] sm:$0xff]  ;;  %v23650_v53 = vld [vmem:[#allocation204_spill] sm:$0xff]  ;;  %v23654_v14 = vld [vmem:[#allocation131_spill] sm:$0xff] }
 0x311   :  { %23639 = vst [vmem:[#allocation69_spill] sm:$0xff] %v20025_v4  ;;  %23640 = vst [vmem:[#allocation169_spill] sm:$0xff] %v20035_v3  ;;  %v20043_v13 = vcombine.low %v9640_v43, %v9647_v17  ;;  %v20045_v38 = vcombine.low %v9654_v32, %v9661_v28  ;;  %v20047_v25 = vcombine.low %v9570_v2, %v9577_v61  ;;  %v23652_v32 = vld [vmem:[#allocation190_spill] sm:$0xff]  ;;  %v23758_v3 = vld [vmem:[#allocation167_spill] sm:$0xff] }
 0x312   :  { %23641 = vst [vmem:[#allocation73_spill] sm:$0xff] %v20037_v55  ;;  %v6926_v37 = vcombine.low %v6918_v48, %v6925_v46  ;;  %v20049_v4 = vcombine.low %v9612_v34, %v9619_v15  ;;  %v7045_v33 = vcombine.low %v7037_v57, %v7044_v20  ;;  %v7071_v50 = vrot.slane %v23648_v51, %v16649_v42  ;;  %v3536_v15 = vpop.permute.xlu1 %3535  ;;  %v20063_v57 = vpop.permute.xlu0 %3556 }
 0x313   :  { %23644 = vst [vmem:[#allocation74_spill] sm:$0xff] %v20043_v13  ;;  %23645 = vst [vmem:[#allocation12_spill] sm:$0xff] %v20045_v38  ;;  %v7078_v1 = vrot.slane %v23649_v60, %v16649_v42  ;;  %v9696_v55 = vrot.slane %v23650_v53, %v23570_v5  ;;  %v9703_v43 = vrot.slane %v23650_v53, %v16594_v7  ;;  %v23655_v60 = vld [vmem:[#allocation106_spill] sm:$0xff] }
 0x314   :  { %23646 = vst [vmem:[#allocation75_spill] sm:$0xff] %v20047_v25  ;;  %23647 = vst [vmem:[#allocation76_spill] sm:$0xff] %v20049_v4  ;;  %v20059_v28 = vcombine.low %v9626_v16, %v9633_v52  ;;  %v3589_v46 = vrot.slane %v19790_v45, %v19541_v24  ;;  %7231 = vperm.xlu1 %15465, %v6926_v37   ;;  %v9710_v34 = vrot.slane %v23650_v53, %v16597_v30  ;;  %v23653_v16 = vld [vmem:[#allocation259_spill] sm:$0xff] }
 0x315   :  { %v9717_v48 = vrot.slane %v23650_v53, %v16600_v18  ;;  %v3594_v2 = vrot.slane %v19839_v8, %v19544_v54  ;;  %7252 = vperm.xlu0 %15464, %v7045_v33   ;;  %v6960_v61 = vcombine.low %v6952_v29, %v6959_v22  ;;  %v3585_v17 = vrot.slane %v19724_v63, %v19551_v19  ;;  %v23656_v29 = vld [vmem:[#allocation30_spill] sm:$0xff] }
 0x316   :  { %23651 = vst [vmem:[#allocation175_spill] sm:$0xff] %v20059_v28  ;;  %v3664_v45 = vrot.slane %v3536_v15, %v19551_v19  ;;  %v6986_v20 = vrot.slane %v23652_v32, %v16649_v42  ;;  %v6993_v52 = vrot.slane %v23653_v16, %v16649_v42  ;;  %v9668_v37 = vrot.slane %v23654_v14, %v23570_v5  ;;  %v3542_v15 = vpop.permute.xlu1 %3541  ;;  %v20089_v32 = vpop.permute.xlu0 %3562 }
 0x317   :  { %v7079_v51 = vcombine.low %v7071_v50, %v7078_v1  ;;  %v7105_v8 = vrot.slane %v23655_v60, %v16649_v42  ;;  %v7112_v22 = vrot.slane %v23656_v29, %v16649_v42  ;;  %v9675_v63 = vrot.slane %v23654_v14, %v16594_v7  ;;  %v23657_v50 = vld [vmem:[#allocation104_spill] sm:$0xff] }
 0x318   :  { %v3590_v33 = vsel %vm1728_vm1, %v3589_v46, %v3585_v17  ;;  %v3668_v53 = vrot.slane %v19969_v41, %v19541_v24  ;;  %7237 = vperm.xlu1 %15465, %v6960_v61   ;;  %v7020_v1 = vrot.slane %v23657_v50, %v16649_v42  ;;  %v3604_v60 = vrot.slane %v19871_v6, %v19564_v40  ;;  %v23658_v46 = vld [vmem:[#allocation261_spill] sm:$0xff] }
 0x319   :  { %v3595_v16 = vsel %vm1735_vm2, %v3594_v2, %v3590_v33  ;;  %v3673_v29 = vrot.slane %v3542_v15, %v19544_v54  ;;  %7258 = vperm.xlu0 %15464, %v7079_v51   ;;  %v7027_v17 = vrot.slane %v23658_v46, %v16649_v42  ;;  %v9682_v41 = vrot.slane %v23654_v14, %v16597_v30  ;;  %v23659_v6 = vld [vmem:[#allocation113_spill] sm:$0xff]  ;;  %v23660_v51 = vld [vmem:[#allocation118_spill] sm:$0xff] }
 0x31a   :  { %v3599_v61 = vrot.slane %v19745_v26, %v19547_v21  ;;  %v3669_v28 = vsel %vm1728_vm1, %v3668_v53, %v3664_v45  ;;  %v6994_v50 = vcombine.low %v6986_v20, %v6993_v52  ;;  %v7113_v33 = vcombine.low %v7105_v8, %v7112_v22  ;;  %v3548_v45 = vpop.permute.xlu1 %3547  ;;  %v23663_v53 = vld [vmem:[#allocation188_spill] sm:$0xff] }
 0x31b   :  { %v3674_v2 = vsel %vm1735_vm2, %v3673_v29, %v3669_v28  ;;  %v7139_v4 = vrot.slane %v23659_v6, %v16649_v42  ;;  %v7146_v15 = vrot.slane %v23660_v51, %v16649_v42  ;;  %v20109_v25 = vcombine.low %v9696_v55, %v9703_v43  ;;  %v20116_v28 = vpop.permute.xlu0 %3568  ;;  %v23667_v6 = vld [vmem:[#allocation139_spill] sm:$0xff] }
 0x31c   :  { %v9689_v46 = vrot.slane %v23654_v14, %v16600_v18  ;;  %v3600_v38 = vsel %vm1742_vm3, %v3599_v61, %v3595_v16  ;;  %v3678_v26 = vrot.slane %v20001_v12, %v19547_v21  ;;  %7243 = vperm.xlu1 %15465, %v6994_v50   ;;  %v3614_v52 = vrot.slane %v19903_v62, %v19592_v35  ;;  %v23662_v12 = vld [vmem:[#allocation187_spill] sm:$0xff]  ;;  %v23664_v62 = vld [vmem:[#allocation197_spill] sm:$0xff]  ;;  %v23665_v61 = vld [vmem:[#allocation32_spill] sm:$0xff] }
 0x31d   :  { %23661 = vst [vmem:[#allocation176_spill] sm:$0xff] %v20109_v25  ;;  %v3605_v20 = vsel %vm1749_vm4, %v3604_v60, %v3600_v38  ;;  %v3683_v55 = vrot.slane %v3548_v45, %v19564_v40  ;;  %7264 = vperm.xlu0 %15464, %v7113_v33   ;;  %v7028_v43 = vcombine.low %v7020_v1, %v7027_v17  ;;  %v23734_v25 = vld [vmem:[#allocation10_spill] sm:$0xff] }
 0x31e   :  { %v3609_v14 = vrot.slane %v19766_v58, %v19580_v10  ;;  %v3679_v8 = vsel %vm1742_vm3, %v3678_v26, %v3674_v2  ;;  %v7054_v22 = vrot.slane %v23662_v12, %v16649_v42  ;;  %v7061_v16 = vrot.slane %v23663_v53, %v16649_v42  ;;  %v3554_v2 = vpop.permute.xlu1 %3553  ;;  %v23672_v53 = vld [vmem:[#allocation36_spill] sm:$0xff] }
 0x31f   :  { %v3684_v38 = vsel %vm1749_vm4, %v3683_v55, %v3679_v8  ;;  %v7147_v60 = vcombine.low %v7139_v4, %v7146_v15  ;;  %v7173_v29 = vrot.slane %v23664_v62, %v16649_v42  ;;  %v7180_v1 = vrot.slane %v23665_v61, %v16649_v42  ;;  %v20139_v33 = vpop.permute.xlu0 %3574  ;;  %v23671_v8 = vld [vmem:[#allocation203_spill] sm:$0xff] }
 0x320   :  { %v20134_v17 = vcombine.low %v9710_v34, %v9717_v48  ;;  %v3610_v58 = vsel %vm1756_vm5, %v3609_v14, %v3605_v20  ;;  %v3688_v50 = vrot.slane %v20033_v0, %v19580_v10  ;;  %7249 = vperm.xlu1 %15465, %v7028_v43   ;;  %v7088_v4 = vrot.slane %v23667_v6, %v16649_v42  ;;  %v23668_v48 = vld [vmem:[#allocation114_spill] sm:$0xff] }
 0x321   :  { %v3615_v51 = vsel %vm1763_vm6, %v3614_v52, %v3610_v58  ;;  %v3624_v15 = vrot.slane %v19935_v49, %v19630_v11  ;;  %v3693_v34 = vrot.slane %v3554_v2, %v19592_v35  ;;  %7270 = vperm.xlu0 %15464, %v7147_v60   ;;  %v7095_v26 = vrot.slane %v23668_v48, %v16649_v42  ;;  %v23670_v14 = vld [vmem:[#allocation198_spill] sm:$0xff]  ;;  %v23675_v58 = vld [vmem:[#allocation116_spill] sm:$0xff] }
 0x322   :  { %23666 = vst [vmem:[#allocation83_spill] sm:$0xff] %v20134_v17  ;;  %v20149_v45 = vcombine.low %v9668_v37, %v9675_v63  ;;  %v3619_v0 = vrot.slane %v19792_v56, %v19601_v9  ;;  %v3689_v20 = vsel %vm1756_vm5, %v3688_v50, %v3684_v38  ;;  %v7062_v55 = vcombine.low %v7054_v22, %v7061_v16  ;;  %v3560_v22 = vpop.permute.xlu1 %3559 }
 0x323   :  { %v3694_v43 = vsel %vm1763_vm6, %v3693_v34, %v3689_v20  ;;  %v7181_v52 = vcombine.low %v7173_v29, %v7180_v1  ;;  %v8510_v49 = vrot.slane %v23670_v14, %v16649_v42  ;;  %v8517_v12 = vrot.slane %v23671_v8, %v16649_v42  ;;  %v20166_v16 = vpop.permute.xlu0 %3580  ;;  %v23678_v14 = vld [vmem:[#allocation33_spill] sm:$0xff] }
 0x324   :  { %23669 = vst [vmem:[#allocation236_spill] sm:$0xff] %v20149_v45  ;;  %v9752_v60 = vrot.slane %v23672_v53, %v23570_v5  ;;  %v20161_v37 = vcombine.low %v9682_v41, %v9689_v46  ;;  %v3620_v63 = vsel %vm1770_vm7, %v3619_v0, %v3615_v51  ;;  %v3698_v56 = vrot.slane %v20063_v57, %v19601_v9  ;;  %v23674_v57 = vld [vmem:[#allocation200_spill] sm:$0xff]  ;;  %v23679_v8 = vld [vmem:[#allocation225_spill] sm:$0xff] }
 0x325   :  { %7255 = vperm.xlu1 %15465, %v7062_v55   ;;  %v3625_v38 = vsel %vm1777_vm8, %v3624_v15, %v3620_v63  ;;  %v3634_v62 = vrot.slane %v19967_v36, %v19672_v59  ;;  %v3703_v29 = vrot.slane %v3560_v22, %v19630_v11  ;;  %7276 = vperm.xlu0 %15464, %v7181_v52   ;;  %v23676_v36 = vld [vmem:[#allocation138_spill] sm:$0xff]  ;;  %v23677_v15 = vld [vmem:[#allocation136_spill] sm:$0xff]  ;;  %v23681_v22 = vld [vmem:[#allocation199_spill] sm:$0xff] }
 0x326   :  { %23673 = vst [vmem:[#allocation166_spill] sm:$0xff] %v20161_v37  ;;  %v7096_v61 = vcombine.low %v7088_v4, %v7095_v26  ;;  %v3629_v41 = vrot.slane %v19841_v23, %v19583_v31  ;;  %v3699_v46 = vsel %vm1770_vm7, %v3698_v56, %v3694_v43  ;;  %v7122_v1 = vrot.slane %v23674_v57, %v16649_v42  ;;  %v3566_v0 = vpop.permute.xlu1 %3565 }
 0x327   :  { %v7129_v50 = vrot.slane %v23675_v58, %v16649_v42  ;;  %v3704_v2 = vsel %vm1777_vm8, %v3703_v29, %v3699_v46  ;;  %v8518_v6 = vcombine.low %v8510_v49, %v8517_v12  ;;  %v8561_v51 = vrot.slane %v23676_v36, %v16649_v42  ;;  %v20191_v20 = vpop.permute.xlu0 %5351  ;;  %v23680_v12 = vld [vmem:[#allocation228_spill] sm:$0xff] }
 0x328   :  { %v8568_v4 = vrot.slane %v23677_v15, %v16649_v42  ;;  %v9759_v23 = vrot.slane %v23672_v53, %v16594_v7  ;;  %v9766_v34 = vrot.slane %v23672_v53, %v16597_v30  ;;  %v3630_v48 = vsel %vm1784_vm9, %v3629_v41, %v3625_v38  ;;  %v23683_v41 = vld [vmem:[#allocation209_spill] sm:$0xff]  ;;  %v23685_v15 = vld [vmem:[#allocation19_spill] sm:$0xff] }
 0x329   :  { %v3708_v26 = vrot.slane %v20089_v32, %v19583_v31  ;;  %7261 = vperm.xlu1 %15465, %v7096_v61   ;;  %v3635_v55 = vsel %vm1791_vm10, %v3634_v62, %v3630_v48  ;;  %v3644_v43 = vrot.slane %v19999_v27, %v19675_v47  ;;  %v3713_v52 = vrot.slane %v3566_v0, %v19672_v59  ;;  %v23682_v27 = vld [vmem:[#allocation208_spill] sm:$0xff] }
 0x32a   :  { %9047 = vperm.xlu0 %15464, %v8518_v6   ;;  %v7156_v49 = vrot.slane %v23678_v14, %v16649_v42  ;;  %v3639_v63 = vrot.slane %v23680_v12, %v23679_v8  ;;  %v7130_v56 = vcombine.low %v7122_v1, %v7129_v50  ;;  %v7163_v38 = vrot.slane %v23681_v22, %v16649_v42  ;;  %v3572_v50 = vpop.permute.xlu1 %3571  ;;  %v23684_v6 = vld [vmem:[#allocation134_spill] sm:$0xff] }
 0x32b   :  { %v3709_v32 = vsel %vm1784_vm9, %v3708_v26, %v3704_v2  ;;  %v8569_v29 = vcombine.low %v8561_v51, %v8568_v4  ;;  %v8595_v61 = vrot.slane %v23682_v27, %v16649_v42  ;;  %v8602_v46 = vrot.slane %v23683_v41, %v16649_v42  ;;  %v20214_v2 = vpop.permute.xlu0 %5360  ;;  %v23686_v26 = vld [vmem:[#allocation126_spill] sm:$0xff] }
 0x32c   :  { %v3714_v62 = vsel %vm1791_vm10, %v3713_v52, %v3709_v32  ;;  %v9773_v57 = vrot.slane %v23672_v53, %v16600_v18  ;;  %v3640_v58 = vsel %vm1798_vm11, %v3639_v63, %v3635_v55  ;;  %v3718_v1 = vrot.slane %v20116_v28, %v23679_v8  ;;  %v23687_v28 = vld [vmem:[#allocation37_spill] sm:$0xff]  ;;  %v23688_v52 = vld [vmem:[#allocation159_spill] sm:$0xff]  ;;  %v23689_v14 = vld [vmem:[#allocation154_spill] sm:$0xff] }
 0x32d   :  { %7267 = vperm.xlu1 %15465, %v7130_v56   ;;  %v8527_v36 = vrot.slane %v23684_v6, %v16649_v42  ;;  %v3645_v51 = vsel %vm1805_vm12, %v3644_v43, %v3640_v58  ;;  %v3654_v4 = vrot.slane %v20031_v39, %v23685_v15  ;;  %v3723_v48 = vrot.slane %v3572_v50, %v19675_v47  ;;  %v23690_v39 = vld [vmem:[#allocation42_spill] sm:$0xff] }
 0x32e   :  { %9056 = vperm.xlu0 %15464, %v8569_v29   ;;  %v8534_v0 = vrot.slane %v23686_v26, %v16649_v42  ;;  %v9724_v55 = vrot.slane %v23687_v28, %v23570_v5  ;;  %v3649_v12 = vrot.slane %v23689_v14, %v23688_v52  ;;  %v3719_v63 = vsel %vm1798_vm11, %v3718_v1, %v3714_v62  ;;  %v23691_v29 = vld [vmem:[#allocation121_spill] sm:$0xff]  ;;  %v23692_v6 = vld [vmem:[#allocation34_spill] sm:$0xff]  ;;  %v23693_v26 = vld [vmem:[#allocation147_spill] sm:$0xff] }
 0x32f   :  { %v7164_v32 = vcombine.low %v7156_v49, %v7163_v38  ;;  %v3724_v43 = vsel %vm1805_vm12, %v3723_v48, %v3719_v63  ;;  %v8603_v56 = vcombine.low %v8595_v61, %v8602_v46  ;;  %v8629_v22 = vrot.slane %v23690_v39, %v16649_v42  ;;  %v3578_v38 = vpop.permute.xlu1 %3577  ;;  %v20241_v62 = vpop.permute.xlu0 %5366  ;;  %v23694_v14 = vld [vmem:[#allocation132_spill] sm:$0xff]  ;;  %v23702_v53 = vld [vmem:[#allocation150_spill] sm:$0xff] }
 0x330   :  { %v8636_v27 = vrot.slane %v23691_v29, %v16649_v42  ;;  %v9731_v41 = vrot.slane %v23687_v28, %v16594_v7  ;;  %v9738_v58 = vrot.slane %v23687_v28, %v16597_v30  ;;  %v3650_v50 = vsel %vm1812_vm13, %v3649_v12, %v3645_v51  ;;  %v23695_v12 = vld [vmem:[#allocation133_spill] sm:$0xff]  ;;  %v23759_v8 = vld [vmem:[#allocation14_spill] sm:$0xff] }
 0x331   :  { %v3728_v49 = vrot.slane %v20139_v33, %v23688_v52  ;;  %7273 = vperm.xlu1 %15465, %v7164_v32   ;;  %v3655_v61 = vsel %vm1819_vm14, %v3654_v4, %v3650_v50  ;;  %v3733_v46 = vrot.slane %v3578_v38, %v23685_v15  ;;  %v8535_v1 = vcombine.low %v8527_v36, %v8534_v0  ;;  %v23697_v0 = vld [vmem:[#allocation210_spill] sm:$0xff] }
 0x332   :  { %9062 = vperm.xlu0 %15464, %v8603_v56   ;;  %v8544_v48 = vrot.slane %v23692_v6, %v16649_v42  ;;  %v3659_v63 = vrot.slane %v23694_v14, %v23693_v26  ;;  %v3738_v51 = vrot.slane %v20166_v16, %v23693_v26  ;;  %v8551_v32 = vrot.slane %v23695_v12, %v16649_v42  ;;  %v23696_v56 = vld [vmem:[#allocation153_spill] sm:$0xff]  ;;  %v23704_v12 = vld [vmem:[#allocation211_spill] sm:$0xff]  ;;  %v23760_v47 = vld [vmem:[#allocation174_spill] sm:$0xff] }
 0x333   :  { %v3729_v33 = vsel %vm1812_vm13, %v3728_v49, %v3724_v43  ;;  %v8637_v39 = vcombine.low %v8629_v22, %v8636_v27  ;;  %v8663_v36 = vrot.slane %v23696_v56, %v16649_v42  ;;  %v8670_v29 = vrot.slane %v23697_v0, %v16649_v42  ;;  %v20268_v38 = vpop.permute.xlu1 %5354  ;;  %v20270_v22 = vpop.permute.xlu0 %5372  ;;  %v23701_v6 = vld [vmem:[#allocation137_spill] sm:$0xff] }
 0x334   :  { %v3734_v4 = vsel %vm1819_vm14, %v3733_v46, %v3729_v33  ;;  %v20262_v50 = vcombine.low %v9752_v60, %v9759_v23  ;;  %v9745_v16 = vrot.slane %v23687_v28, %v16600_v18  ;;  %v3660_v43 = vsel %vm22718_vm15, %v3659_v63, %v3655_v61  ;;  %v23700_v60 = vld [vmem:[#allocation125_spill] sm:$0xff] }
 0x335   :  { %v3739_v49 = vsel %vm22718_vm15, %v3738_v51, %v3734_v4  ;;  %9050 = vperm.xlu1 %15465, %v8535_v1   ;;  %v20275_v27 = vcombine.low %v9766_v34, %v9773_v57  ;;  %v9808_v23 = vrot.slane %v23700_v60, %v23570_v5  ;;  %v9815_v28 = vrot.slane %v23700_v60, %v16594_v7  ;;  %v23703_v51 = vld [vmem:[#allocation6_spill] sm:$0xff] }
 0x336   :  { %23698 = vst [vmem:[#allocation80_spill] sm:$0xff] %v20262_v50  ;;  %v3740_v61 = vsel %vm22717_vm0, %v3739_v49, %v3660_v43  ;;  %9068 = vperm.xlu0 %15464, %v8637_v39   ;;  %v9822_v46 = vrot.slane %v23700_v60, %v16597_v30  ;;  %v8552_v1 = vcombine.low %v8544_v48, %v8551_v32  ;;  %v23705_v39 = vld [vmem:[#allocation207_spill] sm:$0xff] }
 0x337   :  { %23699 = vst [vmem:[#allocation224_spill] sm:$0xff] %v20275_v27  ;;  %15307 = vst.sshfl [vmem:[#allocation3] sm:$0x3 pattern:$0x76325410] %v3740_v61  ;;  %v8578_v14 = vrot.slane %v23701_v6, %v16649_v42  ;;  %v8585_v34 = vrot.slane %v23702_v53, %v16649_v42  ;;  %v9829_v57 = vrot.slane %v23700_v60, %v16600_v18  ;;  %v20302_v43 = vpop.permute.xlu1 %5357  ;;  %v23709_v60 = vld [vmem:[#allocation39_spill] sm:$0xff] }
 0x338   :  { %v8671_v63 = vcombine.low %v8663_v36, %v8670_v29  ;;  %v8697_v33 = vrot.slane %v23703_v51, %v16649_v42  ;;  %v8704_v4 = vrot.slane %v23704_v12, %v16649_v42  ;;  %v9780_v56 = vrot.slane %v23705_v39, %v23570_v5  ;;  %v20304_v36 = vpop.permute.xlu0 %5378  ;;  %v23710_v12 = vld [vmem:[#allocation206_spill] sm:$0xff]  ;;  %v23733_v50 = vld [vmem:[#allocation51_spill] sm:$0xff] }
 0x339   :  { %v9787_v48 = vrot.slane %v23705_v39, %v16594_v7  ;;  %v9794_v32 = vrot.slane %v23705_v39, %v16597_v30  ;;  %v9801_v0 = vrot.slane %v23705_v39, %v16600_v18  ;;  %9053 = vperm.xlu1 %15465, %v8552_v1   ;;  %23706 = vst [vmem:[#allocation240_spill] sm:$0xff] %v20304_v36  ;;  %v23711_v39 = vld [vmem:[#allocation129_spill] sm:$0xff] }
 0x33a   :  { %v20306_v29 = vcombine.low %v9724_v55, %v9731_v41  ;;  %v20308_v49 = vcombine.low %v9738_v58, %v9745_v16  ;;  %v9864_v61 = vrot.slane %v23709_v60, %v23570_v5  ;;  %v9871_v6 = vrot.slane %v23709_v60, %v16594_v7  ;;  %9074 = vperm.xlu0 %15464, %v8671_v63   ;;  %v23712_v16 = vld [vmem:[#allocation7_spill] sm:$0xff] }
 0x33b   :  { %v9878_v53 = vrot.slane %v23709_v60, %v16597_v30  ;;  %v8586_v51 = vcombine.low %v8578_v14, %v8585_v34  ;;  %v8612_v1 = vrot.slane %v23710_v12, %v16649_v42  ;;  %v8619_v55 = vrot.slane %v23711_v39, %v16649_v42  ;;  %v20334_v12 = vpop.permute.xlu1 %5363 }
 0x33c   :  { %23707 = vst [vmem:[#allocation86_spill] sm:$0xff] %v20306_v29  ;;  %23708 = vst [vmem:[#allocation235_spill] sm:$0xff] %v20308_v49  ;;  %v9885_v41 = vrot.slane %v23709_v60, %v16600_v18  ;;  %v8705_v58 = vcombine.low %v8697_v33, %v8704_v4  ;;  %v8731_v49 = vrot.slane %v23712_v16, %v16649_v42  ;;  %v23713_v29 = vld [vmem:[#allocation158_spill] sm:$0xff]  ;;  %v20336_v39 = vpop.permute.xlu0 %5384  ;;  %v23719_v33 = vld [vmem:[#allocation40_spill] sm:$0xff] }
 0x33d   :  { %v8738_v63 = vrot.slane %v23713_v29, %v16649_v42  ;;  %v20326_v37 = vcombine.low %v9808_v23, %v9815_v28  ;;  %v20328_v45 = vcombine.low %v9822_v46, %v9829_v57  ;;  %v20330_v14 = vcombine.low %v9780_v56, %v9787_v48  ;;  %9059 = vperm.xlu1 %15465, %v8586_v51   ;;  %v23721_v56 = vld [vmem:[#allocation41_spill] sm:$0xff]  ;;  %v23724_v16 = vld [vmem:[#allocation135_spill] sm:$0xff] }
 0x33e   :  { %v20332_v34 = vcombine.low %v9794_v32, %v9801_v0  ;;  %23718 = vst [vmem:[#allocation92_spill] sm:$0xff] %v20336_v39  ;;  %v9836_v4 = vrot.slane %v23719_v33, %v23570_v5  ;;  %v9843_v60 = vrot.slane %v23719_v33, %v16594_v7  ;;  %v9850_v23 = vrot.slane %v23719_v33, %v16597_v30  ;;  %v23722_v32 = vld [vmem:[#allocation213_spill] sm:$0xff] }
 0x33f   :  { %23714 = vst [vmem:[#allocation156_spill] sm:$0xff] %v20326_v37  ;;  %23715 = vst [vmem:[#allocation237_spill] sm:$0xff] %v20328_v45  ;;  %v9857_v28 = vrot.slane %v23719_v33, %v16600_v18  ;;  %9080 = vperm.xlu0 %15464, %v8705_v58   ;;  %v20346_v46 = vcombine.low %v9864_v61, %v9871_v6  ;;  %v8620_v57 = vcombine.low %v8612_v1, %v8619_v55  ;;  %v23726_v58 = vld [vmem:[#allocation212_spill] sm:$0xff]  ;;  %v20366_v55 = vpop.permute.xlu1 %5369 }
 0x340   :  { %23716 = vst [vmem:[#allocation241_spill] sm:$0xff] %v20330_v14  ;;  %23717 = vst [vmem:[#allocation242_spill] sm:$0xff] %v20332_v34  ;;  %v8646_v48 = vrot.slane %v23721_v56, %v16649_v42  ;;  %v8653_v0 = vrot.slane %v23722_v32, %v16649_v42  ;;  %v20352_v29 = vcombine.low %v9878_v53, %v9885_v41  ;;  %v23725_v14 = vld [vmem:[#allocation141_spill] sm:$0xff]  ;;  %v23728_v41 = vld [vmem:[#allocation178_spill] sm:$0xff] }
 0x341   :  { %23720 = vst [vmem:[#allocation191_spill] sm:$0xff] %v20346_v46  ;;  %v8739_v51 = vcombine.low %v8731_v49, %v8738_v63  ;;  %v8765_v34 = vrot.slane %v23724_v16, %v16649_v42  ;;  %v8772_v45 = vrot.slane %v23725_v14, %v16649_v42  ;;  %v9920_v61 = vrot.slane %v23726_v58, %v23570_v5  ;;  %v20368_v49 = vpop.permute.xlu0 %5390 }
 0x342   :  { %23723 = vst [vmem:[#allocation238_spill] sm:$0xff] %v20352_v29  ;;  %v9927_v6 = vrot.slane %v23726_v58, %v16594_v7  ;;  %v9934_v1 = vrot.slane %v23726_v58, %v16597_v30  ;;  %v9941_v53 = vrot.slane %v23726_v58, %v16600_v18  ;;  %9065 = vperm.xlu1 %15465, %v8620_v57   ;;  %23727 = vst [vmem:[#allocation239_spill] sm:$0xff] %v20368_v49  ;;  %v23730_v57 = vld [vmem:[#allocation146_spill] sm:$0xff]  ;;  %v23731_v29 = vld [vmem:[#allocation157_spill] sm:$0xff] }
 0x343   :  { %v9892_v63 = vrot.slane %v23728_v41, %v23570_v5  ;;  %v9899_v14 = vrot.slane %v23728_v41, %v16594_v7  ;;  %v9906_v33 = vrot.slane %v23728_v41, %v16597_v30  ;;  %v9913_v56 = vrot.slane %v23728_v41, %v16600_v18  ;;  %9086 = vperm.xlu0 %15464, %v8739_v51   ;;  %v23735_v51 = vld [vmem:[#allocation130_spill] sm:$0xff] }
 0x344   :  { %v20378_v32 = vcombine.low %v9836_v4, %v9843_v60  ;;  %v8654_v16 = vcombine.low %v8646_v48, %v8653_v0  ;;  %v8680_v58 = vrot.slane %v23730_v57, %v16649_v42  ;;  %v8687_v46 = vrot.slane %v23731_v29, %v16649_v42  ;;  %v23741_v29 = vld [vmem:[#allocation43_spill] sm:$0xff] }
 0x345   :  { %v20384_v37 = vcombine.low %v9850_v23, %v9857_v28  ;;  %v8773_v27 = vcombine.low %v8765_v34, %v8772_v45  ;;  %v8799_v17 = vrot.slane %v23733_v50, %v16649_v42  ;;  %v8806_v26 = vrot.slane %v23734_v25, %v16649_v42  ;;  %v20398_v28 = vpop.permute.xlu1 %5375  ;;  %v20400_v45 = vpop.permute.xlu0 %5396 }
 0x346   :  { %23729 = vst [vmem:[#allocation245_spill] sm:$0xff] %v20378_v32  ;;  %v9976_v4 = vrot.slane %v23735_v51, %v23570_v5  ;;  %v9983_v60 = vrot.slane %v23735_v51, %v16594_v7  ;;  %v9990_v48 = vrot.slane %v23735_v51, %v16597_v30  ;;  %v9997_v23 = vrot.slane %v23735_v51, %v16600_v18  ;;  %v23742_v51 = vld [vmem:[#allocation214_spill] sm:$0xff] }
 0x347   :  { %23732 = vst [vmem:[#allocation246_spill] sm:$0xff] %v20384_v37  ;;  %9071 = vperm.xlu1 %15465, %v8654_v16   ;;  %23736 = vst [vmem:[#allocation192_spill] sm:$0xff] %v20400_v45  ;;  %v20402_v50 = vcombine.low %v9920_v61, %v9927_v6  ;;  %v20404_v25 = vcombine.low %v9934_v1, %v9941_v53  ;;  %v20406_v34 = vcombine.low %v9892_v63, %v9899_v14  ;;  %v23743_v16 = vld [vmem:[#allocation11_spill] sm:$0xff]  ;;  %v23744_v1 = vld [vmem:[#allocation216_spill] sm:$0xff] }
 0x348   :  { %v20408_v0 = vcombine.low %v9906_v33, %v9913_v56  ;;  %9092 = vperm.xlu0 %15464, %v8773_v27   ;;  %v9948_v41 = vrot.slane %v23741_v29, %v23570_v5  ;;  %v8688_v57 = vcombine.low %v8680_v58, %v8687_v46  ;;  %v8714_v37 = vrot.slane %v23742_v51, %v16649_v42  ;;  %v23745_v63 = vld [vmem:[#allocation217_spill] sm:$0xff] }
 0x349   :  { %23737 = vst [vmem:[#allocation25_spill] sm:$0xff] %v20402_v50  ;;  %23738 = vst [vmem:[#allocation87_spill] sm:$0xff] %v20404_v25  ;;  %v8721_v32 = vrot.slane %v23743_v16, %v16649_v42  ;;  %v9955_v61 = vrot.slane %v23741_v29, %v16594_v7  ;;  %v8807_v6 = vcombine.low %v8799_v17, %v8806_v26  ;;  %v20430_v58 = vpop.permute.xlu1 %5381  ;;  %v20432_v17 = vpop.permute.xlu0 %5402  ;;  %v23748_v26 = vld [vmem:[#allocation227_spill] sm:$0xff]  ;;  %v23754_v50 = vld [vmem:[#allocation60_spill] sm:$0xff] }
 0x34a   :  { %23739 = vst [vmem:[#allocation88_spill] sm:$0xff] %v20406_v34  ;;  %23740 = vst [vmem:[#allocation18_spill] sm:$0xff] %v20408_v0  ;;  %v8833_v53 = vrot.slane %v23744_v1, %v16649_v42  ;;  %v8840_v27 = vrot.slane %v23745_v63, %v16649_v42  ;;  %v20422_v14 = vcombine.low %v9976_v4, %v9983_v60  ;;  %v23751_v63 = vld [vmem:[#allocation177_spill] sm:$0xff]  ;;  %v23752_v34 = vld [vmem:[#allocation168_spill] sm:$0xff] }
 0x34b   :  { %v20424_v33 = vcombine.low %v9990_v48, %v9997_v23  ;;  %v9962_v46 = vrot.slane %v23741_v29, %v16597_v30  ;;  %v9969_v56 = vrot.slane %v23741_v29, %v16600_v18  ;;  %9077 = vperm.xlu1 %15465, %v8688_v57   ;;  %v11336_v51 = vrot.slane %v23748_v26, %v23570_v5  ;;  %v23749_v23 = vld [vmem:[#allocation108_spill] sm:$0xff]  ;;  %v23750_v57 = vld [vmem:[#allocation143_spill] sm:$0xff] }
 0x34c   :  { %23746 = vst [vmem:[#allocation93_spill] sm:$0xff] %v20422_v14  ;;  %v11343_v4 = vrot.slane %v23748_v26, %v16594_v7  ;;  %v11350_v60 = vrot.slane %v23748_v26, %v16597_v30  ;;  %v11357_v48 = vrot.slane %v23748_v26, %v16600_v18  ;;  %9098 = vperm.xlu0 %15464, %v8807_v6   ;;  %v23753_v26 = vld [vmem:[#allocation50_spill] sm:$0xff] }
 0x34d   :  { %23747 = vst [vmem:[#allocation26_spill] sm:$0xff] %v20424_v33  ;;  %v11308_v29 = vrot.slane %v23749_v23, %v23570_v5  ;;  %v8722_v16 = vcombine.low %v8714_v37, %v8721_v32  ;;  %v8748_v1 = vrot.slane %v23750_v57, %v16649_v42  ;;  %v8755_v33 = vrot.slane %v23751_v63, %v16649_v42  ;;  %v20462_v63 = vpop.permute.xlu1 %5387 }
 0x34e   :  { %v11315_v14 = vrot.slane %v23749_v23, %v16594_v7  ;;  %v8841_v0 = vcombine.low %v8833_v53, %v8840_v27  ;;  %v8867_v25 = vrot.slane %v23752_v34, %v16649_v42  ;;  %v8874_v6 = vrot.slane %v23753_v26, %v16649_v42  ;;  %23755 = vst [vmem:[#allocation243_spill] sm:$0xff] %v20462_v63  ;;  %v20464_v53 = vpop.permute.xlu0 %5408  ;;  %v23756_v26 = vld [vmem:[#allocation5_spill] sm:$0xff] }
 0x34f   :  { %v11364_v45 = vrot.slane %v23754_v50, %v23570_v5  ;;  %v11371_v37 = vrot.slane %v23754_v50, %v16594_v7  ;;  %v11322_v32 = vrot.slane %v23749_v23, %v16597_v30  ;;  %v11329_v57 = vrot.slane %v23749_v23, %v16600_v18  ;;  %9083 = vperm.xlu1 %15465, %v8722_v16   ;;  %v23757_v16 = vld [vmem:[#allocation163_spill] sm:$0xff] }
 0x350   :  { %v11378_v34 = vrot.slane %v23754_v50, %v16597_v30  ;;  %v11385_v27 = vrot.slane %v23754_v50, %v16600_v18  ;;  %v11756_v13 = vrot.slane %v23756_v26, %v23570_v5  ;;  %v11763_v49 = vrot.slane %v23756_v26, %v16594_v7  ;;  %9104 = vperm.xlu0 %15464, %v8841_v0  }
 0x351   :  { %v11770_v23 = vrot.slane %v23756_v26, %v16597_v30  ;;  %v8756_v52 = vcombine.low %v8748_v1, %v8755_v33  ;;  %v8782_v15 = vrot.slane %v23757_v16, %v16649_v42  ;;  %v8789_v44 = vrot.slane %v23758_v3, %v16649_v42  ;;  %v20494_v16 = vpop.permute.xlu1 %5393 }
 0x352   :  { %v11777_v50 = vrot.slane %v23756_v26, %v16600_v18  ;;  %v8875_v39 = vcombine.low %v8867_v25, %v8874_v6  ;;  %v8901_v63 = vrot.slane %v23759_v8, %v16649_v42  ;;  %v8908_v0 = vrot.slane %v23760_v47, %v16649_v42  ;;  %v20496_v3 = vpop.permute.xlu0 %5414  ;;  %v23770_v26 = vld [vmem:[#allocation52_spill] sm:$0xff] }
 0x353   :  { %v20486_v36 = vcombine.low %v9948_v41, %v9955_v61  ;;  %v20488_v31 = vcombine.low %v9962_v46, %v9969_v56  ;;  %v20490_v33 = vcombine.low %v11336_v51, %v11343_v4  ;;  %v20492_v1 = vcombine.low %v11350_v60, %v11357_v48  ;;  %9089 = vperm.xlu1 %15465, %v8756_v52   ;;  %v23763_v46 = vld [vmem:[#allocation53_spill] sm:$0xff]  ;;  %v23766_v60 = vld [vmem:[#allocation15_spill] sm:$0xff] }
 0x354   :  { %v20498_v25 = vcombine.low %v11364_v45, %v11371_v37  ;;  %v20500_v6 = vcombine.low %v11378_v34, %v11385_v27  ;;  %v20502_v8 = vcombine.low %v11308_v29, %v11315_v14  ;;  %v20504_v47 = vcombine.low %v11322_v32, %v11329_v57  ;;  %9110 = vperm.xlu0 %15464, %v8875_v39   ;;  %v23764_v51 = vld [vmem:[#allocation221_spill] sm:$0xff]  ;;  %v23767_v14 = vld [vmem:[#allocation16_spill] sm:$0xff]  ;;  %v23768_v39 = vld [vmem:[#allocation62_spill] sm:$0xff] }
 0x355   :  { %v20506_v41 = vcombine.low %v11756_v13, %v11763_v49  ;;  %v8790_v61 = vcombine.low %v8782_v15, %v8789_v44  ;;  %v8816_v56 = vrot.slane %v23763_v46, %v16649_v42  ;;  %v8823_v52 = vrot.slane %v23764_v51, %v16649_v42  ;;  %v5400_v37 = vpop.permute.xlu1 %5399 }
 0x356   :  { %23761 = vst [vmem:[#allocation244_spill] sm:$0xff] %v20498_v25  ;;  %23762 = vst [vmem:[#allocation95_spill] sm:$0xff] %v20500_v6  ;;  %v20512_v4 = vcombine.low %v11770_v23, %v11777_v50  ;;  %v8909_v45 = vcombine.low %v8901_v63, %v8908_v0  ;;  %v8935_v48 = vrot.slane %v23766_v60, %v16649_v42  ;;  %v20526_v32 = vpop.permute.xlu0 %5420  ;;  %v23769_v63 = vld [vmem:[#allocation63_spill] sm:$0xff] }
 0x357   :  { %v8942_v29 = vrot.slane %v23767_v14, %v16649_v42  ;;  %v11392_v13 = vrot.slane %v23768_v39, %v23570_v5  ;;  %v11399_v44 = vrot.slane %v23768_v39, %v16594_v7  ;;  %v11406_v15 = vrot.slane %v23768_v39, %v16597_v30  ;;  %9095 = vperm.xlu1 %15465, %v8790_v61   ;;  %v23771_v61 = vld [vmem:[#allocation152_spill] sm:$0xff]  ;;  %v23772_v14 = vld [vmem:[#allocation58_spill] sm:$0xff] }
 0x358   :  { %23765 = vst [vmem:[#allocation250_spill] sm:$0xff] %v20512_v4  ;;  %v5453_v49 = vrot.slane %v20268_v38, %v19541_v24  ;;  %v11413_v57 = vrot.slane %v23768_v39, %v16600_v18  ;;  %v11784_v34 = vrot.slane %v23769_v63, %v23570_v5  ;;  %v5458_v27 = vrot.slane %v20302_v43, %v19544_v54 }
 0x359   :  { %9116 = vperm.xlu0 %15464, %v8909_v45   ;;  %v8850_v23 = vrot.slane %v23770_v26, %v16649_v42  ;;  %v5449_v38 = vrot.slane %v20191_v20, %v19551_v19  ;;  %v5528_v50 = vrot.slane %v5400_v37, %v19551_v19  ;;  %v8824_v0 = vcombine.low %v8816_v56, %v8823_v52  ;;  %v23773_v45 = vld [vmem:[#allocation226_spill] sm:$0xff]  ;;  %v5406_v52 = vpop.permute.xlu1 %5405 }
 0x35a   :  { %v8857_v46 = vrot.slane %v23771_v61, %v16649_v42  ;;  %v11791_v51 = vrot.slane %v23769_v63, %v16594_v7  ;;  %v8943_v60 = vcombine.low %v8935_v48, %v8942_v29  ;;  %v8969_v43 = vrot.slane %v23772_v14, %v16649_v42  ;;  %v20552_v37 = vpop.permute.xlu0 %5426  ;;  %v23774_v48 = vld [vmem:[#allocation56_spill] sm:$0xff] }
 0x35b   :  { %v8976_v39 = vrot.slane %v23773_v45, %v16649_v42  ;;  %v11798_v26 = vrot.slane %v23769_v63, %v16597_v30  ;;  %v5454_v20 = vsel %vm1728_vm1, %v5453_v49, %v5449_v38  ;;  %v5532_v56 = vrot.slane %v20432_v17, %v19541_v24  ;;  %9101 = vperm.xlu1 %15465, %v8824_v0   ;;  %v23775_v49 = vld [vmem:[#allocation107_spill] sm:$0xff] }
 0x35c   :  { %v8884_v29 = vrot.slane %v23774_v48, %v16649_v42  ;;  %v5459_v61 = vsel %vm1735_vm2, %v5458_v27, %v5454_v20  ;;  %v5468_v14 = vrot.slane %v20334_v12, %v19564_v40  ;;  %v5537_v45 = vrot.slane %v5406_v52, %v19544_v54  ;;  %v23776_v12 = vld [vmem:[#allocation185_spill] sm:$0xff] }
 0x35d   :  { %9122 = vperm.xlu0 %15464, %v8943_v60   ;;  %v8891_v38 = vrot.slane %v23775_v49, %v16649_v42  ;;  %v11805_v17 = vrot.slane %v23769_v63, %v16600_v18  ;;  %v5463_v0 = vrot.slane %v20214_v2, %v19547_v21  ;;  %v5533_v6 = vsel %vm1728_vm1, %v5532_v56, %v5528_v50  ;;  %v23777_v60 = vld [vmem:[#allocation229_spill] sm:$0xff]  ;;  %v5412_v50 = vpop.permute.xlu1 %5411 }
 0x35e   :  { %v8858_v48 = vcombine.low %v8850_v23, %v8857_v46  ;;  %v5538_v27 = vsel %vm1735_vm2, %v5537_v45, %v5533_v6  ;;  %v8977_v20 = vcombine.low %v8969_v43, %v8976_v39  ;;  %v9003_v25 = vrot.slane %v23776_v12, %v16649_v42  ;;  %v20579_v23 = vpop.permute.xlu0 %5432  ;;  %v23781_v39 = vld [vmem:[#allocation223_spill] sm:$0xff]  ;;  %v23784_v12 = vld [vmem:[#allocation64_spill] sm:$0xff] }
 0x35f   :  { %v9010_v52 = vrot.slane %v23777_v60, %v16649_v42  ;;  %v20572_v4 = vcombine.low %v11392_v13, %v11399_v44  ;;  %v20574_v49 = vcombine.low %v11406_v15, %v11413_v57  ;;  %v5464_v63 = vsel %vm1742_vm3, %v5463_v0, %v5459_v61  ;;  %v23783_v0 = vld [vmem:[#allocation112_spill] sm:$0xff] }
 0x360   :  { %v5542_v2 = vrot.slane %v20464_v53, %v19547_v21  ;;  %9107 = vperm.xlu1 %15465, %v8858_v48   ;;  %v5469_v6 = vsel %vm1749_vm4, %v5468_v14, %v5464_v63  ;;  %v5478_v46 = vrot.slane %v20366_v55, %v19592_v35  ;;  %v5547_v43 = vrot.slane %v5412_v50, %v19564_v40  ;;  %v23780_v53 = vld [vmem:[#allocation222_spill] sm:$0xff] }
 0x361   :  { %23778 = vst [vmem:[#allocation27_spill] sm:$0xff] %v20572_v4  ;;  %23779 = vst [vmem:[#allocation109_spill] sm:$0xff] %v20574_v49  ;;  %9128 = vperm.xlu0 %15464, %v8977_v20   ;;  %v8892_v13 = vcombine.low %v8884_v29, %v8891_v38  ;;  %v5473_v44 = vrot.slane %v20241_v62, %v19580_v10  ;;  %v8918_v57 = vrot.slane %v23780_v53, %v16649_v42  ;;  %v23782_v55 = vld [vmem:[#allocation22_spill] sm:$0xff]  ;;  %v23788_v53 = vld [vmem:[#allocation233_spill] sm:$0xff] }
 0x362   :  { %v5543_v15 = vsel %vm1742_vm3, %v5542_v2, %v5538_v27  ;;  %v8925_v56 = vrot.slane %v23781_v39, %v16649_v42  ;;  %v9011_v14 = vcombine.low %v9003_v25, %v9010_v52  ;;  %v9037_v45 = vrot.slane %v23782_v55, %v16649_v42  ;;  %v5418_v27 = vpop.permute.xlu1 %5417  ;;  %v20602_v20 = vpop.permute.xlu0 %5438 }
 0x363   :  { %v5548_v61 = vsel %vm1749_vm4, %v5547_v43, %v5543_v15  ;;  %v9044_v29 = vrot.slane %v23783_v0, %v16649_v42  ;;  %v20597_v38 = vcombine.low %v11784_v34, %v11791_v51  ;;  %v5474_v62 = vsel %vm1756_vm5, %v5473_v44, %v5469_v6  ;;  %v23785_v51 = vld [vmem:[#allocation128_spill] sm:$0xff]  ;;  %v23787_v44 = vld [vmem:[#allocation231_spill] sm:$0xff] }
 0x364   :  { %v5552_v48 = vrot.slane %v20496_v3, %v19580_v10  ;;  %9113 = vperm.xlu1 %15465, %v8892_v13   ;;  %v8952_v25 = vrot.slane %v23784_v12, %v16649_v42  ;;  %v5479_v60 = vsel %vm1763_vm6, %v5478_v46, %v5474_v62  ;;  %v5488_v52 = vrot.slane %v20398_v28, %v19630_v11  ;;  %v23786_v13 = vld [vmem:[#allocation165_spill] sm:$0xff]  ;;  %v23789_v0 = vld [vmem:[#allocation59_spill] sm:$0xff]  ;;  %v23792_v12 = vld [vmem:[#allocation230_spill] sm:$0xff] }
 0x365   :  { %v5557_v34 = vrot.slane %v5418_v27, %v19592_v35  ;;  %9134 = vperm.xlu0 %15464, %v9011_v14   ;;  %v8959_v63 = vrot.slane %v23785_v51, %v16649_v42  ;;  %v20612_v2 = vcombine.low %v11798_v26, %v11805_v17  ;;  %v5483_v3 = vrot.slane %v20270_v22, %v19601_v9 }
 0x366   :  { %v5553_v50 = vsel %vm1756_vm5, %v5552_v48, %v5548_v61  ;;  %v8926_v6 = vcombine.low %v8918_v57, %v8925_v56  ;;  %v9045_v46 = vcombine.low %v9037_v45, %v9044_v29  ;;  %v10342_v28 = vrot.slane %v23786_v13, %v16649_v42  ;;  %v5424_v57 = vpop.permute.xlu1 %5423  ;;  %v20629_v56 = vpop.permute.xlu0 %5444  ;;  %v23790_v29 = vld [vmem:[#allocation240_spill] sm:$0xff] }
 0x367   :  { %v5558_v43 = vsel %vm1763_vm6, %v5557_v34, %v5553_v50  ;;  %v10349_v15 = vrot.slane %v23787_v44, %v16649_v42  ;;  %v5484_v22 = vsel %vm1770_vm7, %v5483_v3, %v5479_v60  ;;  %v5562_v17 = vrot.slane %v20526_v32, %v19601_v9  ;;  %v23791_v32 = vld [vmem:[#allocation65_spill] sm:$0xff]  ;;  %v23794_v3 = vld [vmem:[#allocation70_spill] sm:$0xff]  ;;  %v23795_v13 = vld [vmem:[#allocation164_spill] sm:$0xff] }
 0x368   :  { %9119 = vperm.xlu1 %15465, %v8926_v6   ;;  %v5489_v61 = vsel %vm1777_vm8, %v5488_v52, %v5484_v22  ;;  %v5498_v14 = vrot.slane %v20430_v58, %v19672_v59  ;;  %v5567_v55 = vrot.slane %v5424_v57, %v19630_v11  ;;  %v8960_v45 = vcombine.low %v8952_v25, %v8959_v63  ;;  %v23793_v58 = vld [vmem:[#allocation67_spill] sm:$0xff] }
 0x369   :  { %9140 = vperm.xlu0 %15464, %v9045_v46   ;;  %v5493_v62 = vrot.slane %v23790_v29, %v23789_v0  ;;  %v5563_v48 = vsel %vm1770_vm7, %v5562_v17, %v5558_v43  ;;  %v8986_v27 = vrot.slane %v23791_v32, %v16649_v42  ;;  %v8993_v60 = vrot.slane %v23792_v12, %v16649_v42  ;;  %v23797_v22 = vld [vmem:[#allocation243_spill] sm:$0xff]  ;;  %v23800_v29 = vld [vmem:[#allocation92_spill] sm:$0xff] }
 0x36a   :  { %v5568_v52 = vsel %vm1777_vm8, %v5567_v55, %v5563_v48  ;;  %v10350_v34 = vcombine.low %v10342_v28, %v10349_v15  ;;  %v10393_v51 = vrot.slane %v23793_v58, %v16649_v42  ;;  %v10400_v25 = vrot.slane %v23794_v3, %v16649_v42  ;;  %v5430_v43 = vpop.permute.xlu1 %5429  ;;  %v20652_v46 = vpop.permute.xlu0 %7183  ;;  %v23796_v15 = vld [vmem:[#allocation180_spill] sm:$0xff]  ;;  %v23801_v58 = vld [vmem:[#allocation171_spill] sm:$0xff] }
 0x36b   :  { %v11434_v63 = vrot.slane %v23788_v53, %v16597_v30  ;;  %v5494_v50 = vsel %vm1784_vm9, %v5493_v62, %v5489_v61  ;;  %v5572_v6 = vrot.slane %v20552_v37, %v23789_v0  ;;  %v9020_v28 = vrot.slane %v23795_v13, %v16649_v42  ;;  %v23798_v61 = vld [vmem:[#allocation186_spill] sm:$0xff] }
 0x36c   :  { %9125 = vperm.xlu1 %15465, %v8960_v45   ;;  %v5499_v44 = vsel %vm1791_vm10, %v5498_v14, %v5494_v50  ;;  %v5508_v17 = vrot.slane %v23797_v22, %v23796_v15  ;;  %v5577_v57 = vrot.slane %v5430_v43, %v19672_v59  ;;  %v9027_v55 = vrot.slane %v23798_v61, %v16649_v42  ;;  %v23799_v45 = vld [vmem:[#allocation225_spill] sm:$0xff] }
 0x36d   :  { %10879 = vperm.xlu0 %15464, %v10350_v34   ;;  %v11441_v37 = vrot.slane %v23788_v53, %v16600_v18  ;;  %v5503_v62 = vrot.slane %v23800_v29, %v23799_v45  ;;  %v5573_v48 = vsel %vm1784_vm9, %v5572_v6, %v5568_v52  ;;  %v8994_v32 = vcombine.low %v8986_v27, %v8993_v60  ;;  %v23802_v34 = vld [vmem:[#allocation169_spill] sm:$0xff] }
 0x36e   :  { %v5578_v14 = vsel %vm1791_vm10, %v5577_v57, %v5573_v48  ;;  %v10401_v12 = vcombine.low %v10393_v51, %v10400_v25  ;;  %v10427_v3 = vrot.slane %v23801_v58, %v16649_v42  ;;  %v10434_v50 = vrot.slane %v23802_v34, %v16649_v42  ;;  %v23803_v43 = vld [vmem:[#allocation145_spill] sm:$0xff]  ;;  %v5436_v60 = vpop.permute.xlu1 %5435  ;;  %v20679_v52 = vpop.permute.xlu0 %7192  ;;  %v23804_v25 = vld [vmem:[#allocation19_spill] sm:$0xff] }
 0x36f   :  { %v11812_v13 = vrot.slane %v23803_v43, %v23570_v5  ;;  %v11819_v22 = vrot.slane %v23803_v43, %v16594_v7  ;;  %v5504_v61 = vsel %vm1798_vm11, %v5503_v62, %v5499_v44  ;;  %v5582_v27 = vrot.slane %v20579_v23, %v23799_v45  ;;  %v23805_v48 = vld [vmem:[#allocation159_spill] sm:$0xff]  ;;  %v23807_v23 = vld [vmem:[#allocation232_spill] sm:$0xff] }
 0x370   :  { %9131 = vperm.xlu1 %15465, %v8994_v32   ;;  %v5509_v51 = vsel %vm1805_vm12, %v5508_v17, %v5504_v61  ;;  %v5518_v6 = vrot.slane %v20494_v16, %v23804_v25  ;;  %v5587_v57 = vrot.slane %v5436_v60, %v23796_v15  ;;  %v9028_v29 = vcombine.low %v9020_v28, %v9027_v55  ;;  %v23806_v58 = vld [vmem:[#allocation239_spill] sm:$0xff]  ;;  %v23809_v16 = vld [vmem:[#allocation74_spill] sm:$0xff] }
 0x371   :  { %10888 = vperm.xlu0 %15464, %v10401_v12   ;;  %v5513_v34 = vrot.slane %v23806_v58, %v23805_v48  ;;  %v5583_v44 = vsel %vm1798_vm11, %v5582_v27, %v5578_v14  ;;  %v10359_v62 = vrot.slane %v23807_v23, %v16649_v42  ;;  %v23808_v32 = vld [vmem:[#allocation155_spill] sm:$0xff]  ;;  %v10435_v61 = vcombine.low %v10427_v3, %v10434_v50  ;;  %v23810_v12 = vld [vmem:[#allocation12_spill] sm:$0xff] }
 0x372   :  { %v10366_v39 = vrot.slane %v23808_v32, %v16649_v42  ;;  %v5588_v17 = vsel %vm1805_vm12, %v5587_v57, %v5583_v44  ;;  %v10461_v26 = vrot.slane %v23809_v16, %v16649_v42  ;;  %v10468_v28 = vrot.slane %v23810_v12, %v16649_v42  ;;  %v5442_v58 = vpop.permute.xlu1 %5441  ;;  %v20704_v3 = vpop.permute.xlu0 %7198  ;;  %v23811_v44 = vld [vmem:[#allocation170_spill] sm:$0xff]  ;;  %v23812_v32 = vld [vmem:[#allocation69_spill] sm:$0xff]  ;;  %v23813_v16 = vld [vmem:[#allocation147_spill] sm:$0xff] }
 0x373   :  { %v11826_v55 = vrot.slane %v23803_v43, %v16597_v30  ;;  %v11833_v14 = vrot.slane %v23803_v43, %v16600_v18  ;;  %v5514_v27 = vsel %vm1812_vm13, %v5513_v34, %v5509_v51  ;;  %v5592_v60 = vrot.slane %v20602_v20, %v23805_v48  ;;  %v23814_v51 = vld [vmem:[#allocation192_spill] sm:$0xff]  ;;  %v23839_v15 = vld [vmem:[#allocation71_spill] sm:$0xff] }
 0x374   :  { %9137 = vperm.xlu1 %15465, %v9028_v29   ;;  %v5519_v50 = vsel %vm1819_vm14, %v5518_v6, %v5514_v27  ;;  %v5597_v57 = vrot.slane %v5442_v58, %v23804_v25  ;;  %v10376_v23 = vrot.slane %v23811_v44, %v16649_v42  ;;  %v10383_v43 = vrot.slane %v23812_v32, %v16649_v42  ;;  %v23816_v44 = vld [vmem:[#allocation83_spill] sm:$0xff] }
 0x375   :  { %10894 = vperm.xlu0 %15464, %v10435_v61   ;;  %v5523_v34 = vrot.slane %v23814_v51, %v23813_v16  ;;  %v5602_v20 = vrot.slane %v20629_v56, %v23813_v16  ;;  %v5593_v29 = vsel %vm1812_vm13, %v5592_v60, %v5588_v17  ;;  %v10367_v12 = vcombine.low %v10359_v62, %v10366_v39  ;;  %v23815_v61 = vld [vmem:[#allocation176_spill] sm:$0xff] }
 0x376   :  { %v5598_v6 = vsel %vm1819_vm14, %v5597_v57, %v5593_v29  ;;  %v10469_v27 = vcombine.low %v10461_v26, %v10468_v28  ;;  %v10495_v58 = vrot.slane %v23815_v61, %v16649_v42  ;;  %v10502_v48 = vrot.slane %v23816_v44, %v16649_v42  ;;  %v20734_v62 = vpop.permute.xlu1 %7186  ;;  %v20736_v17 = vpop.permute.xlu0 %7204  ;;  %v23822_v28 = vld [vmem:[#allocation66_spill] sm:$0xff]  ;;  %v23824_v29 = vld [vmem:[#allocation75_spill] sm:$0xff]  ;;  %v23826_v44 = vld [vmem:[#allocation224_spill] sm:$0xff] }
 0x377   :  { %v23817_v32 = vrot.slane %v23788_v53, %v16594_v7  ;;  %v23818_v51 = vrot.slane %v23788_v53, %v23570_v5  ;;  %v20730_v56 = vcombine.low %v11434_v63, %v11441_v37  ;;  %v5524_v39 = vsel %vm22718_vm15, %v5523_v34, %v5519_v50  ;;  %23821 = vst [vmem:[#allocation21_spill] sm:$0xff] %v20736_v17  ;;  %v23823_v34 = vld [vmem:[#allocation73_spill] sm:$0xff] }
 0x378   :  { %v5603_v26 = vsel %vm22718_vm15, %v5602_v20, %v5598_v6  ;;  %10882 = vperm.xlu1 %15465, %v10367_v12   ;;  %v11448_v60 = vrot.slane %v23822_v28, %v23570_v5  ;;  %v11455_v57 = vrot.slane %v23822_v28, %v16594_v7  ;;  %v20742_v53 = vcombine.low %v11812_v13, %v11819_v22  ;;  %v23825_v13 = vld [vmem:[#allocation80_spill] sm:$0xff] }
 0x379   :  { %v20728_v25 = vcombine.low %v23818_v51, %v23817_v32  ;;  %23820 = vst [vmem:[#allocation249_spill] sm:$0xff] %v20730_v56  ;;  %v5604_v63 = vsel %vm22717_vm0, %v5603_v26, %v5524_v39  ;;  %10900 = vperm.xlu0 %15464, %v10469_v27   ;;  %v20745_v37 = vcombine.low %v11826_v55, %v11833_v14  ;;  %v23827_v14 = vld [vmem:[#allocation151_spill] sm:$0xff]  ;;  %v23830_v39 = vld [vmem:[#allocation68_spill] sm:$0xff] }
 0x37a   :  { %15308 = vst.sshfl [vmem:[#allocation2 + $0x2] sm:$0x3 pattern:$0x76325410] %v5604_v63  ;;  %v10384_v50 = vcombine.low %v10376_v23, %v10383_v43  ;;  %v10410_v20 = vrot.slane %v23823_v34, %v16649_v42  ;;  %v10417_v12 = vrot.slane %v23824_v29, %v16649_v42  ;;  %v11462_v6 = vrot.slane %v23822_v28, %v16597_v30  ;;  %v20765_v51 = vpop.permute.xlu1 %7189 }
 0x37b   :  { %23819 = vst [vmem:[#allocation90_spill] sm:$0xff] %v20728_v25  ;;  %v10503_v61 = vcombine.low %v10495_v58, %v10502_v48  ;;  %v10529_v22 = vrot.slane %v23825_v13, %v16649_v42  ;;  %v10536_v27 = vrot.slane %v23826_v44, %v16649_v42  ;;  %v11469_v55 = vrot.slane %v23822_v28, %v16600_v18  ;;  %v20767_v48 = vpop.permute.xlu0 %7210  ;;  %v23835_v25 = vld [vmem:[#allocation162_spill] sm:$0xff] }
 0x37c   :  { %v11840_v23 = vrot.slane %v23827_v14, %v23570_v5  ;;  %v11847_v43 = vrot.slane %v23827_v14, %v16594_v7  ;;  %v11854_v32 = vrot.slane %v23827_v14, %v16597_v30  ;;  %10885 = vperm.xlu1 %15465, %v10384_v50   ;;  %23828 = vst [vmem:[#allocation96_spill] sm:$0xff] %v20767_v48  ;;  %v23831_v50 = vld [vmem:[#allocation76_spill] sm:$0xff] }
 0x37d   :  { %v20769_v58 = vcombine.low %v11448_v60, %v11455_v57  ;;  %v11476_v26 = vrot.slane %v23830_v39, %v23570_v5  ;;  %v11483_v28 = vrot.slane %v23830_v39, %v16594_v7  ;;  %v11861_v63 = vrot.slane %v23827_v14, %v16600_v18  ;;  %10906 = vperm.xlu0 %15464, %v10503_v61   ;;  %v23832_v60 = vld [vmem:[#allocation175_spill] sm:$0xff]  ;;  %v23834_v14 = vld [vmem:[#allocation237_spill] sm:$0xff] }
 0x37e   :  { %v11490_v34 = vrot.slane %v23830_v39, %v16597_v30  ;;  %v10418_v29 = vcombine.low %v10410_v20, %v10417_v12  ;;  %v10444_v13 = vrot.slane %v23831_v50, %v16649_v42  ;;  %v10451_v57 = vrot.slane %v23832_v60, %v16649_v42 }
 0x37f   :  { %23829 = vst [vmem:[#allocation28_spill] sm:$0xff] %v20769_v58  ;;  %v11497_v44 = vrot.slane %v23830_v39, %v16600_v18  ;;  %v10537_v16 = vcombine.low %v10529_v22, %v10536_v27  ;;  %v23833_v58 = vld [vmem:[#allocation156_spill] sm:$0xff]  ;;  %v10570_v61 = vrot.slane %v23834_v14, %v16649_v42  ;;  %v11868_v45 = vrot.slane %v23835_v25, %v23570_v5  ;;  %v20797_v39 = vpop.permute.xlu1 %7195  ;;  %v20799_v22 = vpop.permute.xlu0 %7216 }
 0x380   :  { %v10563_v56 = vrot.slane %v23833_v58, %v16649_v42  ;;  %v11875_v20 = vrot.slane %v23835_v25, %v16594_v7  ;;  %v11882_v12 = vrot.slane %v23835_v25, %v16597_v30  ;;  %v11889_v50 = vrot.slane %v23835_v25, %v16600_v18  ;;  %10891 = vperm.xlu1 %15465, %v10418_v29   ;;  %v23840_v25 = vld [vmem:[#allocation236_spill] sm:$0xff]  ;;  %v23841_v29 = vld [vmem:[#allocation166_spill] sm:$0xff] }
 0x381   :  { %23836 = vst [vmem:[#allocation29_spill] sm:$0xff] %v20799_v22  ;;  %v20801_v27 = vcombine.low %v11462_v6, %v11469_v55  ;;  %v20803_v58 = vcombine.low %v11476_v26, %v11483_v28  ;;  %v20805_v60 = vcombine.low %v11840_v23, %v11847_v43  ;;  %v20807_v14 = vcombine.low %v11854_v32, %v11861_v63  ;;  %v23842_v23 = vld [vmem:[#allocation191_spill] sm:$0xff]  ;;  %v23843_v32 = vld [vmem:[#allocation238_spill] sm:$0xff] }
 0x382   :  { %10912 = vperm.xlu0 %15464, %v10537_v16   ;;  %v11504_v48 = vrot.slane %v23839_v15, %v23570_v5  ;;  %v10452_v0 = vcombine.low %v10444_v13, %v10451_v57  ;;  %v10478_v49 = vrot.slane %v23840_v25, %v16649_v42  ;;  %v10485_v59 = vrot.slane %v23841_v29, %v16649_v42 }
 0x383   :  { %23837 = vst [vmem:[#allocation94_spill] sm:$0xff] %v20801_v27  ;;  %23838 = vst [vmem:[#allocation251_spill] sm:$0xff] %v20803_v58  ;;  %v11511_v6 = vrot.slane %v23839_v15, %v16594_v7  ;;  %v10571_v55 = vcombine.low %v10563_v56, %v10570_v61  ;;  %v10597_v43 = vrot.slane %v23842_v23, %v16649_v42  ;;  %v20829_v57 = vpop.permute.xlu1 %7201  ;;  %v20831_v25 = vpop.permute.xlu0 %7222  ;;  %v23846_v61 = vld [vmem:[#allocation160_spill] sm:$0xff]  ;;  %v23851_v27 = vld [vmem:[#allocation87_spill] sm:$0xff] }
 0x384   :  { %v10604_v16 = vrot.slane %v23843_v32, %v16649_v42  ;;  %v20821_v26 = vcombine.low %v11490_v34, %v11497_v44  ;;  %v11518_v28 = vrot.slane %v23839_v15, %v16597_v30  ;;  %v20825_v63 = vcombine.low %v11868_v45, %v11875_v20  ;;  %10897 = vperm.xlu1 %15465, %v10452_v0   ;;  %v23847_v0 = vld [vmem:[#allocation86_spill] sm:$0xff] }
 0x385   :  { %v20827_v13 = vcombine.low %v11882_v12, %v11889_v50  ;;  %23845 = vst [vmem:[#allocation256_spill] sm:$0xff] %v20831_v25  ;;  %v11525_v56 = vrot.slane %v23839_v15, %v16600_v18  ;;  %v11896_v29 = vrot.slane %v23846_v61, %v23570_v5  ;;  %v11903_v34 = vrot.slane %v23846_v61, %v16594_v7  ;;  %v23848_v50 = vld [vmem:[#allocation235_spill] sm:$0xff] }
 0x386   :  { %23844 = vst [vmem:[#allocation98_spill] sm:$0xff] %v20821_v26  ;;  %v11910_v45 = vrot.slane %v23846_v61, %v16597_v30  ;;  %10918 = vperm.xlu0 %15464, %v10571_v55   ;;  %v11917_v44 = vrot.slane %v23846_v61, %v16600_v18  ;;  %v10486_v20 = vcombine.low %v10478_v49, %v10485_v59  ;;  %v23850_v26 = vld [vmem:[#allocation25_spill] sm:$0xff]  ;;  %v23852_v55 = vld [vmem:[#allocation72_spill] sm:$0xff] }
 0x387   :  { %v10512_v12 = vrot.slane %v23847_v0, %v16649_v42  ;;  %v10519_v15 = vrot.slane %v23848_v50, %v16649_v42  ;;  %v20847_v23 = vcombine.low %v11504_v48, %v11511_v6  ;;  %v10605_v32 = vcombine.low %v10597_v43, %v10604_v16  ;;  %v20861_v6 = vpop.permute.xlu1 %7207  ;;  %v20863_v43 = vpop.permute.xlu0 %7228  ;;  %v23855_v16 = vld [vmem:[#allocation161_spill] sm:$0xff] }
 0x388   :  { %v10631_v58 = vrot.slane %v23850_v26, %v16649_v42  ;;  %v10638_v25 = vrot.slane %v23851_v27, %v16649_v42  ;;  %v11532_v22 = vrot.slane %v23852_v55, %v23570_v5  ;;  %v11539_v59 = vrot.slane %v23852_v55, %v16594_v7  ;;  %23853 = vst [vmem:[#allocation20_spill] sm:$0xff] %v20861_v6 }
 0x389   :  { %23849 = vst [vmem:[#allocation202_spill] sm:$0xff] %v20847_v23  ;;  %v11546_v49 = vrot.slane %v23852_v55, %v16597_v30  ;;  %v11553_v48 = vrot.slane %v23852_v55, %v16600_v18  ;;  %10903 = vperm.xlu1 %15465, %v10486_v20   ;;  %23854 = vst [vmem:[#allocation254_spill] sm:$0xff] %v20863_v43  ;;  %v11924_v27 = vrot.slane %v23855_v16, %v23570_v5  ;;  %v23857_v20 = vld [vmem:[#allocation241_spill] sm:$0xff]  ;;  %v23858_v43 = vld [vmem:[#allocation242_spill] sm:$0xff] }
 0x38a   :  { %v11931_v26 = vrot.slane %v23855_v16, %v16594_v7  ;;  %v11938_v61 = vrot.slane %v23855_v16, %v16597_v30  ;;  %v11945_v0 = vrot.slane %v23855_v16, %v16600_v18  ;;  %10924 = vperm.xlu0 %15464, %v10605_v32   ;;  %v20873_v50 = vcombine.low %v11518_v28, %v11525_v56  ;;  %v23860_v56 = vld [vmem:[#allocation77_spill] sm:$0xff] }
 0x38b   :  { %v10520_v55 = vcombine.low %v10512_v12, %v10519_v15  ;;  %v10546_v23 = vrot.slane %v23857_v20, %v16649_v42  ;;  %v10553_v4 = vrot.slane %v23858_v43, %v16649_v42  ;;  %v20879_v17 = vcombine.low %v11896_v29, %v11903_v34  ;;  %v20893_v32 = vpop.permute.xlu1 %7213 }
 0x38c   :  { %23856 = vst [vmem:[#allocation189_spill] sm:$0xff] %v20873_v50  ;;  %v10639_v9 = vcombine.low %v10631_v58, %v10638_v25  ;;  %v12206_v6 = vrot.slane %v20502_v8, %v16649_v42  ;;  %v12213_v11 = vrot.slane %v20504_v47, %v16649_v42  ;;  %v20885_v16 = vcombine.low %v11532_v22, %v11539_v59  ;;  %v20895_v58 = vpop.permute.xlu0 %7234  ;;  %v23863_v59 = vld [vmem:[#allocation246_spill] sm:$0xff] }
 0x38d   :  { %v20887_v28 = vcombine.low %v11910_v45, %v11917_v44  ;;  %v11560_v12 = vrot.slane %v23860_v56, %v23570_v5  ;;  %v11567_v15 = vrot.slane %v23860_v56, %v16594_v7  ;;  %10909 = vperm.xlu1 %15465, %v10520_v55   ;;  %v20897_v25 = vcombine.low %v11546_v49, %v11553_v48  ;;  %v23862_v45 = vld [vmem:[#allocation245_spill] sm:$0xff]  ;;  %v23864_v49 = vld [vmem:[#allocation234_spill] sm:$0xff] }
 0x38e   :  { %23859 = vst [vmem:[#allocation101_spill] sm:$0xff] %v20885_v16  ;;  %v20901_v47 = vcombine.low %v11924_v27, %v11931_v26  ;;  %v20903_v22 = vcombine.low %v11938_v61, %v11945_v0  ;;  %10930 = vperm.xlu0 %15464, %v10639_v9   ;;  %v10554_v34 = vcombine.low %v10546_v23, %v10553_v4  ;;  %v23870_v8 = vld [vmem:[#allocation18_spill] sm:$0xff] }
 0x38f   :  { %23861 = vst [vmem:[#allocation120_spill] sm:$0xff] %v20897_v25  ;;  %v10580_v44 = vrot.slane %v23862_v45, %v16649_v42  ;;  %v10587_v43 = vrot.slane %v23863_v59, %v16649_v42  ;;  %v11952_v48 = vrot.slane %v23864_v49, %v23570_v5  ;;  %v12214_v55 = vcombine.low %v12206_v6, %v12213_v11  ;;  %v20925_v0 = vpop.permute.xlu1 %7219 }
 0x390   :  { %v12495_v27 = vrot.slane %v20597_v38, %v16649_v42  ;;  %v12502_v9 = vrot.slane %v20612_v2, %v16649_v42  ;;  %v20917_v26 = vcombine.low %v11560_v12, %v11567_v15  ;;  %v11959_v4 = vrot.slane %v23864_v49, %v16594_v7  ;;  %23866 = vst [vmem:[#allocation119_spill] sm:$0xff] %v20925_v0  ;;  %v20927_v11 = vpop.permute.xlu0 %7240  ;;  %v23867_v38 = vld [vmem:[#allocation79_spill] sm:$0xff]  ;;  %v23868_v15 = vld [vmem:[#allocation82_spill] sm:$0xff] }
 0x391   :  { %v11966_v23 = vrot.slane %v23864_v49, %v16597_v30  ;;  %v11973_v61 = vrot.slane %v23864_v49, %v16600_v18  ;;  %10915 = vperm.xlu1 %15465, %v10554_v34   ;;  %v11980_v6 = vrot.slane %v23867_v38, %v23570_v5  ;;  %v11987_v2 = vrot.slane %v23867_v38, %v16594_v7  ;;  %v23869_v34 = vld [vmem:[#allocation88_spill] sm:$0xff] }
 0x392   :  { %23865 = vst [vmem:[#allocation31_spill] sm:$0xff] %v20917_v26  ;;  %v11994_v20 = vrot.slane %v23867_v38, %v16597_v30  ;;  %v12001_v12 = vrot.slane %v23867_v38, %v16600_v18  ;;  %12743 = vperm.xlu0 %15464, %v12214_v55   ;;  %v12008_v45 = vrot.slane %v23868_v15, %v23570_v5 }
 0x393   :  { %v10588_v59 = vcombine.low %v10580_v44, %v10587_v43  ;;  %v10614_v49 = vrot.slane %v23869_v34, %v16649_v42  ;;  %v10621_v29 = vrot.slane %v23870_v8, %v16649_v42  ;;  %v12015_v26 = vrot.slane %v23868_v15, %v16594_v7  ;;  %v23871_v43 = vld [vmem:[#allocation84_spill] sm:$0xff]  ;;  %v20957_v50 = vpop.permute.xlu1 %7225 }
 0x394   :  { %v12503_v25 = vcombine.low %v12495_v27, %v12502_v9  ;;  %v12512_v16 = vrot.slane %v20742_v53, %v16649_v42  ;;  %v12519_v55 = vrot.slane %v20745_v37, %v16649_v42  ;;  %v12022_v38 = vrot.slane %v23868_v15, %v16597_v30  ;;  %23872 = vst [vmem:[#allocation182_spill] sm:$0xff] %v20957_v50  ;;  %v20959_v27 = vpop.permute.xlu0 %7246 }
 0x395   :  { %v12029_v44 = vrot.slane %v23868_v15, %v16600_v18  ;;  %v12036_v34 = vrot.slane %v23871_v43, %v23570_v5  ;;  %v12043_v8 = vrot.slane %v23871_v43, %v16594_v7  ;;  %10921 = vperm.xlu1 %15465, %v10588_v59   ;;  %v20961_v53 = vcombine.low %v11952_v48, %v11959_v4 }
 0x396   :  { %v20963_v37 = vcombine.low %v11966_v23, %v11973_v61  ;;  %v12050_v9 = vrot.slane %v23871_v43, %v16597_v30  ;;  %v12057_v15 = vrot.slane %v23871_v43, %v16600_v18  ;;  %12794 = vperm.xlu0 %15464, %v12503_v25   ;;  %v20969_v56 = vcombine.low %v11980_v6, %v11987_v2 }
 0x397   :  { %v10622_v0 = vcombine.low %v10614_v49, %v10621_v29  ;;  %v10648_v50 = vrot.slane %v20486_v36, %v16649_v42  ;;  %v10655_v59 = vrot.slane %v20488_v31, %v16649_v42  ;;  %v20975_v48 = vcombine.low %v11994_v20, %v12001_v12  ;;  %v7232_v6 = vpop.permute.xlu1 %7231 }
 0x398   :  { %v12520_v4 = vcombine.low %v12512_v16, %v12519_v55  ;;  %v12529_v23 = vrot.slane %v20805_v60, %v16649_v42  ;;  %v12536_v61 = vrot.slane %v20807_v14, %v16649_v42  ;;  %v20981_v43 = vcombine.low %v12008_v45, %v12015_v26  ;;  %v20989_v31 = vpop.permute.xlu0 %7252  ;;  %v23873_v60 = vld [vmem:[#allocation85_spill] sm:$0xff]  ;;  %v23875_v45 = vld [vmem:[#allocation26_spill] sm:$0xff] }
 0x399   :  { %v20983_v25 = vcombine.low %v12022_v38, %v12029_v44  ;;  %v20985_v29 = vcombine.low %v12036_v34, %v12043_v8  ;;  %v7285_v36 = vrot.slane %v20734_v62, %v19541_v24  ;;  %10927 = vperm.xlu1 %15465, %v10622_v0   ;;  %v20991_v16 = vcombine.low %v12050_v9, %v12057_v15  ;;  %v23874_v26 = vld [vmem:[#allocation93_spill] sm:$0xff] }
 0x39a   :  { %v12064_v2 = vrot.slane %v23873_v60, %v23570_v5  ;;  %v7290_v14 = vrot.slane %v20765_v51, %v19544_v54  ;;  %12797 = vperm.xlu0 %15464, %v12520_v4   ;;  %v10665_v20 = vrot.slane %v23874_v26, %v16649_v42  ;;  %v7281_v12 = vrot.slane %v20652_v46, %v19551_v19 }
 0x39b   :  { %v7360_v62 = vrot.slane %v7232_v6, %v19551_v19  ;;  %v10656_v0 = vcombine.low %v10648_v50, %v10655_v59  ;;  %v10672_v49 = vrot.slane %v23875_v45, %v16649_v42  ;;  %v12071_v55 = vrot.slane %v23873_v60, %v16594_v7  ;;  %v7238_v8 = vpop.permute.xlu1 %7237 }
 0x39c   :  { %v12537_v38 = vcombine.low %v12529_v23, %v12536_v61  ;;  %v12546_v51 = vrot.slane %v20825_v63, %v16649_v42  ;;  %v12553_v44 = vrot.slane %v20827_v13, %v16649_v42  ;;  %v12078_v34 = vrot.slane %v23873_v60, %v16597_v30  ;;  %v21015_v9 = vpop.permute.xlu0 %7258 }
 0x39d   :  { %v7286_v46 = vsel %vm1728_vm1, %v7285_v36, %v7281_v12  ;;  %v7364_v50 = vrot.slane %v20895_v58, %v19541_v24  ;;  %10933 = vperm.xlu1 %15465, %v10656_v0   ;;  %v12223_v15 = vrot.slane %v20490_v33, %v16649_v42  ;;  %v7300_v13 = vrot.slane %v20797_v39, %v19564_v40 }
 0x39e   :  { %v7291_v63 = vsel %vm1735_vm2, %v7290_v14, %v7286_v46  ;;  %v7369_v59 = vrot.slane %v7238_v8, %v19544_v54  ;;  %12800 = vperm.xlu0 %15464, %v12537_v38   ;;  %v12230_v4 = vrot.slane %v20492_v1, %v16649_v42  ;;  %v12085_v58 = vrot.slane %v23873_v60, %v16600_v18  ;;  %v23876_v1 = vld [vmem:[#allocation248_spill] sm:$0xff]  ;;  %v23877_v38 = vld [vmem:[#allocation250_spill] sm:$0xff] }
 0x39f   :  { %v7295_v23 = vrot.slane %v20679_v52, %v19547_v21  ;;  %v7365_v61 = vsel %vm1728_vm1, %v7364_v50, %v7360_v62  ;;  %v10673_v33 = vcombine.low %v10665_v20, %v10672_v49  ;;  %v12554_v6 = vcombine.low %v12546_v51, %v12553_v44  ;;  %v7244_v20 = vpop.permute.xlu1 %7243 }
 0x3a0   :  { %v7370_v36 = vsel %vm1735_vm2, %v7369_v59, %v7365_v61  ;;  %v12563_v39 = vrot.slane %v20879_v17, %v16649_v42  ;;  %v12570_v14 = vrot.slane %v20887_v28, %v16649_v42  ;;  %v21035_v26 = vcombine.low %v12064_v2, %v12071_v55  ;;  %v21042_v62 = vpop.permute.xlu0 %7264  ;;  %v23878_v59 = vld [vmem:[#allocation57_spill] sm:$0xff]  ;;  %v23880_v61 = vld [vmem:[#allocation244_spill] sm:$0xff] }
 0x3a1   :  { %v12092_v12 = vrot.slane %v23876_v1, %v23570_v5  ;;  %v7296_v0 = vsel %vm1742_vm3, %v7295_v23, %v7291_v63  ;;  %v7374_v52 = vrot.slane %v20927_v11, %v19547_v21  ;;  %10936 = vperm.xlu1 %15465, %v10673_v33   ;;  %v7310_v17 = vrot.slane %v20829_v57, %v19592_v35 }
 0x3a2   :  { %v7301_v45 = vsel %vm1749_vm4, %v7300_v13, %v7296_v0  ;;  %v7379_v28 = vrot.slane %v7244_v20, %v19564_v40  ;;  %12803 = vperm.xlu0 %15464, %v12554_v6   ;;  %v12231_v2 = vcombine.low %v12223_v15, %v12230_v4  ;;  %v7305_v49 = vrot.slane %v20704_v3, %v19580_v10  ;;  %v23879_v4 = vld [vmem:[#allocation20_spill] sm:$0xff]  ;;  %v23882_v6 = vld [vmem:[#allocation21_spill] sm:$0xff]  ;;  %v23883_v0 = vld [vmem:[#allocation95_spill] sm:$0xff] }
 0x3a3   :  { %v7375_v55 = vsel %vm1742_vm3, %v7374_v52, %v7370_v36  ;;  %v12478_v11 = vrot.slane %v20506_v41, %v16649_v42  ;;  %v12485_v51 = vrot.slane %v23877_v38, %v16649_v42  ;;  %v12571_v46 = vcombine.low %v12563_v39, %v12570_v14  ;;  %v7250_v63 = vpop.permute.xlu1 %7249  ;;  %v23881_v36 = vld [vmem:[#allocation179_spill] sm:$0xff] }
 0x3a4   :  { %v7380_v44 = vsel %vm1749_vm4, %v7379_v28, %v7375_v55  ;;  %v12580_v57 = vrot.slane %v20901_v47, %v16649_v42  ;;  %v12587_v50 = vrot.slane %v20903_v22, %v16649_v42  ;;  %v12099_v3 = vrot.slane %v23876_v1, %v16594_v7  ;;  %v21067_v13 = vpop.permute.xlu0 %7270 }
 0x3a5   :  { %v12106_v8 = vrot.slane %v23876_v1, %v16597_v30  ;;  %v7306_v41 = vsel %vm1756_vm5, %v7305_v49, %v7301_v45  ;;  %v7384_v15 = vrot.slane %v20959_v27, %v19580_v10  ;;  %12746 = vperm.xlu1 %15465, %v12231_v2   ;;  %v7320_v22 = vrot.slane %v23879_v4, %v23878_v59 }
 0x3a6   :  { %v7311_v47 = vsel %vm1763_vm6, %v7310_v17, %v7306_v41  ;;  %v7389_v23 = vrot.slane %v7250_v63, %v19592_v35  ;;  %12806 = vperm.xlu0 %15464, %v12571_v46   ;;  %v12240_v33 = vrot.slane %v23880_v61, %v16649_v42  ;;  %v7315_v39 = vrot.slane %v23882_v6, %v23881_v36  ;;  %v23885_v46 = vld [vmem:[#allocation61_spill] sm:$0xff]  ;;  %v23887_v41 = vld [vmem:[#allocation59_spill] sm:$0xff] }
 0x3a7   :  { %v7385_v27 = vsel %vm1756_vm5, %v7384_v15, %v7380_v44  ;;  %v12486_v14 = vcombine.low %v12478_v11, %v12485_v51  ;;  %v12247_v52 = vrot.slane %v23883_v0, %v16649_v42  ;;  %v12588_v45 = vcombine.low %v12580_v57, %v12587_v50  ;;  %v7256_v11 = vpop.permute.xlu1 %7255  ;;  %v23884_v51 = vld [vmem:[#allocation27_spill] sm:$0xff]  ;;  %v23888_v15 = vld [vmem:[#allocation96_spill] sm:$0xff] }
 0x3a8   :  { %v7390_v20 = vsel %vm1763_vm6, %v7389_v23, %v7385_v27  ;;  %v12597_v17 = vrot.slane %v20961_v53, %v16649_v42  ;;  %v12604_v28 = vrot.slane %v20963_v37, %v16649_v42  ;;  %v12113_v2 = vrot.slane %v23876_v1, %v16600_v18  ;;  %v21090_v38 = vpop.permute.xlu0 %7276  ;;  %v23886_v1 = vld [vmem:[#allocation109_spill] sm:$0xff] }
 0x3a9   :  { %v7316_v49 = vsel %vm1770_vm7, %v7315_v39, %v7311_v47  ;;  %v7394_v55 = vrot.slane %v20989_v31, %v23881_v36  ;;  %12791 = vperm.xlu1 %15465, %v12486_v14   ;;  %v12257_v44 = vrot.slane %v23884_v51, %v16649_v42  ;;  %v7330_v37 = vrot.slane %v20893_v32, %v23885_v46  ;;  %v23889_v14 = vld [vmem:[#allocation180_spill] sm:$0xff]  ;;  %v23895_v51 = vld [vmem:[#allocation17_spill] sm:$0xff] }
 0x3aa   :  { %v7321_v53 = vsel %vm1777_vm8, %v7320_v22, %v7316_v49  ;;  %v7399_v57 = vrot.slane %v7256_v11, %v23878_v59  ;;  %12809 = vperm.xlu0 %15464, %v12588_v45   ;;  %v12264_v50 = vrot.slane %v23886_v1, %v16649_v42  ;;  %v21103_v31 = vcombine.low %v12078_v34, %v12085_v58 }
 0x3ab   :  { %v7325_v63 = vrot.slane %v23888_v15, %v23887_v41  ;;  %v7395_v47 = vsel %vm1770_vm7, %v7394_v55, %v7390_v20  ;;  %v12248_v4 = vcombine.low %v12240_v33, %v12247_v52  ;;  %v12605_v32 = vcombine.low %v12597_v17, %v12604_v28  ;;  %v7262_v39 = vpop.permute.xlu1 %7261  ;;  %v23894_v17 = vld [vmem:[#allocation249_spill] sm:$0xff]  ;;  %v23896_v15 = vld [vmem:[#allocation19_spill] sm:$0xff] }
 0x3ac   :  { %v7400_v22 = vsel %vm1777_vm8, %v7399_v57, %v7395_v47  ;;  %v12614_v23 = vrot.slane %v20969_v56, %v16649_v42  ;;  %v12621_v61 = vrot.slane %v20975_v48, %v16649_v42  ;;  %v21113_v6 = vcombine.low %v12092_v12, %v12099_v3  ;;  %v21120_v33 = vpop.permute.xlu0 %9047  ;;  %v23890_v56 = vld [vmem:[#allocation119_spill] sm:$0xff]  ;;  %v23891_v3 = vld [vmem:[#allocation225_spill] sm:$0xff] }
 0x3ad   :  { %v21115_v60 = vcombine.low %v12106_v8, %v12113_v2  ;;  %v7326_v34 = vsel %vm1784_vm9, %v7325_v63, %v7321_v53  ;;  %v7404_v58 = vrot.slane %v21015_v9, %v23887_v41  ;;  %12749 = vperm.xlu1 %15465, %v12248_v4   ;;  %v7340_v0 = vrot.slane %v23890_v56, %v23889_v14  ;;  %v23892_v8 = vld [vmem:[#allocation29_spill] sm:$0xff]  ;;  %v23893_v9 = vld [vmem:[#allocation90_spill] sm:$0xff]  ;;  %v23898_v4 = vld [vmem:[#allocation28_spill] sm:$0xff] }
 0x3ae   :  { %v7331_v27 = vsel %vm1791_vm10, %v7330_v37, %v7326_v34  ;;  %v7409_v48 = vrot.slane %v7262_v39, %v23885_v46  ;;  %12812 = vperm.xlu0 %15464, %v12605_v32   ;;  %v12265_v12 = vcombine.low %v12257_v44, %v12264_v50  ;;  %v7335_v52 = vrot.slane %v23892_v8, %v23891_v3  ;;  %v23897_v63 = vld [vmem:[#allocation182_spill] sm:$0xff]  ;;  %v23899_v32 = vld [vmem:[#allocation159_spill] sm:$0xff] }
 0x3af   :  { %v7405_v20 = vsel %vm1784_vm9, %v7404_v58, %v7400_v22  ;;  %v12274_v45 = vrot.slane %v23893_v9, %v16649_v42  ;;  %v12281_v28 = vrot.slane %v23894_v17, %v16649_v42  ;;  %v12622_v49 = vcombine.low %v12614_v23, %v12621_v61  ;;  %v7268_v1 = vpop.permute.xlu1 %7267  ;;  %v23900_v23 = vld [vmem:[#allocation256_spill] sm:$0xff]  ;;  %v23901_v58 = vld [vmem:[#allocation94_spill] sm:$0xff] }
 0x3b0   :  { %v7410_v2 = vsel %vm1791_vm10, %v7409_v48, %v7405_v20  ;;  %v12631_v55 = vrot.slane %v20981_v43, %v16649_v42  ;;  %v12638_v11 = vrot.slane %v20983_v25, %v16649_v42  ;;  %v12120_v44 = vrot.slane %v23895_v51, %v23570_v5  ;;  %v21145_v50 = vpop.permute.xlu0 %9056 }
 0x3b1   :  { %v12127_v53 = vrot.slane %v23895_v51, %v16594_v7  ;;  %v7336_v37 = vsel %vm1798_vm11, %v7335_v52, %v7331_v27  ;;  %v7414_v57 = vrot.slane %v21042_v62, %v23891_v3  ;;  %12752 = vperm.xlu1 %15465, %v12265_v12   ;;  %v7350_v25 = vrot.slane %v23897_v63, %v23896_v15 }
 0x3b2   :  { %v7341_v43 = vsel %vm1805_vm12, %v7340_v0, %v7336_v37  ;;  %v7419_v47 = vrot.slane %v7268_v1, %v23889_v14  ;;  %12815 = vperm.xlu0 %15464, %v12622_v49   ;;  %v12291_v22 = vrot.slane %v23898_v4, %v16649_v42  ;;  %v7345_v61 = vrot.slane %v23900_v23, %v23899_v32 }
 0x3b3   :  { %v7415_v62 = vsel %vm1798_vm11, %v7414_v57, %v7410_v2  ;;  %v12282_v34 = vcombine.low %v12274_v45, %v12281_v28  ;;  %v12298_v39 = vrot.slane %v23901_v58, %v16649_v42  ;;  %v12639_v56 = vcombine.low %v12631_v55, %v12638_v11  ;;  %v7274_v9 = vpop.permute.xlu1 %7273  ;;  %v23903_v2 = vld [vmem:[#allocation98_spill] sm:$0xff]  ;;  %v23904_v55 = vld [vmem:[#allocation147_spill] sm:$0xff] }
 0x3b4   :  { %v7420_v27 = vsel %vm1805_vm12, %v7419_v47, %v7415_v62  ;;  %v12648_v0 = vrot.slane %v20985_v29, %v16649_v42  ;;  %v12655_v48 = vrot.slane %v20991_v16, %v16649_v42  ;;  %v12134_v12 = vrot.slane %v23895_v51, %v16597_v30  ;;  %v21170_v45 = vpop.permute.xlu0 %9062  ;;  %v23902_v16 = vld [vmem:[#allocation251_spill] sm:$0xff]  ;;  %v23905_v11 = vld [vmem:[#allocation254_spill] sm:$0xff]  ;;  %v23906_v47 = vld [vmem:[#allocation77_spill] sm:$0xff] }
 0x3b5   :  { %v12141_v8 = vrot.slane %v23895_v51, %v16600_v18  ;;  %v7346_v52 = vsel %vm1812_vm13, %v7345_v61, %v7341_v43  ;;  %v7424_v20 = vrot.slane %v21067_v13, %v23899_v32  ;;  %12755 = vperm.xlu1 %15465, %v12282_v34   ;;  %v7429_v17 = vrot.slane %v7274_v9, %v23896_v15  ;;  %v23911_v9 = vld [vmem:[#allocation189_spill] sm:$0xff] }
 0x3b6   :  { %v7351_v29 = vsel %vm1819_vm14, %v7350_v25, %v7346_v52  ;;  %12818 = vperm.xlu0 %15464, %v12639_v56   ;;  %v12308_v28 = vrot.slane %v23902_v16, %v16649_v42  ;;  %v12315_v49 = vrot.slane %v23903_v2, %v16649_v42  ;;  %v7355_v51 = vrot.slane %v23905_v11, %v23904_v55  ;;  %v23910_v52 = vld [vmem:[#allocation202_spill] sm:$0xff] }
 0x3b7   :  { %v7434_v13 = vrot.slane %v21090_v38, %v23904_v55  ;;  %v7425_v37 = vsel %vm1812_vm13, %v7424_v20, %v7420_v27  ;;  %v12299_v57 = vcombine.low %v12291_v22, %v12298_v39  ;;  %v12656_v43 = vcombine.low %v12648_v0, %v12655_v48  ;;  %v23909_v38 = vld [vmem:[#allocation253_spill] sm:$0xff]  ;;  %v21200_v58 = vpop.permute.xlu1 %9050 }
 0x3b8   :  { %v7430_v1 = vsel %vm1819_vm14, %v7429_v17, %v7425_v37  ;;  %v12665_v63 = vrot.slane %v21035_v26, %v16649_v42  ;;  %v12672_v25 = vrot.slane %v21103_v31, %v16649_v42  ;;  %v23907_v4 = vrot.slane %v23906_v47, %v16600_v18  ;;  %v21202_v26 = vpop.permute.xlu0 %9068 }
 0x3b9   :  { %v23908_v23 = vrot.slane %v23906_v47, %v16597_v30  ;;  %v12148_v22 = vrot.slane %v23909_v38, %v23570_v5  ;;  %v7356_v62 = vsel %vm22718_vm15, %v7355_v51, %v7351_v29  ;;  %v7435_v34 = vsel %vm22718_vm15, %v7434_v13, %v7430_v1  ;;  %12758 = vperm.xlu1 %15465, %v12299_v57   ;;  %v23912_v51 = vld [vmem:[#allocation78_spill] sm:$0xff]  ;;  %v23915_v47 = vld [vmem:[#allocation120_spill] sm:$0xff] }
 0x3ba   :  { %v12155_v31 = vrot.slane %v23909_v38, %v16594_v7  ;;  %v12162_v39 = vrot.slane %v23909_v38, %v16597_v30  ;;  %v12169_v27 = vrot.slane %v23909_v38, %v16600_v18  ;;  %v7436_v56 = vsel %vm22717_vm0, %v7435_v34, %v7356_v62  ;;  %12821 = vperm.xlu0 %15464, %v12656_v43  }
 0x3bb   :  { %v21194_v61 = vcombine.low %v23908_v23, %v23907_v4  ;;  %v12691_v0 = vcombine.low %v12120_v44, %v12127_v53  ;;  %15309 = vst.sshfl [vmem:[#allocation3 + $0x2] sm:$0x3 pattern:$0x76325410] %v7436_v56  ;;  %v12316_v48 = vcombine.low %v12308_v28, %v12315_v49  ;;  %v12325_v20 = vrot.slane %v23910_v52, %v16649_v42  ;;  %v23916_v56 = vld [vmem:[#allocation81_spill] sm:$0xff] }
 0x3bc   :  { %v12332_v29 = vrot.slane %v23911_v9, %v16649_v42  ;;  %v12692_v17 = vcombine.low %v12134_v12, %v12141_v8  ;;  %v12673_v16 = vcombine.low %v12665_v63, %v12672_v25  ;;  %v12682_v2 = vrot.slane %v21113_v6, %v16649_v42  ;;  %v21227_v12 = vpop.permute.xlu1 %9053  ;;  %v21229_v8 = vpop.permute.xlu0 %9074  ;;  %v23914_v63 = vld [vmem:[#allocation101_spill] sm:$0xff] }
 0x3bd   :  { %v12689_v11 = vrot.slane %v21115_v60, %v16649_v42  ;;  %v11588_v13 = vrot.slane %v23912_v51, %v23570_v5  ;;  %v11595_v44 = vrot.slane %v23912_v51, %v16594_v7  ;;  %v11602_v53 = vrot.slane %v23912_v51, %v16597_v30  ;;  %12761 = vperm.xlu1 %15465, %v12316_v48   ;;  %v23913_v60 = vld [vmem:[#allocation181_spill] sm:$0xff] }
 0x3be   :  { %v11609_v28 = vrot.slane %v23912_v51, %v16600_v18  ;;  %v12708_v6 = vcombine.low %v12148_v22, %v12155_v31  ;;  %v12709_v49 = vcombine.low %v12162_v39, %v12169_v27  ;;  %v12176_v37 = vrot.slane %v23913_v60, %v23570_v5  ;;  %12824 = vperm.xlu0 %15464, %v12673_v16  }
 0x3bf   :  { %v12183_v57 = vrot.slane %v23913_v60, %v16594_v7  ;;  %v12190_v1 = vrot.slane %v23913_v60, %v16597_v30  ;;  %v12333_v43 = vcombine.low %v12325_v20, %v12332_v29  ;;  %v12342_v25 = vrot.slane %v23914_v63, %v16649_v42 }
 0x3c0   :  { %v12349_v4 = vrot.slane %v23915_v47, %v16649_v42  ;;  %v12197_v23 = vrot.slane %v23913_v60, %v16600_v18  ;;  %v12690_v38 = vcombine.low %v12682_v2, %v12689_v11  ;;  %v12699_v22 = vrot.slane %v12691_v0, %v16649_v42  ;;  %v21245_v39 = vpop.permute.xlu1 %9059  ;;  %v21247_v27 = vpop.permute.xlu0 %9080 }
 0x3c1   :  { %v12706_v62 = vrot.slane %v12692_v17, %v16649_v42  ;;  %v12368_v34 = vcombine.low %v11588_v13, %v11595_v44  ;;  %v12369_v31 = vcombine.low %v11602_v53, %v11609_v28  ;;  %12764 = vperm.xlu1 %15465, %v12333_v43   ;;  %v11616_v48 = vrot.slane %v23916_v56, %v23570_v5  ;;  %v23917_v17 = vld [vmem:[#allocation31_spill] sm:$0xff]  ;;  %v23918_v53 = vld [vmem:[#allocation172_spill] sm:$0xff] }
 0x3c2   :  { %v11623_v52 = vrot.slane %v23916_v56, %v16594_v7  ;;  %v11630_v20 = vrot.slane %v23916_v56, %v16597_v30  ;;  %v11637_v0 = vrot.slane %v23916_v56, %v16600_v18  ;;  %12827 = vperm.xlu0 %15464, %v12690_v38   ;;  %v12725_v9 = vcombine.low %v12176_v37, %v12183_v57 }
 0x3c3   :  { %v12350_v29 = vcombine.low %v12342_v25, %v12349_v4  ;;  %v12359_v16 = vrot.slane %v23917_v17, %v16649_v42  ;;  %v12366_v2 = vrot.slane %v21194_v61, %v16649_v42  ;;  %v12726_v11 = vcombine.low %v12190_v1, %v12197_v23 }
 0x3c4   :  { %v12707_v51 = vcombine.low %v12699_v22, %v12706_v62  ;;  %v12716_v13 = vrot.slane %v12708_v6, %v16649_v42  ;;  %v12723_v44 = vrot.slane %v12709_v49, %v16649_v42  ;;  %v11644_v28 = vrot.slane %v23918_v53, %v23570_v5  ;;  %v21267_v37 = vpop.permute.xlu1 %9065  ;;  %v21269_v57 = vpop.permute.xlu0 %9086 }
 0x3c5   :  { %v11651_v60 = vrot.slane %v23918_v53, %v16594_v7  ;;  %12767 = vperm.xlu1 %15465, %v12350_v29   ;;  %v12385_v43 = vcombine.low %v11616_v48, %v11623_v52  ;;  %v11658_v61 = vrot.slane %v23918_v53, %v16597_v30  ;;  %v11665_v6 = vrot.slane %v23918_v53, %v16600_v18  ;;  %v23919_v48 = vld [vmem:[#allocation173_spill] sm:$0xff] }
 0x3c6   :  { %12830 = vperm.xlu0 %15464, %v12707_v51   ;;  %v12386_v49 = vcombine.low %v11630_v20, %v11637_v0  ;;  %v12367_v1 = vcombine.low %v12359_v16, %v12366_v2  ;;  %v12376_v63 = vrot.slane %v12368_v34, %v16649_v42  ;;  %v12383_v25 = vrot.slane %v12369_v31, %v16649_v42  ;;  %v23920_v16 = vld [vmem:[#allocation247_spill] sm:$0xff] }
 0x3c7   :  { %v12724_v47 = vcombine.low %v12716_v13, %v12723_v44  ;;  %v12733_v4 = vrot.slane %v12725_v9, %v16649_v42  ;;  %v12740_v23 = vrot.slane %v12726_v11, %v16649_v42  ;;  %v12402_v38 = vcombine.low %v11644_v28, %v11651_v60 }
 0x3c8   :  { %v21279_v22 = vpop.permute.xlu1 %9071  ;;  %v21281_v62 = vpop.permute.xlu0 %9092  ;;  %v12403_v56 = vcombine.low %v11658_v61, %v11665_v6  ;;  %v11672_v52 = vrot.slane %v23919_v48, %v23570_v5  ;;  %v11679_v34 = vrot.slane %v23919_v48, %v16594_v7  ;;  %v11686_v31 = vrot.slane %v23919_v48, %v16597_v30 }
 0x3c9   :  { %12770 = vperm.xlu1 %15465, %v12367_v1   ;;  %v11693_v20 = vrot.slane %v23919_v48, %v16600_v18  ;;  %v12384_v0 = vcombine.low %v12376_v63, %v12383_v25  ;;  %v12393_v9 = vrot.slane %v12385_v43, %v16649_v42  ;;  %v12400_v29 = vrot.slane %v12386_v49, %v16649_v42 }
 0x3ca   :  { %12833 = vperm.xlu0 %15464, %v12724_v47   ;;  %v12741_v17 = vcombine.low %v12733_v4, %v12740_v23  ;;  %v11700_v2 = vrot.slane %v23920_v16, %v23570_v5  ;;  %v11707_v11 = vrot.slane %v23920_v16, %v16594_v7  ;;  %v12419_v44 = vcombine.low %v11672_v52, %v11679_v34  ;;  %v23921_v47 = vld [vmem:[#allocation91_spill] sm:$0xff] }
 0x3cb   :  { %v11714_v53 = vrot.slane %v23920_v16, %v16597_v30  ;;  %v11721_v28 = vrot.slane %v23920_v16, %v16600_v18  ;;  %v12420_v60 = vcombine.low %v11686_v31, %v11693_v20  ;;  %v12401_v43 = vcombine.low %v12393_v9, %v12400_v29 }
 0x3cc   :  { %v21297_v51 = vpop.permute.xlu1 %9077  ;;  %v9099_v13 = vpop.permute.xlu0 %9098  ;;  %v12410_v61 = vrot.slane %v12402_v38, %v16649_v42  ;;  %v12417_v6 = vrot.slane %v12403_v56, %v16649_v42  ;;  %v12436_v49 = vcombine.low %v11700_v2, %v11707_v11  ;;  %v11728_v4 = vrot.slane %v23921_v47, %v23570_v5 }
 0x3cd   :  { %12773 = vperm.xlu1 %15465, %v12384_v0   ;;  %v12437_v25 = vcombine.low %v11714_v53, %v11721_v28  ;;  %v11735_v23 = vrot.slane %v23921_v47, %v16594_v7  ;;  %v11742_v48 = vrot.slane %v23921_v47, %v16597_v30  ;;  %v11749_v38 = vrot.slane %v23921_v47, %v16600_v18 }
 0x3ce   :  { %12836 = vperm.xlu0 %15464, %v12741_v17   ;;  %v12418_v52 = vcombine.low %v12410_v61, %v12417_v6  ;;  %v12427_v56 = vrot.slane %v12419_v44, %v16649_v42  ;;  %v12434_v34 = vrot.slane %v12420_v60, %v16649_v42  ;;  %v12444_v0 = vrot.slane %v12436_v49, %v16649_v42 }
 0x3cf   :  { %v12451_v9 = vrot.slane %v12437_v25, %v16649_v42  ;;  %v12453_v29 = vcombine.low %v11728_v4, %v11735_v23  ;;  %v12454_v17 = vcombine.low %v11742_v48, %v11749_v38  ;;  %v9149_v2 = vrot.slane %v21200_v58, %v19541_v24 }
 0x3d0   :  { %v21305_v1 = vpop.permute.xlu1 %9083  ;;  %v9105_v63 = vpop.permute.xlu0 %9104  ;;  %v12435_v16 = vcombine.low %v12427_v56, %v12434_v34  ;;  %v9154_v44 = vrot.slane %v21227_v12, %v19544_v54  ;;  %v9145_v60 = vrot.slane %v21120_v33, %v19551_v19  ;;  %v9228_v58 = vrot.slane %v9099_v13, %v19541_v24 }
 0x3d1   :  { %12776 = vperm.xlu1 %15465, %v12401_v43   ;;  %v12452_v28 = vcombine.low %v12444_v0, %v12451_v9  ;;  %v12461_v61 = vrot.slane %v12453_v29, %v16649_v42  ;;  %v12468_v6 = vrot.slane %v12454_v17, %v16649_v42  ;;  %v9164_v12 = vrot.slane %v21245_v39, %v19564_v40 }
 0x3d2   :  { %v9150_v49 = vsel %vm1728_vm1, %v9149_v2, %v9145_v60  ;;  %v9159_v23 = vrot.slane %v21145_v50, %v19547_v21  ;;  %v9238_v56 = vrot.slane %v9105_v63, %v19547_v21  ;;  %v9174_v39 = vrot.slane %v21267_v37, %v19592_v35 }
 0x3d3   :  { %v9155_v4 = vsel %vm1735_vm2, %v9154_v44, %v9150_v49  ;;  %v12469_v38 = vcombine.low %v12461_v61, %v12468_v6  ;;  %v9169_v50 = vrot.slane %v21170_v45, %v19580_v10  ;;  %v9184_v37 = vrot.slane %v21279_v22, %v23878_v59 }
 0x3d4   :  { %v21317_v31 = vpop.permute.xlu1 %9089  ;;  %v9111_v20 = vpop.permute.xlu0 %9110  ;;  %v9160_v13 = vsel %vm1742_vm3, %v9159_v23, %v9155_v4  ;;  %v9179_v45 = vrot.slane %v21202_v26, %v23881_v36  ;;  %v9194_v22 = vrot.slane %v21297_v51, %v23885_v46  ;;  %v9189_v26 = vrot.slane %v21229_v8, %v23887_v41 }
 0x3d5   :  { %12779 = vperm.xlu1 %15465, %v12418_v52   ;;  %v9165_v9 = vsel %vm1749_vm4, %v9164_v12, %v9160_v13  ;;  %v9248_v63 = vrot.slane %v9111_v20, %v19580_v10  ;;  %v9204_v51 = vrot.slane %v21305_v1, %v23889_v14  ;;  %v9199_v8 = vrot.slane %v21247_v27, %v23891_v3 }
 0x3d6   :  { %v9170_v2 = vsel %vm1756_vm5, %v9169_v50, %v9165_v9  ;;  %v9214_v1 = vrot.slane %v21317_v31, %v23896_v15  ;;  %v9209_v27 = vrot.slane %v21269_v57, %v23899_v32  ;;  %v9219_v31 = vrot.slane %v21281_v62, %v23904_v55 }
 0x3d8   :  { %v9096_v11 = vpop.permute.xlu1 %9095  ;;  %v9117_v53 = vpop.permute.xlu0 %9116 }
 0x3d9   :  { %12782 = vperm.xlu1 %15465, %v12435_v16   ;;  %v9224_v43 = vrot.slane %v9096_v11, %v19551_v19  ;;  %v9258_v20 = vrot.slane %v9117_v53, %v23881_v36 }
 0x3db   :  { %v9229_v48 = vsel %vm1728_vm1, %v9228_v58, %v9224_v43 }
 0x3dc   :  { %v9102_v25 = vpop.permute.xlu1 %9101  ;;  %v9123_v47 = vpop.permute.xlu0 %9122 }
 0x3dd   :  { %12785 = vperm.xlu1 %15465, %v12452_v28   ;;  %v9233_v33 = vrot.slane %v9102_v25, %v19544_v54  ;;  %v9175_v28 = vsel %vm1763_vm6, %v9174_v39, %v9170_v2  ;;  %v9268_v53 = vrot.slane %v9123_v47, %v23887_v41 }
 0x3de   :  { %v9180_v6 = vsel %vm1770_vm7, %v9179_v45, %v9175_v28 }
 0x3df   :  { %v9234_v52 = vsel %vm1735_vm2, %v9233_v33, %v9229_v48  ;;  %v9185_v25 = vsel %vm1777_vm8, %v9184_v37, %v9180_v6 }
 0x3e0   :  { %v9108_v34 = vpop.permute.xlu1 %9107  ;;  %v9129_v0 = vpop.permute.xlu0 %9128  ;;  %v9239_v17 = vsel %vm1742_vm3, %v9238_v56, %v9234_v52  ;;  %v9190_v23 = vsel %vm1784_vm9, %v9189_v26, %v9185_v25 }
 0x3e1   :  { %12788 = vperm.xlu1 %15465, %v12469_v38   ;;  %v9243_v29 = vrot.slane %v9108_v34, %v19564_v40  ;;  %v9195_v52 = vsel %vm1791_vm10, %v9194_v22, %v9190_v23  ;;  %v9278_v47 = vrot.slane %v9129_v0, %v23891_v3 }
 0x3e2   :  { %v9200_v9 = vsel %vm1798_vm11, %v9199_v8, %v9195_v52 }
 0x3e3   :  { %v9244_v16 = vsel %vm1749_vm4, %v9243_v29, %v9239_v17  ;;  %v9205_v50 = vsel %vm1805_vm12, %v9204_v51, %v9200_v9 }
 0x3e4   :  { %v9114_v11 = vpop.permute.xlu1 %9113  ;;  %v9135_v44 = vpop.permute.xlu0 %9134  ;;  %v9249_v43 = vsel %vm1756_vm5, %v9248_v63, %v9244_v16  ;;  %v9210_v63 = vsel %vm1812_vm13, %v9209_v27, %v9205_v50 }
 0x3e5   :  { %v9253_v60 = vrot.slane %v9114_v11, %v19592_v35  ;;  %v9288_v0 = vrot.slane %v9135_v44, %v23899_v32  ;;  %v9215_v37 = vsel %vm1819_vm14, %v9214_v1, %v9210_v63 }
 0x3e7   :  { %v9254_v61 = vsel %vm1763_vm6, %v9253_v60, %v9249_v43 }
 0x3e8   :  { %v9120_v49 = vpop.permute.xlu1 %9119  ;;  %v9141_v58 = vpop.permute.xlu0 %9140  ;;  %v9259_v12 = vsel %vm1770_vm7, %v9258_v20, %v9254_v61  ;;  %v9220_v61 = vsel %vm22718_vm15, %v9219_v31, %v9215_v37 }
 0x3e9   :  { %v9263_v4 = vrot.slane %v9120_v49, %v23878_v59  ;;  %v9298_v45 = vrot.slane %v9141_v58, %v23904_v55 }
 0x3eb   :  { %v9264_v33 = vsel %vm1777_vm8, %v9263_v4, %v9259_v12 }
 0x3ec   :  { %v9126_v48 = vpop.permute.xlu1 %9125  ;;  %v10880_v38 = vpop.permute.xlu0 %10879  ;;  %v9269_v56 = vsel %vm1784_vm9, %v9268_v53, %v9264_v33 }
 0x3ed   :  { %v9273_v13 = vrot.slane %v9126_v48, %v23885_v46  ;;  %v10977_v22 = vrot.slane %v10880_v38, %v19551_v19 }
 0x3ef   :  { %v9274_v34 = vsel %vm1791_vm10, %v9273_v13, %v9269_v56 }
 0x3f0   :  { %v9132_v39 = vpop.permute.xlu1 %9131  ;;  %v10889_v29 = vpop.permute.xlu0 %10888  ;;  %v9279_v16 = vsel %vm1798_vm11, %v9278_v47, %v9274_v34 }
 0x3f1   :  { %v9283_v17 = vrot.slane %v9132_v39, %v23889_v14  ;;  %v10991_v33 = vrot.slane %v10889_v29, %v19547_v21 }
 0x3f3   :  { %v9284_v2 = vsel %vm1805_vm12, %v9283_v17, %v9279_v16 }
 0x3f4   :  { %v9138_v11 = vpop.permute.xlu1 %9137  ;;  %v10895_v28 = vpop.permute.xlu0 %10894  ;;  %v9289_v57 = vsel %vm1812_vm13, %v9288_v0, %v9284_v2 }
 0x3f5   :  { %v9293_v60 = vrot.slane %v9138_v11, %v23896_v15  ;;  %v11001_v38 = vrot.slane %v10895_v28, %v19580_v10 }
 0x3f7   :  { %v9294_v43 = vsel %vm1819_vm14, %v9293_v60, %v9289_v57 }
 0x3f8   :  { %v9299_v6 = vsel %vm22718_vm15, %v9298_v45, %v9294_v43  ;;  %v10883_v44 = vpop.permute.xlu1 %10882  ;;  %v10901_v20 = vpop.permute.xlu0 %10900 }
 0x3f9   :  { %v9300_v49 = vsel %vm22717_vm0, %v9299_v6, %v9220_v61  ;;  %v10981_v25 = vrot.slane %v10883_v44, %v19541_v24  ;;  %v11011_v34 = vrot.slane %v10901_v20, %v23881_v36 }
 0x3fa   :  { %15310 = vst.sshfl [vmem:[#allocation2 + $0x4] sm:$0x3 pattern:$0x76325410] %v9300_v49 }
 0x3fb   :  { %v10982_v26 = vsel %vm1728_vm1, %v10981_v25, %v10977_v22 }
 0x3fc   :  { %v10886_v62 = vpop.permute.xlu1 %10885  ;;  %v10907_v4 = vpop.permute.xlu0 %10906 }
 0x3fd   :  { %v10986_v58 = vrot.slane %v10886_v62, %v19544_v54  ;;  %v11021_v17 = vrot.slane %v10907_v4, %v23887_v41 }
 0x3ff   :  { %v10987_v12 = vsel %vm1735_vm2, %v10986_v58, %v10982_v26 }
 0x400   :  { %v10892_v23 = vpop.permute.xlu1 %10891  ;;  %v10992_v52 = vsel %vm1742_vm3, %v10991_v33, %v10987_v12 }
 0x401   :  { %v10913_v53 = vpop.permute.xlu0 %10912  ;;  %v10996_v48 = vrot.slane %v10892_v23, %v19564_v40 }
 0x402   :  { %v11031_v11 = vrot.slane %v10913_v53, %v23891_v3 }
 0x403   :  { %v10997_v51 = vsel %vm1749_vm4, %v10996_v48, %v10992_v52 }
 0x404   :  { %v10898_v13 = vpop.permute.xlu1 %10897  ;;  %v11002_v9 = vsel %vm1756_vm5, %v11001_v38, %v10997_v51 }
 0x405   :  { %v10919_v8 = vpop.permute.xlu0 %10918  ;;  %v11006_v56 = vrot.slane %v10898_v13, %v19592_v35 }
 0x406   :  { %v11041_v57 = vrot.slane %v10919_v8, %v23899_v32 }
 0x407   :  { %v11007_v47 = vsel %vm1763_vm6, %v11006_v56, %v11002_v9 }
 0x408   :  { %v10904_v39 = vpop.permute.xlu1 %10903  ;;  %v11012_v29 = vsel %vm1770_vm7, %v11011_v34, %v11007_v47 }
 0x409   :  { %v10925_v50 = vpop.permute.xlu0 %10924  ;;  %v11016_v1 = vrot.slane %v10904_v39, %v23878_v59 }
 0x40a   :  { %v11051_v49 = vrot.slane %v10925_v50, %v23904_v55 }
 0x40b   :  { %v11017_v27 = vsel %vm1777_vm8, %v11016_v1, %v11012_v29 }
 0x40c   :  { %v10910_v16 = vpop.permute.xlu1 %10909  ;;  %v11022_v2 = vsel %vm1784_vm9, %v11021_v17, %v11017_v27 }
 0x40d   :  { %v10931_v63 = vpop.permute.xlu0 %10930  ;;  %v11026_v0 = vrot.slane %v10910_v16, %v23885_v46 }
 0x40e   :  { %v11060_v58 = vrot.slane %v10931_v63, %v19541_v24 }
 0x40f   :  { %v11027_v28 = vsel %vm1791_vm10, %v11026_v0, %v11022_v2 }
 0x410   :  { %v10916_v37 = vpop.permute.xlu1 %10915  ;;  %v11032_v60 = vsel %vm1798_vm11, %v11031_v11, %v11027_v28 }
 0x411   :  { %v21425_v31 = vpop.permute.xlu0 %12743  ;;  %v11036_v45 = vrot.slane %v10916_v37, %v23889_v14 }
 0x413   :  { %v11037_v43 = vsel %vm1805_vm12, %v11036_v45, %v11032_v60 }
 0x414   :  { %v10922_v61 = vpop.permute.xlu1 %10921  ;;  %v11042_v6 = vsel %vm1812_vm13, %v11041_v57, %v11037_v43 }
 0x415   :  { %v12795_v44 = vpop.permute.xlu0 %12794  ;;  %v11046_v20 = vrot.slane %v10922_v61, %v23896_v15 }
 0x416   :  { %v12924_v37 = vrot.slane %v12795_v44, %v19541_v24 }
 0x417   :  { %v11047_v25 = vsel %vm1819_vm14, %v11046_v20, %v11042_v6 }
 0x418   :  { %v21435_v22 = vsel %vm22718_vm15, %v11051_v49, %v11047_v25  ;;  %v10928_v62 = vpop.permute.xlu1 %10927 }
 0x419   :  { %23922 = vst [vmem:[#allocation99_spill] sm:$0xff] %v21435_v22  ;;  %v12798_v4 = vpop.permute.xlu0 %12797  ;;  %v11056_v26 = vrot.slane %v10928_v62, %v19551_v19 }
 0x41a   :  { %v12929_v45 = vrot.slane %v12798_v4, %v19544_v54 }
 0x41b   :  { %v11061_v12 = vsel %vm1728_vm1, %v11060_v58, %v11056_v26 }
 0x41c   :  { %v10934_v33 = vpop.permute.xlu1 %10933 }
 0x41d   :  { %v12801_v23 = vpop.permute.xlu0 %12800  ;;  %v11065_v53 = vrot.slane %v10934_v33, %v19544_v54  ;;  %v12841_v33 = vrot.slane %v21425_v31, %v19551_v19 }
 0x41e   :  { %v12934_v6 = vrot.slane %v12801_v23, %v19547_v21 }
 0x41f   :  { %v11066_v48 = vsel %vm1735_vm2, %v11065_v53, %v11061_v12 }
 0x420   :  { %v10937_v52 = vpop.permute.xlu1 %10936 }
 0x421   :  { %v12804_v51 = vpop.permute.xlu0 %12803  ;;  %v11070_v38 = vrot.slane %v10937_v52, %v19547_v21 }
 0x422   :  { %v12939_v25 = vrot.slane %v12804_v51, %v19564_v40 }
 0x423   :  { %v21444_v13 = vsel %vm1742_vm3, %v11070_v38, %v11066_v48 }
 0x424   :  { %v12747_v8 = vpop.permute.xlu1 %12746 }
 0x425   :  { %v12807_v56 = vpop.permute.xlu0 %12806  ;;  %v12845_v44 = vrot.slane %v12747_v8, %v19541_v24 }
 0x426   :  { %v12944_v12 = vrot.slane %v12807_v56, %v19580_v10 }
 0x427   :  { %v12846_v38 = vsel %vm1728_vm1, %v12845_v44, %v12841_v33 }
 0x428   :  { %v12792_v34 = vpop.permute.xlu1 %12791 }
 0x429   :  { %v12810_v9 = vpop.permute.xlu0 %12809  ;;  %v12920_v0 = vrot.slane %v12792_v34, %v19551_v19 }
 0x42a   :  { %v12949_v48 = vrot.slane %v12810_v9, %v19592_v35 }
 0x42b   :  { %v12925_v60 = vsel %vm1728_vm1, %v12924_v37, %v12920_v0 }
 0x42c   :  { %v12750_v47 = vpop.permute.xlu1 %12749  ;;  %v12930_v43 = vsel %vm1735_vm2, %v12929_v45, %v12925_v60 }
 0x42d   :  { %v12813_v39 = vpop.permute.xlu0 %12812  ;;  %v12935_v49 = vsel %vm1742_vm3, %v12934_v6, %v12930_v43  ;;  %v12850_v4 = vrot.slane %v12750_v47, %v19544_v54 }
 0x42e   :  { %v12940_v62 = vsel %vm1749_vm4, %v12939_v25, %v12935_v49  ;;  %v12954_v0 = vrot.slane %v12813_v39, %v23881_v36 }
 0x42f   :  { %v12945_v23 = vsel %vm1756_vm5, %v12944_v12, %v12940_v62  ;;  %v12851_v34 = vsel %vm1735_vm2, %v12850_v4, %v12846_v38 }
 0x430   :  { %v12753_v29 = vpop.permute.xlu1 %12752  ;;  %v12950_v56 = vsel %vm1763_vm6, %v12949_v48, %v12945_v23 }
 0x431   :  { %v12816_v50 = vpop.permute.xlu0 %12815  ;;  %v12855_v53 = vrot.slane %v12753_v29, %v19547_v21  ;;  %v12955_v45 = vsel %vm1770_vm7, %v12954_v0, %v12950_v56 }
 0x433   :  { %v12856_v29 = vsel %vm1742_vm3, %v12855_v53, %v12851_v34 }
 0x434   :  { %v12756_v1 = vpop.permute.xlu1 %12755 }
 0x435   :  { %v12819_v17 = vpop.permute.xlu0 %12818  ;;  %v12860_v52 = vrot.slane %v12756_v1, %v19564_v40  ;;  %v12959_v1 = vrot.slane %v12816_v50, %v23878_v59 }
 0x436   :  { %v12964_v43 = vrot.slane %v12819_v17, %v23887_v41 }
 0x437   :  { %v12861_v37 = vsel %vm1749_vm4, %v12860_v52, %v12856_v29  ;;  %v12960_v62 = vsel %vm1777_vm8, %v12959_v1, %v12955_v45 }
 0x438   :  { %v12759_v27 = vpop.permute.xlu1 %12758  ;;  %v12965_v4 = vsel %vm1784_vm9, %v12964_v43, %v12960_v62 }
 0x439   :  { %v12822_v2 = vpop.permute.xlu0 %12821  ;;  %v12865_v8 = vrot.slane %v12759_v27, %v19580_v10 }
 0x43a   :  { %v12969_v39 = vrot.slane %v12822_v2, %v23885_v46 }
 0x43c   :  { %v12762_v16 = vpop.permute.xlu1 %12761 }
 0x43d   :  { %v21447_v11 = vpop.permute.xlu0 %12824  ;;  %v12870_v47 = vrot.slane %v12762_v16, %v19592_v35  ;;  %v12866_v16 = vsel %vm1756_vm5, %v12865_v8, %v12861_v37  ;;  %v23923_v37 = vld [vmem:[#allocation44_spill] sm:$0xff] }
 0x43e   :  { %v12974_v50 = vrot.slane %v21447_v11, %v23891_v3  ;;  %v10046_v45 = vrot.slane %v23923_v37, %v16597_v30  ;;  %v10053_v43 = vrot.slane %v23923_v37, %v16600_v18 }
 0x43f   :  { %v12871_v49 = vsel %vm1763_vm6, %v12870_v47, %v12866_v16  ;;  %v23924_v16 = vld [vmem:[#allocation9_spill] sm:$0xff] }
 0x440   :  { %v12765_v63 = vpop.permute.xlu1 %12764 }
 0x441   :  { %v12828_v61 = vpop.permute.xlu0 %12827  ;;  %v12875_v9 = vrot.slane %v12765_v63, %v23881_v36 }
 0x442   :  { %v12979_v17 = vrot.slane %v12828_v61, %v23889_v14 }
 0x444   :  { %v12768_v28 = vpop.permute.xlu1 %12767 }
 0x445   :  { %v12831_v58 = vpop.permute.xlu0 %12830  ;;  %v12880_v60 = vrot.slane %v12768_v28, %v23878_v59  ;;  %v12876_v28 = vsel %vm1770_vm7, %v12875_v9, %v12871_v49  ;;  %v10018_v49 = vrot.slane %v23924_v16, %v16597_v30 }
 0x447   :  { %v12881_v44 = vsel %vm1777_vm8, %v12880_v60, %v12876_v28  ;;  %v10032_v60 = vrot.slane %v23923_v37, %v23570_v5 }
 0x448   :  { %v12771_v57 = vpop.permute.xlu1 %12770 }
 0x449   :  { %v12834_v31 = vpop.permute.xlu0 %12833  ;;  %v12885_v6 = vrot.slane %v12771_v57, %v23887_v41 }
 0x44a   :  { %v12989_v23 = vrot.slane %v12834_v31, %v23896_v15 }
 0x44b   :  { %v12886_v11 = vsel %vm1784_vm9, %v12885_v6, %v12881_v44  ;;  %v10004_v6 = vrot.slane %v23924_v16, %v23570_v5 }
 0x44c   :  { %v12774_v20 = vpop.permute.xlu1 %12773 }
 0x44d   :  { %v12890_v63 = vrot.slane %v12774_v20, %v23885_v46  ;;  %v12837_v57 = vpop.permute.xlu0 %12836  ;;  %v12984_v20 = vrot.slane %v12831_v58, %v23899_v32 }
 0x44e   :  { %v12994_v52 = vrot.slane %v12837_v57, %v23904_v55 }
 0x44f   :  { %v12891_v61 = vsel %vm1791_vm10, %v12890_v63, %v12886_v11  ;;  %v10025_v63 = vrot.slane %v23924_v16, %v16600_v18 }
 0x450   :  { %v12777_v26 = vpop.permute.xlu1 %12776 }
 0x451   :  { %v12895_v25 = vrot.slane %v12777_v26, %v23891_v3  ;;  %v12970_v26 = vsel %vm1791_vm10, %v12969_v39, %v12965_v4  ;;  %v10011_v39 = vrot.slane %v23924_v16, %v16594_v7  ;;  %v23926_v4 = vld [vmem:[#allocation13_spill] sm:$0xff] }
 0x452   :  { %v12975_v48 = vsel %vm1798_vm11, %v12974_v50, %v12970_v26  ;;  %v23925_v50 = vld [vmem:[#allocation218_spill] sm:$0xff]  ;;  %v10067_v11 = vrot.slane %v23926_v4, %v16594_v7  ;;  %v10081_v26 = vrot.slane %v23926_v4, %v16600_v18 }
 0x453   :  { %v12980_v58 = vsel %vm1805_vm12, %v12979_v17, %v12975_v48  ;;  %v10088_v28 = vrot.slane %v23925_v50, %v23570_v5  ;;  %v21535_v17 = vcombine.low %v10046_v45, %v10053_v43  ;;  %v10102_v44 = vrot.slane %v23925_v50, %v16597_v30 }
 0x454   :  { %v12780_v51 = vpop.permute.xlu1 %12779  ;;  %v12985_v56 = vsel %vm1812_vm13, %v12984_v20, %v12980_v58  ;;  %v10109_v57 = vrot.slane %v23925_v50, %v16600_v18  ;;  %v10060_v20 = vrot.slane %v23926_v4, %v23570_v5 }
 0x455   :  { %v12900_v2 = vrot.slane %v12780_v51, %v23889_v14  ;;  %v12896_v51 = vsel %vm1798_vm11, %v12895_v25, %v12891_v61  ;;  %v12990_v31 = vsel %vm1819_vm14, %v12989_v23, %v12985_v56  ;;  %v10095_v25 = vrot.slane %v23925_v50, %v16594_v7  ;;  %v23928_v56 = vld [vmem:[#allocation49_spill] sm:$0xff] }
 0x456   :  { %v12995_v29 = vsel %vm22718_vm15, %v12994_v52, %v12990_v31  ;;  %v23929_v31 = vld [vmem:[#allocation252_spill] sm:$0xff] }
 0x457   :  { %v12901_v38 = vsel %vm1805_vm12, %v12900_v2, %v12896_v51  ;;  %v21541_v2 = vcombine.low %v10004_v6, %v10011_v39  ;;  %v21555_v61 = vcombine.low %v10088_v28, %v10095_v25 }
 0x458   :  { %v12783_v27 = vpop.permute.xlu1 %12782 }
 0x459   :  { %v12905_v33 = vrot.slane %v12783_v27, %v23899_v32  ;;  %v10039_v27 = vrot.slane %v23923_v37, %v16594_v7  ;;  %v13154_v37 = vrot.slane %v23929_v31, %v16597_v30 }
 0x45b   :  { %v12906_v34 = vsel %vm1812_vm13, %v12905_v33, %v12901_v38  ;;  %v21533_v62 = vcombine.low %v10032_v60, %v10039_v27  ;;  %v10074_v33 = vrot.slane %v23926_v4, %v16597_v30  ;;  %v13161_v60 = vrot.slane %v23929_v31, %v16600_v18  ;;  %v23930_v27 = vld [vmem:[#allocation255_spill] sm:$0xff] }
 0x45c   :  { %v12786_v12 = vpop.permute.xlu1 %12785  ;;  %v13168_v45 = vrot.slane %v23930_v27, %v23570_v5  ;;  %v13175_v43 = vrot.slane %v23930_v27, %v16594_v7  ;;  %v13182_v16 = vrot.slane %v23930_v27, %v16597_v30  ;;  %v13189_v6 = vrot.slane %v23930_v27, %v16600_v18 }
 0x45d   :  { %v12910_v53 = vrot.slane %v12786_v12, %v23896_v15  ;;  %v21543_v12 = vcombine.low %v10018_v49, %v10025_v63  ;;  %v23931_v49 = vld [vmem:[#allocation97_spill] sm:$0xff]  ;;  %v21598_v4 = vcombine.low %v10102_v44, %v10109_v57  ;;  %v14031_v44 = vcombine.low %v13154_v37, %v13161_v60 }
 0x45e   :  { %v13616_v63 = vrot.slane %v23931_v49, %v23570_v5  ;;  %v13623_v50 = vrot.slane %v23931_v49, %v16594_v7  ;;  %v13630_v28 = vrot.slane %v23931_v49, %v16597_v30  ;;  %v13637_v25 = vrot.slane %v23931_v49, %v16600_v18 }
 0x45f   :  { %v12911_v0 = vsel %vm1819_vm14, %v12910_v53, %v12906_v34  ;;  %v23927_v53 = vld [vmem:[#allocation48_spill] sm:$0xff]  ;;  %v10116_v34 = vrot.slane %v23928_v56, %v23570_v5  ;;  %v14047_v57 = vcombine.low %v13168_v45, %v13175_v43 }
 0x460   :  { %v12789_v8 = vpop.permute.xlu1 %12788  ;;  %v10144_v48 = vrot.slane %v23927_v53, %v23570_v5  ;;  %v10151_v58 = vrot.slane %v23927_v53, %v16594_v7  ;;  %v10158_v38 = vrot.slane %v23927_v53, %v16597_v30  ;;  %v23935_v45 = vld [vmem:[#allocation184_spill] sm:$0xff] }
 0x461   :  { %v12915_v47 = vrot.slane %v12789_v8, %v23904_v55  ;;  %v10165_v8 = vrot.slane %v23927_v53, %v16600_v18  ;;  %v21600_v53 = vcombine.low %v10060_v20, %v10067_v11  ;;  %v10137_v55 = vrot.slane %v23928_v56, %v16600_v18 }
 0x462   :  { %v21606_v27 = vcombine.low %v10144_v48, %v10151_v58  ;;  %v14048_v20 = vcombine.low %v13182_v16, %v13189_v6  ;;  %v14319_v11 = vcombine.low %v13616_v63, %v13623_v50  ;;  %v23933_v58 = vld [vmem:[#allocation260_spill] sm:$0xff]  ;;  %v13196_v43 = vrot.slane %v23935_v45, %v23570_v5 }
 0x463   :  { %v12916_v9 = vsel %vm22718_vm15, %v12915_v47, %v12911_v0  ;;  %v10123_v47 = vrot.slane %v23928_v56, %v16594_v7  ;;  %v13140_v0 = vrot.slane %v23929_v31, %v23570_v5  ;;  %v21608_v22 = vcombine.low %v10158_v38, %v10165_v8 }
 0x464   :  { %v12996_v1 = vsel %vm22717_vm0, %v12995_v29, %v12916_v9  ;;  %v13588_v38 = vrot.slane %v23933_v58, %v23570_v5  ;;  %v13595_v8 = vrot.slane %v23933_v58, %v16594_v7  ;;  %v13203_v16 = vrot.slane %v23935_v45, %v16594_v7 }
 0x465   :  { %15312 = vst.sshfl [vmem:[#allocation2 + $0x6] sm:$0x3 pattern:$0x76325410] %v12996_v1  ;;  %v13147_v1 = vrot.slane %v23929_v31, %v16594_v7  ;;  %v10130_v31 = vrot.slane %v23928_v56, %v16597_v30  ;;  %v21612_v15 = vcombine.low %v10116_v34, %v10123_v47  ;;  %v13602_v56 = vrot.slane %v23933_v58, %v16597_v30 }
 0x466   :  { %v13609_v34 = vrot.slane %v23933_v58, %v16600_v18  ;;  %v14062_v6 = vrot.slane %v14048_v20, %v16649_v42 }
 0x467   :  { %v14030_v49 = vcombine.low %v13140_v0, %v13147_v1  ;;  %v23934_v1 = vld [vmem:[#allocation102_spill] sm:$0xff]  ;;  %v21640_v63 = vcombine.low %v10130_v31, %v10137_v55  ;;  %v14064_v31 = vcombine.low %v13196_v43, %v13203_v16 }
 0x468   :  { %v13672_v37 = vrot.slane %v23934_v1, %v23570_v5  ;;  %v13679_v60 = vrot.slane %v23934_v1, %v16594_v7  ;;  %v14303_v58 = vcombine.low %v13602_v56, %v13609_v34 }
 0x469   :  { %v14038_v14 = vrot.slane %v14030_v49, %v16649_v42  ;;  %v23936_v49 = vld [vmem:[#allocation196_spill] sm:$0xff] }
 0x46a   :  { %v14353_v55 = vcombine.low %v13672_v37, %v13679_v60  ;;  %v13238_v56 = vrot.slane %v23936_v49, %v16597_v30  ;;  %v13245_v34 = vrot.slane %v23936_v49, %v16600_v18 }
 0x46c   :  { %v21553_v23 = vld [vmem:[#allocation2] sm:$0xff] }
 0x46d   :  { %v14848_v52 = vrot.slane %v21553_v23, %v16649_v42  ;;  %v14841_v51 = vcombine.high %v21553_v23, %v21553_v23 }
 0x46f   :  { %14862 = vrot.lane.b32.xlu0 %v14848_v52, %s15491_s0  ;;  %v14856_v29 = vcombine.high %v14848_v52, %v14848_v52  ;;  %v14855_v9 = vrot.slane %v14841_v51, %v16649_v42  ;;  %v21602_v51 = vcombine.low %v10074_v33, %v10081_v26  ;;  %v14320_v33 = vcombine.low %v13630_v28, %v13637_v25  ;;  %v23932_v26 = vld [vmem:[#allocation100_spill] sm:$0xff] }
 0x470   :  { %v13644_v32 = vrot.slane %v23932_v26, %v23570_v5  ;;  %v13651_v48 = vrot.slane %v23932_v26, %v16594_v7  ;;  %v13658_v47 = vrot.slane %v23932_v26, %v16597_v30  ;;  %v13665_v0 = vrot.slane %v23932_v26, %v16600_v18 }
 0x471   :  { %14864 = vrot.lane.b32.xlu1 %v14856_v29, %s15491_s0  ;;  %v14857_v39 = vcombine.high %v14855_v9, %v14855_v9  ;;  %v13210_v28 = vrot.slane %v23935_v45, %v16597_v30  ;;  %v13217_v25 = vrot.slane %v23935_v45, %v16600_v18  ;;  %v14302_v26 = vcombine.low %v13588_v38, %v13595_v8 }
 0x472   :  { %v14336_v50 = vcombine.low %v13644_v32, %v13651_v48  ;;  %v14337_v3 = vcombine.low %v13658_v47, %v13665_v0  ;;  %v13693_v32 = vrot.slane %v23934_v1, %v16600_v18  ;;  %v14327_v48 = vrot.slane %v14319_v11, %v16649_v42  ;;  %v23937_v0 = vld [vmem:[#allocation24_spill] sm:$0xff] }
 0x473   :  { %14868 = vrot.lane.b32.xlu0 %v14857_v39, %s15491_s0  ;;  %v14334_v38 = vrot.slane %v14320_v33, %v16649_v42  ;;  %v13224_v8 = vrot.slane %v23936_v49, %v23570_v5  ;;  %v14310_v47 = vrot.slane %v14302_v26, %v16649_v42  ;;  %v14317_v11 = vrot.slane %v14303_v58, %v16649_v42 }
 0x474   :  { %v13259_v37 = vrot.slane %v23937_v0, %v16594_v7  ;;  %v13266_v60 = vrot.slane %v23937_v0, %v16597_v30  ;;  %v13273_v45 = vrot.slane %v23937_v0, %v16600_v18  ;;  %v14351_v16 = vrot.slane %v14337_v3, %v16649_v42 }
 0x475   :  { %14866 = vrot.lane.b32.xlu1 %v14855_v9, %s15491_s0  ;;  %v14335_v43 = vcombine.low %v14327_v48, %v14334_v38 }
 0x477   :  { %14877 = vrot.lane.b32.xlu0 %v14856_v29, %s15492_s24  ;;  %v14055_v29 = vrot.slane %v14047_v57, %v16649_v42  ;;  %v13686_v57 = vrot.slane %v23934_v1, %v16597_v30  ;;  %v13252_v1 = vrot.slane %v23937_v0, %v23570_v5 }
 0x479   :  { %14875 = vrot.lane.b32.xlu1 %v14848_v52, %s15492_s24  ;;  %v14045_v52 = vrot.slane %v14031_v44, %v16649_v42  ;;  %v14063_v20 = vcombine.low %v14055_v29, %v14062_v6  ;;  %v13231_v44 = vrot.slane %v23936_v49, %v16594_v7  ;;  %v14354_v33 = vcombine.low %v13686_v57, %v13693_v32  ;;  %v23938_v29 = vld [vmem:[#allocation8_spill] sm:$0xff] }
 0x47a   :  { %v10200_v6 = vrot.slane %v23938_v29, %v23570_v5  ;;  %v14318_v57 = vcombine.low %v14310_v47, %v14317_v11  ;;  %v14072_v32 = vrot.slane %v14064_v31, %v16649_v42  ;;  %v14098_v38 = vcombine.low %v13252_v1, %v13259_v37  ;;  %v23941_v11 = vld [vmem:[#allocation219_spill] sm:$0xff] }
 0x47b   :  { %14881 = vrot.lane.b32.xlu0 %v14857_v39, %s15492_s24  ;;  %v14065_v39 = vcombine.low %v13210_v28, %v13217_v25  ;;  %v10207_v28 = vrot.slane %v23938_v29, %v16594_v7  ;;  %v23939_v25 = vld [vmem:[#allocation183_spill] sm:$0xff]  ;;  %v14081_v58 = vcombine.low %v13224_v8, %v13231_v44  ;;  %v14099_v49 = vcombine.low %v13266_v60, %v13273_v45 }
 0x47c   :  { %v13700_v26 = vrot.slane %v23939_v25, %v23570_v5  ;;  %v13707_v3 = vrot.slane %v23939_v25, %v16594_v7  ;;  %v13721_v48 = vrot.slane %v23939_v25, %v16600_v18  ;;  %v14361_v44 = vrot.slane %v14353_v55, %v16649_v42 }
 0x47d   :  { %14879 = vrot.lane.b32.xlu1 %v14855_v9, %s15492_s24  ;;  %v14046_v9 = vcombine.low %v14038_v14, %v14045_v52  ;;  %v14344_v14 = vrot.slane %v14336_v50, %v16649_v42  ;;  %v14082_v52 = vcombine.low %v13238_v56, %v13245_v34  ;;  %v13714_v50 = vrot.slane %v23939_v25, %v16597_v30  ;;  %v23940_v34 = vld [vmem:[#allocation111_spill] sm:$0xff] }
 0x47e   :  { %v14368_v56 = vrot.slane %v14354_v33, %v16649_v42  ;;  %v10214_v31 = vrot.slane %v23938_v29, %v16597_v30  ;;  %v13735_v47 = vrot.slane %v23940_v34, %v16594_v7  ;;  %v10172_v0 = vrot.slane %v23941_v11, %v23570_v5 }
 0x47f   :  { %14578 = vperm.xlu0 %15464, %v14063_v20   ;;  %v14079_v20 = vrot.slane %v14065_v39, %v16649_v42  ;;  %v14352_v8 = vcombine.low %v14344_v14, %v14351_v16  ;;  %v10221_v39 = vrot.slane %v23938_v29, %v16600_v18  ;;  %v14089_v55 = vrot.slane %v14081_v58, %v16649_v42 }
 0x480   :  { %v14096_v33 = vrot.slane %v14082_v52, %v16649_v42  ;;  %v10179_v37 = vrot.slane %v23941_v11, %v16594_v7  ;;  %v14370_v60 = vcombine.low %v13700_v26, %v13707_v3  ;;  %v13742_v45 = vrot.slane %v23940_v34, %v16597_v30  ;;  %v23942_v52 = vld [vmem:[#allocation195_spill] sm:$0xff] }
 0x481   :  { %14575 = vperm.xlu1 %15465, %v14046_v9   ;;  %v13728_v9 = vrot.slane %v23940_v34, %v23570_v5  ;;  %v14080_v1 = vcombine.low %v14072_v32, %v14079_v20  ;;  %v14371_v14 = vcombine.low %v13714_v50, %v13721_v48  ;;  %v14369_v16 = vcombine.low %v14361_v44, %v14368_v56 }
 0x482   :  { %v14106_v25 = vrot.slane %v14098_v38, %v16649_v42  ;;  %v13280_v32 = vrot.slane %v23942_v52, %v23570_v5  ;;  %v13287_v26 = vrot.slane %v23942_v52, %v16594_v7  ;;  %v13294_v20 = vrot.slane %v23942_v52, %v16597_v30 }
 0x483   :  { %14626 = vperm.xlu0 %15464, %v14335_v43   ;;  %v13749_v43 = vrot.slane %v23940_v34, %v16600_v18  ;;  %v14387_v58 = vcombine.low %v13728_v9, %v13735_v47  ;;  %v13301_v3 = vrot.slane %v23942_v52, %v16600_v18  ;;  %v14097_v50 = vcombine.low %v14089_v55, %v14096_v33  ;;  %v23944_v33 = vld [vmem:[#allocation23_spill] sm:$0xff] }
 0x484   :  { %v10682_v48 = vrot.slane %v21541_v2, %v16649_v42  ;;  %v10689_v38 = vrot.slane %v21543_v12, %v16649_v42  ;;  %v10699_v2 = vrot.slane %v21533_v62, %v16649_v42  ;;  %v10706_v12 = vrot.slane %v21535_v17, %v16649_v42 }
 0x485   :  { %14623 = vperm.xlu1 %15465, %v14318_v57   ;;  %v14113_v57 = vrot.slane %v14099_v49, %v16649_v42  ;;  %v14388_v49 = vcombine.low %v13742_v45, %v13749_v43  ;;  %v10193_v55 = vrot.slane %v23941_v11, %v16600_v18  ;;  %v13756_v45 = vrot.slane %v23944_v33, %v23570_v5 }
 0x486   :  { %v14115_v43 = vcombine.low %v13280_v32, %v13287_v26  ;;  %v10690_v52 = vcombine.low %v10682_v48, %v10689_v38  ;;  %v14385_v62 = vrot.slane %v14371_v14, %v16649_v42  ;;  %v13763_v17 = vrot.slane %v23944_v33, %v16594_v7 }
 0x487   :  { %14629 = vperm.xlu0 %15464, %v14352_v8   ;;  %v23943_v8 = vld [vmem:[#allocation117_spill] sm:$0xff]  ;;  %v14114_v47 = vcombine.low %v14106_v25, %v14113_v57  ;;  %v14378_v25 = vrot.slane %v14370_v60, %v16649_v42  ;;  %v13770_v57 = vrot.slane %v23944_v33, %v16597_v30  ;;  %v10707_v32 = vcombine.low %v10699_v2, %v10706_v12 }
 0x488   :  { %v13308_v44 = vrot.slane %v23943_v8, %v23570_v5  ;;  %v13315_v56 = vrot.slane %v23943_v8, %v16594_v7  ;;  %v13322_v34 = vrot.slane %v23943_v8, %v16597_v30  ;;  %v13329_v9 = vrot.slane %v23943_v8, %v16600_v18 }
 0x489   :  { %14581 = vperm.xlu1 %15465, %v14080_v1   ;;  %v10186_v1 = vrot.slane %v23941_v11, %v16597_v30  ;;  %v13777_v11 = vrot.slane %v23944_v33, %v16600_v18  ;;  %v14395_v26 = vrot.slane %v14387_v58, %v16649_v42  ;;  %v21756_v60 = vcombine.low %v10200_v6, %v10207_v28 }
 0x48a   :  { %v14133_v8 = vcombine.low %v13322_v34, %v13329_v9  ;;  %v21758_v14 = vcombine.low %v10214_v31, %v10221_v39  ;;  %v14386_v58 = vcombine.low %v14378_v25, %v14385_v62  ;;  %v14404_v29 = vcombine.low %v13756_v45, %v13763_v17 }
 0x48b   :  { %14632 = vperm.xlu0 %15464, %v14369_v16   ;;  %v14116_v16 = vcombine.low %v13294_v20, %v13301_v3  ;;  %v14402_v20 = vrot.slane %v14388_v49, %v16649_v42  ;;  %v23945_v3 = vld [vmem:[#allocation194_spill] sm:$0xff]  ;;  %v14123_v49 = vrot.slane %v14115_v43, %v16649_v42  ;;  %v21768_v34 = vcombine.low %v10186_v1, %v10193_v55 }
 0x48c   :  { %v13784_v48 = vrot.slane %v23945_v3, %v23570_v5  ;;  %v13791_v38 = vrot.slane %v23945_v3, %v16594_v7  ;;  %v13798_v6 = vrot.slane %v23945_v3, %v16597_v30  ;;  %v13805_v28 = vrot.slane %v23945_v3, %v16600_v18 }
 0x48d   :  { %14584 = vperm.xlu1 %15465, %v14097_v50   ;;  %v14132_v50 = vcombine.low %v13308_v44, %v13315_v56  ;;  %v21764_v44 = vcombine.low %v10172_v0, %v10179_v37  ;;  %v14130_v56 = vrot.slane %v14116_v16, %v16649_v42  ;;  %v14405_v31 = vcombine.low %v13770_v57, %v13777_v11 }
 0x48e   :  { %v14403_v39 = vcombine.low %v14395_v26, %v14402_v20  ;;  %v14147_v37 = vrot.slane %v14133_v8, %v16649_v42  ;;  %v14421_v9 = vcombine.low %v13784_v48, %v13791_v38  ;;  %v10716_v45 = vrot.slane %v21600_v53, %v16649_v42  ;;  %v23949_v26 = vld [vmem:[#allocation115_spill] sm:$0xff] }
 0x48f   :  { %14587 = vperm.xlu0 %15464, %v14114_v47   ;;  %v14140_v0 = vrot.slane %v14132_v50, %v16649_v42  ;;  %v23946_v47 = vld [vmem:[#allocation123_spill] sm:$0xff]  ;;  %v14131_v33 = vcombine.low %v14123_v49, %v14130_v56  ;;  %v10723_v43 = vrot.slane %v21602_v51, %v16649_v42  ;;  %v14422_v16 = vcombine.low %v13798_v6, %v13805_v28  ;;  %v23948_v50 = vld [vmem:[#allocation142_spill] sm:$0xff] }
 0x490   :  { %v13336_v2 = vrot.slane %v23946_v47, %v23570_v5  ;;  %v13343_v12 = vrot.slane %v23946_v47, %v16594_v7  ;;  %v13350_v1 = vrot.slane %v23946_v47, %v16597_v30  ;;  %v13357_v55 = vrot.slane %v23946_v47, %v16600_v18  ;;  %v23950_v47 = vld [vmem:[#allocation122_spill] sm:$0xff] }
 0x491   :  { %10939 = vperm.xlu1 %15465, %v10690_v52   ;;  %v23947_v52 = vld [vmem:[#allocation124_spill] sm:$0xff]  ;;  %v14148_v11 = vcombine.low %v14140_v0, %v14147_v37  ;;  %v10733_v53 = vrot.slane %v21555_v61, %v16649_v42  ;;  %v10740_v51 = vrot.slane %v21598_v4, %v16649_v42  ;;  %v10256_v8 = vrot.slane %v23948_v50, %v23570_v5 }
 0x492   :  { %v13364_v25 = vrot.slane %v23947_v52, %v23570_v5  ;;  %v13371_v62 = vrot.slane %v23947_v52, %v16594_v7  ;;  %v13378_v17 = vrot.slane %v23947_v52, %v16597_v30  ;;  %v13385_v57 = vrot.slane %v23947_v52, %v16600_v18 }
 0x493   :  { %10942 = vperm.xlu0 %15464, %v10707_v32   ;;  %v10263_v32 = vrot.slane %v23948_v50, %v16594_v7  ;;  %v13812_v20 = vrot.slane %v23949_v26, %v23570_v5  ;;  %v14149_v3 = vcombine.low %v13336_v2, %v13343_v12  ;;  %v14150_v48 = vcombine.low %v13350_v1, %v13357_v55  ;;  %v23951_v1 = vld [vmem:[#allocation54_spill] sm:$0xff] }
 0x494   :  { %v10724_v38 = vcombine.low %v10716_v45, %v10723_v43  ;;  %v14419_v61 = vrot.slane %v14405_v31, %v16649_v42  ;;  %v13819_v4 = vrot.slane %v23949_v26, %v16594_v7  ;;  %v13826_v49 = vrot.slane %v23949_v26, %v16597_v30 }
 0x495   :  { %14635 = vperm.xlu1 %15465, %v14386_v58   ;;  %v14412_v58 = vrot.slane %v14404_v29, %v16649_v42  ;;  %v13833_v56 = vrot.slane %v23949_v26, %v16600_v18  ;;  %v14166_v6 = vcombine.low %v13364_v25, %v13371_v62  ;;  %v14167_v28 = vcombine.low %v13378_v17, %v13385_v57 }
 0x496   :  { %v14429_v0 = vrot.slane %v14421_v9, %v16649_v42  ;;  %v14436_v37 = vrot.slane %v14422_v16, %v16649_v42  ;;  %v10270_v29 = vrot.slane %v23948_v50, %v16597_v30  ;;  %v10277_v31 = vrot.slane %v23948_v50, %v16600_v18 }
 0x497   :  { %14638 = vperm.xlu0 %15464, %v14403_v39   ;;  %v10741_v39 = vcombine.low %v10733_v53, %v10740_v51  ;;  %v13840_v2 = vrot.slane %v23950_v47, %v23570_v5  ;;  %v13847_v12 = vrot.slane %v23950_v47, %v16594_v7  ;;  %v10228_v55 = vrot.slane %v23951_v1, %v23570_v5  ;;  %v23952_v51 = vld [vmem:[#allocation127_spill] sm:$0xff] }
 0x498   :  { %v14157_v9 = vrot.slane %v14149_v3, %v16649_v42  ;;  %v14164_v45 = vrot.slane %v14150_v48, %v16649_v42  ;;  %v10235_v43 = vrot.slane %v23951_v1, %v16594_v7  ;;  %v14438_v16 = vcombine.low %v13812_v20, %v13819_v4 }
 0x499   :  { %14590 = vperm.xlu1 %15465, %v14131_v33   ;;  %v14420_v33 = vcombine.low %v14412_v58, %v14419_v61  ;;  %v13854_v52 = vrot.slane %v23950_v47, %v16597_v30  ;;  %v13861_v25 = vrot.slane %v23950_v47, %v16600_v18  ;;  %v14439_v62 = vcombine.low %v13826_v49, %v13833_v56  ;;  %v23953_v49 = vld [vmem:[#allocation205_spill] sm:$0xff] }
 0x49a   :  { %v14437_v17 = vcombine.low %v14429_v0, %v14436_v37  ;;  %v14174_v57 = vrot.slane %v14166_v6, %v16649_v42  ;;  %v14455_v53 = vcombine.low %v13840_v2, %v13847_v12  ;;  %v13392_v26 = vrot.slane %v23952_v51, %v23570_v5  ;;  %v23954_v2 = vld [vmem:[#allocation201_spill] sm:$0xff] }
 0x49b   :  { %14593 = vperm.xlu0 %15464, %v14148_v11   ;;  %v14181_v11 = vrot.slane %v14167_v28, %v16649_v42  ;;  %v13399_v20 = vrot.slane %v23952_v51, %v16594_v7  ;;  %v13406_v3 = vrot.slane %v23952_v51, %v16597_v30  ;;  %v13413_v48 = vrot.slane %v23952_v51, %v16600_v18 }
 0x49c   :  { %v10750_v58 = vrot.slane %v21612_v15, %v16649_v42  ;;  %v10757_v61 = vrot.slane %v21640_v63, %v16649_v42  ;;  %v14456_v4 = vcombine.low %v13854_v52, %v13861_v25  ;;  %v13420_v56 = vrot.slane %v23953_v49, %v23570_v5 }
 0x49d   :  { %10945 = vperm.xlu1 %15465, %v10724_v38   ;;  %v14165_v38 = vcombine.low %v14157_v9, %v14164_v45  ;;  %v13427_v6 = vrot.slane %v23953_v49, %v16594_v7  ;;  %v13434_v28 = vrot.slane %v23953_v49, %v16597_v30  ;;  %v14182_v0 = vcombine.low %v14174_v57, %v14181_v11 }
 0x49e   :  { %v10767_v15 = vrot.slane %v21606_v27, %v16649_v42  ;;  %v10774_v63 = vrot.slane %v21608_v22, %v16649_v42  ;;  %v10242_v37 = vrot.slane %v23951_v1, %v16597_v30  ;;  %v10249_v47 = vrot.slane %v23951_v1, %v16600_v18 }
 0x49f   :  { %10948 = vperm.xlu0 %15464, %v10741_v39   ;;  %v13441_v39 = vrot.slane %v23953_v49, %v16600_v18  ;;  %v13868_v12 = vrot.slane %v23954_v2, %v23570_v5  ;;  %v14184_v9 = vcombine.low %v13406_v3, %v13413_v48  ;;  %v10758_v45 = vcombine.low %v10750_v58, %v10757_v61 }
 0x4a0   :  { %v14446_v52 = vrot.slane %v14438_v16, %v16649_v42  ;;  %v14453_v27 = vrot.slane %v14439_v62, %v16649_v42  ;;  %v13875_v22 = vrot.slane %v23954_v2, %v16594_v7  ;;  %v13882_v25 = vrot.slane %v23954_v2, %v16597_v30 }
 0x4a1   :  { %14641 = vperm.xlu1 %15465, %v14420_v33   ;;  %v14183_v33 = vcombine.low %v13392_v26, %v13399_v20  ;;  %v13889_v1 = vrot.slane %v23954_v2, %v16600_v18  ;;  %v14201_v57 = vcombine.low %v13434_v28, %v13441_v39  ;;  %v10775_v11 = vcombine.low %v10767_v15, %v10774_v63  ;;  %v23955_v20 = vld [vmem:[#allocation38_spill] sm:$0xff]  ;;  %v23957_v2 = vld [vmem:[#allocation149_spill] sm:$0xff] }
 0x4a2   :  { %v14463_v51 = vrot.slane %v14455_v53, %v16649_v42  ;;  %v14470_v26 = vrot.slane %v14456_v4, %v16649_v42  ;;  %v21882_v16 = vcombine.low %v10256_v8, %v10263_v32  ;;  %v21884_v62 = vcombine.low %v10270_v29, %v10277_v31 }
 0x4a3   :  { %14644 = vperm.xlu0 %15464, %v14437_v17   ;;  %v14200_v17 = vcombine.low %v13420_v56, %v13427_v6  ;;  %v13896_v3 = vrot.slane %v23955_v20, %v23570_v5  ;;  %v13903_v48 = vrot.slane %v23955_v20, %v16594_v7  ;;  %v14454_v53 = vcombine.low %v14446_v52, %v14453_v27  ;;  %v23956_v56 = vld [vmem:[#allocation140_spill] sm:$0xff]  ;;  %v23958_v27 = vld [vmem:[#allocation55_spill] sm:$0xff] }
 0x4a4   :  { %v14191_v58 = vrot.slane %v14183_v33, %v16649_v42  ;;  %v14198_v61 = vrot.slane %v14184_v9, %v16649_v42  ;;  %v21894_v4 = vcombine.low %v10242_v37, %v10249_v47  ;;  %v14472_v50 = vcombine.low %v13868_v12, %v13875_v22 }
 0x4a5   :  { %14596 = vperm.xlu1 %15465, %v14165_v38   ;;  %v21890_v38 = vcombine.low %v10228_v55, %v10235_v43  ;;  %v13910_v8 = vrot.slane %v23955_v20, %v16597_v30  ;;  %v13917_v32 = vrot.slane %v23955_v20, %v16600_v18  ;;  %v14473_v29 = vcombine.low %v13882_v25, %v13889_v1  ;;  %v23959_v1 = vld [vmem:[#allocation35_spill] sm:$0xff] }
 0x4a6   :  { %v14471_v31 = vcombine.low %v14463_v51, %v14470_v26  ;;  %v14208_v55 = vrot.slane %v14200_v17, %v16649_v42  ;;  %v14215_v43 = vrot.slane %v14201_v57, %v16649_v42  ;;  %v14489_v49 = vcombine.low %v13896_v3, %v13903_v48 }
 0x4a7   :  { %14599 = vperm.xlu0 %15464, %v14182_v0   ;;  %v13448_v6 = vrot.slane %v23956_v56, %v23570_v5  ;;  %v13455_v28 = vrot.slane %v23956_v56, %v16594_v7  ;;  %v13462_v39 = vrot.slane %v23956_v56, %v16597_v30  ;;  %v13469_v0 = vrot.slane %v23956_v56, %v16600_v18 }
 0x4a8   :  { %v14199_v15 = vcombine.low %v14191_v58, %v14198_v61  ;;  %v10784_v63 = vrot.slane %v21764_v44, %v16649_v42  ;;  %v10791_v37 = vrot.slane %v21768_v34, %v16649_v42  ;;  %v14490_v47 = vcombine.low %v13910_v8, %v13917_v32 }
 0x4a9   :  { %10951 = vperm.xlu1 %15465, %v10758_v45   ;;  %v13476_v12 = vrot.slane %v23957_v2, %v23570_v5  ;;  %v13483_v33 = vrot.slane %v23957_v2, %v16594_v7  ;;  %v13490_v9 = vrot.slane %v23957_v2, %v16597_v30  ;;  %v13497_v45 = vrot.slane %v23957_v2, %v16600_v18 }
 0x4aa   :  { %v14216_v52 = vcombine.low %v14208_v55, %v14215_v43  ;;  %v10801_v44 = vrot.slane %v21756_v60, %v16649_v42  ;;  %v10808_v34 = vrot.slane %v21758_v14, %v16649_v42  ;;  %v10312_v22 = vrot.slane %v23958_v27, %v23570_v5  ;;  %v23961_v43 = vld [vmem:[#allocation144_spill] sm:$0xff] }
 0x4ab   :  { %10954 = vperm.xlu0 %15464, %v10775_v11   ;;  %v10319_v25 = vrot.slane %v23958_v27, %v16594_v7  ;;  %v13924_v17 = vrot.slane %v23959_v1, %v23570_v5  ;;  %v14217_v57 = vcombine.low %v13448_v6, %v13455_v28  ;;  %v14218_v11 = vcombine.low %v13462_v39, %v13469_v0 }
 0x4ac   :  { %v10792_v51 = vcombine.low %v10784_v63, %v10791_v37  ;;  %v14480_v26 = vrot.slane %v14472_v50, %v16649_v42  ;;  %v14487_v60 = vrot.slane %v14473_v29, %v16649_v42  ;;  %v13931_v14 = vrot.slane %v23959_v1, %v16594_v7  ;;  %v23960_v29 = vld [vmem:[#allocation4_spill] sm:$0xff] }
 0x4ad   :  { %14647 = vperm.xlu1 %15465, %v14454_v53   ;;  %v13938_v20 = vrot.slane %v23959_v1, %v16597_v30  ;;  %v13945_v3 = vrot.slane %v23959_v1, %v16600_v18  ;;  %v14234_v48 = vcombine.low %v13476_v12, %v13483_v33  ;;  %v14235_v53 = vcombine.low %v13490_v9, %v13497_v45  ;;  %v23962_v9 = vld [vmem:[#allocation46_spill] sm:$0xff] }
 0x4ae   :  { %v10809_v58 = vcombine.low %v10801_v44, %v10808_v34  ;;  %v14497_v61 = vrot.slane %v14489_v49, %v16649_v42  ;;  %v14504_v8 = vrot.slane %v14490_v47, %v16649_v42  ;;  %v10326_v50 = vrot.slane %v23958_v27, %v16597_v30 }
 0x4af   :  { %14650 = vperm.xlu0 %15464, %v14471_v31   ;;  %v10333_v32 = vrot.slane %v23958_v27, %v16600_v18  ;;  %v13952_v31 = vrot.slane %v23960_v29, %v23570_v5  ;;  %v13959_v55 = vrot.slane %v23960_v29, %v16594_v7  ;;  %v10284_v56 = vrot.slane %v23961_v43, %v23570_v5 }
 0x4b0   :  { %v14488_v6 = vcombine.low %v14480_v26, %v14487_v60  ;;  %v14225_v49 = vrot.slane %v14217_v57, %v16649_v42  ;;  %v14232_v28 = vrot.slane %v14218_v11, %v16649_v42  ;;  %v10291_v39 = vrot.slane %v23961_v43, %v16594_v7 }
 0x4b1   :  { %14602 = vperm.xlu1 %15465, %v14199_v15   ;;  %v14506_v0 = vcombine.low %v13924_v17, %v13931_v14  ;;  %v13966_v15 = vrot.slane %v23960_v29, %v16597_v30  ;;  %v13973_v63 = vrot.slane %v23960_v29, %v16600_v18  ;;  %v14507_v37 = vcombine.low %v13938_v20, %v13945_v3 }
 0x4b2   :  { %v14505_v47 = vcombine.low %v14497_v61, %v14504_v8  ;;  %v14242_v2 = vrot.slane %v14234_v48, %v16649_v42  ;;  %v14249_v12 = vrot.slane %v14235_v53, %v16649_v42  ;;  %v14523_v33 = vcombine.low %v13952_v31, %v13959_v55 }
 0x4b3   :  { %14605 = vperm.xlu0 %15464, %v14216_v52   ;;  %v13504_v45 = vrot.slane %v23962_v9, %v23570_v5  ;;  %v13511_v52 = vrot.slane %v23962_v9, %v16594_v7  ;;  %v13518_v44 = vrot.slane %v23962_v9, %v16597_v30  ;;  %v13525_v34 = vrot.slane %v23962_v9, %v16600_v18 }
 0x4b4   :  { %v14233_v1 = vcombine.low %v14225_v49, %v14232_v28  ;;  %v10818_v17 = vrot.slane %v21890_v38, %v16649_v42  ;;  %v10825_v57 = vrot.slane %v21894_v4, %v16649_v42  ;;  %v14524_v11 = vcombine.low %v13966_v15, %v13973_v63 }
 0x4b5   :  { %10957 = vperm.xlu1 %15465, %v10792_v51   ;;  %v23963_v51 = vld [vmem:[#allocation47_spill] sm:$0xff]  ;;  %v14250_v3 = vcombine.low %v14242_v2, %v14249_v12  ;;  %v10835_v38 = vrot.slane %v21882_v16, %v16649_v42  ;;  %v10842_v4 = vrot.slane %v21884_v62, %v16649_v42  ;;  %v10298_v48 = vrot.slane %v23961_v43, %v16597_v30  ;;  %v23965_v2 = vld [vmem:[#allocation45_spill] sm:$0xff] }
 0x4b6   :  { %v13532_v26 = vrot.slane %v23963_v51, %v23570_v5  ;;  %v13539_v60 = vrot.slane %v23963_v51, %v16594_v7  ;;  %v13546_v14 = vrot.slane %v23963_v51, %v16597_v30  ;;  %v13553_v20 = vrot.slane %v23963_v51, %v16600_v18  ;;  %v23966_v51 = vld [vmem:[#allocation215_spill] sm:$0xff] }
 0x4b7   :  { %10960 = vperm.xlu0 %15464, %v10809_v58   ;;  %v10305_v53 = vrot.slane %v23961_v43, %v16600_v18  ;;  %v23964_v58 = vld [vmem:[#allocation148_spill] sm:$0xff]  ;;  %v14251_v8 = vcombine.low %v13504_v45, %v13511_v52  ;;  %v14252_v29 = vcombine.low %v13518_v44, %v13525_v34  ;;  %v10826_v31 = vcombine.low %v10818_v17, %v10825_v57 }
 0x4b8   :  { %v13980_v61 = vrot.slane %v23964_v58, %v23570_v5  ;;  %v14514_v55 = vrot.slane %v14506_v0, %v16649_v42  ;;  %v14521_v16 = vrot.slane %v14507_v37, %v16649_v42  ;;  %v13987_v62 = vrot.slane %v23964_v58, %v16594_v7 }
 0x4b9   :  { %14653 = vperm.xlu1 %15465, %v14488_v6   ;;  %v13994_v6 = vrot.slane %v23964_v58, %v16597_v30  ;;  %v14001_v43 = vrot.slane %v23964_v58, %v16600_v18  ;;  %v14268_v49 = vcombine.low %v13532_v26, %v13539_v60  ;;  %v14269_v28 = vcombine.low %v13546_v14, %v13553_v20  ;;  %v15314_v58 = vld [vmem:[%s22423_s1 + $0x1] ss:$4 sm:$0xf] }
 0x4ba   :  { %v10843_v15 = vcombine.low %v10835_v38, %v10842_v4  ;;  %v14531_v63 = vrot.slane %v14523_v33, %v16649_v42  ;;  %v10861_v0 = vcombine.low %v10312_v22, %v10319_v25  ;;  %v10844_v37 = vcombine.low %v10284_v56, %v10291_v39 }
 0x4bb   :  { %14656 = vperm.xlu0 %15464, %v14505_v47   ;;  %v14538_v47 = vrot.slane %v14524_v11, %v16649_v42  ;;  %v14008_v12 = vrot.slane %v23965_v2, %v23570_v5  ;;  %v14015_v9 = vrot.slane %v23965_v2, %v16594_v7  ;;  %v10845_v45 = vcombine.low %v10298_v48, %v10305_v53 }
 0x4bc   :  { %v14522_v52 = vcombine.low %v14514_v55, %v14521_v16  ;;  %v14259_v33 = vrot.slane %v14251_v8, %v16649_v42  ;;  %v14266_v44 = vrot.slane %v14252_v29, %v16649_v42  ;;  %v10862_v34 = vcombine.low %v10326_v50, %v10333_v32 }
 0x4bd   :  { %14608 = vperm.xlu1 %15465, %v14233_v1   ;;  %v14540_v1 = vcombine.low %v13980_v61, %v13987_v62  ;;  %v14541_v22 = vcombine.low %v13994_v6, %v14001_v43  ;;  %v14022_v25 = vrot.slane %v23965_v2, %v16597_v30  ;;  %v14029_v56 = vrot.slane %v23965_v2, %v16600_v18  ;;  %v15058_v2 = vld [vmem:[%s22424_s2 + $0x8] sm:$0xff] }
 0x4be   :  { %v14539_v39 = vcombine.low %v14531_v63, %v14538_v47  ;;  %v14276_v17 = vrot.slane %v14268_v49, %v16649_v42  ;;  %v14283_v57 = vrot.slane %v14269_v28, %v16649_v42  ;;  %v14557_v11 = vcombine.low %v14008_v12, %v14015_v9  ;;  %v15073_v49 = vld [vmem:[%s22424_s2 + $0x80] sm:$0xff]  ;;  %v15074_v28 = vld [vmem:[%s22424_s2 + $0x88] sm:$0xff] }
 0x4bf   :  { %14611 = vperm.xlu0 %15464, %v14250_v3   ;;  %v13560_v26 = vrot.slane %v23966_v51, %v23570_v5  ;;  %v13567_v27 = vrot.slane %v23966_v51, %v16594_v7  ;;  %v13574_v50 = vrot.slane %v23966_v51, %v16597_v30  ;;  %v13581_v32 = vrot.slane %v23966_v51, %v16600_v18  ;;  %v23967_v3 = vld [vmem:[#allocation89_spill] sm:$0xff]  ;;  %v15105_v12 = vld [vmem:[%s22424_s2 + $0x180] sm:$0xff] }
 0x4c0   :  { %v14267_v60 = vcombine.low %v14259_v33, %v14266_v44  ;;  %v10852_v14 = vrot.slane %v10844_v37, %v16649_v42  ;;  %v10859_v20 = vrot.slane %v10845_v45, %v16649_v42  ;;  %v22034_v38 = vsub.s32 0, %v23967_v3  ;;  %v15057_v37 = vld [vmem:[%s22424_s2] sm:$0xff] }
 0x4c1   :  { %10963 = vperm.xlu1 %15465, %v10826_v31   ;;  %v22037_v5 = vsub.s32 1, %v23967_v3  ;;  %v22040_v7 = vsub.s32 2, %v23967_v3  ;;  %v22043_v30 = vsub.s32 3, %v23967_v3  ;;  %v14558_v4 = vcombine.low %v14022_v25, %v14029_v56  ;;  %v15075_v25 = vld [vmem:[%s22424_s2 + $0x90] sm:$0xff]  ;;  %v15108_v3 = vld [vmem:[%s22424_s2 + $0x198] sm:$0xff] }
 0x4c2   :  { %v14284_v18 = vcombine.low %v14276_v17, %v14283_v57  ;;  %v10869_v48 = vrot.slane %v10861_v0, %v16649_v42  ;;  %v10876_v53 = vrot.slane %v10862_v34, %v16649_v42  ;;  %v14548_v61 = vrot.slane %v14540_v1, %v16649_v42  ;;  %v15089_v1 = vld [vmem:[%s22424_s2 + $0x100] sm:$0xff]  ;;  %v15076_v57 = vld [vmem:[%s22424_s2 + $0x98] sm:$0xff] }
 0x4c3   :  { %10966 = vperm.xlu0 %15464, %v10843_v15   ;;  %v14555_v8 = vrot.slane %v14541_v22, %v16649_v42  ;;  %v14285_v29 = vcombine.low %v13560_v26, %v13567_v27  ;;  %v14286_v31 = vcombine.low %v13574_v50, %v13581_v32  ;;  %v10860_v55 = vcombine.low %v10852_v14, %v10859_v20  ;;  %v15090_v22 = vld [vmem:[%s22424_s2 + $0x108] sm:$0xff]  ;;  %v15059_v27 = vld [vmem:[%s22424_s2 + $0x10] sm:$0xff]  ;;  %v15060_v50 = vld [vmem:[%s22424_s2 + $0x18] sm:$0xff] }
 0x4c4   :  { %v14920_v16 = vrot.slane %v15314_v58, %v22034_v38  ;;  %v14924_v62 = vrot.slane %v15314_v58, %v22037_v5  ;;  %v14928_v6 = vrot.slane %v15314_v58, %v22040_v7  ;;  %v14932_v43 = vrot.slane %v15314_v58, %v22043_v30  ;;  %v15107_v32 = vld [vmem:[%s22424_s2 + $0x190] sm:$0xff]  ;;  %v15077_v58 = vld [vmem:[%s22424_s2 + $0xa0] sm:$0xff] }
 0x4c5   :  { %14659 = vperm.xlu1 %15465, %v14522_v52   ;;  %v10877_v15 = vcombine.low %v10869_v48, %v10876_v53  ;;  %v14565_v63 = vrot.slane %v14557_v11, %v16649_v42  ;;  %v14572_v47 = vrot.slane %v14558_v4, %v16649_v42  ;;  %v15392_v0 = vpack.c.bf16 %v15074_v28, %v15073_v49  ;;  %v15106_v52 = vld [vmem:[%s22424_s2 + $0x188] sm:$0xff]  ;;  %v15091_v4 = vld [vmem:[%s22424_s2 + $0x110] sm:$0xff]  ;;  %v15093_v49 = vld [vmem:[%s22424_s2 + $0x120] sm:$0xff] }
 0x4c6   :  { %v14556_v9 = vcombine.low %v14548_v61, %v14555_v8  ;;  %v15394_v45 = vpack.c.bf16 %v15058_v2, %v15057_v37  ;;  %v14293_v33 = vrot.slane %v14285_v29, %v16649_v42  ;;  %v14300_v44 = vrot.slane %v14286_v31, %v16649_v42  ;;  %v15078_v61 = vld [vmem:[%s22424_s2 + $0xa8] sm:$0xff]  ;;  %v15061_v8 = vld [vmem:[%s22424_s2 + $0x20] sm:$0xff]  ;;  %v15064_v37 = vld [vmem:[%s22424_s2 + $0x38] sm:$0xff] }
 0x4c7   :  { %14662 = vperm.xlu0 %15464, %v14539_v39   ;;  %15393 = vmatprep.subr.bf16.mxu0 %v15392_v0  ;;  %v15424_v34 = vpack.c.bf16 %v15106_v52, %v15105_v12  ;;  %v14933_v56 = vcombine.low %v14920_v16, %v14924_v62  ;;  %v14934_v39 = vcombine.low %v14928_v6, %v14932_v43  ;;  %v15062_v31 = vld [vmem:[%s22424_s2 + $0x28] sm:$0xff]  ;;  %v15063_v0 = vld [vmem:[%s22424_s2 + $0x30] sm:$0xff] }
 0x4c8   :  { %15395 = vmatpush3.bf16.msra.mxu0 %v15394_v45  ;;  %v15426_v17 = vpack.c.bf16 %v15090_v22, %v15089_v1  ;;  %v14573_v11 = vcombine.low %v14565_v63, %v14572_v47  ;;  %v15396_v51 = vpack.c.bf16 %v15076_v57, %v15075_v25  ;;  %v14301_v26 = vcombine.low %v14293_v33, %v14300_v44  ;;  %v15110_v16 = vld [vmem:[%s22424_s2 + $0x1a8] sm:$0xff]  ;;  %v15080_v47 = vld [vmem:[%s22424_s2 + $0xb8] sm:$0xff]  ;;  %v15095_v52 = vld [vmem:[%s22424_s2 + $0x130] sm:$0xff] }
 0x4c9   :  { %14614 = vperm.xlu1 %15465, %v14267_v60   ;;  %15425 = vmatprep.subr.bf16.mxu1 %v15424_v34  ;;  %v14941_v60 = vrot.slane %v14933_v56, %v16649_v42  ;;  %v14948_v14 = vrot.slane %v14934_v39, %v16649_v42  ;;  %v15398_v20 = vpack.c.bf16 %v15060_v50, %v15059_v27  ;;  %v15094_v28 = vld [vmem:[%s22424_s2 + $0x128] sm:$0xff]  ;;  %v15112_v45 = vld [vmem:[%s22424_s2 + $0x1b8] sm:$0xff]  ;;  %v15081_v22 = vld [vmem:[%s22424_s2 + $0xc0] sm:$0xff] }
 0x4ca   :  { %15427 = vmatpush3.bf16.msra.mxu1 %v15426_v17  ;;  %15397 = vmatprep.subr.bf16.mxu0 %v15396_v51  ;;  %v15428_v48 = vpack.c.bf16 %v15108_v3, %v15107_v32  ;;  %v15400_v29 = vpack.c.bf16 %v15078_v61, %v15077_v58  ;;  %v15402_v62 = vpack.c.bf16 %v15062_v31, %v15061_v8  ;;  %v22158_v33 = vld [vmem:[%s22423_s1] ss:$4 sm:$0xf]  ;;  %v15096_v1 = vld [vmem:[%s22424_s2 + $0x138] sm:$0xff]  ;;  %v15083_v32 = vld [vmem:[%s22424_s2 + $0xd0] sm:$0xff] }
 0x4cb   :  { %14617 = vperm.xlu0 %15464, %v14284_v18   ;;  %v15092_v18 = vld [vmem:[%s22424_s2 + $0x118] sm:$0xff]  ;;  %v14949_v43 = vcombine.low %v14941_v60, %v14948_v14  ;;  %v15434_v63 = vpack.c.bf16 %v15094_v28, %v15093_v49  ;;  %v15406_v12 = vpack.c.bf16 %v15064_v37, %v15063_v0  ;;  %v15082_v25 = vld [vmem:[%s22424_s2 + $0xc8] sm:$0xff]  ;;  %v15438_v56 = vpack.c.bf16 %v15096_v1, %v15095_v52  ;;  %v15113_v57 = vld [vmem:[%s22424_s2 + $0x1c0] sm:$0xff] }
 0x4cc   :  { %v15430_v53 = vpack.c.bf16 %v15092_v18, %v15091_v4  ;;  %15399 = vmatpush3.bf16.msra.mxu0 %v15398_v20  ;;  %15429 = vmatprep.subr.bf16.mxu1 %v15428_v48  ;;  %v15408_v39 = vpack.c.bf16 %v15082_v25, %v15081_v22  ;;  %v15066_v17 = vld [vmem:[%s22424_s2 + $0x48] sm:$0xff]  ;;  %v15084_v60 = vld [vmem:[%s22424_s2 + $0xd8] sm:$0xff]  ;;  %v15067_v14 = vld [vmem:[%s22424_s2 + $0x50] sm:$0xff]  ;;  %v14897_v8 = vrot.slane %v22158_v33, %v22037_v5 }
 0x4cd   :  { %10969 = vperm.xlu1 %15465, %v10860_v55   ;;  %v15109_v55 = vld [vmem:[%s22424_s2 + $0x1a0] sm:$0xff]  ;;  %15401 = vmatprep.subr.bf16.mxu0 %v15400_v29  ;;  %v14951_v44 = vmul.f32 %v14949_v43, %v21553_v23  ;;  %v15114_v51 = vld [vmem:[%s22424_s2 + $0x1c8] sm:$0xff]  ;;  %v15412_v4 = vpack.c.bf16 %v15084_v60, %v15083_v32  ;;  %v15068_v18 = vld [vmem:[%s22424_s2 + $0x58] sm:$0xff] }
 0x4ce   :  { %v15432_v6 = vpack.c.bf16 %v15110_v16, %v15109_v55  ;;  %15431 = vmatpush3.bf16.msra.mxu1 %v15430_v53  ;;  %v15065_v23 = vld [vmem:[%s22424_s2 + $0x40] sm:$0xff]  ;;  %v15098_v27 = vld [vmem:[%s22424_s2 + $0x148] sm:$0xff]  ;;  %v15440_v50 = vpack.c.bf16 %v15114_v51, %v15113_v57  ;;  %v15115_v48 = vld [vmem:[%s22424_s2 + $0x1d0] sm:$0xff] }
 0x4cf   :  { %10972 = vperm.xlu0 %15464, %v10877_v15   ;;  %v15079_v15 = vld [vmem:[%s22424_s2 + $0xb0] sm:$0xff]  ;;  %v14953_v20 = vcombine.high %v14951_v44, %v14951_v44  ;;  %v15116_v53 = vld [vmem:[%s22424_s2 + $0x1d8] sm:$0xff]  ;;  %v14960_v29 = vrot.slane %v14951_v44, %v16649_v42  ;;  %v15086_v43 = vld [vmem:[%s22424_s2 + $0xe8] sm:$0xff] }
 0x4d0   :  { %15433 = vmatprep.subr.bf16.mxu1 %v15432_v6  ;;  %15403 = vmatpush3.bf16.msra.mxu0 %v15402_v62  ;;  %v15404_v2 = vpack.c.bf16 %v15080_v47, %v15079_v15  ;;  %v23968_v61 = vld [vmem:[#allocation220_spill] sm:$0xff]  ;;  %v15444_v31 = vpack.c.bf16 %v15116_v53, %v15115_v48  ;;  %v15100_v16 = vld [vmem:[%s22424_s2 + $0x158] sm:$0xff]  ;;  %v15085_v62 = vld [vmem:[%s22424_s2 + $0xe0] sm:$0xff]  ;;  %v15414_v6 = vpack.c.bf16 %v15068_v18, %v15067_v14 }
 0x4d1   :  { %14665 = vperm.xlu1 %15465, %v14556_v9   ;;  %v15111_v9 = vld [vmem:[%s22424_s2 + $0x1b0] sm:$0xff]  ;;  %vm14870_vm0 = vcmp.lt.s32.totalorder %v23968_v61, 1  ;;  %v15069_v49 = vld [vmem:[%s22424_s2 + $0x60] sm:$0xff]  ;;  %v14893_v15 = vrot.slane %v22158_v33, %v22034_v38  ;;  %v15070_v47 = vld [vmem:[%s22424_s2 + $0x68] sm:$0xff]  ;;  %v14968_v1 = vcombine.high %v14960_v29, %v14960_v29  ;;  %vm14883_vm15 = vcmp.lt.s32.totalorder %v23968_v61, 127 }
 0x4d2   :  { %15435 = vmatpush3.bf16.msra.mxu1 %v15434_v63  ;;  %v15436_v34 = vpack.c.bf16 %v15112_v45, %v15111_v9  ;;  %15405 = vmatprep.subr.bf16.mxu0 %v15404_v2  ;;  %v15099_v55 = vld [vmem:[%s22424_s2 + $0x150] sm:$0xff]  ;;  %v15416_v63 = vpack.c.bf16 %v15086_v43, %v15085_v62  ;;  %v15117_v0 = vld [vmem:[%s22424_s2 + $0x1e0] sm:$0xff]  ;;  %v15118_v37 = vld [vmem:[%s22424_s2 + $0x1e8] sm:$0xff]  ;;  %v14967_v9 = vrot.slane %v14953_v20, %v16649_v42 }
 0x4d3   :  { %14668 = vperm.xlu0 %15464, %v14573_v11   ;;  %v15410_v11 = vpack.c.bf16 %v15066_v17, %v15065_v23  ;;  %v22244_v45 = vld [vmem:[%s22423_s1 + $0x2] ss:$4 sm:$0xf]  ;;  %v15446_v52 = vpack.c.bf16 %v15100_v16, %v15099_v55  ;;  %v15087_v44 = vld [vmem:[%s22424_s2 + $0xf0] sm:$0xff]  ;;  %v15120_v51 = vld [vmem:[%s22424_s2 + $0x1f8] sm:$0xff] }
 0x4d4   :  { %15407 = vmatpush3.bf16.msra.mxu0 %v15406_v12  ;;  %15437 = vmatprep.subr.bf16.mxu1 %v15436_v34  ;;  %v14901_v12 = vrot.slane %v22158_v33, %v22040_v7  ;;  %v15088_v34 = vld [vmem:[%s22424_s2 + $0xf8] sm:$0xff]  ;;  %v15101_v23 = vld [vmem:[%s22424_s2 + $0x160] sm:$0xff]  ;;  %v15102_v17 = vld [vmem:[%s22424_s2 + $0x168] sm:$0xff]  ;;  %v14984_v32 = vrot.slane %v22244_v45, %v22034_v38 }
 0x4d5   :  { %14620 = vperm.xlu1 %15465, %v14301_v26   ;;  %v15097_v26 = vld [vmem:[%s22424_s2 + $0x140] sm:$0xff]  ;;  %15409 = vmatprep.subr.bf16.mxu0 %v15408_v39  ;;  %v15448_v39 = vpack.c.bf16 %v15118_v37, %v15117_v0  ;;  %v15420_v60 = vpack.c.bf16 %v15088_v34, %v15087_v44  ;;  %v15071_v14 = vld [vmem:[%s22424_s2 + $0x70] sm:$0xff]  ;;  %v15072_v20 = vld [vmem:[%s22424_s2 + $0x78] sm:$0xff]  ;;  %v15450_v48 = vpack.c.bf16 %v15102_v17, %v15101_v23 }
 0x4d6   :  { %15439 = vmatpush3.bf16.msra.mxu1 %v15438_v56  ;;  %v15442_v3 = vpack.c.bf16 %v15098_v27, %v15097_v26  ;;  %v14905_v56 = vrot.slane %v22158_v33, %v22043_v30  ;;  %v15119_v33 = vld [vmem:[%s22424_s2 + $0x1f0] sm:$0xff]  ;;  %v15104_v16 = vld [vmem:[%s22424_s2 + $0x178] sm:$0xff]  ;;  %v15422_v62 = vpack.c.bf16 %v15072_v20, %v15071_v14  ;;  %v14988_v0 = vrot.slane %v22244_v45, %v22037_v5 }
 0x4d7   :  { %15441 = vmatprep.subr.bf16.mxu1 %v15440_v50  ;;  %v15103_v55 = vld [vmem:[%s22424_s2 + $0x170] sm:$0xff]  ;;  %v14992_v37 = vrot.slane %v22244_v45, %v22040_v7 }
 0x4d8   :  { %15411 = vmatpush3.bf16.msra.mxu0 %v15410_v11  ;;  %v15418_v11 = vpack.c.bf16 %v15070_v47, %v15069_v49 }
 0x4d9   :  { %15413 = vmatprep.subr.bf16.mxu0 %v15412_v4 }
 0x4da   :  { %15443 = vmatpush3.bf16.msra.mxu1 %v15442_v3  ;;  %v14969_v3 = vcombine.high %v14967_v9, %v14967_v9 }
 0x4db   :  { %15445 = vmatprep.subr.bf16.mxu1 %v15444_v31  ;;  %v15452_v31 = vpack.c.bf16 %v15120_v51, %v15119_v33 }
 0x4dc   :  { %15415 = vmatpush3.bf16.msra.mxu0 %v15414_v6 }
 0x4dd   :  { %15417 = vmatprep.subr.bf16.mxu0 %v15416_v63 }
 0x4de   :  { %15447 = vmatpush3.bf16.msra.mxu1 %v15446_v52 }
 0x4df   :  { %15449 = vmatprep.subr.bf16.mxu1 %v15448_v39 }
 0x4e0   :  { %15419 = vmatpush3.bf16.msra.mxu0 %v15418_v11 }
 0x4e1   :  { %v14863_v58 = vpop.permute.xlu0 %14862  ;;  %15421 = vmatprep.subr.bf16.mxu0 %v15420_v60 }
 0x4e2   :  { %15451 = vmatpush3.bf16.msra.mxu1 %v15450_v48 }
 0x4e3   :  { %v14865_v28 = vpop.permute.xlu1 %14864  ;;  %15453 = vmatprep.subr.bf16.mxu1 %v15452_v31 }
 0x4e4   :  { %v14873_v2 = vsel %vm14870_vm0, %v14863_v58, %v14865_v28  ;;  %15423 = vmatpush3.bf16.msra.mxu0 %v15422_v62 }
 0x4e5   :  { %v14911_v22 = vmul.f32 %v14897_v8, %v14873_v2  ;;  %v14869_v25 = vpop.permute.xlu0 %14868 }
 0x4e6   :  { %v14874_v57 = vsel %vm14870_vm0, %v14869_v25, %v14863_v58 }
 0x4e7   :  { %v14975_v26 = vadd.f32 %v14968_v1, %v14911_v22  ;;  %v14910_v27 = vmul.f32 %v14893_v15, %v14874_v57  ;;  %v14867_v50 = vpop.permute.xlu1 %14866  ;;  %v15454_v15 = vpack.c.bf16 %v15104_v16, %v15103_v55 }
 0x4e8   :  { %v14871_v4 = vsel %vm14870_vm0, %v14867_v50, %v14869_v25  ;;  %v14872_v18 = vsel %vm14870_vm0, %v14865_v28, %v14867_v50 }
 0x4e9   :  { %v14974_v38 = vadd.f32 %v14960_v29, %v14910_v27  ;;  %v14912_v53 = vmul.f32 %v14901_v12, %v14872_v18  ;;  %v14913_v58 = vmul.f32 %v14905_v56, %v14871_v4  ;;  %v14878_v8 = vpop.permute.xlu0 %14877  ;;  %v14996_v29 = vrot.slane %v22244_v45, %v22043_v30  ;;  %15455 = vmatpush3.bf16.msra.mxu1 %v15454_v15 }
 0x4eb   :  { %v14976_v6 = vadd.f32 %v14967_v9, %v14912_v53  ;;  %v14977_v43 = vadd.f32 %v14969_v3, %v14913_v58  ;;  %v14876_v49 = vpop.permute.xlu1 %14875 }
 0x4ec   :  { %v14886_v28 = vsel %vm14883_vm15, %v14876_v49, %v14878_v8 }
 0x4ed   :  { %v15001_v63 = vmul.f32 %v14984_v32, %v14886_v28  ;;  %v14882_v47 = vpop.permute.xlu0 %14881 }
 0x4ee   :  { %v14887_v2 = vsel %vm14883_vm15, %v14882_v47, %v14876_v49 }
 0x4ef   :  { %v15005_v30 = vadd.f32 %v15001_v63, %v14974_v38  ;;  %v15004_v12 = vmul.f32 %v14996_v29, %v14887_v2  ;;  %v14880_v9 = vpop.permute.xlu1 %14879 }
 0x4f0   :  { %v14884_v52 = vsel %vm14883_vm15, %v14880_v9, %v14882_v47  ;;  %v14885_v44 = vsel %vm14883_vm15, %v14878_v8, %v14880_v9 }
 0x4f1   :  { %v15316_v34 = vmul.f32 -1.442695, %v15005_v30  ;;  %v15008_v5 = vadd.f32 %v15004_v12, %v14977_v43  ;;  %v15002_v1 = vmul.f32 %v14988_v0, %v14885_v44  ;;  %v15003_v22 = vmul.f32 %v14992_v37, %v14884_v52 }
 0x4f3   :  { %15467 = vpow2.f32 %v15316_v34  ;;  %v15319_v7 = vmul.f32 -1.442695, %v15008_v5  ;;  %v15006_v45 = vadd.f32 %v15002_v1, %v14975_v26  ;;  %v15007_v25 = vadd.f32 %v15003_v22, %v14976_v6 }
 0x4f5   :  { %15469 = vpow2.f32 %v15319_v7  ;;  %v15317_v56 = vmul.f32 -1.442695, %v15006_v45  ;;  %v15318_v39 = vmul.f32 -1.442695, %v15007_v25 }
 0x4f7   :  { %15471 = vpow2.f32 %v15317_v56 }
 0x4f8   :  { %15473 = vpow2.f32 %v15318_v39 }
 0x4fd   :  { %v15468_v23 = vpop.eup %15467 }
 0x4fe   :  { %v15021_v17 = vadd.f32 1.0, %v15468_v23  ;;  %v14579_v57 = vpop.permute.xlu0 %14578 }
 0x4ff   :  { %v15470_v11 = vpop.eup %15469  ;;  %v14677_v27 = vrot.slane %v14579_v57, %v19541_v24 }
 0x500   :  { %v15024_v61 = vadd.f32 1.0, %v15470_v11  ;;  %v14576_v33 = vpop.permute.xlu1 %14575  ;;  %15475 = vrcp.f32 %v15021_v17 }
 0x501   :  { %v15472_v51 = vpop.eup %15471  ;;  %v14673_v50 = vrot.slane %v14576_v33, %v19551_v19 }
 0x502   :  { %v15474_v32 = vpop.eup %15473  ;;  %v15022_v26 = vadd.f32 1.0, %v15472_v51  ;;  %v14627_v60 = vpop.permute.xlu0 %14626  ;;  %15477 = vrcp.f32 %v15024_v61 }
 0x503   :  { %v15023_v14 = vadd.f32 1.0, %v15474_v32  ;;  %v14678_v20 = vsel %vm1728_vm1, %v14677_v27, %v14673_v50  ;;  %v14756_v4 = vrot.slane %v14627_v60, %v19541_v24 }
 0x504   :  { %15479 = vrcp.f32 %v15022_v26  ;;  %v14624_v3 = vpop.permute.xlu1 %14623 }
 0x505   :  { %15481 = vrcp.f32 %v15023_v14  ;;  %v14752_v18 = vrot.slane %v14624_v3, %v19551_v19 }
 0x506   :  { %v14630_v48 = vpop.permute.xlu0 %14629 }
 0x507   :  { %v14757_v38 = vsel %vm1728_vm1, %v14756_v4, %v14752_v18  ;;  %v14761_v53 = vrot.slane %v14630_v48, %v19544_v54  ;;  %vm23974_vm1 = vcmask 1048512  }
 0x508   :  { %v14582_v58 = vpop.permute.xlu1 %14581 }
 0x509   :  { %v14762_v8 = vsel %vm1735_vm2, %v14761_v53, %v14757_v38  ;;  %v14682_v57 = vrot.slane %v14582_v58, %v19544_v54 }
 0x50a   :  { %v14633_v31 = vpop.permute.xlu0 %14632  ;;  %v15476_v55 = vpop.eup %15475 }
 0x50b   :  { %v14766_v61 = vrot.slane %v14633_v31, %v19547_v21  ;;  %v14683_v60 = vsel %vm1735_vm2, %v14682_v57, %v14678_v20  ;;  %vm23976_vm2 = vcmask 1041409  }
 0x50c   :  { %v14585_v16 = vpop.permute.xlu1 %14584  ;;  %v15478_v62 = vpop.eup %15477 }
 0x50d   :  { %v14687_v33 = vrot.slane %v14585_v16, %v19547_v21  ;;  %v14767_v3 = vsel %vm1742_vm3, %v14766_v61, %v14762_v8 }
 0x50e   :  { %v15480_v6 = vpop.eup %15479  ;;  %v14588_v43 = vpop.permute.xlu0 %14587 }
 0x50f   :  { %v15482_v49 = vpop.eup %15481  ;;  %v15038_v29 = vcombine.low %v15476_v55, %v15480_v6  ;;  %v14692_v54 = vrot.slane %v14588_v43, %v19564_v40  ;;  %v14688_v21 = vsel %vm1742_vm3, %v14687_v33, %v14683_v60  ;;  %vm23977_vm3 = vmmov %vm23974_vm1 }
 0x510   :  { %v10940_v28 = vpop.permute.xlu1 %10939  ;;  %v15039_v24 = vcombine.low %v15482_v49, %v15478_v62 }
 0x511   :  { %v22310_v19 = vrot.slane %v15038_v29, %v16649_v42  ;;  %v11075_v17 = vrot.slane %v10940_v28, %v19564_v40  ;;  %v14693_v8 = vsel %vm1749_vm4, %v14692_v54, %v14688_v21 }
 0x512   :  { %v10943_v15 = vpop.permute.xlu0 %10942  ;;  %v22313_v63 = vrot.slane %v15039_v24, %v16649_v42 }
 0x513   :  { %v11080_v51 = vrot.slane %v10943_v15, %v19580_v10  ;;  %v11076_v32 = vsel %vm1749_vm4, %v11075_v17, %v21444_v13 }
 0x514   :  { %v14636_v47 = vpop.permute.xlu1 %14635  ;;  %v15054_v0 = vcombine.low %v22310_v19, %v22313_v63 }
 0x515   :  { %v14771_v27 = vrot.slane %v14636_v47, %v19564_v40  ;;  %v11081_v48 = vsel %vm1756_vm5, %v11080_v51, %v11076_v32 }
 0x516   :  { %v14639_v37 = vpop.permute.xlu0 %14638 }
 0x517   :  { %v14776_v4 = vrot.slane %v14639_v37, %v19580_v10  ;;  %v14772_v38 = vsel %vm1749_vm4, %v14771_v27, %v14767_v3  ;;  %vm23978_vm4 = vmmov %vm23974_vm1 }
 0x518   :  { %v14591_v2 = vpop.permute.xlu1 %14590 }
 0x519   :  { %v14697_v18 = vrot.slane %v14591_v2, %v19580_v10  ;;  %v14777_v10 = vsel %vm1756_vm5, %v14776_v4, %v14772_v38 }
 0x51a   :  { %v14594_v30 = vpop.permute.xlu0 %14593 }
 0x51b   :  { %v14702_v31 = vrot.slane %v14594_v30, %v19592_v35  ;;  %v14698_v16 = vsel %vm1756_vm5, %v14697_v18, %v14693_v8  ;;  %vm23979_vm5 = vmmov %vm23976_vm2 }
 0x51c   :  { %v10946_v12 = vpop.permute.xlu1 %10945 }
 0x51d   :  { %v11085_v26 = vrot.slane %v10946_v12, %v19592_v35  ;;  %v14703_v47 = vsel %vm1763_vm6, %v14702_v31, %v14698_v16  ;;  %v23975_v16 = vld [vmem:[#allocation99_spill] sm:$0xff] }
 0x51e   :  { %v10949_v9 = vpop.permute.xlu0 %10948 }
 0x51f   :  { %v11090_v13 = vrot.slane %v10949_v9, %v23881_v36  ;;  %v11086_v40 = vsel %vm1763_vm6, %v11085_v26, %v11081_v48 }
 0x520   :  { %v14642_v52 = vpop.permute.xlu1 %14641 }
 0x521   :  { %v14781_v53 = vrot.slane %v14642_v52, %v19592_v35  ;;  %v11091_v43 = vsel %vm1770_vm7, %v11090_v13, %v11086_v40 }
 0x522   :  { %v14645_v44 = vpop.permute.xlu0 %14644 }
 0x523   :  { %v14786_v62 = vrot.slane %v14645_v44, %v23881_v36  ;;  %v14782_v49 = vsel %vm1763_vm6, %v14781_v53, %v14777_v10  ;;  %v23973_v53 = vld [vmem:[#allocation147_spill] sm:$0xff] }
 0x524   :  { %v14597_v34 = vpop.permute.xlu1 %14596 }
 0x525   :  { %v14707_v6 = vrot.slane %v14597_v34, %v23881_v36  ;;  %v14787_v36 = vsel %vm1770_vm7, %v14786_v62, %v14782_v49  ;;  %v23969_v34 = vld [vmem:[#allocation225_spill] sm:$0xff] }
 0x526   :  { %v22317_v5 = vpop.permute.xlu0 %14599 }
 0x527   :  { %v14712_v37 = vrot.slane %v22317_v5, %v23878_v59  ;;  %v14708_v30 = vsel %vm1770_vm7, %v14707_v6, %v14703_v47  ;;  %v23970_v5 = vld [vmem:[#allocation180_spill] sm:$0xff] }
 0x528   :  { %v10952_v1 = vpop.permute.xlu1 %10951 }
 0x529   :  { %v11095_v58 = vrot.slane %v10952_v1, %v23878_v59  ;;  %v14713_v17 = vsel %vm1777_vm8, %v14712_v37, %v14708_v30 }
 0x52a   :  { %v10955_v22 = vpop.permute.xlu0 %10954 }
 0x52b   :  { %v11100_v29 = vrot.slane %v10955_v22, %v23887_v41  ;;  %v11096_v35 = vsel %vm1777_vm8, %v11095_v58, %v11091_v43 }
 0x52c   :  { %v14648_v7 = vpop.permute.xlu1 %14647 }
 0x52d   :  { %v14791_v28 = vrot.slane %v14648_v7, %v23878_v59  ;;  %v11101_v52 = vsel %vm1784_vm9, %v11100_v29, %v11096_v35 }
 0x52e   :  { %v14651_v45 = vpop.permute.xlu0 %14650 }
 0x52f   :  { %v14796_v12 = vrot.slane %v14651_v45, %v23887_v41  ;;  %v14792_v44 = vsel %vm1777_vm8, %v14791_v28, %v14787_v36 }
 0x530   :  { %v14603_v25 = vpop.permute.xlu1 %14602 }
 0x531   :  { %v14717_v9 = vrot.slane %v14603_v25, %v23887_v41  ;;  %v14797_v45 = vsel %vm1784_vm9, %v14796_v12, %v14792_v44 }
 0x532   :  { %v22319_v56 = vpop.permute.xlu0 %14605 }
 0x533   :  { %v14718_v41 = vsel %vm1784_vm9, %v14717_v9, %v14713_v17  ;;  %v14722_v25 = vrot.slane %v22319_v56, %v23885_v46 }
 0x534   :  { %v10958_v39 = vpop.permute.xlu1 %10957 }
 0x535   :  { %v11105_v15 = vrot.slane %v10958_v39, %v23885_v46  ;;  %v14723_v3 = vsel %vm1791_vm10, %v14722_v25, %v14718_v41 }
 0x536   :  { %v10961_v23 = vpop.permute.xlu0 %10960 }
 0x537   :  { %v11110_v1 = vrot.slane %v10961_v23, %v23969_v34  ;;  %v11106_v7 = vsel %vm1791_vm10, %v11105_v15, %v11101_v52 }
 0x538   :  { %v14654_v11 = vpop.permute.xlu1 %14653 }
 0x539   :  { %v14801_v59 = vrot.slane %v14654_v11, %v23885_v46  ;;  %v11111_v61 = vsel %vm1798_vm11, %v11110_v1, %v11106_v7  ;;  %v23971_v11 = vld [vmem:[#allocation159_spill] sm:$0xff]  ;;  %v15320_v7 = vld [vmem:[%s22425_s3] ss:$0 sm:$0xff] }
 0x53a   :  { %v22327_v50 = vpop.permute.xlu0 %14656  ;;  %v23972_v46 = vld [vmem:[#allocation19_spill] sm:$0xff] }
 0x53b   :  { %v14806_v23 = vrot.slane %v22327_v50, %v23969_v34  ;;  %v14802_v32 = vsel %vm1791_vm10, %v14801_v59, %v14797_v45 }
 0x53c   :  { %v14609_v14 = vpop.permute.xlu1 %14608 }
 0x53d   :  { %v14727_v33 = vrot.slane %v14609_v14, %v23969_v34  ;;  %v14807_v21 = vsel %vm1798_vm11, %v14806_v23, %v14802_v32 }
 0x53e   :  { %v14612_v20 = vpop.permute.xlu0 %14611 }
 0x53f   :  { %v14728_v50 = vsel %vm1798_vm11, %v14727_v33, %v14723_v3  ;;  %v14732_v14 = vrot.slane %v14612_v20, %v23970_v5 }
 0x540   :  { %v10964_v55 = vpop.permute.xlu1 %10963 }
 0x541   :  { %v11115_v39 = vrot.slane %v10964_v55, %v23970_v5  ;;  %v14733_v20 = vsel %vm1805_vm12, %v14732_v14, %v14728_v50 }
 0x542   :  { %v10967_v24 = vpop.permute.xlu0 %10966 }
 0x543   :  { %v11120_v51 = vrot.slane %v10967_v24, %v23971_v11  ;;  %v11116_v26 = vsel %vm1805_vm12, %v11115_v39, %v11111_v61 }
 0x544   :  { %v14660_v2 = vpop.permute.xlu1 %14659 }
 0x545   :  { %v14811_v60 = vrot.slane %v14660_v2, %v23970_v5  ;;  %v11121_v4 = vsel %vm1812_vm13, %v11120_v51, %v11116_v26 }
 0x546   :  { %v14663_v22 = vpop.permute.xlu0 %14662 }
 0x547   :  { %v14816_v48 = vrot.slane %v14663_v22, %v23971_v11  ;;  %v14812_v58 = vsel %vm1805_vm12, %v14811_v60, %v14807_v21 }
 0x548   :  { %v14615_v57 = vpop.permute.xlu1 %14614 }
 0x549   :  { %v14737_v38 = vrot.slane %v14615_v57, %v23971_v11  ;;  %v14817_v43 = vsel %vm1812_vm13, %v14816_v48, %v14812_v58 }
 0x54a   :  { %v14618_v27 = vpop.permute.xlu0 %14617 }
 0x54b   :  { %v14742_v10 = vrot.slane %v14618_v27, %v23972_v46  ;;  %v14738_v49 = vsel %vm1812_vm13, %v14737_v38, %v14733_v20 }
 0x54c   :  { %v10970_v54 = vpop.permute.xlu1 %10969 }
 0x54d   :  { %v11125_v56 = vrot.slane %v10970_v54, %v23972_v46  ;;  %v14743_v15 = vsel %vm1819_vm14, %v14742_v10, %v14738_v49 }
 0x54e   :  { %v10973_v18 = vpop.permute.xlu0 %10972 }
 0x54f   :  { %v11126_v13 = vsel %vm1819_vm14, %v11125_v56, %v11121_v4  ;;  %v11130_v40 = vrot.slane %v10973_v18, %v23973_v53 }
 0x550   :  { %v14666_v8 = vpop.permute.xlu1 %14665 }
 0x551   :  { %v11131_v31 = vsel %vm23974_vm1, %v11130_v40, %v11126_v13  ;;  %v14821_v55 = vrot.slane %v14666_v8, %v23972_v46 }
 0x552   :  { %v11132_v62 = vsel %vm23976_vm2, %v11131_v31, %v23975_v16  ;;  %v14669_v6 = vpop.permute.xlu0 %14668 }
 0x553   :  { %15311 = vst.sshfl [vmem:[#allocation3 + $0x4] sm:$0x3 pattern:$0x76325410] %v11132_v62  ;;  %v14826_v29 = vrot.slane %v14669_v6, %v23973_v53  ;;  %v14822_v28 = vsel %vm1819_vm14, %v14821_v55, %v14817_v43 }
 0x554   :  { %v14621_v24 = vpop.permute.xlu1 %14620 }
 0x555   :  { %v14747_v35 = vrot.slane %v14621_v24, %v23973_v53  ;;  %v14827_v47 = vsel %vm23977_vm3, %v14826_v29, %v14822_v28 }
 0x557   :  { %v14748_v37 = vsel %vm23978_vm4, %v14747_v35, %v14743_v15 }
 0x558   :  { %v14828_v2 = vsel %vm23979_vm5, %v14827_v47, %v14748_v37 }
 0x559   :  { %15313 = vst.sshfl [vmem:[#allocation3 + $0x6] sm:$0x3 pattern:$0x76325410] %v14828_v2 }
 0x560   :  { %v14839_v36 = vld [vmem:[#allocation3] sm:$0xff] }
 0x561   :  { %v15033_v30 = vmul.f32 0.020408163, %v14839_v36 }
 0x563   :  { %v15056_v12 = vmul.f32 %v15054_v0, %v15033_v30 }
 0x565   :  { %v15136_v9 = vrot.slane %v15056_v12, %v16649_v42  ;;  %v15129_v52 = vcombine.high %v15056_v12, %v15056_v12 }
 0x567   :  { %v15144_v44 = vcombine.high %v15136_v9, %v15136_v9  ;;  %v15143_v34 = vrot.slane %v15129_v52, %v16649_v42  ;;  %v15321_v42 = vld [vmem:[%s22426_s4] ss:$0 sm:$0xff] }
 0x569   :  { %15214 = vmatprep.mubr.f32.mxu0 %v15144_v44  ;;  %v15145_v1 = vcombine.high %v15143_v34, %v15143_v34 }
 0x56a   :  { %15215 = vmatmul.mubr.f32.vlgmr.msra.gmra.mrb[0].mxu0 %v15136_v9 }
 0x56b   :  { %15284 = vmatprep.mubr.f32.mxu1 %v15145_v1 }
 0x56c   :  { %15285 = vmatmul.mubr.f32.vlgmr.msra.gmra.mrb[0].mxu1 %v15143_v34 }
 0x63d   :  { %v15354_v22 = vpop.f32.mrb[0].mxu0 }
 0x63e   :  { %v15355_v59 = vpop.f32.mrb[1].mxu0 }
 0x63f   :  { %v15356_v5 = vadd.f32 %v15355_v59, %v15354_v22  ;;  %v15389_v19 = vpop.f32.mrb[0].mxu1 }
 0x640   :  { %v15390_v63 = vpop.f32.mrb[1].mxu1 }
 0x641   :  { %v15217_v0 = vadd.f32 %v15356_v5, %v15320_v7  ;;  %v15391_v39 = vadd.f32 %v15390_v63, %v15389_v19 }
 0x643   :  { %v15287_v17 = vadd.f32 %v15391_v39, %v15217_v0 }
 0x645   :  { %15483 = vtanh.f32 %v15287_v17 }
 0x64f   :  { %v15484_v57 = vpop.eup %15483 }
 0x650   :  { %v15292_v45 = vsub.f32 %v15484_v57, %v15287_v17 }
 0x652   :  { %v15299_v41 = vmul.f32 %v15321_v42, %v15292_v45 }
 0x654   :  { %v15300_v25 = vadd.f32 %v15299_v41, %v15287_v17 }
 0x656   :  { %15301 = vst [vmem:[%s22427_s5] sm:$0x3] %v15300_v25 }

</bundles_post_ra>
